<compile_context>
chip_gen: v7x
topology: tpu7x:2x2x1
jax: 0.10.0
libtpu: 0.0.40
codegen_flags: <defaults>
</compile_context>

<pallas_src>
import functools

import jax
import jax.numpy as jnp
from jax.experimental import pallas as pl
from jax.experimental.pallas import tpu as pltpu


def _round_up(x, m):
    return (x + m - 1) // m * m


try:  # single-buffer mode for grid-constant blocks (supported in recent JAX)
    _BUFFERED_ONE = pl.Buffered(1)
except Exception:  # pragma: no cover
    _BUFFERED_ONE = None


# ------------------------------- fused kernel --------------------------------

def _sign_fused_kernel(*refs, H, n_layers):
    """One grid step: full SIGN forward for one tile of node rows.

    Ref layout (inputs then output):
      refs[0]              : alphas, SMEM (H+2,)  [hop-FFN PReLUs, model PReLU, project PReLU]
      refs[1 : 1+H]        : per-hop feature tiles                 (tile_n, in_feats)
      next 2*H*n_layers    : inception (W, b) pairs, hop-major then layer
      next H               : project layer-0 weight, one slab/hop  (hidden, w0_out)
      next 1               : project layer-0 bias                  (1, w0_out)
      next 2*(n_layers-1)  : remaining project (W, b) pairs
      refs[-1]             : output tile                           (tile_n, out_feats)
    """
    alphas_ref = refs[0]
    pos = 1
    feat_refs = refs[pos:pos + H]; pos += H
    inc_refs = refs[pos:pos + 2 * H * n_layers]; pos += 2 * H * n_layers
    p0w_refs = refs[pos:pos + H]; pos += H
    p0b_ref = refs[pos]; pos += 1
    proj_refs = refs[pos:pos + 2 * (n_layers - 1)]; pos += 2 * (n_layers - 1)
    o_ref = refs[pos]

    def prelu(x, a):
        return jnp.where(x >= 0, x, a * x)

    alpha_model = alphas_ref[H]       # model-level PReLU (dropout = identity in eval)
    alpha_proj = alphas_ref[H + 1]    # project-FFN PReLU

    # --- inception FFNs + accumulated first project layer (replaces concat) ---
    z = None
    for h in range(H):
        x = feat_refs[h][...]
        for l in range(n_layers):
            w_ref = inc_refs[2 * (h * n_layers + l)]
            b = inc_refs[2 * (h * n_layers + l) + 1][...]
            x = jnp.dot(x.astype(w_ref.dtype), w_ref[...],
                        preferred_element_type=jnp.float32) + b
            if l < n_layers - 1:              # FFN PReLU (dropout = identity in eval)
                x = prelu(x, alphas_ref[h])
        # model PReLU, then this hop's slab of the project layer-0 weight.
        # sum_h PReLU(hop_h) @ W0[h]  ==  PReLU(concat(hops)) @ W0  (no concat copy).
        x = prelu(x, alpha_model)
        part = jnp.dot(x.astype(p0w_refs[h].dtype), p0w_refs[h][...],
                       preferred_element_type=jnp.float32)
        z = part if z is None else z + part
    z = z + p0b_ref[...]

    # --- remaining project layers ---
    for l in range(n_layers - 1):
        z = prelu(z, alpha_proj)
        w_ref = proj_refs[2 * l]
        b = proj_refs[2 * l + 1][...]
        z = jnp.dot(z.astype(w_ref.dtype), w_ref[...],
                    preferred_element_type=jnp.float32) + b

    o_ref[...] = z.astype(o_ref.dtype)


# --------------------------- parameter initialization ------------------------

def init_linear(key, fin, fout):
    # nn.init.xavier_uniform_(weight, gain=calculate_gain('relu')), bias = 0
    gain = 2.0 ** 0.5
    bound = gain * (6.0 / (fin + fout)) ** 0.5
    w = jax.random.uniform(key, (fin, fout), jnp.float32, -bound, bound)
    b = jnp.zeros((fout,), jnp.float32)
    return w, b


def init_ffn(key, in_feats, hidden, out_feats, n_layers):
    keys = jax.random.split(key, max(n_layers, 1))
    layers = []
    if n_layers == 1:
        layers.append(init_linear(keys[0], in_feats, out_feats))
    else:
        layers.append(init_linear(keys[0], in_feats, hidden))
        for i in range(n_layers - 2):
            layers.append(init_linear(keys[i + 1], hidden, hidden))
        layers.append(init_linear(keys[-1], hidden, out_feats))
    # nn.PReLU() default: single weight initialized to 0.25
    return {"layers": layers, "alpha": jnp.array([0.25], jnp.float32),
            "n_layers": n_layers}


def init_model(key, in_feats, hidden, out_feats, R, n_layers):
    keys = jax.random.split(key, R + 2)
    inception = [init_ffn(keys[h], in_feats, hidden, hidden, n_layers)
                 for h in range(R + 1)]
    project = init_ffn(keys[-1], (R + 1) * hidden, hidden, out_feats, n_layers)
    return {"inception_ffs": inception, "project": project,
            "alpha": jnp.array([0.25], jnp.float32)}


# ------------------------------ fused forward --------------------------------

def model_forward_fused(params, feats, *, in_feats, hidden, out_feats, R,
                        n_layers, tile_n=512, compute_dtype=jnp.bfloat16):
    H = R + 1
    N = feats[0].shape[0]

    # Row tile: multiple of 16 sublanes (safe for bf16 and f32); clamp so the
    # grid keeps >= 2 steps (v7x shards the parallel axis across its 2 TCs).
    tile_n = int(max(16, min(tile_n, _round_up(pl.cdiv(N, 2), 16))))
    grid = (pl.cdiv(N, tile_n),)

    # --- one-time host casts (no padding copies, no extra HBM passes) --------
    feats_c = [f.astype(compute_dtype) for f in feats]

    inc_params = []
    for h in range(H):
        for (w, b) in params["inception_ffs"][h]["layers"]:
            inc_params.append(w.astype(compute_dtype))
            inc_params.append(b.reshape(1, -1).astype(jnp.float32))

    proj_layers = params["project"]["layers"]
    w0, b0 = proj_layers[0]
    # Split the concat weight into per-hop slabs -> in-kernel accumulation.
    p0_ws = [w0[h * hidden:(h + 1) * hidden, :].astype(compute_dtype)
             for h in range(H)]
    p0_b = b0.reshape(1, -1).astype(jnp.float32)
    proj_rest = []
    for (w, b) in proj_layers[1:]:
        proj_rest.append(w.astype(compute_dtype))
        proj_rest.append(b.reshape(1, -1).astype(jnp.float32))

    alphas = jnp.concatenate(
        [params["inception_ffs"][h]["alpha"] for h in range(H)]
        + [params["alpha"], params["project"]["alpha"]]).astype(jnp.float32)

    weight_arrays = inc_params + p0_ws + [p0_b] + proj_rest
    inputs = [alphas] + feats_c + weight_arrays

    # --- BlockSpecs -----------------------------------------------------------
    def _resident_spec(shape):
        # Grid-constant block: single-buffer it when supported (saves VMEM, v7x).
        idx = lambda i: (0,) * len(shape)
        if _BUFFERED_ONE is not None:
            try:
                return pl.BlockSpec(shape, idx, pipeline_mode=_BUFFERED_ONE)
            except TypeError:
                pass
        return pl.BlockSpec(shape, idx)

    def _build_in_specs(single_buffer_weights):
        specs = [pl.BlockSpec(memory_space=pltpu.SMEM)]          # alphas (scalars)
        specs += [pl.BlockSpec((tile_n, in_feats), lambda i: (i, 0))
                  for _ in range(H)]                             # raw, un-padded feats
        for a in weight_arrays:
            specs.append(_resident_spec(a.shape) if single_buffer_weights
                         else pl.BlockSpec(a.shape, lambda i: (0, 0)))
        return specs

    out_specs = pl.BlockSpec((tile_n, out_feats), lambda i: (i, 0))

    # --- advisory cost estimate (real, un-padded flops / bytes) ---------------
    def _ffn_macs(fin, hid, fout, nl):
        return fin * fout if nl == 1 else fin * hid + (nl - 2) * hid * hid + hid * fout

    macs = (H * _ffn_macs(in_feats, hidden, hidden, n_layers)
            + _ffn_macs(H * hidden, hidden, out_feats, n_layers))
    bytes_accessed = int(sum(int(a.size) * a.dtype.itemsize for a in inputs)
                         + N * out_feats * 4)
    cost = pl.CostEstimate(flops=int(2 * N * macs), transcendentals=0,
                           bytes_accessed=bytes_accessed)

    # --- VMEM budget (valid on v5e/v6e 128 MiB and v7x 64 MiB) -----------------
    def _vmem_bytes(shape, dtype):
        it = jnp.dtype(dtype).itemsize
        rows = shape[0] if len(shape) > 1 else 1
        sub = 8 * max(1, 4 // it)
        return _round_up(rows, sub) * _round_up(shape[-1], 128) * it

    wbytes = sum(_vmem_bytes(a.shape, a.dtype) for a in weight_arrays)
    fbytes = 2 * H * _vmem_bytes((tile_n, in_feats), compute_dtype)   # double-buffered
    obytes = 2 * _vmem_bytes((tile_n, out_feats), jnp.float32)
    tbytes = 6 * _vmem_bytes((tile_n, max(hidden, out_feats, in_feats)), jnp.float32)
    vmem_limit = int(min(max(2 * wbytes + fbytes + obytes + tbytes + (8 << 20),
                             32 << 20), 48 << 20))

    kernel = functools.partial(_sign_fused_kernel, H=H, n_layers=n_layers)
    out_shape = jax.ShapeDtypeStruct((N, out_feats), jnp.float32)
    cparams = pltpu.CompilerParams(dimension_semantics=("parallel",),
                                   vmem_limit_bytes=vmem_limit)

    def _run(single_buffer_weights):
        return pl.pallas_call(
            kernel,
            out_shape=out_shape,
            grid=grid,
            in_specs=_build_in_specs(single_buffer_weights),
            out_specs=out_specs,
            compiler_params=cparams,
            cost_estimate=cost,
        )(*inputs)

    if _BUFFERED_ONE is not None:
        try:
            return _run(True)
        except Exception:   # lowering without pipeline_mode support: default buffering
            pass
    return _run(False)


# ---------------------------- pure-JAX reference -----------------------------

def _prelu_ref(x, a):
    return jnp.where(x >= 0, x, a[0] * x)


def _ffn_ref(p, x):
    n_layers = p["n_layers"]
    for i, (w, b) in enumerate(p["layers"]):
        x = x @ w + b
        if i < n_layers - 1:
            x = _prelu_ref(x, p["alpha"])
    return x


def model_forward_ref(params, feats):
    hidden = [_ffn_ref(ff, f) for f, ff in zip(feats, params["inception_ffs"])]
    h = _prelu_ref(jnp.concatenate(hidden, axis=-1), params["alpha"])
    return _ffn_ref(params["project"], h)


# ----------------------------------- main ------------------------------------

if __name__ == "__main__":
    # Small SIGN config: R+1 = 3 hop features, 2-layer FFNs.
    in_feats, hidden, out_feats = 16, 32, 8
    R, n_layers = 2, 2
    N = 500          # deliberately NOT a multiple of the row tile (edge-block path)

    key = jax.random.PRNGKey(0)
    k_params, k_feats = jax.random.split(key)
    params = init_model(k_params, in_feats, hidden, out_feats, R, n_layers)

    fkeys = jax.random.split(k_feats, R + 1)
    feats = [jax.random.normal(fk, (N, in_feats), jnp.float32) for fk in fkeys]

    ref = jax.block_until_ready(model_forward_ref(params, feats))

    # Exact-precision path: tight check of the fused-kernel semantics.
    out_f32 = jax.block_until_ready(model_forward_fused(
        params, feats, in_feats=in_feats, hidden=hidden, out_feats=out_feats,
        R=R, n_layers=n_layers, compute_dtype=jnp.float32))
    assert out_f32.shape == (N, out_feats)
    assert jnp.allclose(out_f32, ref, atol=2e-4, rtol=2e-4), "f32 mismatch vs reference"

    # Fast path: bf16 operands, f32 MXU accumulation (production configuration).
    out_bf16 = jax.block_until_ready(model_forward_fused(
        params, feats, in_feats=in_feats, hidden=hidden, out_feats=out_feats,
        R=R, n_layers=n_layers, compute_dtype=jnp.bfloat16))
    assert out_bf16.shape == (N, out_feats)
    assert jnp.allclose(out_bf16, ref, atol=2.5e-1, rtol=5e-2), "bf16 mismatch vs reference"

    print("KERNEL_OK")
</pallas_src>

<mosaic_0001>
module attributes {stable_mosaic.version = 11 : i64} {
  func.func @_sign_fused_kernel(%arg0: i32, %arg1: memref<5xf32, #tpu.memory_space<smem>>, %arg2: memref<256x16xf32, #tpu.memory_space<vmem>>, %arg3: memref<256x16xf32, #tpu.memory_space<vmem>>, %arg4: memref<256x16xf32, #tpu.memory_space<vmem>>, %arg5: memref<16x32xf32, #tpu.memory_space<vmem>>, %arg6: memref<1x32xf32, #tpu.memory_space<vmem>>, %arg7: memref<32x32xf32, #tpu.memory_space<vmem>>, %arg8: memref<1x32xf32, #tpu.memory_space<vmem>>, %arg9: memref<16x32xf32, #tpu.memory_space<vmem>>, %arg10: memref<1x32xf32, #tpu.memory_space<vmem>>, %arg11: memref<32x32xf32, #tpu.memory_space<vmem>>, %arg12: memref<1x32xf32, #tpu.memory_space<vmem>>, %arg13: memref<16x32xf32, #tpu.memory_space<vmem>>, %arg14: memref<1x32xf32, #tpu.memory_space<vmem>>, %arg15: memref<32x32xf32, #tpu.memory_space<vmem>>, %arg16: memref<1x32xf32, #tpu.memory_space<vmem>>, %arg17: memref<32x32xf32, #tpu.memory_space<vmem>>, %arg18: memref<32x32xf32, #tpu.memory_space<vmem>>, %arg19: memref<32x32xf32, #tpu.memory_space<vmem>>, %arg20: memref<1x32xf32, #tpu.memory_space<vmem>>, %arg21: memref<32x8xf32, #tpu.memory_space<vmem>>, %arg22: memref<1x8xf32, #tpu.memory_space<vmem>>, %arg23: memref<256x8xf32, #tpu.memory_space<vmem>>) attributes {dimension_semantics = [#tpu.dimension_semantics<parallel>], iteration_bounds = array<i64: 2>, scalar_prefetch = 0 : i64, scratch_operands = 0 : i64, tpu.core_type = #tpu.core_type<tc>, window_params = [{transform_indices = @transform_0, window_bounds = array<i64: 5>}, {transform_indices = @transform_1, window_bounds = array<i64: 256, 16>}, {transform_indices = @transform_2, window_bounds = array<i64: 256, 16>}, {transform_indices = @transform_3, window_bounds = array<i64: 256, 16>}, {pipeline_mode = #tpu.pipeline_mode<synchronous>, transform_indices = @transform_4, window_bounds = array<i64: 16, 32>}, {pipeline_mode = #tpu.pipeline_mode<synchronous>, transform_indices = @transform_5, window_bounds = array<i64: 1, 32>}, {pipeline_mode = #tpu.pipeline_mode<synchronous>, transform_indices = @transform_6, window_bounds = array<i64: 32, 32>}, {pipeline_mode = #tpu.pipeline_mode<synchronous>, transform_indices = @transform_7, window_bounds = array<i64: 1, 32>}, {pipeline_mode = #tpu.pipeline_mode<synchronous>, transform_indices = @transform_8, window_bounds = array<i64: 16, 32>}, {pipeline_mode = #tpu.pipeline_mode<synchronous>, transform_indices = @transform_9, window_bounds = array<i64: 1, 32>}, {pipeline_mode = #tpu.pipeline_mode<synchronous>, transform_indices = @transform_10, window_bounds = array<i64: 32, 32>}, {pipeline_mode = #tpu.pipeline_mode<synchronous>, transform_indices = @transform_11, window_bounds = array<i64: 1, 32>}, {pipeline_mode = #tpu.pipeline_mode<synchronous>, transform_indices = @transform_12, window_bounds = array<i64: 16, 32>}, {pipeline_mode = #tpu.pipeline_mode<synchronous>, transform_indices = @transform_13, window_bounds = array<i64: 1, 32>}, {pipeline_mode = #tpu.pipeline_mode<synchronous>, transform_indices = @transform_14, window_bounds = array<i64: 32, 32>}, {pipeline_mode = #tpu.pipeline_mode<synchronous>, transform_indices = @transform_15, window_bounds = array<i64: 1, 32>}, {pipeline_mode = #tpu.pipeline_mode<synchronous>, transform_indices = @transform_16, window_bounds = array<i64: 32, 32>}, {pipeline_mode = #tpu.pipeline_mode<synchronous>, transform_indices = @transform_17, window_bounds = array<i64: 32, 32>}, {pipeline_mode = #tpu.pipeline_mode<synchronous>, transform_indices = @transform_18, window_bounds = array<i64: 32, 32>}, {pipeline_mode = #tpu.pipeline_mode<synchronous>, transform_indices = @transform_19, window_bounds = array<i64: 1, 32>}, {pipeline_mode = #tpu.pipeline_mode<synchronous>, transform_indices = @transform_20, window_bounds = array<i64: 32, 8>}, {pipeline_mode = #tpu.pipeline_mode<synchronous>, transform_indices = @transform_21, window_bounds = array<i64: 1, 8>}, {transform_indices = @transform_22, window_bounds = array<i64: 256, 8>}]} {
    %c3 = arith.constant 3 : index
    %0 = memref.load %arg1[%c3] : memref<5xf32, #tpu.memory_space<smem>>
    %c4 = arith.constant 4 : index
    %1 = memref.load %arg1[%c4] : memref<5xf32, #tpu.memory_space<smem>>
    %c0 = arith.constant 0 : index
    %c0_0 = arith.constant 0 : index
    %2 = vector.load %arg2[%c0, %c0_0] : memref<256x16xf32, #tpu.memory_space<vmem>>, vector<256x16xf32>
    %c0_1 = arith.constant 0 : index
    %c0_2 = arith.constant 0 : index
    %3 = vector.load %arg6[%c0_1, %c0_2] : memref<1x32xf32, #tpu.memory_space<vmem>>, vector<1x32xf32>
    %c0_3 = arith.constant 0 : index
    %c0_4 = arith.constant 0 : index
    %4 = vector.load %arg5[%c0_3, %c0_4] : memref<16x32xf32, #tpu.memory_space<vmem>>, vector<16x32xf32>
    %cst = arith.constant dense<0.000000e+00> : vector<256x32xf32>
    %5 = tpu.matmul %2, %4, %cst {dimension_numbers = #tpu.dot_dimension_numbers<[1], [0], [0], [1], [0, 0, 1, 1], [], []>} : vector<256x16xf32>, vector<16x32xf32>, vector<256x32xf32> -> vector<256x32xf32>
    %6 = vector.broadcast %3 : vector<1x32xf32> to vector<256x32xf32>
    %7 = arith.addf %5, %6 : vector<256x32xf32>
    %c0_5 = arith.constant 0 : index
    %8 = memref.load %arg1[%c0_5] : memref<5xf32, #tpu.memory_space<smem>>
    %cst_6 = arith.constant 0.000000e+00 : f32
    %9 = vector.broadcast %cst_6 : f32 to vector<256x32xf32>
    %10 = arith.cmpf oge, %7, %9 : vector<256x32xf32>
    %11 = vector.broadcast %8 : f32 to vector<256x32xf32>
    %12 = arith.mulf %11, %7 : vector<256x32xf32>
    %13 = arith.select %10, %7, %12 : vector<256x32xi1>, vector<256x32xf32>
    %c0_7 = arith.constant 0 : index
    %c0_8 = arith.constant 0 : index
    %14 = vector.load %arg8[%c0_7, %c0_8] : memref<1x32xf32, #tpu.memory_space<vmem>>, vector<1x32xf32>
    %c0_9 = arith.constant 0 : index
    %c0_10 = arith.constant 0 : index
    %15 = vector.load %arg7[%c0_9, %c0_10] : memref<32x32xf32, #tpu.memory_space<vmem>>, vector<32x32xf32>
    %cst_11 = arith.constant dense<0.000000e+00> : vector<256x32xf32>
    %16 = tpu.matmul %13, %15, %cst_11 {dimension_numbers = #tpu.dot_dimension_numbers<[1], [0], [0], [1], [0, 0, 1, 1], [], []>} : vector<256x32xf32>, vector<32x32xf32>, vector<256x32xf32> -> vector<256x32xf32>
    %17 = vector.broadcast %14 : vector<1x32xf32> to vector<256x32xf32>
    %18 = arith.addf %16, %17 : vector<256x32xf32>
    %cst_12 = arith.constant 0.000000e+00 : f32
    %19 = vector.broadcast %cst_12 : f32 to vector<256x32xf32>
    %20 = arith.cmpf oge, %18, %19 : vector<256x32xf32>
    %21 = vector.broadcast %0 : f32 to vector<256x32xf32>
    %22 = arith.mulf %21, %18 : vector<256x32xf32>
    %23 = arith.select %20, %18, %22 : vector<256x32xi1>, vector<256x32xf32>
    %c0_13 = arith.constant 0 : index
    %c0_14 = arith.constant 0 : index
    %24 = vector.load %arg17[%c0_13, %c0_14] : memref<32x32xf32, #tpu.memory_space<vmem>>, vector<32x32xf32>
    %cst_15 = arith.constant dense<0.000000e+00> : vector<256x32xf32>
    %25 = tpu.matmul %23, %24, %cst_15 {dimension_numbers = #tpu.dot_dimension_numbers<[1], [0], [0], [1], [0, 0, 1, 1], [], []>} : vector<256x32xf32>, vector<32x32xf32>, vector<256x32xf32> -> vector<256x32xf32>
    %c0_16 = arith.constant 0 : index
    %c0_17 = arith.constant 0 : index
    %26 = vector.load %arg3[%c0_16, %c0_17] : memref<256x16xf32, #tpu.memory_space<vmem>>, vector<256x16xf32>
    %c0_18 = arith.constant 0 : index
    %c0_19 = arith.constant 0 : index
    %27 = vector.load %arg10[%c0_18, %c0_19] : memref<1x32xf32, #tpu.memory_space<vmem>>, vector<1x32xf32>
    %c0_20 = arith.constant 0 : index
    %c0_21 = arith.constant 0 : index
    %28 = vector.load %arg9[%c0_20, %c0_21] : memref<16x32xf32, #tpu.memory_space<vmem>>, vector<16x32xf32>
    %cst_22 = arith.constant dense<0.000000e+00> : vector<256x32xf32>
    %29 = tpu.matmul %26, %28, %cst_22 {dimension_numbers = #tpu.dot_dimension_numbers<[1], [0], [0], [1], [0, 0, 1, 1], [], []>} : vector<256x16xf32>, vector<16x32xf32>, vector<256x32xf32> -> vector<256x32xf32>
    %30 = vector.broadcast %27 : vector<1x32xf32> to vector<256x32xf32>
    %31 = arith.addf %29, %30 : vector<256x32xf32>
    %c1 = arith.constant 1 : index
    %32 = memref.load %arg1[%c1] : memref<5xf32, #tpu.memory_space<smem>>
    %cst_23 = arith.constant 0.000000e+00 : f32
    %33 = vector.broadcast %cst_23 : f32 to vector<256x32xf32>
    %34 = arith.cmpf oge, %31, %33 : vector<256x32xf32>
    %35 = vector.broadcast %32 : f32 to vector<256x32xf32>
    %36 = arith.mulf %35, %31 : vector<256x32xf32>
    %37 = arith.select %34, %31, %36 : vector<256x32xi1>, vector<256x32xf32>
    %c0_24 = arith.constant 0 : index
    %c0_25 = arith.constant 0 : index
    %38 = vector.load %arg12[%c0_24, %c0_25] : memref<1x32xf32, #tpu.memory_space<vmem>>, vector<1x32xf32>
    %c0_26 = arith.constant 0 : index
    %c0_27 = arith.constant 0 : index
    %39 = vector.load %arg11[%c0_26, %c0_27] : memref<32x32xf32, #tpu.memory_space<vmem>>, vector<32x32xf32>
    %cst_28 = arith.constant dense<0.000000e+00> : vector<256x32xf32>
    %40 = tpu.matmul %37, %39, %cst_28 {dimension_numbers = #tpu.dot_dimension_numbers<[1], [0], [0], [1], [0, 0, 1, 1], [], []>} : vector<256x32xf32>, vector<32x32xf32>, vector<256x32xf32> -> vector<256x32xf32>
    %41 = vector.broadcast %38 : vector<1x32xf32> to vector<256x32xf32>
    %42 = arith.addf %40, %41 : vector<256x32xf32>
    %cst_29 = arith.constant 0.000000e+00 : f32
    %43 = vector.broadcast %cst_29 : f32 to vector<256x32xf32>
    %44 = arith.cmpf oge, %42, %43 : vector<256x32xf32>
    %45 = vector.broadcast %0 : f32 to vector<256x32xf32>
    %46 = arith.mulf %45, %42 : vector<256x32xf32>
    %47 = arith.select %44, %42, %46 : vector<256x32xi1>, vector<256x32xf32>
    %c0_30 = arith.constant 0 : index
    %c0_31 = arith.constant 0 : index
    %48 = vector.load %arg18[%c0_30, %c0_31] : memref<32x32xf32, #tpu.memory_space<vmem>>, vector<32x32xf32>
    %cst_32 = arith.constant dense<0.000000e+00> : vector<256x32xf32>
    %49 = tpu.matmul %47, %48, %cst_32 {dimension_numbers = #tpu.dot_dimension_numbers<[1], [0], [0], [1], [0, 0, 1, 1], [], []>} : vector<256x32xf32>, vector<32x32xf32>, vector<256x32xf32> -> vector<256x32xf32>
    %50 = arith.addf %25, %49 : vector<256x32xf32>
    %c0_33 = arith.constant 0 : index
    %c0_34 = arith.constant 0 : index
    %51 = vector.load %arg4[%c0_33, %c0_34] : memref<256x16xf32, #tpu.memory_space<vmem>>, vector<256x16xf32>
    %c0_35 = arith.constant 0 : index
    %c0_36 = arith.constant 0 : index
    %52 = vector.load %arg14[%c0_35, %c0_36] : memref<1x32xf32, #tpu.memory_space<vmem>>, vector<1x32xf32>
    %c0_37 = arith.constant 0 : index
    %c0_38 = arith.constant 0 : index
    %53 = vector.load %arg13[%c0_37, %c0_38] : memref<16x32xf32, #tpu.memory_space<vmem>>, vector<16x32xf32>
    %cst_39 = arith.constant dense<0.000000e+00> : vector<256x32xf32>
    %54 = tpu.matmul %51, %53, %cst_39 {dimension_numbers = #tpu.dot_dimension_numbers<[1], [0], [0], [1], [0, 0, 1, 1], [], []>} : vector<256x16xf32>, vector<16x32xf32>, vector<256x32xf32> -> vector<256x32xf32>
    %55 = vector.broadcast %52 : vector<1x32xf32> to vector<256x32xf32>
    %56 = arith.addf %54, %55 : vector<256x32xf32>
    %c2 = arith.constant 2 : index
    %57 = memref.load %arg1[%c2] : memref<5xf32, #tpu.memory_space<smem>>
    %cst_40 = arith.constant 0.000000e+00 : f32
    %58 = vector.broadcast %cst_40 : f32 to vector<256x32xf32>
    %59 = arith.cmpf oge, %56, %58 : vector<256x32xf32>
    %60 = vector.broadcast %57 : f32 to vector<256x32xf32>
    %61 = arith.mulf %60, %56 : vector<256x32xf32>
    %62 = arith.select %59, %56, %61 : vector<256x32xi1>, vector<256x32xf32>
    %c0_41 = arith.constant 0 : index
    %c0_42 = arith.constant 0 : index
    %63 = vector.load %arg16[%c0_41, %c0_42] : memref<1x32xf32, #tpu.memory_space<vmem>>, vector<1x32xf32>
    %c0_43 = arith.constant 0 : index
    %c0_44 = arith.constant 0 : index
    %64 = vector.load %arg15[%c0_43, %c0_44] : memref<32x32xf32, #tpu.memory_space<vmem>>, vector<32x32xf32>
    %cst_45 = arith.constant dense<0.000000e+00> : vector<256x32xf32>
    %65 = tpu.matmul %62, %64, %cst_45 {dimension_numbers = #tpu.dot_dimension_numbers<[1], [0], [0], [1], [0, 0, 1, 1], [], []>} : vector<256x32xf32>, vector<32x32xf32>, vector<256x32xf32> -> vector<256x32xf32>
    %66 = vector.broadcast %63 : vector<1x32xf32> to vector<256x32xf32>
    %67 = arith.addf %65, %66 : vector<256x32xf32>
    %cst_46 = arith.constant 0.000000e+00 : f32
    %68 = vector.broadcast %cst_46 : f32 to vector<256x32xf32>
    %69 = arith.cmpf oge, %67, %68 : vector<256x32xf32>
    %70 = vector.broadcast %0 : f32 to vector<256x32xf32>
    %71 = arith.mulf %70, %67 : vector<256x32xf32>
    %72 = arith.select %69, %67, %71 : vector<256x32xi1>, vector<256x32xf32>
    %c0_47 = arith.constant 0 : index
    %c0_48 = arith.constant 0 : index
    %73 = vector.load %arg19[%c0_47, %c0_48] : memref<32x32xf32, #tpu.memory_space<vmem>>, vector<32x32xf32>
    %cst_49 = arith.constant dense<0.000000e+00> : vector<256x32xf32>
    %74 = tpu.matmul %72, %73, %cst_49 {dimension_numbers = #tpu.dot_dimension_numbers<[1], [0], [0], [1], [0, 0, 1, 1], [], []>} : vector<256x32xf32>, vector<32x32xf32>, vector<256x32xf32> -> vector<256x32xf32>
    %75 = arith.addf %50, %74 : vector<256x32xf32>
    %c0_50 = arith.constant 0 : index
    %c0_51 = arith.constant 0 : index
    %76 = vector.load %arg20[%c0_50, %c0_51] : memref<1x32xf32, #tpu.memory_space<vmem>>, vector<1x32xf32>
    %77 = vector.broadcast %76 : vector<1x32xf32> to vector<256x32xf32>
    %78 = arith.addf %75, %77 : vector<256x32xf32>
    %cst_52 = arith.constant 0.000000e+00 : f32
    %79 = vector.broadcast %cst_52 : f32 to vector<256x32xf32>
    %80 = arith.cmpf oge, %78, %79 : vector<256x32xf32>
    %81 = vector.broadcast %1 : f32 to vector<256x32xf32>
    %82 = arith.mulf %81, %78 : vector<256x32xf32>
    %83 = arith.select %80, %78, %82 : vector<256x32xi1>, vector<256x32xf32>
    %c0_53 = arith.constant 0 : index
    %c0_54 = arith.constant 0 : index
    %84 = vector.load %arg22[%c0_53, %c0_54] : memref<1x8xf32, #tpu.memory_space<vmem>>, vector<1x8xf32>
    %c0_55 = arith.constant 0 : index
    %c0_56 = arith.constant 0 : index
    %85 = vector.load %arg21[%c0_55, %c0_56] : memref<32x8xf32, #tpu.memory_space<vmem>>, vector<32x8xf32>
    %cst_57 = arith.constant dense<0.000000e+00> : vector<256x8xf32>
    %86 = tpu.matmul %83, %85, %cst_57 {dimension_numbers = #tpu.dot_dimension_numbers<[1], [0], [0], [1], [0, 0, 1, 1], [], []>} : vector<256x32xf32>, vector<32x8xf32>, vector<256x8xf32> -> vector<256x8xf32>
    %87 = vector.broadcast %84 : vector<1x8xf32> to vector<256x8xf32>
    %88 = arith.addf %86, %87 : vector<256x8xf32>
    %c0_58 = arith.constant 0 : index
    %c0_59 = arith.constant 0 : index
    %89 = vector.load %arg23[%c0_58, %c0_59] : memref<256x8xf32, #tpu.memory_space<vmem>>, vector<256x8xf32>
    tpu.vector_store %arg23[%c0_58, %c0_59], %88 {strides = array<i32>} : memref<256x8xf32, #tpu.memory_space<vmem>>, vector<256x8xf32>,
    return
  }
  func.func @transform_0(%arg0: i32) -> i32 {
    %c0_i32 = arith.constant 0 : i32
    %c0_i32_0 = arith.constant 0 : i32
    return %c0_i32 : i32
  }
  func.func @transform_1(%arg0: i32) -> (i32, i32) {
    %c0_i32 = arith.constant 0 : i32
    %c0_i32_0 = arith.constant 0 : i32
    return %arg0, %c0_i32 : i32, i32
  }
  func.func @transform_2(%arg0: i32) -> (i32, i32) {
    %c0_i32 = arith.constant 0 : i32
    %c0_i32_0 = arith.constant 0 : i32
    return %arg0, %c0_i32 : i32, i32
  }
  func.func @transform_3(%arg0: i32) -> (i32, i32) {
    %c0_i32 = arith.constant 0 : i32
    %c0_i32_0 = arith.constant 0 : i32
    return %arg0, %c0_i32 : i32, i32
  }
  func.func @transform_4(%arg0: i32) -> (i32, i32) {
    %c0_i32 = arith.constant 0 : i32
    %c0_i32_0 = arith.constant 0 : i32
    %c0_i32_1 = arith.constant 0 : i32
    return %c0_i32, %c0_i32_0 : i32, i32
  }
  func.func @transform_5(%arg0: i32) -> (i32, i32) {
    %c0_i32 = arith.constant 0 : i32
    %c0_i32_0 = arith.constant 0 : i32
    %c0_i32_1 = arith.constant 0 : i32
    return %c0_i32, %c0_i32_0 : i32, i32
  }
  func.func @transform_6(%arg0: i32) -> (i32, i32) {
    %c0_i32 = arith.constant 0 : i32
    %c0_i32_0 = arith.constant 0 : i32
    %c0_i32_1 = arith.constant 0 : i32
    return %c0_i32, %c0_i32_0 : i32, i32
  }
  func.func @transform_7(%arg0: i32) -> (i32, i32) {
    %c0_i32 = arith.constant 0 : i32
    %c0_i32_0 = arith.constant 0 : i32
    %c0_i32_1 = arith.constant 0 : i32
    return %c0_i32, %c0_i32_0 : i32, i32
  }
  func.func @transform_8(%arg0: i32) -> (i32, i32) {
    %c0_i32 = arith.constant 0 : i32
    %c0_i32_0 = arith.constant 0 : i32
    %c0_i32_1 = arith.constant 0 : i32
    return %c0_i32, %c0_i32_0 : i32, i32
  }
  func.func @transform_9(%arg0: i32) -> (i32, i32) {
    %c0_i32 = arith.constant 0 : i32
    %c0_i32_0 = arith.constant 0 : i32
    %c0_i32_1 = arith.constant 0 : i32
    return %c0_i32, %c0_i32_0 : i32, i32
  }
  func.func @transform_10(%arg0: i32) -> (i32, i32) {
    %c0_i32 = arith.constant 0 : i32
    %c0_i32_0 = arith.constant 0 : i32
    %c0_i32_1 = arith.constant 0 : i32
    return %c0_i32, %c0_i32_0 : i32, i32
  }
  func.func @transform_11(%arg0: i32) -> (i32, i32) {
    %c0_i32 = arith.constant 0 : i32
    %c0_i32_0 = arith.constant 0 : i32
    %c0_i32_1 = arith.constant 0 : i32
    return %c0_i32, %c0_i32_0 : i32, i32
  }
  func.func @transform_12(%arg0: i32) -> (i32, i32) {
    %c0_i32 = arith.constant 0 : i32
    %c0_i32_0 = arith.constant 0 : i32
    %c0_i32_1 = arith.constant 0 : i32
    return %c0_i32, %c0_i32_0 : i32, i32
  }
  func.func @transform_13(%arg0: i32) -> (i32, i32) {
    %c0_i32 = arith.constant 0 : i32
    %c0_i32_0 = arith.constant 0 : i32
    %c0_i32_1 = arith.constant 0 : i32
    return %c0_i32, %c0_i32_0 : i32, i32
  }
  func.func @transform_14(%arg0: i32) -> (i32, i32) {
    %c0_i32 = arith.constant 0 : i32
    %c0_i32_0 = arith.constant 0 : i32
    %c0_i32_1 = arith.constant 0 : i32
    return %c0_i32, %c0_i32_0 : i32, i32
  }
  func.func @transform_15(%arg0: i32) -> (i32, i32) {
    %c0_i32 = arith.constant 0 : i32
    %c0_i32_0 = arith.constant 0 : i32
    %c0_i32_1 = arith.constant 0 : i32
    return %c0_i32, %c0_i32_0 : i32, i32
  }
  func.func @transform_16(%arg0: i32) -> (i32, i32) {
    %c0_i32 = arith.constant 0 : i32
    %c0_i32_0 = arith.constant 0 : i32
    %c0_i32_1 = arith.constant 0 : i32
    return %c0_i32, %c0_i32_0 : i32, i32
  }
  func.func @transform_17(%arg0: i32) -> (i32, i32) {
    %c0_i32 = arith.constant 0 : i32
    %c0_i32_0 = arith.constant 0 : i32
    %c0_i32_1 = arith.constant 0 : i32
    return %c0_i32, %c0_i32_0 : i32, i32
  }
  func.func @transform_18(%arg0: i32) -> (i32, i32) {
    %c0_i32 = arith.constant 0 : i32
    %c0_i32_0 = arith.constant 0 : i32
    %c0_i32_1 = arith.constant 0 : i32
    return %c0_i32, %c0_i32_0 : i32, i32
  }
  func.func @transform_19(%arg0: i32) -> (i32, i32) {
    %c0_i32 = arith.constant 0 : i32
    %c0_i32_0 = arith.constant 0 : i32
    %c0_i32_1 = arith.constant 0 : i32
    return %c0_i32, %c0_i32_0 : i32, i32
  }
  func.func @transform_20(%arg0: i32) -> (i32, i32) {
    %c0_i32 = arith.constant 0 : i32
    %c0_i32_0 = arith.constant 0 : i32
    %c0_i32_1 = arith.constant 0 : i32
    return %c0_i32, %c0_i32_0 : i32, i32
  }
  func.func @transform_21(%arg0: i32) -> (i32, i32) {
    %c0_i32 = arith.constant 0 : i32
    %c0_i32_0 = arith.constant 0 : i32
    %c0_i32_1 = arith.constant 0 : i32
    return %c0_i32, %c0_i32_0 : i32, i32
  }
  func.func @transform_22(%arg0: i32) -> (i32, i32) {
    %c0_i32 = arith.constant 0 : i32
    %c0_i32_0 = arith.constant 0 : i32
    return %arg0, %c0_i32 : i32, i32
  }
}

module attributes {stable_mosaic.version = 11 : i64} {
  func.func @_sign_fused_kernel(%arg0: i32, %arg1: memref<5xf32, #tpu.memory_space<smem>>, %arg2: memref<256x16xf32, #tpu.memory_space<vmem>>, %arg3: memref<256x16xf32, #tpu.memory_space<vmem>>, %arg4: memref<256x16xf32, #tpu.memory_space<vmem>>, %arg5: memref<16x32xf32, #tpu.memory_space<vmem>>, %arg6: memref<1x32xf32, #tpu.memory_space<vmem>>, %arg7: memref<32x32xf32, #tpu.memory_space<vmem>>, %arg8: memref<1x32xf32, #tpu.memory_space<vmem>>, %arg9: memref<16x32xf32, #tpu.memory_space<vmem>>, %arg10: memref<1x32xf32, #tpu.memory_space<vmem>>, %arg11: memref<32x32xf32, #tpu.memory_space<vmem>>, %arg12: memref<1x32xf32, #tpu.memory_space<vmem>>, %arg13: memref<16x32xf32, #tpu.memory_space<vmem>>, %arg14: memref<1x32xf32, #tpu.memory_space<vmem>>, %arg15: memref<32x32xf32, #tpu.memory_space<vmem>>, %arg16: memref<1x32xf32, #tpu.memory_space<vmem>>, %arg17: memref<32x32xf32, #tpu.memory_space<vmem>>, %arg18: memref<32x32xf32, #tpu.memory_space<vmem>>, %arg19: memref<32x32xf32, #tpu.memory_space<vmem>>, %arg20: memref<1x32xf32, #tpu.memory_space<vmem>>, %arg21: memref<32x8xf32, #tpu.memory_space<vmem>>, %arg22: memref<1x8xf32, #tpu.memory_space<vmem>>, %arg23: memref<256x8xf32, #tpu.memory_space<vmem>>) attributes {dimension_semantics = [#tpu.dimension_semantics<parallel>], iteration_bounds = array<i64: 2>, scalar_prefetch = 0 : i64, scratch_operands = 0 : i64, tpu.core_type = #tpu.core_type<tc>, window_params = [{transform_indices = @transform_0, window_bounds = array<i64: 5>}, {transform_indices = @transform_1, window_bounds = array<i64: 256, 16>}, {transform_indices = @transform_2, window_bounds = array<i64: 256, 16>}, {transform_indices = @transform_3, window_bounds = array<i64: 256, 16>}, {pipeline_mode = #tpu.pipeline_mode<synchronous>, transform_indices = @transform_4, window_bounds = array<i64: 16, 32>}, {pipeline_mode = #tpu.pipeline_mode<synchronous>, transform_indices = @transform_5, window_bounds = array<i64: 1, 32>}, {pipeline_mode = #tpu.pipeline_mode<synchronous>, transform_indices = @transform_6, window_bounds = array<i64: 32, 32>}, {pipeline_mode = #tpu.pipeline_mode<synchronous>, transform_indices = @transform_7, window_bounds = array<i64: 1, 32>}, {pipeline_mode = #tpu.pipeline_mode<synchronous>, transform_indices = @transform_8, window_bounds = array<i64: 16, 32>}, {pipeline_mode = #tpu.pipeline_mode<synchronous>, transform_indices = @transform_9, window_bounds = array<i64: 1, 32>}, {pipeline_mode = #tpu.pipeline_mode<synchronous>, transform_indices = @transform_10, window_bounds = array<i64: 32, 32>}, {pipeline_mode = #tpu.pipeline_mode<synchronous>, transform_indices = @transform_11, window_bounds = array<i64: 1, 32>}, {pipeline_mode = #tpu.pipeline_mode<synchronous>, transform_indices = @transform_12, window_bounds = array<i64: 16, 32>}, {pipeline_mode = #tpu.pipeline_mode<synchronous>, transform_indices = @transform_13, window_bounds = array<i64: 1, 32>}, {pipeline_mode = #tpu.pipeline_mode<synchronous>, transform_indices = @transform_14, window_bounds = array<i64: 32, 32>}, {pipeline_mode = #tpu.pipeline_mode<synchronous>, transform_indices = @transform_15, window_bounds = array<i64: 1, 32>}, {pipeline_mode = #tpu.pipeline_mode<synchronous>, transform_indices = @transform_16, window_bounds = array<i64: 32, 32>}, {pipeline_mode = #tpu.pipeline_mode<synchronous>, transform_indices = @transform_17, window_bounds = array<i64: 32, 32>}, {pipeline_mode = #tpu.pipeline_mode<synchronous>, transform_indices = @transform_18, window_bounds = array<i64: 32, 32>}, {pipeline_mode = #tpu.pipeline_mode<synchronous>, transform_indices = @transform_19, window_bounds = array<i64: 1, 32>}, {pipeline_mode = #tpu.pipeline_mode<synchronous>, transform_indices = @transform_20, window_bounds = array<i64: 32, 8>}, {pipeline_mode = #tpu.pipeline_mode<synchronous>, transform_indices = @transform_21, window_bounds = array<i64: 1, 8>}, {transform_indices = @transform_22, window_bounds = array<i64: 256, 8>}]} {
    %c3 = arith.constant 3 : index
    %0 = memref.load %arg1[%c3] : memref<5xf32, #tpu.memory_space<smem>>
    %c4 = arith.constant 4 : index
    %1 = memref.load %arg1[%c4] : memref<5xf32, #tpu.memory_space<smem>>
    %c0 = arith.constant 0 : index
    %c0_0 = arith.constant 0 : index
    %2 = vector.load %arg2[%c0, %c0_0] : memref<256x16xf32, #tpu.memory_space<vmem>>, vector<256x16xf32>
    %c0_1 = arith.constant 0 : index
    %c0_2 = arith.constant 0 : index
    %3 = vector.load %arg6[%c0_1, %c0_2] : memref<1x32xf32, #tpu.memory_space<vmem>>, vector<1x32xf32>
    %c0_3 = arith.constant 0 : index
    %c0_4 = arith.constant 0 : index
    %4 = vector.load %arg5[%c0_3, %c0_4] : memref<16x32xf32, #tpu.memory_space<vmem>>, vector<16x32xf32>
    %cst = arith.constant dense<0.000000e+00> : vector<256x32xf32>
    %5 = tpu.matmul %2, %4, %cst {dimension_numbers = #tpu.dot_dimension_numbers<[1], [0], [0], [1], [0, 0, 1, 1], [], []>} : vector<256x16xf32>, vector<16x32xf32>, vector<256x32xf32> -> vector<256x32xf32>
    %6 = vector.broadcast %3 : vector<1x32xf32> to vector<256x32xf32>
    %7 = arith.addf %5, %6 : vector<256x32xf32>
    %c0_5 = arith.constant 0 : index
    %8 = memref.load %arg1[%c0_5] : memref<5xf32, #tpu.memory_space<smem>>
    %cst_6 = arith.constant 0.000000e+00 : f32
    %9 = vector.broadcast %cst_6 : f32 to vector<256x32xf32>
    %10 = arith.cmpf oge, %7, %9 : vector<256x32xf32>
    %11 = vector.broadcast %8 : f32 to vector<256x32xf32>
    %12 = arith.mulf %11, %7 : vector<256x32xf32>
    %13 = arith.select %10, %7, %12 : vector<256x32xi1>, vector<256x32xf32>
    %c0_7 = arith.constant 0 : index
    %c0_8 = arith.constant 0 : index
    %14 = vector.load %arg8[%c0_7, %c0_8] : memref<1x32xf32, #tpu.memory_space<vmem>>, vector<1x32xf32>
    %c0_9 = arith.constant 0 : index
    %c0_10 = arith.constant 0 : index
    %15 = vector.load %arg7[%c0_9, %c0_10] : memref<32x32xf32, #tpu.memory_space<vmem>>, vector<32x32xf32>
    %cst_11 = arith.constant dense<0.000000e+00> : vector<256x32xf32>
    %16 = tpu.matmul %13, %15, %cst_11 {dimension_numbers = #tpu.dot_dimension_numbers<[1], [0], [0], [1], [0, 0, 1, 1], [], []>} : vector<256x32xf32>, vector<32x32xf32>, vector<256x32xf32> -> vector<256x32xf32>
    %17 = vector.broadcast %14 : vector<1x32xf32> to vector<256x32xf32>
    %18 = arith.addf %16, %17 : vector<256x32xf32>
    %cst_12 = arith.constant 0.000000e+00 : f32
    %19 = vector.broadcast %cst_12 : f32 to vector<256x32xf32>
    %20 = arith.cmpf oge, %18, %19 : vector<256x32xf32>
    %21 = vector.broadcast %0 : f32 to vector<256x32xf32>
    %22 = arith.mulf %21, %18 : vector<256x32xf32>
    %23 = arith.select %20, %18, %22 : vector<256x32xi1>, vector<256x32xf32>
    %c0_13 = arith.constant 0 : index
    %c0_14 = arith.constant 0 : index
    %24 = vector.load %arg17[%c0_13, %c0_14] : memref<32x32xf32, #tpu.memory_space<vmem>>, vector<32x32xf32>
    %cst_15 = arith.constant dense<0.000000e+00> : vector<256x32xf32>
    %25 = tpu.matmul %23, %24, %cst_15 {dimension_numbers = #tpu.dot_dimension_numbers<[1], [0], [0], [1], [0, 0, 1, 1], [], []>} : vector<256x32xf32>, vector<32x32xf32>, vector<256x32xf32> -> vector<256x32xf32>
    %c0_16 = arith.constant 0 : index
    %c0_17 = arith.constant 0 : index
    %26 = vector.load %arg3[%c0_16, %c0_17] : memref<256x16xf32, #tpu.memory_space<vmem>>, vector<256x16xf32>
    %c0_18 = arith.constant 0 : index
    %c0_19 = arith.constant 0 : index
    %27 = vector.load %arg10[%c0_18, %c0_19] : memref<1x32xf32, #tpu.memory_space<vmem>>, vector<1x32xf32>
    %c0_20 = arith.constant 0 : index
    %c0_21 = arith.constant 0 : index
    %28 = vector.load %arg9[%c0_20, %c0_21] : memref<16x32xf32, #tpu.memory_space<vmem>>, vector<16x32xf32>
    %cst_22 = arith.constant dense<0.000000e+00> : vector<256x32xf32>
    %29 = tpu.matmul %26, %28, %cst_22 {dimension_numbers = #tpu.dot_dimension_numbers<[1], [0], [0], [1], [0, 0, 1, 1], [], []>} : vector<256x16xf32>, vector<16x32xf32>, vector<256x32xf32> -> vector<256x32xf32>
    %30 = vector.broadcast %27 : vector<1x32xf32> to vector<256x32xf32>
    %31 = arith.addf %29, %30 : vector<256x32xf32>
    %c1 = arith.constant 1 : index
    %32 = memref.load %arg1[%c1] : memref<5xf32, #tpu.memory_space<smem>>
    %cst_23 = arith.constant 0.000000e+00 : f32
    %33 = vector.broadcast %cst_23 : f32 to vector<256x32xf32>
    %34 = arith.cmpf oge, %31, %33 : vector<256x32xf32>
    %35 = vector.broadcast %32 : f32 to vector<256x32xf32>
    %36 = arith.mulf %35, %31 : vector<256x32xf32>
    %37 = arith.select %34, %31, %36 : vector<256x32xi1>, vector<256x32xf32>
    %c0_24 = arith.constant 0 : index
    %c0_25 = arith.constant 0 : index
    %38 = vector.load %arg12[%c0_24, %c0_25] : memref<1x32xf32, #tpu.memory_space<vmem>>, vector<1x32xf32>
    %c0_26 = arith.constant 0 : index
    %c0_27 = arith.constant 0 : index
    %39 = vector.load %arg11[%c0_26, %c0_27] : memref<32x32xf32, #tpu.memory_space<vmem>>, vector<32x32xf32>
    %cst_28 = arith.constant dense<0.000000e+00> : vector<256x32xf32>
    %40 = tpu.matmul %37, %39, %cst_28 {dimension_numbers = #tpu.dot_dimension_numbers<[1], [0], [0], [1], [0, 0, 1, 1], [], []>} : vector<256x32xf32>, vector<32x32xf32>, vector<256x32xf32> -> vector<256x32xf32>
    %41 = vector.broadcast %38 : vector<1x32xf32> to vector<256x32xf32>
    %42 = arith.addf %40, %41 : vector<256x32xf32>
    %cst_29 = arith.constant 0.000000e+00 : f32
    %43 = vector.broadcast %cst_29 : f32 to vector<256x32xf32>
    %44 = arith.cmpf oge, %42, %43 : vector<256x32xf32>
    %45 = vector.broadcast %0 : f32 to vector<256x32xf32>
    %46 = arith.mulf %45, %42 : vector<256x32xf32>
    %47 = arith.select %44, %42, %46 : vector<256x32xi1>, vector<256x32xf32>
    %c0_30 = arith.constant 0 : index
    %c0_31 = arith.constant 0 : index
    %48 = vector.load %arg18[%c0_30, %c0_31] : memref<32x32xf32, #tpu.memory_space<vmem>>, vector<32x32xf32>
    %cst_32 = arith.constant dense<0.000000e+00> : vector<256x32xf32>
    %49 = tpu.matmul %47, %48, %cst_32 {dimension_numbers = #tpu.dot_dimension_numbers<[1], [0], [0], [1], [0, 0, 1, 1], [], []>} : vector<256x32xf32>, vector<32x32xf32>, vector<256x32xf32> -> vector<256x32xf32>
    %50 = arith.addf %25, %49 : vector<256x32xf32>
    %c0_33 = arith.constant 0 : index
    %c0_34 = arith.constant 0 : index
    %51 = vector.load %arg4[%c0_33, %c0_34] : memref<256x16xf32, #tpu.memory_space<vmem>>, vector<256x16xf32>
    %c0_35 = arith.constant 0 : index
    %c0_36 = arith.constant 0 : index
    %52 = vector.load %arg14[%c0_35, %c0_36] : memref<1x32xf32, #tpu.memory_space<vmem>>, vector<1x32xf32>
    %c0_37 = arith.constant 0 : index
    %c0_38 = arith.constant 0 : index
    %53 = vector.load %arg13[%c0_37, %c0_38] : memref<16x32xf32, #tpu.memory_space<vmem>>, vector<16x32xf32>
    %cst_39 = arith.constant dense<0.000000e+00> : vector<256x32xf32>
    %54 = tpu.matmul %51, %53, %cst_39 {dimension_numbers = #tpu.dot_dimension_numbers<[1], [0], [0], [1], [0, 0, 1, 1], [], []>} : vector<256x16xf32>, vector<16x32xf32>, vector<256x32xf32> -> vector<256x32xf32>
    %55 = vector.broadcast %52 : vector<1x32xf32> to vector<256x32xf32>
    %56 = arith.addf %54, %55 : vector<256x32xf32>
    %c2 = arith.constant 2 : index
    %57 = memref.load %arg1[%c2] : memref<5xf32, #tpu.memory_space<smem>>
    %cst_40 = arith.constant 0.000000e+00 : f32
    %58 = vector.broadcast %cst_40 : f32 to vector<256x32xf32>
    %59 = arith.cmpf oge, %56, %58 : vector<256x32xf32>
    %60 = vector.broadcast %57 : f32 to vector<256x32xf32>
    %61 = arith.mulf %60, %56 : vector<256x32xf32>
    %62 = arith.select %59, %56, %61 : vector<256x32xi1>, vector<256x32xf32>
    %c0_41 = arith.constant 0 : index
    %c0_42 = arith.constant 0 : index
    %63 = vector.load %arg16[%c0_41, %c0_42] : memref<1x32xf32, #tpu.memory_space<vmem>>, vector<1x32xf32>
    %c0_43 = arith.constant 0 : index
    %c0_44 = arith.constant 0 : index
    %64 = vector.load %arg15[%c0_43, %c0_44] : memref<32x32xf32, #tpu.memory_space<vmem>>, vector<32x32xf32>
    %cst_45 = arith.constant dense<0.000000e+00> : vector<256x32xf32>
    %65 = tpu.matmul %62, %64, %cst_45 {dimension_numbers = #tpu.dot_dimension_numbers<[1], [0], [0], [1], [0, 0, 1, 1], [], []>} : vector<256x32xf32>, vector<32x32xf32>, vector<256x32xf32> -> vector<256x32xf32>
    %66 = vector.broadcast %63 : vector<1x32xf32> to vector<256x32xf32>
    %67 = arith.addf %65, %66 : vector<256x32xf32>
    %cst_46 = arith.constant 0.000000e+00 : f32
    %68 = vector.broadcast %cst_46 : f32 to vector<256x32xf32>
    %69 = arith.cmpf oge, %67, %68 : vector<256x32xf32>
    %70 = vector.broadcast %0 : f32 to vector<256x32xf32>
    %71 = arith.mulf %70, %67 : vector<256x32xf32>
    %72 = arith.select %69, %67, %71 : vector<256x32xi1>, vector<256x32xf32>
    %c0_47 = arith.constant 0 : index
    %c0_48 = arith.constant 0 : index
    %73 = vector.load %arg19[%c0_47, %c0_48] : memref<32x32xf32, #tpu.memory_space<vmem>>, vector<32x32xf32>
    %cst_49 = arith.constant dense<0.000000e+00> : vector<256x32xf32>
    %74 = tpu.matmul %72, %73, %cst_49 {dimension_numbers = #tpu.dot_dimension_numbers<[1], [0], [0], [1], [0, 0, 1, 1], [], []>} : vector<256x32xf32>, vector<32x32xf32>, vector<256x32xf32> -> vector<256x32xf32>
    %75 = arith.addf %50, %74 : vector<256x32xf32>
    %c0_50 = arith.constant 0 : index
    %c0_51 = arith.constant 0 : index
    %76 = vector.load %arg20[%c0_50, %c0_51] : memref<1x32xf32, #tpu.memory_space<vmem>>, vector<1x32xf32>
    %77 = vector.broadcast %76 : vector<1x32xf32> to vector<256x32xf32>
    %78 = arith.addf %75, %77 : vector<256x32xf32>
    %cst_52 = arith.constant 0.000000e+00 : f32
    %79 = vector.broadcast %cst_52 : f32 to vector<256x32xf32>
    %80 = arith.cmpf oge, %78, %79 : vector<256x32xf32>
    %81 = vector.broadcast %1 : f32 to vector<256x32xf32>
    %82 = arith.mulf %81, %78 : vector<256x32xf32>
    %83 = arith.select %80, %78, %82 : vector<256x32xi1>, vector<256x32xf32>
    %c0_53 = arith.constant 0 : index
    %c0_54 = arith.constant 0 : index
    %84 = vector.load %arg22[%c0_53, %c0_54] : memref<1x8xf32, #tpu.memory_space<vmem>>, vector<1x8xf32>
    %c0_55 = arith.constant 0 : index
    %c0_56 = arith.constant 0 : index
    %85 = vector.load %arg21[%c0_55, %c0_56] : memref<32x8xf32, #tpu.memory_space<vmem>>, vector<32x8xf32>
    %cst_57 = arith.constant dense<0.000000e+00> : vector<256x8xf32>
    %86 = tpu.matmul %83, %85, %cst_57 {dimension_numbers = #tpu.dot_dimension_numbers<[1], [0], [0], [1], [0, 0, 1, 1], [], []>} : vector<256x32xf32>, vector<32x8xf32>, vector<256x8xf32> -> vector<256x8xf32>
    %87 = vector.broadcast %84 : vector<1x8xf32> to vector<256x8xf32>
    %88 = arith.addf %86, %87 : vector<256x8xf32>
    %c0_58 = arith.constant 0 : index
    %c0_59 = arith.constant 0 : index
    %89 = vector.load %arg23[%c0_58, %c0_59] : memref<256x8xf32, #tpu.memory_space<vmem>>, vector<256x8xf32>
    tpu.vector_store %arg23[%c0_58, %c0_59], %88 {strides = array<i32>} : memref<256x8xf32, #tpu.memory_space<vmem>>, vector<256x8xf32>,
    return
  }
  func.func @transform_0(%arg0: i32) -> i32 {
    %c0_i32 = arith.constant 0 : i32
    %c0_i32_0 = arith.constant 0 : i32
    return %c0_i32 : i32
  }
  func.func @transform_1(%arg0: i32) -> (i32, i32) {
    %c0_i32 = arith.constant 0 : i32
    %c0_i32_0 = arith.constant 0 : i32
    return %arg0, %c0_i32 : i32, i32
  }
  func.func @transform_2(%arg0: i32) -> (i32, i32) {
    %c0_i32 = arith.constant 0 : i32
    %c0_i32_0 = arith.constant 0 : i32
    return %arg0, %c0_i32 : i32, i32
  }
  func.func @transform_3(%arg0: i32) -> (i32, i32) {
    %c0_i32 = arith.constant 0 : i32
    %c0_i32_0 = arith.constant 0 : i32
    return %arg0, %c0_i32 : i32, i32
  }
  func.func @transform_4(%arg0: i32) -> (i32, i32) {
    %c0_i32 = arith.constant 0 : i32
    %c0_i32_0 = arith.constant 0 : i32
    %c0_i32_1 = arith.constant 0 : i32
    return %c0_i32, %c0_i32_0 : i32, i32
  }
  func.func @transform_5(%arg0: i32) -> (i32, i32) {
    %c0_i32 = arith.constant 0 : i32
    %c0_i32_0 = arith.constant 0 : i32
    %c0_i32_1 = arith.constant 0 : i32
    return %c0_i32, %c0_i32_0 : i32, i32
  }
  func.func @transform_6(%arg0: i32) -> (i32, i32) {
    %c0_i32 = arith.constant 0 : i32
    %c0_i32_0 = arith.constant 0 : i32
    %c0_i32_1 = arith.constant 0 : i32
    return %c0_i32, %c0_i32_0 : i32, i32
  }
  func.func @transform_7(%arg0: i32) -> (i32, i32) {
    %c0_i32 = arith.constant 0 : i32
    %c0_i32_0 = arith.constant 0 : i32
    %c0_i32_1 = arith.constant 0 : i32
    return %c0_i32, %c0_i32_0 : i32, i32
  }
  func.func @transform_8(%arg0: i32) -> (i32, i32) {
    %c0_i32 = arith.constant 0 : i32
    %c0_i32_0 = arith.constant 0 : i32
    %c0_i32_1 = arith.constant 0 : i32
    return %c0_i32, %c0_i32_0 : i32, i32
  }
  func.func @transform_9(%arg0: i32) -> (i32, i32) {
    %c0_i32 = arith.constant 0 : i32
    %c0_i32_0 = arith.constant 0 : i32
    %c0_i32_1 = arith.constant 0 : i32
    return %c0_i32, %c0_i32_0 : i32, i32
  }
  func.func @transform_10(%arg0: i32) -> (i32, i32) {
    %c0_i32 = arith.constant 0 : i32
    %c0_i32_0 = arith.constant 0 : i32
    %c0_i32_1 = arith.constant 0 : i32
    return %c0_i32, %c0_i32_0 : i32, i32
  }
  func.func @transform_11(%arg0: i32) -> (i32, i32) {
    %c0_i32 = arith.constant 0 : i32
    %c0_i32_0 = arith.constant 0 : i32
    %c0_i32_1 = arith.constant 0 : i32
    return %c0_i32, %c0_i32_0 : i32, i32
  }
  func.func @transform_12(%arg0: i32) -> (i32, i32) {
    %c0_i32 = arith.constant 0 : i32
    %c0_i32_0 = arith.constant 0 : i32
    %c0_i32_1 = arith.constant 0 : i32
    return %c0_i32, %c0_i32_0 : i32, i32
  }
  func.func @transform_13(%arg0: i32) -> (i32, i32) {
    %c0_i32 = arith.constant 0 : i32
    %c0_i32_0 = arith.constant 0 : i32
    %c0_i32_1 = arith.constant 0 : i32
    return %c0_i32, %c0_i32_0 : i32, i32
  }
  func.func @transform_14(%arg0: i32) -> (i32, i32) {
    %c0_i32 = arith.constant 0 : i32
    %c0_i32_0 = arith.constant 0 : i32
    %c0_i32_1 = arith.constant 0 : i32
    return %c0_i32, %c0_i32_0 : i32, i32
  }
  func.func @transform_15(%arg0: i32) -> (i32, i32) {
    %c0_i32 = arith.constant 0 : i32
    %c0_i32_0 = arith.constant 0 : i32
    %c0_i32_1 = arith.constant 0 : i32
    return %c0_i32, %c0_i32_0 : i32, i32
  }
  func.func @transform_16(%arg0: i32) -> (i32, i32) {
    %c0_i32 = arith.constant 0 : i32
    %c0_i32_0 = arith.constant 0 : i32
    %c0_i32_1 = arith.constant 0 : i32
    return %c0_i32, %c0_i32_0 : i32, i32
  }
  func.func @transform_17(%arg0: i32) -> (i32, i32) {
    %c0_i32 = arith.constant 0 : i32
    %c0_i32_0 = arith.constant 0 : i32
    %c0_i32_1 = arith.constant 0 : i32
    return %c0_i32, %c0_i32_0 : i32, i32
  }
  func.func @transform_18(%arg0: i32) -> (i32, i32) {
    %c0_i32 = arith.constant 0 : i32
    %c0_i32_0 = arith.constant 0 : i32
    %c0_i32_1 = arith.constant 0 : i32
    return %c0_i32, %c0_i32_0 : i32, i32
  }
  func.func @transform_19(%arg0: i32) -> (i32, i32) {
    %c0_i32 = arith.constant 0 : i32
    %c0_i32_0 = arith.constant 0 : i32
    %c0_i32_1 = arith.constant 0 : i32
    return %c0_i32, %c0_i32_0 : i32, i32
  }
  func.func @transform_20(%arg0: i32) -> (i32, i32) {
    %c0_i32 = arith.constant 0 : i32
    %c0_i32_0 = arith.constant 0 : i32
    %c0_i32_1 = arith.constant 0 : i32
    return %c0_i32, %c0_i32_0 : i32, i32
  }
  func.func @transform_21(%arg0: i32) -> (i32, i32) {
    %c0_i32 = arith.constant 0 : i32
    %c0_i32_0 = arith.constant 0 : i32
    %c0_i32_1 = arith.constant 0 : i32
    return %c0_i32, %c0_i32_0 : i32, i32
  }
  func.func @transform_22(%arg0: i32) -> (i32, i32) {
    %c0_i32 = arith.constant 0 : i32
    %c0_i32_0 = arith.constant 0 : i32
    return %arg0, %c0_i32 : i32, i32
  }
}

</mosaic_0001>

<bundles_post_ra>
// kernel: tpu_custom_call.1
= control target key start
LH: loop header
LB: loop body
LE: loop exit
PB: predicated region body
PF: predicated region fallthrough
CT: control target
= control target key end

     0   :  { %s8562_s0 = inlined_call_operand.vmem [shape: f32[5], index: 0, kind: input, shape index: {}]   ;;  %s8563_s1 = inlined_call_operand.vmem [shape: f32[500,16], index: 1, kind: input, shape index: {}]   ;;  %s8564_s2 = inlined_call_operand.vmem [shape: f32[500,16], index: 2, kind: input, shape index: {}]   ;;  %s8565_s3 = inlined_call_operand.vmem [shape: f32[500,16], index: 3, kind: input, shape index: {}]   ;;  %s8566_s4 = inlined_call_operand.vmem [shape: f32[16,32], index: 4, kind: input, shape index: {}]   ;;  %s8567_s5 = inlined_call_operand.vmem [shape: f32[1,32], index: 5, kind: input, shape index: {}]   ;;  %s8568_s6 = inlined_call_operand.vmem [shape: f32[32,32], index: 6, kind: input, shape index: {}]   ;;  %s8569_s7 = inlined_call_operand.vmem [shape: f32[1,32], index: 7, kind: input, shape index: {}]   ;;  %s8570_s8 = inlined_call_operand.vmem [shape: f32[16,32], index: 8, kind: input, shape index: {}]   ;;  %s8571_s9 = inlined_call_operand.vmem [shape: f32[1,32], index: 9, kind: input, shape index: {}]   ;;  %s8572_s10 = inlined_call_operand.vmem [shape: f32[32,32], index: 10, kind: input, shape index: {}]   ;;  %s8573_s11 = inlined_call_operand.vmem [shape: f32[1,32], index: 11, kind: input, shape index: {}]   ;;  %s8574_s12 = inlined_call_operand.vmem [shape: f32[16,32], index: 12, kind: input, shape index: {}]   ;;  %s8575_s13 = inlined_call_operand.vmem [shape: f32[1,32], index: 13, kind: input, shape index: {}]   ;;  %s8576_s14 = inlined_call_operand.vmem [shape: f32[32,32], index: 14, kind: input, shape index: {}]   ;;  %s8577_s15 = inlined_call_operand.vmem [shape: f32[1,32], index: 15, kind: input, shape index: {}]   ;;  %s8578_s16 = inlined_call_operand.vmem [shape: f32[32,32], index: 16, kind: input, shape index: {}]   ;;  %s8579_s17 = inlined_call_operand.vmem [shape: f32[32,32], index: 17, kind: input, shape index: {}]   ;;  %s8580_s18 = inlined_call_operand.vmem [shape: f32[32,32], index: 18, kind: input, shape index: {}]   ;;  %s8581_s19 = inlined_call_operand.vmem [shape: f32[1,32], index: 19, kind: input, shape index: {}]   ;;  %s8582_s20 = inlined_call_operand.vmem [shape: f32[32,8], index: 20, kind: input, shape index: {}]   ;;  %s8583_s21 = inlined_call_operand.vmem [shape: f32[1,8], index: 21, kind: input, shape index: {}]   ;;  %s8584_s22 = inlined_call_operand.vmem [shape: f32[500,8], index: 22, kind: output, shape index: {}]  }
   0x1   :  { %8589 = sst [smem:[#allocation8_spill]] %s8562_s0 }
   0x2   :  { %8590 = sst [smem:[#allocation9_spill]] %s8563_s1 }
   0x3   :  { %8591 = sst [smem:[#allocation10_spill]] %s8564_s2 }
   0x4   :  { %8592 = sst [smem:[#allocation11_spill]] %s8565_s3 }
   0x5   :  { %8593 = sst [smem:[#allocation12_spill]] %s8566_s4 }
   0x6   :  { %8594 = sst [smem:[#allocation13_spill]] %s8567_s5 }
   0x7   :  { %8595 = sst [smem:[#allocation14_spill]] %s8568_s6 }
   0x8   :  { %8596 = sst [smem:[#allocation15_spill]] %s8569_s7 }
   0x9   :  { %8597 = sst [smem:[#allocation16_spill]] %s8570_s8 }
   0xa   :  { %8598 = sst [smem:[#allocation17_spill]] %s8571_s9 }
   0xb   :  { %27 = vsyncpa [#allocation3], 0  ;;  %s7076_s3 = smov 0   ;;  %s7078_s28 = smov 0  }
   0xc   :  { %s7080_s29 = smov 0  }
   0xd LB: > { %8599 = sst [smem:[#allocation6_spill]] %s6922_s28  ;;  %s7089_s30 = sadd.s32 4294967295, %s6926_s29   ;;  %s6926_s29 = sphi %s7080_s29, %s8620_s29   ;;  %s6922_s28 = sphi %s7078_s28, %s8619_s28   ;;  %s6918_s3 = sphi %s7076_s3, %s8618_s3  }
   0xe   : > { %s7091_s4 = sadd.s32 1, %s6926_s29   ;;  %s517_s23 = sadd.s32 1, %s6922_s28 }
   0xf   : > { %s514_s0 = ssub.s32 %s6926_s29, %s7091_s4  ;;  %p527_p1 = scmp.ne.s32.totalorder %s6922_s28, %s6918_s3 }
  0x10   : > { %p515_p0 = scmp.eq.s32.totalorder %s514_s0, 0  ;;  %p528_p2 = scmp.eq.s32.totalorder %s7089_s30, 1 }
  0x11   : > { %p5356_p3 = scmp.ge.s32.totalorder %s6926_s29, 1  ;;  %p541_p5 = scmp.lt.s32.totalorder %s6926_s29, 3 }
  0x12   : > { %s7099_s1 = scalar_select %p515_p0, %s6922_s28, %s517_s23  }
  0x13   : > { %p7101_p4 = por %p528_p2, %p527_p1  ;;  %p6762_p6 = scmp.eq.s32.totalorder %s7089_s30, 0 }
  0x14   : > { %8600 = sst [smem:[#allocation7_spill]] %s7099_s1  ;;  %p7106_p7 = pnand %p5356_p3, %p541_p5 }
  0x15   : > { %s8603_s26 = sld [smem:[#allocation8_spill]] }
  0x16   : > { %p6758_p8 = pneg %p7106_p7 }
  0x18   : > { %p6759_p9 = pnand %p6762_p6, %p6758_p8 }
  0x1a   : > { %p6855_p11 = pneg %p6759_p9 }
  0x1b   : > { %s554_s2 = sshll.u32 %s8603_s26, 4  ;;  %s555_s2 = int_to_ptr.vmem [resolvable:$true] %s554_s2 }
  0x1c   : > { %s6853_s27 = scalar_lea.vmem %s555_s2, 16  ;;  %p6861_p0 = scmp.lt.s32.totalorder %s555_s2, %s555_s2 }
  0x1d   : > { %p6854_p10 = scmp.ne.s32.totalorder %s555_s2, %s6853_s27  ;;  %p6862_p1 = scmp.lt.s32.totalorder %s6853_s27, %s6853_s27 }
  0x1f   : > { %p6856_p12 = pnand %p6855_p11, %p6854_p10  ;;  %p6863_p2 = por %p6862_p1, %p6861_p0 }
  0x21   : > { %p6857_p13 = pneg %p6856_p12 }
  0x23   : > { %p6864_p3 = pnand %p6863_p2, %p6857_p13 }
  0x25   : > { %6867 = shalt.err (!%p6864_p3)
}
  0x26   : > { %s6960_s29 = smov [#allocation2]   ;;  %672 = sbr.rel (%p7106_p7) target bundleno = 1397 (0x575), region = 108 }
  0x27   : > { %6761 = dma.vmem_to_smem (!%p6759_p9), %s555_s2, 16, %s6960_s29, [#allocation3]  }
  0x2d   : > { %6913 = dma.done.wait (%p6762_p6), [#allocation3], 16  }
  0x2e   : > { %6915 = vsyncadd (%p6762_p6), [#allocation3], 4294967280 }
  0x2f   : > { %678 = sfence }
  0x30   : > { %s8604_s6 = sld [smem:[#allocation12_spill]]  ;;  %s7130_s2 = sshll.u32 %s7089_s30, 5  ;;  %vm846_vm0 = vcmask 130048   ;;  %v2161_v61 = vld [vmem:[%s8572_s10] sm:$0xff]  ;;  %v2162_v62 = vld [vmem:[%s8572_s10 + $0x8] sm:$0xff]  ;;  %vm1277_vm3 = vcmask 261120  }
  0x31   : > { %s8605_s8 = sld [smem:[#allocation16_spill]]  ;;  %p761_p5 = scmp.lt.s32.totalorder %s7130_s2, 62  ;;  %v7269_v63 = vpack.c.bf16 %v2162_v62, %v2161_v61 }
  0x32   : > { %s8606_s24 = sld [smem:[#allocation14_spill]]  ;;  %s8607_s29 = sld [smem:[#allocation9_spill]] }
  0x33   : > { %s762_s0 = scalar_select %p761_p5, %s7130_s2, 62 }
  0x34   : > { %s8609_s1 = sld [smem:[#allocation13_spill]]  ;;  %s8610_s9 = sld [smem:[#allocation17_spill]] }
  0x35   : > { %s7140_s23 = sshll.u32 %s762_s0, 3  ;;  %s8608_s0 = sld [smem:[#allocation10_spill]] }
  0x36   : > { %v838_v0 = vld [vmem:[%s8604_s6] sm:$0xff]  ;;  %v839_v1 = vld [vmem:[%s8604_s6 + $0x8] sm:$0xff]  ;;  %s5600_s27 = sld [smem:[#allocation2 + $0x2]]  ;;  %s8612_s7 = sld [smem:[#allocation15_spill]] }
  0x37   : > { %v1733_v2 = vld [vmem:[%s8605_s8] sm:$0xff]  ;;  %v6622_v3 = vpack.c.bf16 %v839_v1, %v838_v0  ;;  %v1734_v4 = vld [vmem:[%s8605_s8 + $0x8] sm:$0xff] }
  0x38   : > { %v6634_v5 = vpack.c.bf16 %v1734_v4, %v1733_v2  ;;  %v1267_v6 = vld [vmem:[%s8606_s24] sm:$0xff]  ;;  %v1268_v7 = vld [vmem:[%s8606_s24 + $0x8] sm:$0xff]  ;;  %s7152_s8 = scalar_lea.vmem %s8607_s29, %s7140_s23  ;;  %v1269_v54 = vld [vmem:[%s8606_s24 + $0x10] sm:$0xff]  ;;  %s753_s29 = sand.u32 1, %s6918_s3  }
  0x39   : > { %6623 = vmatprep.subr.bf16.mxu0 %v6622_v3  ;;  %v6626_v8 = vpack.c.bf16 %v1268_v7, %v1267_v6  ;;  %v805_v9 = vld [vmem:[%s7152_s8] sm:$0xff]  ;;  %v806_v10 = vld [vmem:[%s7152_s8 + $0x8] sm:$0xff]  ;;  %v807_v11 = vld [vmem:[%s7152_s8 + $0x10] sm:$0xff]  ;;  %s4988_s3 = ssub.s32 (%p7101_p4), 63, %s7130_s2 }
  0x3a   : > { %6625 = vmatpush3.bf16.msra.mxu0 %v6622_v3  ;;  %6078 = vmatprep.mubr.msk.f32.mxu0 %vm846_vm0, %v805_v9  ;;  %v808_v12 = vld [vmem:[%s7152_s8 + $0x18] sm:$0xff]  ;;  %v809_v13 = vld [vmem:[%s7152_s8 + $0x20] sm:$0xff]  ;;  %v810_v14 = vld [vmem:[%s7152_s8 + $0x28] sm:$0xff]  ;;  %p4989_p6 = scmp.lt.s32.totalorder (%p7101_p4), %s4988_s3, 32 }
  0x3b   : > { %6635 = vmatprep.subr.bf16.mxu0 %v6634_v5  ;;  %6627 = vmatprep.subr.bf16.mxu1 %v6626_v8  ;;  %v811_v15 = vld [vmem:[%s7152_s8 + $0x30] sm:$0xff]  ;;  %v812_v16 = vld [vmem:[%s7152_s8 + $0x38] sm:$0xff]  ;;  %v813_v17 = vld [vmem:[%s7152_s8 + $0x40] sm:$0xff]  ;;  %s7218_s25 = scalar_lea.vmem %s8608_s0, %s7140_s23  ;;  %s8611_s0 = sld [smem:[#allocation11_spill]] }
  0x3c   : > { %6629 = vmatpush3.bf16.msra.mxu1 %v6626_v8  ;;  %v814_v18 = vld [vmem:[%s7152_s8 + $0x48] sm:$0xff]  ;;  %v815_v19 = vld [vmem:[%s7152_s8 + $0x50] sm:$0xff]  ;;  %v816_v20 = vld [vmem:[%s7152_s8 + $0x58] sm:$0xff] }
  0x3d   : > { %6079 = vmatmul.mubr.msk.f32.vlgmr.msra.gmra.mrb[0].mxu0 %vm846_vm0, %v806_v10  ;;  %v817_v21 = vld [vmem:[%s7152_s8 + $0x60] sm:$0xff]  ;;  %v818_v22 = vld [vmem:[%s7152_s8 + $0x68] sm:$0xff]  ;;  %v819_v23 = vld [vmem:[%s7152_s8 + $0x70] sm:$0xff] }
  0x3e   : > { %6637 = vmatpush3.bf16.msra.mxu0 %v6634_v5  ;;  %6081 = vmatprep.mubr.msk.f32.mxu0 %vm846_vm0, %v807_v11  ;;  %v820_v24 = vld [vmem:[%s7152_s8 + $0x78] sm:$0xff]  ;;  %v821_v25 = vld [vmem:[%s7152_s8 + $0x80] sm:$0xff]  ;;  %v822_v26 = vld [vmem:[%s7152_s8 + $0x88] sm:$0xff] }
  0x3f   : > { %v823_v27 = vld [vmem:[%s7152_s8 + $0x90] sm:$0xff]  ;;  %v824_v28 = vld [vmem:[%s7152_s8 + $0x98] sm:$0xff]  ;;  %v825_v29 = vld [vmem:[%s7152_s8 + $0xa0] sm:$0xff] }
  0x40   : > { %v826_v30 = vld [vmem:[%s7152_s8 + $0xa8] sm:$0xff]  ;;  %v827_v31 = vld [vmem:[%s7152_s8 + $0xb0] sm:$0xff]  ;;  %v828_v32 = vld [vmem:[%s7152_s8 + $0xb8] sm:$0xff] }
  0x41   : > { %6082 = vmatmul.mubr.msk.f32.gmra.mrb[2].mxu0 %vm846_vm0, %v808_v12  ;;  %v829_v33 = vld [vmem:[%s7152_s8 + $0xc0] sm:$0xff]  ;;  %v830_v34 = vld [vmem:[%s7152_s8 + $0xc8] sm:$0xff]  ;;  %v831_v35 = vld [vmem:[%s7152_s8 + $0xd0] sm:$0xff] }
  0x42   : > { %6084 = vmatprep.mubr.msk.f32.mxu0 %vm846_vm0, %v809_v13  ;;  %v832_v36 = vld [vmem:[%s7152_s8 + $0xd8] sm:$0xff]  ;;  %v833_v37 = vld [vmem:[%s7152_s8 + $0xe0] sm:$0xff]  ;;  %v834_v38 = vld [vmem:[%s7152_s8 + $0xe8] sm:$0xff] }
  0x43   : > { %v835_v39 = vld [vmem:[%s7152_s8 + $0xf0] sm:$0xff]  ;;  %v836_v40 = vld [vmem:[%s7152_s8 + $0xf8] sm:$0xff]  ;;  %v1700_v41 = vld [vmem:[%s7218_s25] sm:$0xff]  ;;  %s1168_s8 = sld [smem:[#allocation2]] }
  0x44   : > { %v1701_v42 = vld [vmem:[%s7218_s25 + $0x8] sm:$0xff]  ;;  %v1702_v43 = vld [vmem:[%s7218_s25 + $0x10] sm:$0xff]  ;;  %v1703_v44 = vld [vmem:[%s7218_s25 + $0x18] sm:$0xff] }
  0x45   : > { %6085 = vmatmul.mubr.msk.f32.gmra.mrb[4].mxu0 %vm846_vm0, %v810_v14  ;;  %v1704_v45 = vld [vmem:[%s7218_s25 + $0x20] sm:$0xff]  ;;  %v1705_v46 = vld [vmem:[%s7218_s25 + $0x28] sm:$0xff]  ;;  %v1706_v47 = vld [vmem:[%s7218_s25 + $0x30] sm:$0xff] }
  0x46   : > { %6087 = vmatprep.mubr.msk.f32.mxu0 %vm846_vm0, %v811_v15  ;;  %v1707_v48 = vld [vmem:[%s7218_s25 + $0x38] sm:$0xff]  ;;  %v1708_v49 = vld [vmem:[%s7218_s25 + $0x40] sm:$0xff]  ;;  %v1709_v50 = vld [vmem:[%s7218_s25 + $0x48] sm:$0xff] }
  0x47   : > { %v1710_v51 = vld [vmem:[%s7218_s25 + $0x50] sm:$0xff]  ;;  %v1711_v52 = vld [vmem:[%s7218_s25 + $0x58] sm:$0xff]  ;;  %v1712_v53 = vld [vmem:[%s7218_s25 + $0x60] sm:$0xff] }
  0x48   : > { %v1270_v55 = vld [vmem:[%s8606_s24 + $0x18] sm:$0xff]  ;;  %v1713_v56 = vld [vmem:[%s7218_s25 + $0x68] sm:$0xff]  ;;  %v1714_v58 = vld [vmem:[%s7218_s25 + $0x70] sm:$0xff] }
  0x49   : > { %6088 = vmatmul.mubr.msk.f32.gmra.mrb[6].mxu0 %vm846_vm0, %v812_v16  ;;  %v6630_v57 = vpack.c.bf16 %v1270_v55, %v1269_v54  ;;  %v1715_v59 = vld [vmem:[%s7218_s25 + $0x78] sm:$0xff]  ;;  %v1716_v60 = vld [vmem:[%s7218_s25 + $0x80] sm:$0xff]  ;;  %v1717_v0 = vld [vmem:[%s7218_s25 + $0x88] sm:$0xff] }
  0x4a   : > { %6090 = vmatprep.mubr.msk.f32.mxu0 %vm846_vm0, %v813_v17  ;;  %v1718_v1 = vld [vmem:[%s7218_s25 + $0x90] sm:$0xff]  ;;  %v1719_v2 = vld [vmem:[%s7218_s25 + $0x98] sm:$0xff]  ;;  %v1720_v3 = vld [vmem:[%s7218_s25 + $0xa0] sm:$0xff]  ;;  %v7308_v17 = vstv %s1168_s8  ;;  %s7526_s8 = scalar_lea.vmem %s8611_s0, %s7140_s23  ;;  %s5717_s23 = sshll.u32 (%p7101_p4), %s7089_s30, 8 }
  0x4b   : > { %6631 = vmatprep.subr.bf16.mxu1 %v6630_v57  ;;  %v1721_v4 = vld [vmem:[%s7218_s25 + $0xa8] sm:$0xff]  ;;  %v1722_v5 = vld [vmem:[%s7218_s25 + $0xb0] sm:$0xff]  ;;  %v1723_v6 = vld [vmem:[%s7218_s25 + $0xb8] sm:$0xff] }
  0x4c   : > { %6633 = vmatpush3.bf16.msra.mxu1 %v6630_v57  ;;  %v1724_v7 = vld [vmem:[%s7218_s25 + $0xc0] sm:$0xff]  ;;  %v1725_v8 = vld [vmem:[%s7218_s25 + $0xc8] sm:$0xff]  ;;  %v1726_v9 = vld [vmem:[%s7218_s25 + $0xd0] sm:$0xff] }
  0x4d   : > { %6091 = vmatmul.mubr.msk.f32.gmra.mrb[8].mxu0 %vm846_vm0, %v814_v18  ;;  %6639 = vmatprep.subr.bf16.mxu1 %v7269_v63  ;;  %v1727_v10 = vld [vmem:[%s7218_s25 + $0xd8] sm:$0xff]  ;;  %v1728_v11 = vld [vmem:[%s7218_s25 + $0xe0] sm:$0xff]  ;;  %v1729_v12 = vld [vmem:[%s7218_s25 + $0xe8] sm:$0xff] }
  0x4e   : > { %6093 = vmatprep.mubr.msk.f32.mxu0 %vm846_vm0, %v815_v19  ;;  %v1730_v13 = vld [vmem:[%s7218_s25 + $0xf0] sm:$0xff]  ;;  %v1731_v14 = vld [vmem:[%s7218_s25 + $0xf8] sm:$0xff]  ;;  %v7306_v15 = vld [vmem:[%s8609_s1] ss:$0 sm:$0xff]  ;;  %s5469_s1 = sld [smem:[#allocation2 + $0x1]]  ;;  %s5361_s25 = sshll.u32 %s753_s29, 8 }
  0x4f   : > { %s8327_s0 = scalar_lea.vmem [#allocation4], %s5361_s25  }
  0x51   : > { %6094 = vmatmul.mubr.msk.f32.gmra.mrb[10].mxu0 %vm846_vm0, %v816_v20 }
  0x52   : > { %6096 = vmatprep.mubr.msk.f32.mxu0 %vm846_vm0, %v817_v21 }
  0x55   : > { %6097 = vmatmul.mubr.msk.f32.gmra.mrb[12].mxu0 %vm846_vm0, %v818_v22  ;;  %v2163_v22 = vld [vmem:[%s8572_s10 + $0x10] sm:$0xff] }
  0x56   : > { %6099 = vmatprep.mubr.msk.f32.mxu0 %vm846_vm0, %v819_v23  ;;  %v2164_v23 = vld [vmem:[%s8572_s10 + $0x18] sm:$0xff] }
  0x59   : > { %6100 = vmatmul.mubr.msk.f32.gmra.mrb[14].mxu0 %vm846_vm0, %v820_v24 }
  0x5a   : > { %6102 = vmatprep.mubr.msk.f32.mxu0 %vm846_vm0, %v821_v25 }
  0x5d   : > { %6103 = vmatmul.mubr.msk.f32.gmra.mrb[16].mxu0 %vm846_vm0, %v822_v26 }
  0x5e   : > { %6105 = vmatprep.mubr.msk.f32.mxu0 %vm846_vm0, %v823_v27 }
  0x61   : > { %6106 = vmatmul.mubr.msk.f32.gmra.mrb[18].mxu0 %vm846_vm0, %v824_v28 }
  0x62   : > { %6108 = vmatprep.mubr.msk.f32.mxu0 %vm846_vm0, %v825_v29 }
  0x65   : > { %6109 = vmatmul.mubr.msk.f32.gmra.mrb[20].mxu0 %vm846_vm0, %v826_v30  ;;  %v6642_v30 = vpack.c.bf16 %v2164_v23, %v2163_v22 }
  0x66   : > { %6111 = vmatprep.mubr.msk.f32.mxu0 %vm846_vm0, %v827_v31 }
  0x69   : > { %6112 = vmatmul.mubr.msk.f32.gmra.mrb[22].mxu0 %vm846_vm0, %v828_v32 }
  0x6a   : > { %6114 = vmatprep.mubr.msk.f32.mxu0 %vm846_vm0, %v829_v33  ;;  %v3267_v33 = vld [vmem:[%s8574_s12] sm:$0xff] }
  0x6d   : > { %6115 = vmatmul.mubr.msk.f32.gmra.mrb[24].mxu0 %vm846_vm0, %v830_v34  ;;  %v3268_v34 = vld [vmem:[%s8574_s12 + $0x8] sm:$0xff] }
  0x6e   : > { %6117 = vmatprep.mubr.msk.f32.mxu0 %vm846_vm0, %v831_v35 }
  0x71   : > { %6118 = vmatmul.mubr.msk.f32.gmra.mrb[26].mxu0 %vm846_vm0, %v832_v36 }
  0x72   : > { %6120 = vmatprep.mubr.msk.f32.mxu0 %vm846_vm0, %v833_v37 }
  0x75   : > { %6121 = vmatmul.mubr.msk.f32.gmra.mrb[28].mxu0 %vm846_vm0, %v834_v38 }
  0x76   : > { %6123 = vmatprep.mubr.msk.f32.mxu0 %vm846_vm0, %v835_v39 }
  0x79   : > { %6124 = vmatmul.mubr.msk.f32.gmra.mrb[30].mxu0 %vm846_vm0, %v836_v40 }
  0x7a   : > { %6186 = vmatprep.mubr.msk.f32.mxu0 %vm846_vm0, %v1700_v41  ;;  %v7335_v41 = vpack.c.bf16 %v3268_v34, %v3267_v33 }
  0x7d   : > { %6187 = vmatmul.mubr.msk.f32.vlgmr.msra.gmra.mrb[32].mxu0 %vm846_vm0, %v1701_v42 }
  0x7e   : > { %6189 = vmatprep.mubr.msk.f32.mxu0 %vm846_vm0, %v1702_v43 }
  0x81   : > { %6190 = vmatmul.mubr.msk.f32.gmra.mrb[34].mxu0 %vm846_vm0, %v1703_v44 }
  0x82   : > { %6192 = vmatprep.mubr.msk.f32.mxu0 %vm846_vm0, %v1704_v45 }
  0x85   : > { %6193 = vmatmul.mubr.msk.f32.gmra.mrb[36].mxu0 %vm846_vm0, %v1705_v46 }
  0x86   : > { %6195 = vmatprep.mubr.msk.f32.mxu0 %vm846_vm0, %v1706_v47 }
  0x89   : > { %6196 = vmatmul.mubr.msk.f32.gmra.mrb[38].mxu0 %vm846_vm0, %v1707_v48 }
  0x8a   : > { %6198 = vmatprep.mubr.msk.f32.mxu0 %vm846_vm0, %v1708_v49 }
  0x8d   : > { %6199 = vmatmul.mubr.msk.f32.gmra.mrb[40].mxu0 %vm846_vm0, %v1709_v50 }
  0x8e   : > { %6201 = vmatprep.mubr.msk.f32.mxu0 %vm846_vm0, %v1710_v51 }
  0x91   : > { %6202 = vmatmul.mubr.msk.f32.gmra.mrb[42].mxu0 %vm846_vm0, %v1711_v52 }
  0x92   : > { %6204 = vmatprep.mubr.msk.f32.mxu0 %vm846_vm0, %v1712_v53 }
  0x95   : > { %6205 = vmatmul.mubr.msk.f32.gmra.mrb[44].mxu0 %vm846_vm0, %v1713_v56 }
  0x96   : > { %6207 = vmatprep.mubr.msk.f32.mxu0 %vm846_vm0, %v1714_v58 }
  0x99   : > { %6208 = vmatmul.mubr.msk.f32.gmra.mrb[46].mxu0 %vm846_vm0, %v1715_v59 }
  0x9a   : > { %6210 = vmatprep.mubr.msk.f32.mxu0 %vm846_vm0, %v1716_v60 }
  0x9d   : > { %6211 = vmatmul.mubr.msk.f32.gmra.mrb[48].mxu0 %vm846_vm0, %v1717_v0 }
  0x9e   : > { %6213 = vmatprep.mubr.msk.f32.mxu0 %vm846_vm0, %v1718_v1 }
  0xa1   : > { %6214 = vmatmul.mubr.msk.f32.gmra.mrb[50].mxu0 %vm846_vm0, %v1719_v2 }
  0xa2   : > { %6216 = vmatprep.mubr.msk.f32.mxu0 %vm846_vm0, %v1720_v3 }
  0xa5   : > { %6217 = vmatmul.mubr.msk.f32.gmra.mrb[52].mxu0 %vm846_vm0, %v1721_v4 }
  0xa6   : > { %6219 = vmatprep.mubr.msk.f32.mxu0 %vm846_vm0, %v1722_v5 }
  0xa9   : > { %6220 = vmatmul.mubr.msk.f32.gmra.mrb[54].mxu0 %vm846_vm0, %v1723_v6 }
  0xaa   : > { %6222 = vmatprep.mubr.msk.f32.mxu0 %vm846_vm0, %v1724_v7 }
  0xad   : > { %6223 = vmatmul.mubr.msk.f32.gmra.mrb[56].mxu0 %vm846_vm0, %v1725_v8 }
  0xae   : > { %6225 = vmatprep.mubr.msk.f32.mxu0 %vm846_vm0, %v1726_v9 }
  0xb1   : > { %6226 = vmatmul.mubr.msk.f32.gmra.mrb[58].mxu0 %vm846_vm0, %v1727_v10 }
  0xb2   : > { %6228 = vmatprep.mubr.msk.f32.mxu0 %vm846_vm0, %v1728_v11 }
  0xb5   : > { %6229 = vmatmul.mubr.msk.f32.gmra.mrb[60].mxu0 %vm846_vm0, %v1729_v12 }
  0xb6   : > { %6231 = vmatprep.mubr.msk.f32.mxu0 %vm846_vm0, %v1730_v13 }
  0xb9   : > { %6232 = vmatmul.mubr.msk.f32.gmra.mrb[62].mxu0 %vm846_vm0, %v1731_v14 }
 0x110   : > { %v6080_v16 = vpop.f32.mrb[0].mxu0 }
 0x111   : > { %v1015_v18 = vadd.f32 %v6080_v16, %v7306_v15  ;;  %v1009_v19 = vpop.f32.mrb[1].mxu0 }
 0x112   : > { %v1010_v20 = vadd.f32 %v7306_v15, %v1009_v19 }
 0x113   : > { %v1203_v21 = vmul.f32 %v7308_v17, %v1015_v18  ;;  %vm1170_vm1 = vcmp.ge.f32.partialorder %v1015_v18, 0.0 }
 0x114   : > { %v6083_v24 = vpop.f32.mrb[2].mxu0  ;;  %vm1169_vm2 = vcmp.ge.f32.partialorder %v1010_v20, 0.0  ;;  %v1202_v25 = vmul.f32 %v7308_v17, %v1010_v20 }
 0x115   : > { %v1025_v26 = vadd.f32 %v6083_v24, %v7306_v15  ;;  %v1019_v27 = vpop.f32.mrb[3].mxu0  ;;  %v1235_v32 = vsel %vm1170_vm1, %v1015_v18, %v1203_v21 }
 0x116   : > { %v1020_v28 = vadd.f32 %v7306_v15, %v1019_v27  ;;  %v1234_v29 = vsel %vm1169_vm2, %v1010_v20, %v1202_v25 }
 0x117   : > { %v1205_v31 = vmul.f32 %v7308_v17, %v1025_v26  ;;  %6134 = vmatprep.mubr.msk.f32.mxu1 %vm1277_vm3, %v1234_v29  ;;  %vm1172_vm4 = vcmp.ge.f32.partialorder %v1025_v26, 0.0 }
 0x118   : > { %vm1171_vm5 = vcmp.ge.f32.partialorder %v1020_v28, 0.0  ;;  %v1204_v35 = vmul.f32 %v7308_v17, %v1020_v28  ;;  %v6086_v36 = vpop.f32.mrb[4].mxu0  ;;  %6135 = vmatmul.mubr.msk.f32.vlgmr.msra.gmra.mrb[0].mxu1 %vm1277_vm3, %v1235_v32 }
 0x119   : > { %v1035_v37 = vadd.f32 %v6086_v36, %v7306_v15  ;;  %6641 = vmatpush3.bf16.msra.mxu1 %v7269_v63  ;;  %v1029_v38 = vpop.f32.mrb[5].mxu0  ;;  %v1237_v43 = vsel %vm1172_vm4, %v1025_v26, %v1205_v31 }
 0x11a   : > { %v1030_v39 = vadd.f32 %v7306_v15, %v1029_v38  ;;  %v1236_v40 = vsel %vm1171_vm5, %v1020_v28, %v1204_v35  ;;  %6643 = vmatprep.subr.bf16.mxu1 %v6642_v30 }
 0x11b   : > { %v1207_v42 = vmul.f32 %v7308_v17, %v1035_v37  ;;  %6137 = vmatprep.mubr.msk.f32.mxu1 %vm1277_vm3, %v1236_v40  ;;  %vm1174_vm6 = vcmp.ge.f32.partialorder %v1035_v37, 0.0 }
 0x11c   : > { %vm1173_vm7 = vcmp.ge.f32.partialorder %v1030_v39, 0.0  ;;  %v1206_v44 = vmul.f32 %v7308_v17, %v1030_v39  ;;  %v6089_v45 = vpop.f32.mrb[6].mxu0  ;;  %6138 = vmatmul.mubr.msk.f32.gmra.mrb[2].mxu1 %vm1277_vm3, %v1237_v43 }
 0x11d   : > { %v1045_v46 = vadd.f32 %v6089_v45, %v7306_v15  ;;  %v1039_v47 = vpop.f32.mrb[7].mxu0  ;;  %6645 = vmatpush3.bf16.msra.mxu1 %v6642_v30  ;;  %v1239_v51 = vsel %vm1174_vm6, %v1035_v37, %v1207_v42 }
 0x11e   : > { %v1040_v48 = vadd.f32 %v7306_v15, %v1039_v47  ;;  %v1238_v49 = vsel %vm1173_vm7, %v1030_v39, %v1206_v44  ;;  %6663 = vmatprep.subr.bf16.mxu1 %v7335_v41 }
 0x11f   : > { %v1209_v50 = vmul.f32 %v7308_v17, %v1045_v46  ;;  %6140 = vmatprep.mubr.msk.f32.mxu1 %vm1277_vm3, %v1238_v49  ;;  %vm1176_vm8 = vcmp.ge.f32.partialorder %v1045_v46, 0.0 }
 0x120   : > { %vm1175_vm9 = vcmp.ge.f32.partialorder %v1040_v48, 0.0  ;;  %v1208_v52 = vmul.f32 %v7308_v17, %v1040_v48  ;;  %v6092_v53 = vpop.f32.mrb[8].mxu0  ;;  %6141 = vmatmul.mubr.msk.f32.gmra.mrb[4].mxu1 %vm1277_vm3, %v1239_v51 }
 0x121   : > { %v1055_v54 = vadd.f32 %v6092_v53, %v7306_v15  ;;  %v1049_v55 = vpop.f32.mrb[9].mxu0  ;;  %v1241_v59 = vsel %vm1176_vm8, %v1045_v46, %v1209_v50 }
 0x122   : > { %v1050_v56 = vadd.f32 %v7306_v15, %v1049_v55  ;;  %v1240_v57 = vsel %vm1175_vm9, %v1040_v48, %v1208_v52 }
 0x123   : > { %v1211_v58 = vmul.f32 %v7308_v17, %v1055_v54  ;;  %6143 = vmatprep.mubr.msk.f32.mxu1 %vm1277_vm3, %v1240_v57  ;;  %vm1178_vm10 = vcmp.ge.f32.partialorder %v1055_v54, 0.0 }
 0x124   : > { %vm1177_vm11 = vcmp.ge.f32.partialorder %v1050_v56, 0.0  ;;  %v1210_v60 = vmul.f32 %v7308_v17, %v1050_v56  ;;  %v6095_v61 = vpop.f32.mrb[10].mxu0  ;;  %6144 = vmatmul.mubr.msk.f32.gmra.mrb[6].mxu1 %vm1277_vm3, %v1241_v59 }
 0x125   : > { %v1065_v62 = vadd.f32 %v6095_v61, %v7306_v15  ;;  %v1059_v63 = vpop.f32.mrb[11].mxu0  ;;  %v1243_v3 = vsel %vm1178_vm10, %v1055_v54, %v1211_v58 }
 0x126   : > { %v1060_v0 = vadd.f32 %v7306_v15, %v1059_v63  ;;  %v1242_v1 = vsel %vm1177_vm11, %v1050_v56, %v1210_v60 }
 0x127   : > { %v1213_v2 = vmul.f32 %v7308_v17, %v1065_v62  ;;  %6146 = vmatprep.mubr.msk.f32.mxu1 %vm1277_vm3, %v1242_v1  ;;  %vm1180_vm12 = vcmp.ge.f32.partialorder %v1065_v62, 0.0 }
 0x128   : > { %vm1179_vm13 = vcmp.ge.f32.partialorder %v1060_v0, 0.0  ;;  %v1212_v4 = vmul.f32 %v7308_v17, %v1060_v0  ;;  %v6098_v5 = vpop.f32.mrb[12].mxu0  ;;  %6147 = vmatmul.mubr.msk.f32.gmra.mrb[8].mxu1 %vm1277_vm3, %v1243_v3 }
 0x129   : > { %v1075_v6 = vadd.f32 %v6098_v5, %v7306_v15  ;;  %v1069_v7 = vpop.f32.mrb[13].mxu0  ;;  %v1245_v11 = vsel %vm1180_vm12, %v1065_v62, %v1213_v2 }
 0x12a   : > { %v1070_v8 = vadd.f32 %v7306_v15, %v1069_v7  ;;  %v1244_v9 = vsel %vm1179_vm13, %v1060_v0, %v1212_v4 }
 0x12b   : > { %v1215_v10 = vmul.f32 %v7308_v17, %v1075_v6  ;;  %6149 = vmatprep.mubr.msk.f32.mxu1 %vm1277_vm3, %v1244_v9  ;;  %vm1182_vm14 = vcmp.ge.f32.partialorder %v1075_v6, 0.0 }
 0x12c   : > { %vm1181_vm15 = vcmp.ge.f32.partialorder %v1070_v8, 0.0  ;;  %v1214_v12 = vmul.f32 %v7308_v17, %v1070_v8  ;;  %v6101_v13 = vpop.f32.mrb[14].mxu0  ;;  %6150 = vmatmul.mubr.msk.f32.gmra.mrb[10].mxu1 %vm1277_vm3, %v1245_v11 }
 0x12d   : > { %v1085_v14 = vadd.f32 %v6101_v13, %v7306_v15  ;;  %v1079_v16 = vpop.f32.mrb[15].mxu0  ;;  %v1247_v21 = vsel %vm1182_vm14, %v1075_v6, %v1215_v10 }
 0x12e   : > { %v1080_v18 = vadd.f32 %v7306_v15, %v1079_v16  ;;  %v1246_v19 = vsel %vm1181_vm15, %v1070_v8, %v1214_v12 }
 0x12f   : > { %v1217_v20 = vmul.f32 %v7308_v17, %v1085_v14  ;;  %6152 = vmatprep.mubr.msk.f32.mxu1 %vm1277_vm3, %v1246_v19  ;;  %vm1184_vm1 = vcmp.ge.f32.partialorder %v1085_v14, 0.0 }
 0x130   : > { %vm1183_vm2 = vcmp.ge.f32.partialorder %v1080_v18, 0.0  ;;  %v1216_v22 = vmul.f32 %v7308_v17, %v1080_v18  ;;  %v6104_v23 = vpop.f32.mrb[16].mxu0  ;;  %6153 = vmatmul.mubr.msk.f32.gmra.mrb[12].mxu1 %vm1277_vm3, %v1247_v21 }
 0x131   : > { %v1095_v24 = vadd.f32 %v6104_v23, %v7306_v15  ;;  %v1089_v25 = vpop.f32.mrb[17].mxu0  ;;  %v1249_v29 = vsel %vm1184_vm1, %v1085_v14, %v1217_v20  ;;  %v7419_v23 = vld [vmem:[%s8610_s9] ss:$0 sm:$0xff] }
 0x132   : > { %v1090_v26 = vadd.f32 %v7306_v15, %v1089_v25  ;;  %v1248_v27 = vsel %vm1183_vm2, %v1080_v18, %v1216_v22 }
 0x133   : > { %v1219_v28 = vmul.f32 %v7308_v17, %v1095_v24  ;;  %6155 = vmatprep.mubr.msk.f32.mxu1 %vm1277_vm3, %v1248_v27  ;;  %vm1186_vm4 = vcmp.ge.f32.partialorder %v1095_v24, 0.0 }
 0x134   : > { %vm1185_vm5 = vcmp.ge.f32.partialorder %v1090_v26, 0.0  ;;  %v1218_v30 = vmul.f32 %v7308_v17, %v1090_v26  ;;  %v6107_v31 = vpop.f32.mrb[18].mxu0  ;;  %6156 = vmatmul.mubr.msk.f32.gmra.mrb[14].mxu1 %vm1277_vm3, %v1249_v29 }
 0x135   : > { %v1105_v32 = vadd.f32 %v6107_v31, %v7306_v15  ;;  %v1099_v33 = vpop.f32.mrb[19].mxu0  ;;  %v1251_v37 = vsel %vm1186_vm4, %v1095_v24, %v1219_v28  ;;  %v7425_v28 = vstv %s5469_s1 }
 0x136   : > { %v1100_v34 = vadd.f32 %v7306_v15, %v1099_v33  ;;  %v1250_v35 = vsel %vm1185_vm5, %v1090_v26, %v1218_v30 }
 0x137   : > { %v1221_v36 = vmul.f32 %v7308_v17, %v1105_v32  ;;  %6158 = vmatprep.mubr.msk.f32.mxu1 %vm1277_vm3, %v1250_v35  ;;  %vm1188_vm6 = vcmp.ge.f32.partialorder %v1105_v32, 0.0 }
 0x138   : > { %vm1187_vm7 = vcmp.ge.f32.partialorder %v1100_v34, 0.0  ;;  %v1220_v38 = vmul.f32 %v7308_v17, %v1100_v34  ;;  %v6110_v39 = vpop.f32.mrb[20].mxu0  ;;  %6159 = vmatmul.mubr.msk.f32.gmra.mrb[16].mxu1 %vm1277_vm3, %v1251_v37 }
 0x139   : > { %v1115_v40 = vadd.f32 %v6110_v39, %v7306_v15  ;;  %v1109_v42 = vpop.f32.mrb[21].mxu0  ;;  %v1253_v46 = vsel %vm1188_vm6, %v1105_v32, %v1221_v36 }
 0x13a   : > { %v1110_v43 = vadd.f32 %v7306_v15, %v1109_v42  ;;  %v1252_v44 = vsel %vm1187_vm7, %v1100_v34, %v1220_v38 }
 0x13b   : > { %v1223_v45 = vmul.f32 %v7308_v17, %v1115_v40  ;;  %6161 = vmatprep.mubr.msk.f32.mxu1 %vm1277_vm3, %v1252_v44  ;;  %vm1190_vm8 = vcmp.ge.f32.partialorder %v1115_v40, 0.0 }
 0x13c   : > { %vm1189_vm9 = vcmp.ge.f32.partialorder %v1110_v43, 0.0  ;;  %v1222_v47 = vmul.f32 %v7308_v17, %v1110_v43  ;;  %v6113_v48 = vpop.f32.mrb[22].mxu0  ;;  %6162 = vmatmul.mubr.msk.f32.gmra.mrb[18].mxu1 %vm1277_vm3, %v1253_v46 }
 0x13d   : > { %v1125_v49 = vadd.f32 %v6113_v48, %v7306_v15  ;;  %v1119_v50 = vpop.f32.mrb[23].mxu0  ;;  %v1255_v54 = vsel %vm1190_vm8, %v1115_v40, %v1223_v45 }
 0x13e   : > { %v1120_v51 = vadd.f32 %v7306_v15, %v1119_v50  ;;  %v1254_v52 = vsel %vm1189_vm9, %v1110_v43, %v1222_v47 }
 0x13f   : > { %v1225_v53 = vmul.f32 %v7308_v17, %v1125_v49  ;;  %6164 = vmatprep.mubr.msk.f32.mxu1 %vm1277_vm3, %v1254_v52  ;;  %vm1192_vm10 = vcmp.ge.f32.partialorder %v1125_v49, 0.0 }
 0x140   : > { %vm1191_vm11 = vcmp.ge.f32.partialorder %v1120_v51, 0.0  ;;  %v1224_v55 = vmul.f32 %v7308_v17, %v1120_v51  ;;  %v6116_v56 = vpop.f32.mrb[24].mxu0  ;;  %6165 = vmatmul.mubr.msk.f32.gmra.mrb[20].mxu1 %vm1277_vm3, %v1255_v54 }
 0x141   : > { %v1135_v57 = vadd.f32 %v6116_v56, %v7306_v15  ;;  %v1129_v58 = vpop.f32.mrb[25].mxu0  ;;  %v1257_v62 = vsel %vm1192_vm10, %v1125_v49, %v1225_v53 }
 0x142   : > { %v1130_v59 = vadd.f32 %v7306_v15, %v1129_v58  ;;  %v1256_v60 = vsel %vm1191_vm11, %v1120_v51, %v1224_v55 }
 0x143   : > { %v1227_v61 = vmul.f32 %v7308_v17, %v1135_v57  ;;  %6167 = vmatprep.mubr.msk.f32.mxu1 %vm1277_vm3, %v1256_v60  ;;  %vm1194_vm12 = vcmp.ge.f32.partialorder %v1135_v57, 0.0 }
 0x144   : > { %vm1193_vm13 = vcmp.ge.f32.partialorder %v1130_v59, 0.0  ;;  %v1226_v63 = vmul.f32 %v7308_v17, %v1130_v59  ;;  %v6119_v0 = vpop.f32.mrb[26].mxu0  ;;  %6168 = vmatmul.mubr.msk.f32.gmra.mrb[22].mxu1 %vm1277_vm3, %v1257_v62 }
 0x145   : > { %v1145_v1 = vadd.f32 %v6119_v0, %v7306_v15  ;;  %v1139_v2 = vpop.f32.mrb[27].mxu0  ;;  %v1259_v6 = vsel %vm1194_vm12, %v1135_v57, %v1227_v61 }
 0x146   : > { %v1140_v3 = vadd.f32 %v7306_v15, %v1139_v2  ;;  %v1258_v4 = vsel %vm1193_vm13, %v1130_v59, %v1226_v63 }
 0x147   : > { %v1229_v5 = vmul.f32 %v7308_v17, %v1145_v1  ;;  %6170 = vmatprep.mubr.msk.f32.mxu1 %vm1277_vm3, %v1258_v4  ;;  %vm1196_vm14 = vcmp.ge.f32.partialorder %v1145_v1, 0.0 }
 0x148   : > { %vm1195_vm15 = vcmp.ge.f32.partialorder %v1140_v3, 0.0  ;;  %v1228_v7 = vmul.f32 %v7308_v17, %v1140_v3  ;;  %v6122_v8 = vpop.f32.mrb[28].mxu0  ;;  %6171 = vmatmul.mubr.msk.f32.gmra.mrb[24].mxu1 %vm1277_vm3, %v1259_v6 }
 0x149   : > { %v1155_v9 = vadd.f32 %v6122_v8, %v7306_v15  ;;  %v1149_v10 = vpop.f32.mrb[29].mxu0  ;;  %v1261_v14 = vsel %vm1196_vm14, %v1145_v1, %v1229_v5 }
 0x14a   : > { %v1150_v11 = vadd.f32 %v7306_v15, %v1149_v10  ;;  %v1260_v12 = vsel %vm1195_vm15, %v1140_v3, %v1228_v7 }
 0x14b   : > { %v1231_v13 = vmul.f32 %v7308_v17, %v1155_v9  ;;  %6173 = vmatprep.mubr.msk.f32.mxu1 %vm1277_vm3, %v1260_v12  ;;  %vm1198_vm1 = vcmp.ge.f32.partialorder %v1155_v9, 0.0 }
 0x14c   : > { %vm1197_vm2 = vcmp.ge.f32.partialorder %v1150_v11, 0.0  ;;  %v1230_v16 = vmul.f32 %v7308_v17, %v1150_v11  ;;  %v6125_v18 = vpop.f32.mrb[30].mxu0  ;;  %6174 = vmatmul.mubr.msk.f32.gmra.mrb[26].mxu1 %vm1277_vm3, %v1261_v14 }
 0x14d   : > { %v1165_v19 = vadd.f32 %v6125_v18, %v7306_v15  ;;  %v1159_v20 = vpop.f32.mrb[31].mxu0  ;;  %v1263_v25 = vsel %vm1198_vm1, %v1155_v9, %v1231_v13 }
 0x14e   : > { %v1160_v21 = vadd.f32 %v7306_v15, %v1159_v20  ;;  %v1262_v22 = vsel %vm1197_vm2, %v1150_v11, %v1230_v16 }
 0x14f   : > { %v1233_v24 = vmul.f32 %v7308_v17, %v1165_v19  ;;  %6176 = vmatprep.mubr.msk.f32.mxu1 %vm1277_vm3, %v1262_v22  ;;  %vm1200_vm4 = vcmp.ge.f32.partialorder %v1165_v19, 0.0 }
 0x150   : > { %vm1199_vm5 = vcmp.ge.f32.partialorder %v1160_v21, 0.0  ;;  %v1232_v26 = vmul.f32 %v7308_v17, %v1160_v21  ;;  %6177 = vmatmul.mubr.msk.f32.gmra.mrb[28].mxu1 %vm1277_vm3, %v1263_v25  ;;  %v6188_v27 = vpop.f32.mrb[32].mxu0 }
 0x151   : > { %v1909_v15 = vadd.f32 %v6188_v27, %v7419_v23  ;;  %v1903_v29 = vpop.f32.mrb[33].mxu0  ;;  %v1265_v33 = vsel %vm1200_vm4, %v1165_v19, %v1233_v24 }
 0x152   : > { %v1904_v30 = vadd.f32 %v7419_v23, %v1903_v29  ;;  %v1264_v31 = vsel %vm1199_vm5, %v1160_v21, %v1232_v26 }
 0x153   : > { %v2097_v32 = vmul.f32 %v7425_v28, %v1909_v15  ;;  %6179 = vmatprep.mubr.msk.f32.mxu1 %vm1277_vm3, %v1264_v31  ;;  %vm2064_vm6 = vcmp.ge.f32.partialorder %v1909_v15, 0.0 }
 0x154   : > { %vm2063_vm7 = vcmp.ge.f32.partialorder %v1904_v30, 0.0  ;;  %v2096_v17 = vmul.f32 %v7425_v28, %v1904_v30  ;;  %6180 = vmatmul.mubr.msk.f32.gmra.mrb[30].mxu1 %vm1277_vm3, %v1265_v33  ;;  %v6191_v34 = vpop.f32.mrb[34].mxu0 }
 0x155   : > { %v1919_v35 = vadd.f32 %v6191_v34, %v7419_v23  ;;  %v1913_v36 = vpop.f32.mrb[35].mxu0  ;;  %v2129_v39 = vsel %vm2064_vm6, %v1909_v15, %v2097_v32 }
 0x156   : > { %v1914_v37 = vadd.f32 %v7419_v23, %v1913_v36  ;;  %v2128_v38 = vsel %vm2063_vm7, %v1904_v30, %v2096_v17 }
 0x157   : > { %v2099_v40 = vmul.f32 %v7425_v28, %v1919_v35  ;;  %6242 = vmatprep.mubr.msk.f32.mxu1 %vm1277_vm3, %v2128_v38  ;;  %vm2066_vm8 = vcmp.ge.f32.partialorder %v1919_v35, 0.0 }
 0x158   : > { %vm2065_vm9 = vcmp.ge.f32.partialorder %v1914_v37, 0.0  ;;  %v2098_v42 = vmul.f32 %v7425_v28, %v1914_v37  ;;  %v6194_v43 = vpop.f32.mrb[36].mxu0  ;;  %6243 = vmatmul.mubr.msk.f32.vlgmr.msra.gmra.mrb[32].mxu1 %vm1277_vm3, %v2129_v39 }
 0x159   : > { %v1929_v44 = vadd.f32 %v6194_v43, %v7419_v23  ;;  %6665 = vmatpush3.bf16.msra.mxu1 %v7335_v41  ;;  %v1923_v45 = vpop.f32.mrb[37].mxu0  ;;  %v2131_v49 = vsel %vm2066_vm8, %v1919_v35, %v2099_v40 }
 0x15a   : > { %v1924_v46 = vadd.f32 %v7419_v23, %v1923_v45  ;;  %v2130_v47 = vsel %vm2065_vm9, %v1914_v37, %v2098_v42 }
 0x15b   : > { %v2101_v48 = vmul.f32 %v7425_v28, %v1929_v44  ;;  %6245 = vmatprep.mubr.msk.f32.mxu1 %vm1277_vm3, %v2130_v47  ;;  %vm2068_vm10 = vcmp.ge.f32.partialorder %v1929_v44, 0.0 }
 0x15c   : > { %vm2067_vm11 = vcmp.ge.f32.partialorder %v1924_v46, 0.0  ;;  %v2100_v50 = vmul.f32 %v7425_v28, %v1924_v46  ;;  %v6197_v51 = vpop.f32.mrb[38].mxu0  ;;  %6246 = vmatmul.mubr.msk.f32.gmra.mrb[34].mxu1 %vm1277_vm3, %v2131_v49 }
 0x15d   : > { %v1939_v52 = vadd.f32 %v6197_v51, %v7419_v23  ;;  %v1933_v53 = vpop.f32.mrb[39].mxu0  ;;  %v2133_v56 = vsel %vm2068_vm10, %v1929_v44, %v2101_v48 }
 0x15e   : > { %v1934_v41 = vadd.f32 %v7419_v23, %v1933_v53  ;;  %v2132_v54 = vsel %vm2067_vm11, %v1924_v46, %v2100_v50 }
 0x15f   : > { %v2103_v55 = vmul.f32 %v7425_v28, %v1939_v52  ;;  %6248 = vmatprep.mubr.msk.f32.mxu1 %vm1277_vm3, %v2132_v54  ;;  %vm2070_vm12 = vcmp.ge.f32.partialorder %v1939_v52, 0.0 }
 0x160   : > { %vm2069_vm13 = vcmp.ge.f32.partialorder %v1934_v41, 0.0  ;;  %v2102_v57 = vmul.f32 %v7425_v28, %v1934_v41  ;;  %v6200_v58 = vpop.f32.mrb[40].mxu0  ;;  %6249 = vmatmul.mubr.msk.f32.gmra.mrb[36].mxu1 %vm1277_vm3, %v2133_v56 }
 0x161   : > { %v1949_v59 = vadd.f32 %v6200_v58, %v7419_v23  ;;  %v1943_v60 = vpop.f32.mrb[41].mxu0  ;;  %v2135_v0 = vsel %vm2070_vm12, %v1939_v52, %v2103_v55 }
 0x162   : > { %v1944_v61 = vadd.f32 %v7419_v23, %v1943_v60  ;;  %v2134_v62 = vsel %vm2069_vm13, %v1934_v41, %v2102_v57 }
 0x163   : > { %v2105_v63 = vmul.f32 %v7425_v28, %v1949_v59  ;;  %6251 = vmatprep.mubr.msk.f32.mxu1 %vm1277_vm3, %v2134_v62  ;;  %vm2072_vm14 = vcmp.ge.f32.partialorder %v1949_v59, 0.0 }
 0x164   : > { %vm2071_vm15 = vcmp.ge.f32.partialorder %v1944_v61, 0.0  ;;  %v2104_v1 = vmul.f32 %v7425_v28, %v1944_v61  ;;  %v6203_v2 = vpop.f32.mrb[42].mxu0  ;;  %6252 = vmatmul.mubr.msk.f32.gmra.mrb[38].mxu1 %vm1277_vm3, %v2135_v0 }
 0x165   : > { %v1959_v3 = vadd.f32 %v6203_v2, %v7419_v23  ;;  %v1953_v4 = vpop.f32.mrb[43].mxu0  ;;  %v2137_v8 = vsel %vm2072_vm14, %v1949_v59, %v2105_v63 }
 0x166   : > { %v1954_v5 = vadd.f32 %v7419_v23, %v1953_v4  ;;  %v2136_v6 = vsel %vm2071_vm15, %v1944_v61, %v2104_v1 }
 0x167   : > { %v2107_v7 = vmul.f32 %v7425_v28, %v1959_v3  ;;  %6254 = vmatprep.mubr.msk.f32.mxu1 %vm1277_vm3, %v2136_v6  ;;  %vm2074_vm1 = vcmp.ge.f32.partialorder %v1959_v3, 0.0 }
 0x168   : > { %vm2073_vm2 = vcmp.ge.f32.partialorder %v1954_v5, 0.0  ;;  %v2106_v9 = vmul.f32 %v7425_v28, %v1954_v5  ;;  %v6206_v10 = vpop.f32.mrb[44].mxu0  ;;  %6255 = vmatmul.mubr.msk.f32.gmra.mrb[40].mxu1 %vm1277_vm3, %v2137_v8 }
 0x169   : > { %v1969_v11 = vadd.f32 %v6206_v10, %v7419_v23  ;;  %v1963_v12 = vpop.f32.mrb[45].mxu0  ;;  %v2139_v18 = vsel %vm2074_vm1, %v1959_v3, %v2107_v7 }
 0x16a   : > { %v1964_v13 = vadd.f32 %v7419_v23, %v1963_v12  ;;  %v2138_v14 = vsel %vm2073_vm2, %v1954_v5, %v2106_v9 }
 0x16b   : > { %v2109_v16 = vmul.f32 %v7425_v28, %v1969_v11  ;;  %6257 = vmatprep.mubr.msk.f32.mxu1 %vm1277_vm3, %v2138_v14  ;;  %vm2076_vm4 = vcmp.ge.f32.partialorder %v1969_v11, 0.0 }
 0x16c   : > { %vm2075_vm5 = vcmp.ge.f32.partialorder %v1964_v13, 0.0  ;;  %v2108_v19 = vmul.f32 %v7425_v28, %v1964_v13  ;;  %v6209_v20 = vpop.f32.mrb[46].mxu0  ;;  %6258 = vmatmul.mubr.msk.f32.gmra.mrb[42].mxu1 %vm1277_vm3, %v2139_v18 }
 0x16d   : > { %v1979_v21 = vadd.f32 %v6209_v20, %v7419_v23  ;;  %v1973_v22 = vpop.f32.mrb[47].mxu0  ;;  %v2141_v27 = vsel %vm2076_vm4, %v1969_v11, %v2109_v16 }
 0x16e   : > { %v1974_v24 = vadd.f32 %v7419_v23, %v1973_v22  ;;  %v2140_v25 = vsel %vm2075_vm5, %v1964_v13, %v2108_v19 }
 0x16f   : > { %v2111_v26 = vmul.f32 %v7425_v28, %v1979_v21  ;;  %6260 = vmatprep.mubr.msk.f32.mxu1 %vm1277_vm3, %v2140_v25  ;;  %vm2078_vm6 = vcmp.ge.f32.partialorder %v1979_v21, 0.0 }
 0x170   : > { %vm2077_vm7 = vcmp.ge.f32.partialorder %v1974_v24, 0.0  ;;  %v2110_v15 = vmul.f32 %v7425_v28, %v1974_v24  ;;  %v6212_v29 = vpop.f32.mrb[48].mxu0  ;;  %6261 = vmatmul.mubr.msk.f32.gmra.mrb[44].mxu1 %vm1277_vm3, %v2141_v27 }
 0x171   : > { %v1989_v30 = vadd.f32 %v6212_v29, %v7419_v23  ;;  %v1983_v31 = vpop.f32.mrb[49].mxu0  ;;  %v2143_v34 = vsel %vm2078_vm6, %v1979_v21, %v2111_v26 }
 0x172   : > { %v1984_v32 = vadd.f32 %v7419_v23, %v1983_v31  ;;  %v2142_v33 = vsel %vm2077_vm7, %v1974_v24, %v2110_v15  ;;  %v3234_v31 = vld [vmem:[%s7526_s8] sm:$0xff] }
 0x173   : > { %v2113_v17 = vmul.f32 %v7425_v28, %v1989_v30  ;;  %6263 = vmatprep.mubr.msk.f32.mxu1 %vm1277_vm3, %v2142_v33  ;;  %vm2080_vm8 = vcmp.ge.f32.partialorder %v1989_v30, 0.0  ;;  %v3235_v33 = vld [vmem:[%s7526_s8 + $0x8] sm:$0xff] }
 0x174   : > { %vm2079_vm9 = vcmp.ge.f32.partialorder %v1984_v32, 0.0  ;;  %v2112_v35 = vmul.f32 %v7425_v28, %v1984_v32  ;;  %v6215_v36 = vpop.f32.mrb[50].mxu0  ;;  %6264 = vmatmul.mubr.msk.f32.gmra.mrb[46].mxu1 %vm1277_vm3, %v2143_v34  ;;  %v3238_v34 = vld [vmem:[%s7526_s8 + $0x20] sm:$0xff] }
 0x175   : > { %v1999_v37 = vadd.f32 %v6215_v36, %v7419_v23  ;;  %v1993_v38 = vpop.f32.mrb[51].mxu0  ;;  %v2145_v43 = vsel %vm2080_vm8, %v1989_v30, %v2113_v17  ;;  %v3236_v17 = vld [vmem:[%s7526_s8 + $0x10] sm:$0xff] }
 0x176   : > { %v1994_v39 = vadd.f32 %v7419_v23, %v1993_v38  ;;  %v2144_v40 = vsel %vm2079_vm9, %v1984_v32, %v2112_v35  ;;  %v3239_v35 = vld [vmem:[%s7526_s8 + $0x28] sm:$0xff]  ;;  %v3240_v36 = vld [vmem:[%s7526_s8 + $0x30] sm:$0xff]  ;;  %v3242_v38 = vld [vmem:[%s7526_s8 + $0x40] sm:$0xff] }
 0x177   : > { %v2115_v42 = vmul.f32 %v7425_v28, %v1999_v37  ;;  %6266 = vmatprep.mubr.msk.f32.mxu1 %vm1277_vm3, %v2144_v40  ;;  %vm2082_vm10 = vcmp.ge.f32.partialorder %v1999_v37, 0.0  ;;  %v3244_v40 = vld [vmem:[%s7526_s8 + $0x50] sm:$0xff] }
 0x178   : > { %vm2081_vm11 = vcmp.ge.f32.partialorder %v1994_v39, 0.0  ;;  %v2114_v44 = vmul.f32 %v7425_v28, %v1994_v39  ;;  %v6218_v45 = vpop.f32.mrb[52].mxu0  ;;  %6267 = vmatmul.mubr.msk.f32.gmra.mrb[48].mxu1 %vm1277_vm3, %v2145_v43  ;;  %v2589_v43 = vld [vmem:[%s8579_s17 + $0x8] sm:$0xff] }
 0x179   : > { %v2009_v46 = vadd.f32 %v6218_v45, %v7419_v23  ;;  %v2003_v47 = vpop.f32.mrb[53].mxu0  ;;  %v2147_v51 = vsel %vm2082_vm10, %v1999_v37, %v2115_v42  ;;  %v3241_v37 = vld [vmem:[%s7526_s8 + $0x38] sm:$0xff]  ;;  %v2588_v42 = vld [vmem:[%s8579_s17] sm:$0xff] }
 0x17a   : > { %v2004_v48 = vadd.f32 %v7419_v23, %v2003_v47  ;;  %v2146_v49 = vsel %vm2081_vm11, %v1994_v39, %v2114_v44  ;;  %v3243_v39 = vld [vmem:[%s7526_s8 + $0x48] sm:$0xff]  ;;  %v3245_v44 = vld [vmem:[%s7526_s8 + $0x58] sm:$0xff]  ;;  %v6646_v45 = vpack.c.bf16 %v2589_v43, %v2588_v42  ;;  %v2590_v47 = vld [vmem:[%s8579_s17 + $0x10] sm:$0xff] }
 0x17b   : > { %v2117_v50 = vmul.f32 %v7425_v28, %v2009_v46  ;;  %6269 = vmatprep.mubr.msk.f32.mxu1 %vm1277_vm3, %v2146_v49  ;;  %vm2084_vm12 = vcmp.ge.f32.partialorder %v2009_v46, 0.0  ;;  %v3247_v49 = vld [vmem:[%s7526_s8 + $0x68] sm:$0xff] }
 0x17c   : > { %vm2083_vm13 = vcmp.ge.f32.partialorder %v2004_v48, 0.0  ;;  %v2116_v52 = vmul.f32 %v7425_v28, %v2004_v48  ;;  %v6221_v53 = vpop.f32.mrb[54].mxu0  ;;  %6270 = vmatmul.mubr.msk.f32.gmra.mrb[50].mxu1 %vm1277_vm3, %v2147_v51  ;;  %6647 = vmatprep.subr.bf16.mxu0 %v6646_v45  ;;  %v3248_v51 = vld [vmem:[%s7526_s8 + $0x70] sm:$0xff] }
 0x17d   : > { %v2019_v41 = vadd.f32 %v6221_v53, %v7419_v23  ;;  %v2013_v54 = vpop.f32.mrb[55].mxu0  ;;  %v2149_v58 = vsel %vm2084_vm12, %v2009_v46, %v2117_v50  ;;  %v3246_v46 = vld [vmem:[%s7526_s8 + $0x60] sm:$0xff]  ;;  %6649 = vmatpush3.bf16.msra.mxu0 %v6646_v45 }
 0x17e   : > { %v2014_v55 = vadd.f32 %v7419_v23, %v2013_v54  ;;  %v2148_v56 = vsel %vm2083_vm13, %v2004_v48, %v2116_v52  ;;  %v2591_v48 = vld [vmem:[%s8579_s17 + $0x18] sm:$0xff]  ;;  %v3250_v53 = vld [vmem:[%s7526_s8 + $0x80] sm:$0xff]  ;;  %v3696_v54 = vld [vmem:[%s8576_s14 + $0x8] sm:$0xff] }
 0x17f   : > { %v2119_v57 = vmul.f32 %v7425_v28, %v2019_v41  ;;  %6272 = vmatprep.mubr.msk.f32.mxu1 %vm1277_vm3, %v2148_v56  ;;  %vm2086_vm14 = vcmp.ge.f32.partialorder %v2019_v41, 0.0  ;;  %v6650_v50 = vpack.c.bf16 %v2591_v48, %v2590_v47  ;;  %v3249_v52 = vld [vmem:[%s7526_s8 + $0x78] sm:$0xff]  ;;  %v3251_v56 = vld [vmem:[%s7526_s8 + $0x88] sm:$0xff] }
 0x180   : > { %vm2085_vm15 = vcmp.ge.f32.partialorder %v2014_v55, 0.0  ;;  %v2118_v59 = vmul.f32 %v7425_v28, %v2014_v55  ;;  %v6224_v60 = vpop.f32.mrb[56].mxu0  ;;  %6273 = vmatmul.mubr.msk.f32.gmra.mrb[52].mxu1 %vm1277_vm3, %v2149_v58  ;;  %v3253_v58 = vld [vmem:[%s7526_s8 + $0x98] sm:$0xff] }
 0x181   : > { %v2029_v61 = vadd.f32 %v6224_v60, %v7419_v23  ;;  %v2023_v62 = vpop.f32.mrb[57].mxu0  ;;  %v2151_v2 = vsel %vm2086_vm14, %v2019_v41, %v2119_v57  ;;  %6651 = vmatprep.subr.bf16.mxu0 %v6650_v50  ;;  %v3695_v41 = vld [vmem:[%s8576_s14] sm:$0xff]  ;;  %v3252_v57 = vld [vmem:[%s7526_s8 + $0x90] sm:$0xff]  ;;  %v3255_v60 = vld [vmem:[%s7526_s8 + $0xa8] sm:$0xff] }
 0x182   : > { %v2024_v63 = vadd.f32 %v7419_v23, %v2023_v62  ;;  %v2150_v0 = vsel %vm2085_vm15, %v2014_v55, %v2118_v59  ;;  %6653 = vmatpush3.bf16.msra.mxu0 %v6650_v50  ;;  %v6666_v55 = vpack.c.bf16 %v3696_v54, %v3695_v41  ;;  %v3254_v59 = vld [vmem:[%s7526_s8 + $0xa0] sm:$0xff]  ;;  %v3257_v62 = vld [vmem:[%s7526_s8 + $0xb8] sm:$0xff] }
 0x183   : > { %v2121_v1 = vmul.f32 %v7425_v28, %v2029_v61  ;;  %6275 = vmatprep.mubr.msk.f32.mxu1 %vm1277_vm3, %v2150_v0  ;;  %vm2088_vm1 = vcmp.ge.f32.partialorder %v2029_v61, 0.0  ;;  %v3259_v0 = vld [vmem:[%s7526_s8 + $0xc8] sm:$0xff]  ;;  %v1699_v41 = vld [vmem:[%s8578_s16 + $0x18] sm:$0xff] }
 0x184   : > { %vm2087_vm2 = vcmp.ge.f32.partialorder %v2024_v63, 0.0  ;;  %v2120_v3 = vmul.f32 %v7425_v28, %v2024_v63  ;;  %v6227_v4 = vpop.f32.mrb[58].mxu0  ;;  %6276 = vmatmul.mubr.msk.f32.gmra.mrb[54].mxu1 %vm1277_vm3, %v2151_v2  ;;  %6667 = vmatprep.subr.bf16.mxu1 %v6666_v55  ;;  %v3261_v2 = vld [vmem:[%s7526_s8 + $0xd8] sm:$0xff] }
 0x185   : > { %v2039_v5 = vadd.f32 %v6227_v4, %v7419_v23  ;;  %v2033_v6 = vpop.f32.mrb[59].mxu0  ;;  %v2153_v10 = vsel %vm2088_vm1, %v2029_v61, %v2121_v1  ;;  %v3256_v61 = vld [vmem:[%s7526_s8 + $0xb0] sm:$0xff]  ;;  %v3263_v4 = vld [vmem:[%s7526_s8 + $0xe8] sm:$0xff] }
 0x186   : > { %v2034_v7 = vadd.f32 %v7419_v23, %v2033_v6  ;;  %v2152_v8 = vsel %vm2087_vm2, %v2024_v63, %v2120_v3  ;;  %v3258_v63 = vld [vmem:[%s7526_s8 + $0xc0] sm:$0xff]  ;;  %v3260_v1 = vld [vmem:[%s7526_s8 + $0xd0] sm:$0xff]  ;;  %v3265_v6 = vld [vmem:[%s7526_s8 + $0xf8] sm:$0xff] }
 0x187   : > { %v2123_v9 = vmul.f32 %v7425_v28, %v2039_v5  ;;  %6278 = vmatprep.mubr.msk.f32.mxu1 %vm1277_vm3, %v2152_v8  ;;  %vm2090_vm4 = vcmp.ge.f32.partialorder %v2039_v5, 0.0  ;;  %v3262_v3 = vld [vmem:[%s7526_s8 + $0xe0] sm:$0xff]  ;;  %v3698_v8 = vld [vmem:[%s8576_s14 + $0x18] sm:$0xff] }
 0x188   : > { %vm2089_vm5 = vcmp.ge.f32.partialorder %v2034_v7, 0.0  ;;  %v2122_v11 = vmul.f32 %v7425_v28, %v2034_v7  ;;  %v6230_v12 = vpop.f32.mrb[60].mxu0  ;;  %6279 = vmatmul.mubr.msk.f32.gmra.mrb[56].mxu1 %vm1277_vm3, %v2153_v10  ;;  %v1696_v10 = vld [vmem:[%s8578_s16] sm:$0xff] }
 0x189   : > { %v2049_v13 = vadd.f32 %v6230_v12, %v7419_v23  ;;  %v2043_v14 = vpop.f32.mrb[61].mxu0  ;;  %v2155_v20 = vsel %vm2090_vm4, %v2039_v5, %v2123_v9  ;;  %v3264_v5 = vld [vmem:[%s7526_s8 + $0xf0] sm:$0xff] }
 0x18a   : > { %v2044_v16 = vadd.f32 %v7419_v23, %v2043_v14  ;;  %v2154_v18 = vsel %vm2089_vm5, %v2034_v7, %v2122_v11  ;;  %v3697_v7 = vld [vmem:[%s8576_s14 + $0x10] sm:$0xff]  ;;  %v1697_v11 = vld [vmem:[%s8578_s16 + $0x8] sm:$0xff] }
 0x18b   : > { %v2125_v19 = vmul.f32 %v7425_v28, %v2049_v13  ;;  %6281 = vmatprep.mubr.msk.f32.mxu1 %vm1277_vm3, %v2154_v18  ;;  %vm2092_vm6 = vcmp.ge.f32.partialorder %v2049_v13, 0.0  ;;  %v6670_v9 = vpack.c.bf16 %v3698_v8, %v3697_v7  ;;  %v7626_v12 = vpack.c.bf16 %v1697_v11, %v1696_v10 }
 0x18c   : > { %vm2091_vm7 = vcmp.ge.f32.partialorder %v2044_v16, 0.0  ;;  %v2124_v21 = vmul.f32 %v7425_v28, %v2044_v16  ;;  %v6233_v22 = vpop.f32.mrb[62].mxu0  ;;  %6282 = vmatmul.mubr.msk.f32.gmra.mrb[58].mxu1 %vm1277_vm3, %v2155_v20 }
 0x18d   : > { %v2059_v24 = vadd.f32 %v6233_v22, %v7419_v23  ;;  %v2053_v25 = vpop.f32.mrb[63].mxu0  ;;  %v2157_v29 = vsel %vm2092_vm6, %v2049_v13, %v2125_v19  ;;  %6655 = vmatprep.subr.bf16.mxu0 %v7626_v12 }
 0x18e   : > { %v2054_v26 = vadd.f32 %v7419_v23, %v2053_v25  ;;  %v2156_v27 = vsel %vm2091_vm7, %v2044_v16, %v2124_v21 }
 0x18f   : > { %v2127_v15 = vmul.f32 %v7425_v28, %v2059_v24  ;;  %6284 = vmatprep.mubr.msk.f32.mxu1 %vm1277_vm3, %v2156_v27  ;;  %vm2094_vm8 = vcmp.ge.f32.partialorder %v2059_v24, 0.0 }
 0x190   : > { %vm2093_vm9 = vcmp.ge.f32.partialorder %v2054_v26, 0.0  ;;  %v2126_v23 = vmul.f32 %v7425_v28, %v2054_v26  ;;  %6285 = vmatmul.mubr.msk.f32.gmra.mrb[60].mxu1 %vm1277_vm3, %v2157_v29  ;;  %v3237_v28 = vld [vmem:[%s7526_s8 + $0x18] sm:$0xff]  ;;  %s5368_s8 = sld [smem:[#allocation2 + $0x3]] }
 0x191   : > { %v2159_v32 = vsel %vm2094_vm8, %v2059_v24, %v2127_v15 }
 0x192   : > { %v2158_v30 = vsel %vm2093_vm9, %v2054_v26, %v2126_v23 }
 0x193   : > { %6287 = vmatprep.mubr.msk.f32.mxu1 %vm1277_vm3, %v2158_v30 }
 0x194   : > { %6288 = vmatmul.mubr.msk.f32.gmra.mrb[62].mxu1 %vm1277_vm3, %v2159_v32 }
 0x195   : > { %6406 = vmatprep.mubr.msk.f32.mxu1 %vm846_vm0, %v3234_v31 }
 0x196   : > { %v7699_v50 = vstv %s5368_s8  ;;  %s5369_s8 = sld [smem:[#allocation2 + $0x4]] }
 0x198   : > { %6407 = vmatmul.mubr.msk.f32.vlgmr.msra.gmra.mrb[64].mxu1 %vm846_vm0, %v3235_v33 }
 0x199   : > { %6409 = vmatprep.mubr.msk.f32.mxu1 %vm846_vm0, %v3236_v17  ;;  %6669 = vmatpush3.bf16.msra.mxu1 %v6666_v55 }
 0x19a   : > { %6671 = vmatprep.subr.bf16.mxu1 %v6670_v9 }
 0x19c   : > { %6410 = vmatmul.mubr.msk.f32.gmra.mrb[66].mxu1 %vm846_vm0, %v3237_v28 }
 0x19d   : > { %6412 = vmatprep.mubr.msk.f32.mxu1 %vm846_vm0, %v3238_v34  ;;  %6673 = vmatpush3.bf16.msra.mxu1 %v6670_v9 }
 0x1a0   : > { %6413 = vmatmul.mubr.msk.f32.gmra.mrb[68].mxu1 %vm846_vm0, %v3239_v35 }
 0x1a1   : > { %6415 = vmatprep.mubr.msk.f32.mxu1 %vm846_vm0, %v3240_v36 }
 0x1a4   : > { %6416 = vmatmul.mubr.msk.f32.gmra.mrb[70].mxu1 %vm846_vm0, %v3241_v37 }
 0x1a5   : > { %6418 = vmatprep.mubr.msk.f32.mxu1 %vm846_vm0, %v3242_v38 }
 0x1a8   : > { %6419 = vmatmul.mubr.msk.f32.gmra.mrb[72].mxu1 %vm846_vm0, %v3243_v39 }
 0x1a9   : > { %6421 = vmatprep.mubr.msk.f32.mxu1 %vm846_vm0, %v3244_v40 }
 0x1ac   : > { %6422 = vmatmul.mubr.msk.f32.gmra.mrb[74].mxu1 %vm846_vm0, %v3245_v44 }
 0x1ad   : > { %6424 = vmatprep.mubr.msk.f32.mxu1 %vm846_vm0, %v3246_v46  ;;  %v7696_v46 = vld [vmem:[%s8573_s11] ss:$0 sm:$0xff] }
 0x1b0   : > { %6425 = vmatmul.mubr.msk.f32.gmra.mrb[76].mxu1 %vm846_vm0, %v3247_v49 }
 0x1b1   : > { %6427 = vmatprep.mubr.msk.f32.mxu1 %vm846_vm0, %v3248_v51 }
 0x1b4   : > { %6428 = vmatmul.mubr.msk.f32.gmra.mrb[78].mxu1 %vm846_vm0, %v3249_v52 }
 0x1b5   : > { %6430 = vmatprep.mubr.msk.f32.mxu1 %vm846_vm0, %v3250_v53  ;;  %v1698_v53 = vld [vmem:[%s8578_s16 + $0x10] sm:$0xff] }
 0x1b8   : > { %6431 = vmatmul.mubr.msk.f32.gmra.mrb[80].mxu1 %vm846_vm0, %v3251_v56 }
 0x1b9   : > { %6433 = vmatprep.mubr.msk.f32.mxu1 %vm846_vm0, %v3252_v57 }
 0x1bc   : > { %6434 = vmatmul.mubr.msk.f32.gmra.mrb[82].mxu1 %vm846_vm0, %v3253_v58 }
 0x1bd   : > { %6436 = vmatprep.mubr.msk.f32.mxu1 %vm846_vm0, %v3254_v59 }
 0x1c0   : > { %6437 = vmatmul.mubr.msk.f32.gmra.mrb[84].mxu1 %vm846_vm0, %v3255_v60  ;;  %v6658_v60 = vpack.c.bf16 %v1699_v41, %v1698_v53 }
 0x1c1   : > { %6439 = vmatprep.mubr.msk.f32.mxu1 %vm846_vm0, %v3256_v61 }
 0x1c4   : > { %6440 = vmatmul.mubr.msk.f32.gmra.mrb[86].mxu1 %vm846_vm0, %v3257_v62 }
 0x1c5   : > { %6442 = vmatprep.mubr.msk.f32.mxu1 %vm846_vm0, %v3258_v63  ;;  %v4122_v63 = vld [vmem:[%s8580_s18] sm:$0xff] }
 0x1c8   : > { %6443 = vmatmul.mubr.msk.f32.gmra.mrb[88].mxu1 %vm846_vm0, %v3259_v0  ;;  %v4123_v0 = vld [vmem:[%s8580_s18 + $0x8] sm:$0xff] }
 0x1c9   : > { %6445 = vmatprep.mubr.msk.f32.mxu1 %vm846_vm0, %v3260_v1  ;;  %v7725_v7 = vpack.c.bf16 %v4123_v0, %v4122_v63 }
 0x1cc   : > { %6446 = vmatmul.mubr.msk.f32.gmra.mrb[90].mxu1 %vm846_vm0, %v3261_v2 }
 0x1cd   : > { %6448 = vmatprep.mubr.msk.f32.mxu1 %vm846_vm0, %v3262_v3 }
 0x1d0   : > { %6449 = vmatmul.mubr.msk.f32.gmra.mrb[92].mxu1 %vm846_vm0, %v3263_v4 }
 0x1d1   : > { %6451 = vmatprep.mubr.msk.f32.mxu1 %vm846_vm0, %v3264_v5 }
 0x1d4   : > { %6452 = vmatmul.mubr.msk.f32.gmra.mrb[94].mxu1 %vm846_vm0, %v3265_v6 }
 0x1eb   : > { %v7628_v13 = vpop.f32.mrb[0].mxu1 }
 0x1ec   : > { %v7631_v14 = vpop.f32.mrb[1].mxu1 }
 0x1ef   : > { %v7633_v16 = vpop.f32.mrb[2].mxu1 }
 0x1f0   : > { %v7635_v18 = vpop.f32.mrb[3].mxu1 }
 0x1f3   : > { %v7637_v19 = vpop.f32.mrb[4].mxu1 }
 0x1f4   : > { %v7639_v20 = vpop.f32.mrb[5].mxu1 }
 0x1f7   : > { %v7641_v21 = vpop.f32.mrb[6].mxu1 }
 0x1f8   : > { %v7643_v22 = vpop.f32.mrb[7].mxu1 }
 0x1fb   : > { %v7645_v24 = vpop.f32.mrb[8].mxu1 }
 0x1fc   : > { %v7647_v25 = vpop.f32.mrb[9].mxu1 }
 0x1ff   : > { %v7649_v26 = vpop.f32.mrb[10].mxu1 }
 0x200   : > { %v7651_v27 = vpop.f32.mrb[11].mxu1 }
 0x203   : > { %v7653_v15 = vpop.f32.mrb[12].mxu1 }
 0x204   : > { %v7655_v29 = vpop.f32.mrb[13].mxu1 }
 0x207   : > { %v7657_v23 = vpop.f32.mrb[14].mxu1 }
 0x208   : > { %v7659_v30 = vpop.f32.mrb[15].mxu1 }
 0x20b   : > { %v7661_v31 = vpop.f32.mrb[16].mxu1 }
 0x20c   : > { %v7663_v32 = vpop.f32.mrb[17].mxu1 }
 0x20f   : > { %v7665_v33 = vpop.f32.mrb[18].mxu1 }
 0x210   : > { %v7667_v17 = vpop.f32.mrb[19].mxu1 }
 0x213   : > { %v7669_v28 = vpop.f32.mrb[20].mxu1 }
 0x214   : > { %v7671_v34 = vpop.f32.mrb[21].mxu1 }
 0x217   : > { %v7673_v35 = vpop.f32.mrb[22].mxu1 }
 0x218   : > { %v7675_v36 = vpop.f32.mrb[23].mxu1 }
 0x21b   : > { %v7677_v37 = vpop.f32.mrb[24].mxu1 }
 0x21c   : > { %v7679_v38 = vpop.f32.mrb[25].mxu1 }
 0x21f   : > { %v7681_v39 = vpop.f32.mrb[26].mxu1 }
 0x220   : > { %v7683_v40 = vpop.f32.mrb[27].mxu1 }
 0x223   : > { %v7685_v42 = vpop.f32.mrb[28].mxu1 }
 0x224   : > { %v7687_v43 = vpop.f32.mrb[29].mxu1 }
 0x227   : > { %v7689_v44 = vpop.f32.mrb[30].mxu1 }
 0x228   : > { %v7691_v45 = vpop.f32.mrb[31].mxu1 }
 0x22b   : > { %v6244_v47 = vpop.f32.mrb[32].mxu1 }
 0x22c   : > { %v2339_v48 = vadd.f32 %v6244_v47, %v7696_v46  ;;  %v2333_v49 = vpop.f32.mrb[33].mxu1 }
 0x22d   : > { %v2334_v51 = vadd.f32 %v7696_v46, %v2333_v49 }
 0x22e   : > { %v2525_v52 = vmul.f32 %v2339_v48, %v7699_v50  ;;  %vm2493_vm0 = vcmp.ge.f32.partialorder %v2339_v48, 0.0 }
 0x22f   : > { %vm2492_vm10 = vcmp.ge.f32.partialorder %v2334_v51, 0.0  ;;  %v2524_v54 = vmul.f32 %v2334_v51, %v7699_v50  ;;  %v6247_v55 = vpop.f32.mrb[34].mxu1 }
 0x230   : > { %v2349_v56 = vadd.f32 %v6247_v55, %v7696_v46  ;;  %v2343_v57 = vpop.f32.mrb[35].mxu1  ;;  %v2557_v61 = vsel %vm2493_vm0, %v2339_v48, %v2525_v52 }
 0x231   : > { %v2344_v58 = vadd.f32 %v7696_v46, %v2343_v57  ;;  %v2556_v59 = vsel %vm2492_vm10, %v2334_v51, %v2524_v54 }
 0x232   : > { %v2527_v62 = vmul.f32 %v2349_v56, %v7699_v50  ;;  %6298 = vmatprep.mubr.msk.f32.mxu0 %vm1277_vm3, %v2556_v59  ;;  %vm2495_vm11 = vcmp.ge.f32.partialorder %v2349_v56, 0.0 }
 0x233   : > { %vm2494_vm12 = vcmp.ge.f32.partialorder %v2344_v58, 0.0  ;;  %v2526_v1 = vmul.f32 %v2344_v58, %v7699_v50  ;;  %v6250_v2 = vpop.f32.mrb[36].mxu1  ;;  %6299 = vmatmul.mubr.msk.f32.vlgmr.msra.gmra.mrb[64].mxu0 %vm1277_vm3, %v2557_v61 }
 0x234   : > { %v2359_v3 = vadd.f32 %v6250_v2, %v7696_v46  ;;  %v2353_v4 = vpop.f32.mrb[37].mxu1  ;;  %6657 = vmatpush3.bf16.msra.mxu0 %v7626_v12  ;;  %v2559_v9 = vsel %vm2495_vm11, %v2349_v56, %v2527_v62 }
 0x235   : > { %v2354_v5 = vadd.f32 %v7696_v46, %v2353_v4  ;;  %v2558_v6 = vsel %vm2494_vm12, %v2344_v58, %v2526_v1  ;;  %6659 = vmatprep.subr.bf16.mxu0 %v6658_v60 }
 0x236   : > { %v2529_v8 = vmul.f32 %v2359_v3, %v7699_v50  ;;  %6301 = vmatprep.mubr.msk.f32.mxu0 %vm1277_vm3, %v2558_v6  ;;  %vm2497_vm13 = vcmp.ge.f32.partialorder %v2359_v3, 0.0 }
 0x237   : > { %vm2496_vm14 = vcmp.ge.f32.partialorder %v2354_v5, 0.0  ;;  %v2528_v10 = vmul.f32 %v2354_v5, %v7699_v50  ;;  %v6253_v11 = vpop.f32.mrb[38].mxu1  ;;  %6302 = vmatmul.mubr.msk.f32.gmra.mrb[66].mxu0 %vm1277_vm3, %v2559_v9 }
 0x238   : > { %v2369_v12 = vadd.f32 %v6253_v11, %v7696_v46  ;;  %v2363_v47 = vpop.f32.mrb[39].mxu1  ;;  %6661 = vmatpush3.bf16.msra.mxu0 %v6658_v60  ;;  %v2561_v52 = vsel %vm2497_vm13, %v2359_v3, %v2529_v8 }
 0x239   : > { %v2364_v48 = vadd.f32 %v7696_v46, %v2363_v47  ;;  %v2560_v49 = vsel %vm2496_vm14, %v2354_v5, %v2528_v10  ;;  %6675 = vmatprep.subr.bf16.mxu0 %v7725_v7 }
 0x23a   : > { %v2531_v51 = vmul.f32 %v2369_v12, %v7699_v50  ;;  %6304 = vmatprep.mubr.msk.f32.mxu0 %vm1277_vm3, %v2560_v49  ;;  %vm2499_vm15 = vcmp.ge.f32.partialorder %v2369_v12, 0.0 }
 0x23b   : > { %vm2498_vm1 = vcmp.ge.f32.partialorder %v2364_v48, 0.0  ;;  %v2530_v53 = vmul.f32 %v2364_v48, %v7699_v50  ;;  %v6256_v41 = vpop.f32.mrb[40].mxu1  ;;  %6305 = vmatmul.mubr.msk.f32.gmra.mrb[68].mxu0 %vm1277_vm3, %v2561_v52 }
 0x23c   : > { %v2379_v54 = vadd.f32 %v6256_v41, %v7696_v46  ;;  %v2373_v55 = vpop.f32.mrb[41].mxu1  ;;  %v2563_v59 = vsel %vm2499_vm15, %v2369_v12, %v2531_v51 }
 0x23d   : > { %v2374_v56 = vadd.f32 %v7696_v46, %v2373_v55  ;;  %v2562_v57 = vsel %vm2498_vm1, %v2364_v48, %v2530_v53 }
 0x23e   : > { %v2533_v58 = vmul.f32 %v2379_v54, %v7699_v50  ;;  %6307 = vmatprep.mubr.msk.f32.mxu0 %vm1277_vm3, %v2562_v57  ;;  %vm2501_vm2 = vcmp.ge.f32.partialorder %v2379_v54, 0.0 }
 0x23f   : > { %vm2500_vm4 = vcmp.ge.f32.partialorder %v2374_v56, 0.0  ;;  %v2532_v60 = vmul.f32 %v2374_v56, %v7699_v50  ;;  %v6259_v61 = vpop.f32.mrb[42].mxu1  ;;  %6308 = vmatmul.mubr.msk.f32.gmra.mrb[70].mxu0 %vm1277_vm3, %v2563_v59 }
 0x240   : > { %v2389_v62 = vadd.f32 %v6259_v61, %v7696_v46  ;;  %v2383_v63 = vpop.f32.mrb[43].mxu1  ;;  %v2565_v3 = vsel %vm2501_vm2, %v2379_v54, %v2533_v58 }
 0x241   : > { %v2384_v0 = vadd.f32 %v7696_v46, %v2383_v63  ;;  %v2564_v1 = vsel %vm2500_vm4, %v2374_v56, %v2532_v60 }
 0x242   : > { %v2535_v2 = vmul.f32 %v2389_v62, %v7699_v50  ;;  %6310 = vmatprep.mubr.msk.f32.mxu0 %vm1277_vm3, %v2564_v1  ;;  %vm2503_vm5 = vcmp.ge.f32.partialorder %v2389_v62, 0.0 }
 0x243   : > { %vm2502_vm6 = vcmp.ge.f32.partialorder %v2384_v0, 0.0  ;;  %v2534_v4 = vmul.f32 %v2384_v0, %v7699_v50  ;;  %v6262_v5 = vpop.f32.mrb[44].mxu1  ;;  %6311 = vmatmul.mubr.msk.f32.gmra.mrb[72].mxu0 %vm1277_vm3, %v2565_v3 }
 0x244   : > { %v2399_v6 = vadd.f32 %v6262_v5, %v7696_v46  ;;  %v2393_v8 = vpop.f32.mrb[45].mxu1  ;;  %v2567_v12 = vsel %vm2503_vm5, %v2389_v62, %v2535_v2 }
 0x245   : > { %v2394_v9 = vadd.f32 %v7696_v46, %v2393_v8  ;;  %v2566_v10 = vsel %vm2502_vm6, %v2384_v0, %v2534_v4 }
 0x246   : > { %v2537_v11 = vmul.f32 %v2399_v6, %v7699_v50  ;;  %6313 = vmatprep.mubr.msk.f32.mxu0 %vm1277_vm3, %v2566_v10  ;;  %vm2505_vm7 = vcmp.ge.f32.partialorder %v2399_v6, 0.0 }
 0x247   : > { %vm2504_vm8 = vcmp.ge.f32.partialorder %v2394_v9, 0.0  ;;  %v2536_v47 = vmul.f32 %v2394_v9, %v7699_v50  ;;  %v6265_v48 = vpop.f32.mrb[46].mxu1  ;;  %6314 = vmatmul.mubr.msk.f32.gmra.mrb[74].mxu0 %vm1277_vm3, %v2567_v12 }
 0x248   : > { %v2409_v49 = vadd.f32 %v6265_v48, %v7696_v46  ;;  %v2403_v51 = vpop.f32.mrb[47].mxu1  ;;  %v2569_v54 = vsel %vm2505_vm7, %v2399_v6, %v2537_v11 }
 0x249   : > { %v2404_v52 = vadd.f32 %v7696_v46, %v2403_v51  ;;  %v2568_v53 = vsel %vm2504_vm8, %v2394_v9, %v2536_v47 }
 0x24a   : > { %v2539_v41 = vmul.f32 %v2409_v49, %v7699_v50  ;;  %6316 = vmatprep.mubr.msk.f32.mxu0 %vm1277_vm3, %v2568_v53  ;;  %vm2507_vm9 = vcmp.ge.f32.partialorder %v2409_v49, 0.0 }
 0x24b   : > { %vm2506_vm0 = vcmp.ge.f32.partialorder %v2404_v52, 0.0  ;;  %v2538_v55 = vmul.f32 %v2404_v52, %v7699_v50  ;;  %v6268_v56 = vpop.f32.mrb[48].mxu1  ;;  %6317 = vmatmul.mubr.msk.f32.gmra.mrb[76].mxu0 %vm1277_vm3, %v2569_v54 }
 0x24c   : > { %v2419_v57 = vadd.f32 %v6268_v56, %v7696_v46  ;;  %v2413_v58 = vpop.f32.mrb[49].mxu1  ;;  %v2571_v62 = vsel %vm2507_vm9, %v2409_v49, %v2539_v41 }
 0x24d   : > { %v2414_v59 = vadd.f32 %v7696_v46, %v2413_v58  ;;  %v2570_v60 = vsel %vm2506_vm0, %v2404_v52, %v2538_v55 }
 0x24e   : > { %v2541_v61 = vmul.f32 %v2419_v57, %v7699_v50  ;;  %6319 = vmatprep.mubr.msk.f32.mxu0 %vm1277_vm3, %v2570_v60  ;;  %vm2509_vm10 = vcmp.ge.f32.partialorder %v2419_v57, 0.0 }
 0x24f   : > { %vm2508_vm11 = vcmp.ge.f32.partialorder %v2414_v59, 0.0  ;;  %v2540_v63 = vmul.f32 %v2414_v59, %v7699_v50  ;;  %v6271_v0 = vpop.f32.mrb[50].mxu1  ;;  %6320 = vmatmul.mubr.msk.f32.gmra.mrb[78].mxu0 %vm1277_vm3, %v2571_v62 }
 0x250   : > { %v2429_v1 = vadd.f32 %v6271_v0, %v7696_v46  ;;  %v2423_v2 = vpop.f32.mrb[51].mxu1  ;;  %v2573_v6 = vsel %vm2509_vm10, %v2419_v57, %v2541_v61 }
 0x251   : > { %v2424_v3 = vadd.f32 %v7696_v46, %v2423_v2  ;;  %v2572_v4 = vsel %vm2508_vm11, %v2414_v59, %v2540_v63 }
 0x252   : > { %v2543_v5 = vmul.f32 %v2429_v1, %v7699_v50  ;;  %6322 = vmatprep.mubr.msk.f32.mxu0 %vm1277_vm3, %v2572_v4  ;;  %vm2511_vm12 = vcmp.ge.f32.partialorder %v2429_v1, 0.0 }
 0x253   : > { %vm2510_vm13 = vcmp.ge.f32.partialorder %v2424_v3, 0.0  ;;  %v2542_v8 = vmul.f32 %v2424_v3, %v7699_v50  ;;  %v6274_v9 = vpop.f32.mrb[52].mxu1  ;;  %6323 = vmatmul.mubr.msk.f32.gmra.mrb[80].mxu0 %vm1277_vm3, %v2573_v6  ;;  %v7796_v6 = vld [vmem:[%s8612_s7] ss:$0 sm:$0xff] }
 0x254   : > { %v2439_v10 = vadd.f32 %v6274_v9, %v7696_v46  ;;  %v2433_v11 = vpop.f32.mrb[53].mxu1  ;;  %v2575_v49 = vsel %vm2511_vm12, %v2429_v1, %v2543_v5 }
 0x255   : > { %v2434_v12 = vadd.f32 %v7696_v46, %v2433_v11  ;;  %v2574_v47 = vsel %vm2510_vm13, %v2424_v3, %v2542_v8 }
 0x256   : > { %v2545_v48 = vmul.f32 %v2439_v10, %v7699_v50  ;;  %6325 = vmatprep.mubr.msk.f32.mxu0 %vm1277_vm3, %v2574_v47  ;;  %vm2513_vm14 = vcmp.ge.f32.partialorder %v2439_v10, 0.0 }
 0x257   : > { %vm2512_vm15 = vcmp.ge.f32.partialorder %v2434_v12, 0.0  ;;  %v2544_v51 = vmul.f32 %v2434_v12, %v7699_v50  ;;  %v6277_v52 = vpop.f32.mrb[54].mxu1  ;;  %6326 = vmatmul.mubr.msk.f32.gmra.mrb[82].mxu0 %vm1277_vm3, %v2575_v49 }
 0x258   : > { %v2449_v53 = vadd.f32 %v6277_v52, %v7696_v46  ;;  %v2443_v41 = vpop.f32.mrb[55].mxu1  ;;  %v2577_v57 = vsel %vm2513_vm14, %v2439_v10, %v2545_v48  ;;  %v1446_v48 = vadd.f32 %v7628_v13, %v7796_v6  ;;  %v1441_v52 = vadd.f32 %v7796_v6, %v7631_v14 }
 0x259   : > { %v2444_v54 = vadd.f32 %v7696_v46, %v2443_v41  ;;  %v2576_v55 = vsel %vm2512_vm15, %v2434_v12, %v2544_v51 }
 0x25a   : > { %v2547_v56 = vmul.f32 %v2449_v53, %v7699_v50  ;;  %6328 = vmatprep.mubr.msk.f32.mxu0 %vm1277_vm3, %v2576_v55  ;;  %vm2515_vm1 = vcmp.ge.f32.partialorder %v2449_v53, 0.0  ;;  %vm1600_vm0 = vcmp.ge.f32.partialorder %v1446_v48, 0.0  ;;  %vm1599_vm10 = vcmp.ge.f32.partialorder %v1441_v52, 0.0 }
 0x25b   : > { %vm2514_vm2 = vcmp.ge.f32.partialorder %v2444_v54, 0.0  ;;  %v2546_v58 = vmul.f32 %v2444_v54, %v7699_v50  ;;  %v6280_v59 = vpop.f32.mrb[56].mxu1  ;;  %6329 = vmatmul.mubr.msk.f32.gmra.mrb[84].mxu0 %vm1277_vm3, %v2577_v57 }
 0x25c   : > { %v2459_v60 = vadd.f32 %v6280_v59, %v7696_v46  ;;  %v2453_v61 = vpop.f32.mrb[57].mxu1  ;;  %v2579_v1 = vsel %vm2515_vm1, %v2449_v53, %v2547_v56  ;;  %v1456_v56 = vadd.f32 %v7633_v16, %v7796_v6  ;;  %v7816_v59 = vstv %s5600_s27  ;;  %s8430_s27 = scalar_lea.vmem (%p7101_p4), %s8584_s22, %s5717_s23  }
 0x25d   : > { %v2454_v62 = vadd.f32 %v7696_v46, %v2453_v61  ;;  %v2578_v63 = vsel %vm2514_vm2, %v2444_v54, %v2546_v58  ;;  %v1632_v61 = vmul.f32 %v7699_v50, %v1441_v52 }
 0x25e   : > { %v2549_v0 = vmul.f32 %v2459_v60, %v7699_v50  ;;  %6331 = vmatprep.mubr.msk.f32.mxu0 %vm1277_vm3, %v2578_v63  ;;  %vm2517_vm4 = vcmp.ge.f32.partialorder %v2459_v60, 0.0  ;;  %v7824_v63 = vld [vmem:[%s8575_s13] ss:$0 sm:$0xff]  ;;  %vm1602_vm13 = vcmp.ge.f32.partialorder %v1456_v56, 0.0 }
 0x25f   : > { %vm2516_vm5 = vcmp.ge.f32.partialorder %v2454_v62, 0.0  ;;  %v2548_v2 = vmul.f32 %v2454_v62, %v7699_v50  ;;  %v6283_v3 = vpop.f32.mrb[58].mxu1  ;;  %6332 = vmatmul.mubr.msk.f32.gmra.mrb[86].mxu0 %vm1277_vm3, %v2579_v1 }
 0x260   : > { %v2469_v4 = vadd.f32 %v6283_v3, %v7696_v46  ;;  %v2463_v5 = vpop.f32.mrb[59].mxu1  ;;  %v2581_v11 = vsel %vm2517_vm4, %v2459_v60, %v2549_v0  ;;  %v1633_v60 = vmul.f32 %v7699_v50, %v1446_v48  ;;  %v1451_v0 = vadd.f32 %v7796_v6, %v7635_v18 }
 0x261   : > { %v2464_v8 = vadd.f32 %v7696_v46, %v2463_v5  ;;  %v2580_v9 = vsel %vm2516_vm5, %v2454_v62, %v2548_v2  ;;  %v1635_v3 = vmul.f32 %v7699_v50, %v1456_v56  ;;  %v1466_v5 = vadd.f32 %v7637_v19, %v7796_v6 }
 0x262   : > { %v2551_v10 = vmul.f32 %v2469_v4, %v7699_v50  ;;  %6334 = vmatprep.mubr.msk.f32.mxu0 %vm1277_vm3, %v2580_v9  ;;  %vm2519_vm6 = vcmp.ge.f32.partialorder %v2469_v4, 0.0  ;;  %v1461_v18 = vadd.f32 %v7796_v6, %v7639_v20  ;;  %vm1601_vm14 = vcmp.ge.f32.partialorder %v1451_v0, 0.0  ;;  %v4124_v20 = vld [vmem:[%s8580_s18 + $0x10] sm:$0xff] }
 0x263   : > { %vm2518_vm7 = vcmp.ge.f32.partialorder %v2464_v8, 0.0  ;;  %v2550_v12 = vmul.f32 %v2464_v8, %v7699_v50  ;;  %v6286_v47 = vpop.f32.mrb[60].mxu1  ;;  %6335 = vmatmul.mubr.msk.f32.gmra.mrb[88].mxu0 %vm1277_vm3, %v2581_v11  ;;  %vm1604_vm2 = vcmp.ge.f32.partialorder %v1466_v5, 0.0 }
 0x264   : > { %v2479_v49 = vadd.f32 %v6286_v47, %v7696_v46  ;;  %v2473_v51 = vpop.f32.mrb[61].mxu1  ;;  %v2583_v55 = vsel %vm2519_vm6, %v2469_v4, %v2551_v10  ;;  %v1665_v10 = vsel %vm1600_vm0, %v1446_v48, %v1633_v60  ;;  %v1664_v47 = vsel %vm1599_vm10, %v1441_v52, %v1632_v61  ;;  %v4125_v48 = vld [vmem:[%s8580_s18 + $0x18] sm:$0xff] }
 0x265   : > { %v2474_v53 = vadd.f32 %v7696_v46, %v2473_v51  ;;  %v2582_v41 = vsel %vm2518_vm7, %v2464_v8, %v2550_v12  ;;  %v6678_v61 = vpack.c.bf16 %v4125_v48, %v4124_v20  ;;  %vm1603_vm4 = vcmp.ge.f32.partialorder %v1461_v18, 0.0 }
 0x266   : > { %v2553_v54 = vmul.f32 %v2479_v49, %v7699_v50  ;;  %6337 = vmatprep.mubr.msk.f32.mxu0 %vm1277_vm3, %v2582_v41  ;;  %vm2521_vm8 = vcmp.ge.f32.partialorder %v2479_v49, 0.0  ;;  %v1667_v41 = vsel %vm1602_vm13, %v1456_v56, %v1635_v3  ;;  %v1486_v3 = vadd.f32 %v7645_v24, %v7796_v6 }
 0x267   : > { %vm2520_vm9 = vcmp.ge.f32.partialorder %v2474_v53, 0.0  ;;  %v2552_v13 = vmul.f32 %v2474_v53, %v7699_v50  ;;  %v6289_v57 = vpop.f32.mrb[62].mxu1  ;;  %6338 = vmatmul.mubr.msk.f32.gmra.mrb[90].mxu0 %vm1277_vm3, %v2583_v55  ;;  %v1636_v55 = vmul.f32 %v7699_v50, %v1461_v18  ;;  %v1481_v24 = vadd.f32 %v7796_v6, %v7647_v25 }
 0x268   : > { %v2489_v14 = vadd.f32 %v6289_v57, %v7696_v46  ;;  %v2483_v58 = vpop.f32.mrb[63].mxu1  ;;  %v2585_v2 = vsel %vm2521_vm8, %v2479_v49, %v2553_v54  ;;  %v1634_v49 = vmul.f32 %v7699_v50, %v1451_v0  ;;  %v1637_v54 = vmul.f32 %v7699_v50, %v1466_v5 }
 0x269   : > { %v2484_v62 = vadd.f32 %v7696_v46, %v2483_v58  ;;  %v2584_v16 = vsel %vm2520_vm9, %v2474_v53, %v2552_v13  ;;  %v1641_v25 = vmul.f32 %v7699_v50, %v1486_v3  ;;  %vm1608_vm10 = vcmp.ge.f32.partialorder %v1486_v3, 0.0 }
 0x26a   : > { %v2555_v1 = vmul.f32 %v2489_v14, %v7699_v50  ;;  %6340 = vmatprep.mubr.msk.f32.mxu0 %vm1277_vm3, %v2584_v16  ;;  %vm2523_vm11 = vcmp.ge.f32.partialorder %v2489_v14, 0.0  ;;  %v1666_v16 = vsel %vm1601_vm14, %v1451_v0, %v1634_v49 }
 0x26b   : > { %vm2522_vm12 = vcmp.ge.f32.partialorder %v2484_v62, 0.0  ;;  %v2554_v46 = vmul.f32 %v2484_v62, %v7699_v50  ;;  %6341 = vmatmul.mubr.msk.f32.gmra.mrb[92].mxu0 %vm1277_vm3, %v2585_v2  ;;  %v6408_v4 = vpop.f32.mrb[64].mxu1 }
 0x26c   : > { %v3443_v8 = vadd.f32 %v6408_v4, %v7824_v63  ;;  %v3437_v9 = vpop.f32.mrb[65].mxu1  ;;  %v2587_v19 = vsel %vm2523_vm11, %v2489_v14, %v2555_v1  ;;  %v1471_v14 = vadd.f32 %v7796_v6, %v7643_v22  ;;  %v1476_v1 = vadd.f32 %v7641_v21, %v7796_v6 }
 0x26d   : > { %v3438_v11 = vadd.f32 %v7824_v63, %v3437_v9  ;;  %v2586_v12 = vsel %vm2522_vm12, %v2484_v62, %v2554_v46  ;;  %v1669_v4 = vsel %vm1604_vm2, %v1466_v5, %v1637_v54  ;;  %vm1607_vm11 = vcmp.ge.f32.partialorder %v1481_v24, 0.0 }
 0x26e   : > { %v3631_v51 = vmul.f32 %v7816_v59, %v3443_v8  ;;  %6343 = vmatprep.mubr.msk.f32.mxu0 %vm1277_vm3, %v2586_v12  ;;  %vm3598_vm15 = vcmp.ge.f32.partialorder %v3443_v8, 0.0  ;;  %v1638_v21 = vmul.f32 %v7699_v50, %v1471_v14  ;;  %vm1605_vm7 = vcmp.ge.f32.partialorder %v1471_v14, 0.0 }
 0x26f   : > { %vm3597_vm1 = vcmp.ge.f32.partialorder %v3438_v11, 0.0  ;;  %v3630_v52 = vmul.f32 %v7816_v59, %v3438_v11  ;;  %6344 = vmatmul.mubr.msk.f32.gmra.mrb[94].mxu0 %vm1277_vm3, %v2587_v19  ;;  %v6411_v53 = vpop.f32.mrb[66].mxu1  ;;  %vm1606_vm0 = vcmp.ge.f32.partialorder %v1476_v1, 0.0 }
 0x270   : > { %v3453_v13 = vadd.f32 %v6411_v53, %v7824_v63  ;;  %6354 = vmatprep.mubr.msk.f32.mxu0 %vm1277_vm3, %v1664_v47  ;;  %v3447_v57 = vpop.f32.mrb[67].mxu1  ;;  %v3663_v56 = vsel %vm3598_vm15, %v3443_v8, %v3631_v51  ;;  %v1491_v47 = vadd.f32 %v7796_v6, %v7651_v27  ;;  %v1670_v48 = vsel %vm1605_vm7, %v1471_v14, %v1638_v21 }
 0x271   : > { %v3448_v58 = vadd.f32 %v7824_v63, %v3447_v57  ;;  %v3662_v60 = vsel %vm3597_vm1, %v3438_v11, %v3630_v52  ;;  %v1640_v52 = vmul.f32 %v7699_v50, %v1481_v24 }
 0x272   : > { %v3633_v62 = vmul.f32 %v7816_v59, %v3453_v13  ;;  %6462 = vmatprep.mubr.msk.f32.mxu1 %vm1277_vm3, %v3662_v60  ;;  %vm3600_vm5 = vcmp.ge.f32.partialorder %v3453_v13, 0.0  ;;  %vm1609_vm14 = vcmp.ge.f32.partialorder %v1491_v47, 0.0  ;;  %v1506_v60 = vadd.f32 %v7653_v15, %v7796_v6 }
 0x273   : > { %vm3599_vm6 = vcmp.ge.f32.partialorder %v3448_v58, 0.0  ;;  %v3632_v22 = vmul.f32 %v7816_v59, %v3448_v58  ;;  %6355 = vmatmul.mubr.msk.f32.vlgmr.msra.gmra.mrb[64].mxu0 %vm1277_vm3, %v1665_v10  ;;  %v6414_v2 = vpop.f32.mrb[68].mxu1  ;;  %6463 = vmatmul.mubr.msk.f32.vlgmr.msra.gmra.mrb[96].mxu1 %vm1277_vm3, %v3663_v56  ;;  %v1668_v10 = vsel %vm1603_vm4, %v1461_v18, %v1636_v55 }
 0x274   : > { %v3463_v46 = vadd.f32 %v6414_v2, %v7824_v63  ;;  %6357 = vmatprep.mubr.msk.f32.mxu0 %vm1277_vm3, %v1666_v16  ;;  %v3457_v0 = vpop.f32.mrb[69].mxu1  ;;  %6677 = vmatpush3.bf16.msra.mxu0 %v7725_v7  ;;  %v3665_v5 = vsel %vm3600_vm5, %v3453_v13, %v3633_v62  ;;  %v1639_v7 = vmul.f32 %v7699_v50, %v1476_v1  ;;  %vm1612_vm4 = vcmp.ge.f32.partialorder %v1506_v60, 0.0 }
 0x275   : > { %v3458_v8 = vadd.f32 %v7824_v63, %v3457_v0  ;;  %v3664_v9 = vsel %vm3599_vm6, %v3448_v58, %v3632_v22  ;;  %6679 = vmatprep.subr.bf16.mxu0 %v6678_v61  ;;  %v1642_v13 = vmul.f32 %v7699_v50, %v1491_v47  ;;  %v1501_v62 = vadd.f32 %v7796_v6, %v7655_v29 }
 0x276   : > { %v3635_v11 = vmul.f32 %v7816_v59, %v3463_v46  ;;  %6465 = vmatprep.mubr.msk.f32.mxu1 %vm1277_vm3, %v3664_v9  ;;  %vm3602_vm8 = vcmp.ge.f32.partialorder %v3463_v46, 0.0  ;;  %v1671_v58 = vsel %vm1606_vm0, %v1476_v1, %v1639_v7  ;;  %v1672_v1 = vsel %vm1607_vm11, %v1481_v24, %v1640_v52 }
 0x277   : > { %vm3601_vm9 = vcmp.ge.f32.partialorder %v3458_v8, 0.0  ;;  %v3634_v12 = vmul.f32 %v7816_v59, %v3458_v8  ;;  %6358 = vmatmul.mubr.msk.f32.gmra.mrb[66].mxu0 %vm1277_vm3, %v1667_v41  ;;  %v6417_v18 = vpop.f32.mrb[70].mxu1  ;;  %6466 = vmatmul.mubr.msk.f32.gmra.mrb[98].mxu1 %vm1277_vm3, %v3665_v5  ;;  %v1496_v41 = vadd.f32 %v7649_v26, %v7796_v6  ;;  %v1673_v26 = vsel %vm1608_vm10, %v1486_v3, %v1641_v25 }
 0x278   : > { %v3473_v49 = vadd.f32 %v6417_v18, %v7824_v63  ;;  %6360 = vmatprep.mubr.msk.f32.mxu0 %vm1277_vm3, %v1668_v10  ;;  %v3467_v51 = vpop.f32.mrb[71].mxu1  ;;  %6681 = vmatpush3.bf16.msra.mxu0 %v6678_v61  ;;  %v3667_v27 = vsel %vm3602_vm8, %v3463_v46, %v3635_v11  ;;  %v1511_v3 = vadd.f32 %v7796_v6, %v7659_v30  ;;  %vm1611_vm5 = vcmp.ge.f32.partialorder %v1501_v62, 0.0 }
 0x279   : > { %v3468_v19 = vadd.f32 %v7824_v63, %v3467_v51  ;;  %v3666_v20 = vsel %vm3601_vm9, %v3458_v8, %v3634_v12  ;;  %vm1610_vm15 = vcmp.ge.f32.partialorder %v1496_v41, 0.0  ;;  %v1643_v29 = vmul.f32 %v7699_v50, %v1496_v41 }
 0x27a   : > { %v3637_v53 = vmul.f32 %v7816_v59, %v3473_v49  ;;  %6468 = vmatprep.mubr.msk.f32.mxu1 %vm1277_vm3, %v3666_v20  ;;  %vm3604_vm12 = vcmp.ge.f32.partialorder %v3473_v49, 0.0  ;;  %v1645_v21 = vmul.f32 %v7699_v50, %v1506_v60  ;;  %v1644_v10 = vmul.f32 %v7699_v50, %v1501_v62 }
 0x27b   : > { %vm3603_vm13 = vcmp.ge.f32.partialorder %v3468_v19, 0.0  ;;  %v3636_v54 = vmul.f32 %v7816_v59, %v3468_v19  ;;  %6361 = vmatmul.mubr.msk.f32.gmra.mrb[68].mxu0 %vm1277_vm3, %v1669_v4  ;;  %v6420_v55 = vpop.f32.mrb[72].mxu1  ;;  %6469 = vmatmul.mubr.msk.f32.gmra.mrb[100].mxu1 %vm1277_vm3, %v3667_v27  ;;  %v1674_v4 = vsel %vm1609_vm14, %v1491_v47, %v1642_v13  ;;  %v1516_v11 = vadd.f32 %v7657_v23, %v7796_v6 }
 0x27c   : > { %v3483_v57 = vadd.f32 %v6420_v55, %v7824_v63  ;;  %6363 = vmatprep.mubr.msk.f32.mxu0 %vm1277_vm3, %v1670_v48  ;;  %v3477_v14 = vpop.f32.mrb[73].mxu1  ;;  %v3669_v22 = vsel %vm3604_vm12, %v3473_v49, %v3637_v53  ;;  %v1646_v12 = vmul.f32 %v7699_v50, %v1511_v3  ;;  %v1526_v18 = vadd.f32 %v7661_v31, %v7796_v6 }
 0x27d   : > { %v3478_v61 = vadd.f32 %v7824_v63, %v3477_v14  ;;  %v3668_v56 = vsel %vm3603_vm13, %v3468_v19, %v3636_v54  ;;  %v1675_v23 = vsel %vm1610_vm15, %v1496_v41, %v1643_v29  ;;  %vm1613_vm8 = vcmp.ge.f32.partialorder %v1511_v3, 0.0 }
 0x27e   : > { %v3639_v16 = vmul.f32 %v7816_v59, %v3483_v57  ;;  %6471 = vmatprep.mubr.msk.f32.mxu1 %vm1277_vm3, %v3668_v56  ;;  %vm3606_vm1 = vcmp.ge.f32.partialorder %v3483_v57, 0.0  ;;  %v1521_v49 = vadd.f32 %v7796_v6, %v7663_v32  ;;  %v1676_v48 = vsel %vm1611_vm5, %v1501_v62, %v1644_v10 }
 0x27f   : > { %vm3605_vm2 = vcmp.ge.f32.partialorder %v3478_v61, 0.0  ;;  %v3638_v2 = vmul.f32 %v7816_v59, %v3478_v61  ;;  %6364 = vmatmul.mubr.msk.f32.gmra.mrb[70].mxu0 %vm1277_vm3, %v1671_v58  ;;  %v6423_v15 = vpop.f32.mrb[74].mxu1  ;;  %6472 = vmatmul.mubr.msk.f32.gmra.mrb[102].mxu1 %vm1277_vm3, %v3669_v22  ;;  %v1677_v52 = vsel %vm1612_vm4, %v1506_v60, %v1645_v21  ;;  %vm1614_vm9 = vcmp.ge.f32.partialorder %v1516_v11, 0.0 }
 0x280   : > { %v3493_v46 = vadd.f32 %v6423_v15, %v7824_v63  ;;  %6366 = vmatprep.mubr.msk.f32.mxu0 %vm1277_vm3, %v1672_v1  ;;  %v3487_v0 = vpop.f32.mrb[75].mxu1  ;;  %v3671_v30 = vsel %vm3606_vm1, %v3483_v57, %v3639_v16  ;;  %v1647_v27 = vmul.f32 %v7699_v50, %v1516_v11  ;;  %vm1616_vm11 = vcmp.ge.f32.partialorder %v1526_v18, 0.0 }
 0x281   : > { %v3488_v8 = vadd.f32 %v7824_v63, %v3487_v0  ;;  %v3670_v9 = vsel %vm3605_vm2, %v3478_v61, %v3638_v2  ;;  %v1678_v55 = vsel %vm1613_vm8, %v1511_v3, %v1646_v12  ;;  %v1649_v13 = vmul.f32 %v7699_v50, %v1526_v18 }
 0x282   : > { %v3641_v24 = vmul.f32 %v7816_v59, %v3493_v46  ;;  %6474 = vmatprep.mubr.msk.f32.mxu1 %vm1277_vm3, %v3670_v9  ;;  %vm3608_vm6 = vcmp.ge.f32.partialorder %v3493_v46, 0.0  ;;  %v1648_v57 = vmul.f32 %v7699_v50, %v1521_v49  ;;  %vm1615_vm12 = vcmp.ge.f32.partialorder %v1521_v49, 0.0 }
 0x283   : > { %vm3607_vm7 = vcmp.ge.f32.partialorder %v3488_v8, 0.0  ;;  %v3640_v5 = vmul.f32 %v7816_v59, %v3488_v8  ;;  %6367 = vmatmul.mubr.msk.f32.gmra.mrb[72].mxu0 %vm1277_vm3, %v1673_v26  ;;  %v6426_v7 = vpop.f32.mrb[76].mxu1  ;;  %6475 = vmatmul.mubr.msk.f32.gmra.mrb[104].mxu1 %vm1277_vm3, %v3671_v30  ;;  %v1536_v26 = vadd.f32 %v7665_v33, %v7796_v6  ;;  %v1531_v56 = vadd.f32 %v7796_v6, %v7667_v17 }
 0x284   : > { %v3503_v25 = vadd.f32 %v6426_v7, %v7824_v63  ;;  %6369 = vmatprep.mubr.msk.f32.mxu0 %vm1277_vm3, %v1674_v4  ;;  %v3497_v47 = vpop.f32.mrb[77].mxu1  ;;  %v3673_v31 = vsel %vm3608_vm6, %v3493_v46, %v3641_v24  ;;  %v1541_v33 = vadd.f32 %v7796_v6, %v7671_v34  ;;  %v1679_v2 = vsel %vm1614_vm9, %v1516_v11, %v1647_v27 }
 0x285   : > { %v3498_v51 = vadd.f32 %v7824_v63, %v3497_v47  ;;  %v3672_v19 = vsel %vm3607_vm7, %v3488_v8, %v3640_v5  ;;  %v1680_v29 = vsel %vm1615_vm12, %v1521_v49, %v1648_v57  ;;  %v1681_v3 = vsel %vm1616_vm11, %v1526_v18, %v1649_v13 }
 0x286   : > { %v3643_v20 = vmul.f32 %v7816_v59, %v3503_v25  ;;  %6477 = vmatprep.mubr.msk.f32.mxu1 %vm1277_vm3, %v3672_v19  ;;  %vm3610_vm0 = vcmp.ge.f32.partialorder %v3503_v25, 0.0  ;;  %vm1618_vm15 = vcmp.ge.f32.partialorder %v1536_v26, 0.0  ;;  %v1651_v46 = vmul.f32 %v7699_v50, %v1536_v26 }
 0x287   : > { %vm3609_vm10 = vcmp.ge.f32.partialorder %v3498_v51, 0.0  ;;  %v3642_v53 = vmul.f32 %v7816_v59, %v3498_v51  ;;  %6370 = vmatmul.mubr.msk.f32.gmra.mrb[74].mxu0 %vm1277_vm3, %v1675_v23  ;;  %v6429_v32 = vpop.f32.mrb[78].mxu1  ;;  %6478 = vmatmul.mubr.msk.f32.gmra.mrb[106].mxu1 %vm1277_vm3, %v3673_v31  ;;  %v1650_v4 = vmul.f32 %v7699_v50, %v1531_v56  ;;  %vm1617_vm4 = vcmp.ge.f32.partialorder %v1531_v56, 0.0 }
 0x288   : > { %v3513_v41 = vadd.f32 %v6429_v32, %v7824_v63  ;;  %6372 = vmatprep.mubr.msk.f32.mxu0 %vm1277_vm3, %v1676_v48  ;;  %v3507_v54 = vpop.f32.mrb[79].mxu1  ;;  %v3675_v61 = vsel %vm3610_vm0, %v3503_v25, %v3643_v20  ;;  %v1546_v9 = vadd.f32 %v7669_v28, %v7796_v6  ;;  %v1652_v10 = vmul.f32 %v7699_v50, %v1541_v33 }
 0x289   : > { %v3508_v14 = vadd.f32 %v7824_v63, %v3507_v54  ;;  %v3674_v58 = vsel %vm3609_vm10, %v3498_v51, %v3642_v53  ;;  %vm1619_vm5 = vcmp.ge.f32.partialorder %v1541_v33, 0.0  ;;  %v1556_v11 = vadd.f32 %v7673_v35, %v7796_v6 }
 0x28a   : > { %v3645_v60 = vmul.f32 %v7816_v59, %v3513_v41  ;;  %6480 = vmatprep.mubr.msk.f32.mxu1 %vm1277_vm3, %v3674_v58  ;;  %vm3612_vm13 = vcmp.ge.f32.partialorder %v3513_v41, 0.0  ;;  %v1551_v12 = vadd.f32 %v7796_v6, %v7675_v36  ;;  %v1683_v25 = vsel %vm1618_vm15, %v1536_v26, %v1651_v46 }
 0x28b   : > { %vm3611_vm14 = vcmp.ge.f32.partialorder %v3508_v14, 0.0  ;;  %v3644_v62 = vmul.f32 %v7816_v59, %v3508_v14  ;;  %6373 = vmatmul.mubr.msk.f32.gmra.mrb[76].mxu0 %vm1277_vm3, %v1677_v52  ;;  %v6432_v16 = vpop.f32.mrb[80].mxu1  ;;  %6481 = vmatmul.mubr.msk.f32.gmra.mrb[108].mxu1 %vm1277_vm3, %v3675_v61  ;;  %v1682_v23 = vsel %vm1617_vm4, %v1531_v56, %v1650_v4  ;;  %vm1620_vm8 = vcmp.ge.f32.partialorder %v1546_v9, 0.0 }
 0x28c   : > { %v3523_v22 = vadd.f32 %v6432_v16, %v7824_v63  ;;  %6375 = vmatprep.mubr.msk.f32.mxu0 %vm1277_vm3, %v1678_v55  ;;  %v3517_v1 = vpop.f32.mrb[81].mxu1  ;;  %v3677_v34 = vsel %vm3612_vm13, %v3513_v41, %v3645_v60  ;;  %v1653_v36 = vmul.f32 %v7699_v50, %v1546_v9  ;;  %v1684_v19 = vsel %vm1619_vm5, %v1541_v33, %v1652_v10 }
 0x28d   : > { %v3518_v17 = vadd.f32 %v7824_v63, %v3517_v1  ;;  %v3676_v15 = vsel %vm3611_vm14, %v3508_v14, %v3644_v62  ;;  %vm1622_vm9 = vcmp.ge.f32.partialorder %v1556_v11, 0.0  ;;  %v1655_v20 = vmul.f32 %v7699_v50, %v1556_v11 }
 0x28e   : > { %v3647_v0 = vmul.f32 %v7816_v59, %v3523_v22  ;;  %6483 = vmatprep.mubr.msk.f32.mxu1 %vm1277_vm3, %v3676_v15  ;;  %vm3614_vm1 = vcmp.ge.f32.partialorder %v3523_v22, 0.0  ;;  %vm1621_vm0 = vcmp.ge.f32.partialorder %v1551_v12, 0.0  ;;  %v1654_v52 = vmul.f32 %v7699_v50, %v1551_v12 }
 0x28f   : > { %vm3613_vm2 = vcmp.ge.f32.partialorder %v3518_v17, 0.0  ;;  %v3646_v21 = vmul.f32 %v7816_v59, %v3518_v17  ;;  %6376 = vmatmul.mubr.msk.f32.gmra.mrb[78].mxu0 %vm1277_vm3, %v1679_v2  ;;  %v6435_v8 = vpop.f32.mrb[82].mxu1  ;;  %6484 = vmatmul.mubr.msk.f32.gmra.mrb[110].mxu1 %vm1277_vm3, %v3677_v34  ;;  %v1561_v27 = vadd.f32 %v7796_v6, %v7679_v38  ;;  %v1566_v55 = vadd.f32 %v7677_v37, %v7796_v6 }
 0x290   : > { %v3533_v24 = vadd.f32 %v6435_v8, %v7824_v63  ;;  %6378 = vmatprep.mubr.msk.f32.mxu0 %vm1277_vm3, %v1680_v29  ;;  %v3527_v30 = vpop.f32.mrb[83].mxu1  ;;  %v3679_v28 = vsel %vm3614_vm1, %v3523_v22, %v3647_v0  ;;  %v1571_v38 = vadd.f32 %v7796_v6, %v7683_v40  ;;  %v1685_v26 = vsel %vm1620_vm8, %v1546_v9, %v1653_v36 }
 0x291   : > { %v3528_v5 = vadd.f32 %v7824_v63, %v3527_v30  ;;  %v3678_v7 = vsel %vm3613_vm2, %v3518_v17, %v3646_v21  ;;  %v1686_v37 = vsel %vm1621_vm0, %v1551_v12, %v1654_v52  ;;  %v1687_v56 = vsel %vm1622_vm9, %v1556_v11, %v1655_v20 }
 0x292   : > { %v3649_v18 = vmul.f32 %v7816_v59, %v3533_v24  ;;  %6486 = vmatprep.mubr.msk.f32.mxu1 %vm1277_vm3, %v3678_v7  ;;  %vm3616_vm6 = vcmp.ge.f32.partialorder %v3533_v24, 0.0  ;;  %v1656_v62 = vmul.f32 %v7699_v50, %v1561_v27  ;;  %v1657_v33 = vmul.f32 %v7699_v50, %v1566_v55 }
 0x293   : > { %vm3615_vm7 = vcmp.ge.f32.partialorder %v3528_v5, 0.0  ;;  %v3648_v47 = vmul.f32 %v7816_v59, %v3528_v5  ;;  %6379 = vmatmul.mubr.msk.f32.gmra.mrb[80].mxu0 %vm1277_vm3, %v1681_v3  ;;  %v6438_v35 = vpop.f32.mrb[84].mxu1  ;;  %6487 = vmatmul.mubr.msk.f32.gmra.mrb[112].mxu1 %vm1277_vm3, %v3679_v28  ;;  %vm1623_vm14 = vcmp.ge.f32.partialorder %v1561_v27, 0.0  ;;  %v1576_v22 = vadd.f32 %v7681_v39, %v7796_v6 }
 0x294   : > { %v3543_v49 = vadd.f32 %v6438_v35, %v7824_v63  ;;  %6381 = vmatprep.mubr.msk.f32.mxu0 %vm1277_vm3, %v1682_v23  ;;  %v3537_v51 = vpop.f32.mrb[85].mxu1  ;;  %v3681_v32 = vsel %vm3616_vm6, %v3533_v24, %v3649_v18  ;;  %vm1624_vm15 = vcmp.ge.f32.partialorder %v1566_v55, 0.0  ;;  %v1658_v17 = vmul.f32 %v7699_v50, %v1571_v38 }
 0x295   : > { %v3538_v31 = vadd.f32 %v7824_v63, %v3537_v51  ;;  %v3680_v48 = vsel %vm3615_vm7, %v3528_v5, %v3648_v47  ;;  %vm1625_vm1 = vcmp.ge.f32.partialorder %v1571_v38, 0.0  ;;  %v1581_v3 = vadd.f32 %v7796_v6, %v7687_v43 }
 0x296   : > { %v3651_v53 = vmul.f32 %v7816_v59, %v3543_v49  ;;  %6489 = vmatprep.mubr.msk.f32.mxu1 %vm1277_vm3, %v3680_v48  ;;  %vm3618_vm10 = vcmp.ge.f32.partialorder %v3543_v49, 0.0  ;;  %v1688_v4 = vsel %vm1623_vm14, %v1561_v27, %v1656_v62  ;;  %vm1626_vm5 = vcmp.ge.f32.partialorder %v1576_v22, 0.0 }
 0x297   : > { %vm3617_vm11 = vcmp.ge.f32.partialorder %v3538_v31, 0.0  ;;  %v3650_v41 = vmul.f32 %v7816_v59, %v3538_v31  ;;  %6382 = vmatmul.mubr.msk.f32.gmra.mrb[82].mxu0 %vm1277_vm3, %v1683_v25  ;;  %v6441_v54 = vpop.f32.mrb[86].mxu1  ;;  %6490 = vmatmul.mubr.msk.f32.gmra.mrb[114].mxu1 %vm1277_vm3, %v3681_v32  ;;  %v1659_v43 = vmul.f32 %v7699_v50, %v1576_v22  ;;  %v1689_v9 = vsel %vm1624_vm15, %v1566_v55, %v1657_v33 }
 0x298   : > { %v3553_v13 = vadd.f32 %v6441_v54, %v7824_v63  ;;  %6384 = vmatprep.mubr.msk.f32.mxu0 %vm1277_vm3, %v1684_v19  ;;  %v3547_v57 = vpop.f32.mrb[87].mxu1  ;;  %v3683_v61 = vsel %vm3618_vm10, %v3543_v49, %v3651_v53  ;;  %v1586_v10 = vadd.f32 %v7685_v42, %v7796_v6  ;;  %v1690_v11 = vsel %vm1625_vm1, %v1571_v38, %v1658_v17 }
 0x299   : > { %v3548_v14 = vadd.f32 %v7824_v63, %v3547_v57  ;;  %v3682_v58 = vsel %vm3617_vm11, %v3538_v31, %v3650_v41  ;;  %vm1627_vm6 = vcmp.ge.f32.partialorder %v1581_v3, 0.0  ;;  %v1660_v5 = vmul.f32 %v7699_v50, %v1581_v3 }
 0x29a   : > { %v3653_v60 = vmul.f32 %v7816_v59, %v3553_v13  ;;  %6492 = vmatprep.mubr.msk.f32.mxu1 %vm1277_vm3, %v3682_v58  ;;  %vm3620_vm12 = vcmp.ge.f32.partialorder %v3553_v13, 0.0  ;;  %v1591_v18 = vadd.f32 %v7796_v6, %v7691_v45  ;;  %v1691_v35 = vsel %vm1626_vm5, %v1576_v22, %v1659_v43  ;;  %v4617_v58 = vld [vmem:[%s8582_s20 + $0x8] sm:$0xff] }
 0x29b   : > { %vm3619_vm13 = vcmp.ge.f32.partialorder %v3548_v14, 0.0  ;;  %v3652_v40 = vmul.f32 %v7816_v59, %v3548_v14  ;;  %6385 = vmatmul.mubr.msk.f32.gmra.mrb[84].mxu0 %vm1277_vm3, %v1685_v26  ;;  %v6444_v16 = vpop.f32.mrb[88].mxu1  ;;  %6493 = vmatmul.mubr.msk.f32.gmra.mrb[116].mxu1 %vm1277_vm3, %v3683_v61  ;;  %vm1628_vm9 = vcmp.ge.f32.partialorder %v1586_v10, 0.0  ;;  %v1661_v23 = vmul.f32 %v7699_v50, %v1586_v10  ;;  %v4618_v26 = vld [vmem:[%s8582_s20 + $0x10] sm:$0xff]  ;;  %v4619_v61 = vld [vmem:[%s8582_s20 + $0x18] sm:$0xff] }
 0x29c   : > { %v3563_v1 = vadd.f32 %v6444_v16, %v7824_v63  ;;  %6387 = vmatprep.mubr.msk.f32.mxu0 %vm1277_vm3, %v1686_v37  ;;  %v3557_v2 = vpop.f32.mrb[89].mxu1  ;;  %v3685_v39 = vsel %vm3620_vm12, %v3553_v13, %v3653_v60  ;;  %v1596_v49 = vadd.f32 %v7689_v44, %v7796_v6  ;;  %v1692_v20 = vsel %vm1627_vm6, %v1581_v3, %v1660_v5 }
 0x29d   : > { %v3558_v15 = vadd.f32 %v7824_v63, %v3557_v2  ;;  %v3684_v29 = vsel %vm3619_vm13, %v3548_v14, %v3652_v40  ;;  %v1662_v31 = vmul.f32 %v7699_v50, %v1591_v18  ;;  %vm1629_vm11 = vcmp.ge.f32.partialorder %v1591_v18, 0.0 }
 0x29e   : > { %v3655_v46 = vmul.f32 %v7816_v59, %v3563_v1  ;;  %6495 = vmatprep.mubr.msk.f32.mxu1 %vm1277_vm3, %v3684_v29  ;;  %vm3622_vm2 = vcmp.ge.f32.partialorder %v3563_v1, 0.0  ;;  %v1693_v27 = vsel %vm1628_vm9, %v1586_v10, %v1661_v23  ;;  %vm1630_vm12 = vcmp.ge.f32.partialorder %v1596_v49, 0.0 }
 0x29f   : > { %vm3621_vm4 = vcmp.ge.f32.partialorder %v3558_v15, 0.0  ;;  %v3654_v0 = vmul.f32 %v7816_v59, %v3558_v15  ;;  %6388 = vmatmul.mubr.msk.f32.gmra.mrb[86].mxu0 %vm1277_vm3, %v1687_v56  ;;  %v6447_v34 = vpop.f32.mrb[90].mxu1  ;;  %6496 = vmatmul.mubr.msk.f32.gmra.mrb[118].mxu1 %vm1277_vm3, %v3685_v39  ;;  %v1663_v41 = vmul.f32 %v7699_v50, %v1596_v49  ;;  %v6686_v37 = vpack.c.bf16 %v4619_v61, %v4618_v26  ;;  %v8118_v56 = vld [vmem:[%s8577_s15] ss:$0 sm:$0xff] }
 0x2a0   : > { %v3573_v21 = vadd.f32 %v6447_v34, %v7824_v63  ;;  %6390 = vmatprep.mubr.msk.f32.mxu0 %vm1277_vm3, %v1688_v4  ;;  %v3567_v8 = vpop.f32.mrb[91].mxu1  ;;  %v3687_v12 = vsel %vm3622_vm2, %v3563_v1, %v3655_v46 }
 0x2a1   : > { %v3568_v24 = vadd.f32 %v7824_v63, %v3567_v8  ;;  %v3686_v30 = vsel %vm3621_vm4, %v3558_v15, %v3654_v0  ;;  %v1695_v38 = vsel %vm1630_vm12, %v1596_v49, %v1663_v41 }
 0x2a2   : > { %v3657_v7 = vmul.f32 %v7816_v59, %v3573_v21  ;;  %6498 = vmatprep.mubr.msk.f32.mxu1 %vm1277_vm3, %v3686_v30  ;;  %vm3624_vm7 = vcmp.ge.f32.partialorder %v3573_v21, 0.0 }
 0x2a3   : > { %vm3623_vm8 = vcmp.ge.f32.partialorder %v3568_v24, 0.0  ;;  %v3656_v42 = vmul.f32 %v7816_v59, %v3568_v24  ;;  %6391 = vmatmul.mubr.msk.f32.gmra.mrb[88].mxu0 %vm1277_vm3, %v1689_v9  ;;  %v6450_v28 = vpop.f32.mrb[92].mxu1  ;;  %6499 = vmatmul.mubr.msk.f32.gmra.mrb[120].mxu1 %vm1277_vm3, %v3687_v12 }
 0x2a4   : > { %v3583_v25 = vadd.f32 %v6450_v28, %v7824_v63  ;;  %6393 = vmatprep.mubr.msk.f32.mxu0 %vm1277_vm3, %v1690_v11  ;;  %v3577_v47 = vpop.f32.mrb[93].mxu1  ;;  %v3689_v19 = vsel %vm3624_vm7, %v3573_v21, %v3657_v7 }
 0x2a5   : > { %v3578_v45 = vadd.f32 %v7824_v63, %v3577_v47  ;;  %v3688_v36 = vsel %vm3623_vm8, %v3568_v24, %v3656_v42 }
 0x2a6   : > { %v3659_v51 = vmul.f32 %v7816_v59, %v3583_v25  ;;  %6501 = vmatprep.mubr.msk.f32.mxu1 %vm1277_vm3, %v3688_v36  ;;  %vm3626_vm0 = vcmp.ge.f32.partialorder %v3583_v25, 0.0 }
 0x2a7   : > { %vm3625_vm10 = vcmp.ge.f32.partialorder %v3578_v45, 0.0  ;;  %v3658_v48 = vmul.f32 %v7816_v59, %v3578_v45  ;;  %6394 = vmatmul.mubr.msk.f32.gmra.mrb[90].mxu0 %vm1277_vm3, %v1691_v35  ;;  %v6453_v52 = vpop.f32.mrb[94].mxu1  ;;  %6502 = vmatmul.mubr.msk.f32.gmra.mrb[122].mxu1 %vm1277_vm3, %v3689_v19 }
 0x2a8   : > { %v3593_v44 = vadd.f32 %v6453_v52, %v7824_v63  ;;  %6396 = vmatprep.mubr.msk.f32.mxu0 %vm1277_vm3, %v1692_v20  ;;  %v3587_v6 = vpop.f32.mrb[95].mxu1  ;;  %v3691_v55 = vsel %vm3626_vm0, %v3583_v25, %v3659_v51 }
 0x2a9   : > { %v3588_v53 = vadd.f32 %v7824_v63, %v3587_v6  ;;  %v3690_v32 = vsel %vm3625_vm10, %v3578_v45, %v3658_v48  ;;  %v1694_v63 = vsel %vm1629_vm11, %v1591_v18, %v1662_v31 }
 0x2aa   : > { %v3661_v54 = vmul.f32 %v7816_v59, %v3593_v44  ;;  %6504 = vmatprep.mubr.msk.f32.mxu1 %vm1277_vm3, %v3690_v32  ;;  %vm3628_vm13 = vcmp.ge.f32.partialorder %v3593_v44, 0.0 }
 0x2ab   : > { %vm3627_vm14 = vcmp.ge.f32.partialorder %v3588_v53, 0.0  ;;  %v3660_v13 = vmul.f32 %v7816_v59, %v3588_v53  ;;  %6397 = vmatmul.mubr.msk.f32.gmra.mrb[92].mxu0 %vm1277_vm3, %v1693_v27  ;;  %6505 = vmatmul.mubr.msk.f32.gmra.mrb[124].mxu1 %vm1277_vm3, %v3691_v55  ;;  %v4616_v59 = vld [vmem:[%s8582_s20] sm:$0xff] }
 0x2ac   : > { %6399 = vmatprep.mubr.msk.f32.mxu0 %vm1277_vm3, %v1694_v63  ;;  %v3693_v14 = vsel %vm3628_vm13, %v3593_v44, %v3661_v54  ;;  %v6682_v60 = vpack.c.bf16 %v4617_v58, %v4616_v59 }
 0x2ad   : > { %v3692_v57 = vsel %vm3627_vm14, %v3588_v53, %v3660_v13 }
 0x2ae   : > { %6507 = vmatprep.mubr.msk.f32.mxu1 %vm1277_vm3, %v3692_v57  ;;  %6683 = vmatprep.subr.bf16.mxu1 %v6682_v60 }
 0x2af   : > { %6400 = vmatmul.mubr.msk.f32.gmra.mrb[94].mxu0 %vm1277_vm3, %v1695_v38  ;;  %6508 = vmatmul.mubr.msk.f32.gmra.mrb[126].mxu1 %vm1277_vm3, %v3693_v14 }
 0x2b0   : > { %6685 = vmatpush3.bf16.msra.mxu1 %v6682_v60 }
 0x2b1   : > { %6687 = vmatprep.subr.bf16.mxu1 %v6686_v37 }
 0x2b4   : > { %6689 = vmatpush3.bf16.msra.mxu1 %v6686_v37 }
 0x346   : > { %v6464_v62 = vpop.f32.mrb[96].mxu1 }
 0x347   : > { %v3873_v40 = vadd.f32 %v6464_v62, %v8118_v56  ;;  %v3867_v16 = vpop.f32.mrb[97].mxu1 }
 0x348   : > { %v3868_v33 = vadd.f32 %v8118_v56, %v3867_v16 }
 0x349   : > { %v4059_v22 = vmul.f32 %v3873_v40, %v7699_v50  ;;  %vm4027_vm15 = vcmp.ge.f32.partialorder %v3873_v40, 0.0 }
 0x34a   : > { %vm4026_vm1 = vcmp.ge.f32.partialorder %v3868_v33, 0.0  ;;  %v4058_v1 = vmul.f32 %v3868_v33, %v7699_v50  ;;  %v6467_v2 = vpop.f32.mrb[98].mxu1 }
 0x34b   : > { %v3883_v17 = vadd.f32 %v6467_v2, %v8118_v56  ;;  %v3877_v15 = vpop.f32.mrb[99].mxu1  ;;  %v4091_v46 = vsel %vm4027_vm15, %v3873_v40, %v4059_v22 }
 0x34c   : > { %v3878_v29 = vadd.f32 %v8118_v56, %v3877_v15  ;;  %v4090_v3 = vsel %vm4026_vm1, %v3868_v33, %v4058_v1 }
 0x34d   : > { %v4061_v39 = vmul.f32 %v3883_v17, %v7699_v50  ;;  %6518 = vmatprep.mubr.msk.f32.mxu0 %vm1277_vm3, %v4090_v3  ;;  %vm4029_vm2 = vcmp.ge.f32.partialorder %v3883_v17, 0.0 }
 0x34e   : > { %vm4028_vm4 = vcmp.ge.f32.partialorder %v3878_v29, 0.0  ;;  %v4060_v0 = vmul.f32 %v3878_v29, %v7699_v50  ;;  %v6470_v34 = vpop.f32.mrb[100].mxu1  ;;  %6519 = vmatmul.mubr.msk.f32.vlgmr.msra.gmra.mrb[64].mxu0 %vm1277_vm3, %v4091_v46 }
 0x34f   : > { %v3893_v4 = vadd.f32 %v6470_v34, %v8118_v56  ;;  %v3887_v43 = vpop.f32.mrb[101].mxu1  ;;  %v4093_v10 = vsel %vm4029_vm2, %v3883_v17, %v4061_v39 }
 0x350   : > { %v3888_v21 = vadd.f32 %v8118_v56, %v3887_v43  ;;  %v4092_v8 = vsel %vm4028_vm4, %v3878_v29, %v4060_v0 }
 0x351   : > { %v4063_v9 = vmul.f32 %v3893_v4, %v7699_v50  ;;  %6521 = vmatprep.mubr.msk.f32.mxu0 %vm1277_vm3, %v4092_v8  ;;  %vm4031_vm5 = vcmp.ge.f32.partialorder %v3893_v4, 0.0 }
 0x352   : > { %vm4030_vm6 = vcmp.ge.f32.partialorder %v3888_v21, 0.0  ;;  %v4062_v24 = vmul.f32 %v3888_v21, %v7699_v50  ;;  %v6473_v30 = vpop.f32.mrb[102].mxu1  ;;  %6522 = vmatmul.mubr.msk.f32.gmra.mrb[66].mxu0 %vm1277_vm3, %v4093_v10 }
 0x353   : > { %v3903_v11 = vadd.f32 %v6473_v30, %v8118_v56  ;;  %v3897_v5 = vpop.f32.mrb[103].mxu1  ;;  %v4095_v42 = vsel %vm4031_vm5, %v3893_v4, %v4063_v9 }
 0x354   : > { %v3898_v7 = vadd.f32 %v8118_v56, %v3897_v5  ;;  %v4094_v12 = vsel %vm4030_vm6, %v3888_v21, %v4062_v24 }
 0x355   : > { %v4065_v18 = vmul.f32 %v3903_v11, %v7699_v50  ;;  %6524 = vmatprep.mubr.msk.f32.mxu0 %vm1277_vm3, %v4094_v12  ;;  %vm4033_vm7 = vcmp.ge.f32.partialorder %v3903_v11, 0.0 }
 0x356   : > { %vm4032_vm8 = vcmp.ge.f32.partialorder %v3898_v7, 0.0  ;;  %v4064_v28 = vmul.f32 %v3898_v7, %v7699_v50  ;;  %v6476_v25 = vpop.f32.mrb[104].mxu1  ;;  %6525 = vmatmul.mubr.msk.f32.gmra.mrb[68].mxu0 %vm1277_vm3, %v4095_v42 }
 0x357   : > { %v3913_v47 = vadd.f32 %v6476_v25, %v8118_v56  ;;  %v3907_v35 = vpop.f32.mrb[105].mxu1  ;;  %v4097_v49 = vsel %vm4033_vm7, %v3903_v11, %v4065_v18 }
 0x358   : > { %v3908_v23 = vadd.f32 %v8118_v56, %v3907_v35  ;;  %v4096_v45 = vsel %vm4032_vm8, %v3898_v7, %v4064_v28 }
 0x359   : > { %v4067_v36 = vmul.f32 %v3913_v47, %v7699_v50  ;;  %6527 = vmatprep.mubr.msk.f32.mxu0 %vm1277_vm3, %v4096_v45  ;;  %vm4035_vm9 = vcmp.ge.f32.partialorder %v3913_v47, 0.0 }
 0x35a   : > { %vm4034_vm0 = vcmp.ge.f32.partialorder %v3908_v23, 0.0  ;;  %v4066_v51 = vmul.f32 %v3908_v23, %v7699_v50  ;;  %v6479_v19 = vpop.f32.mrb[106].mxu1  ;;  %6528 = vmatmul.mubr.msk.f32.gmra.mrb[70].mxu0 %vm1277_vm3, %v4097_v49 }
 0x35b   : > { %v3923_v20 = vadd.f32 %v6479_v19, %v8118_v56  ;;  %v3917_v31 = vpop.f32.mrb[107].mxu1  ;;  %v4099_v6 = vsel %vm4035_vm9, %v3913_v47, %v4067_v36 }
 0x35c   : > { %v3918_v48 = vadd.f32 %v8118_v56, %v3917_v31  ;;  %v4098_v52 = vsel %vm4034_vm0, %v3908_v23, %v4066_v51 }
 0x35d   : > { %v4069_v44 = vmul.f32 %v3923_v20, %v7699_v50  ;;  %6530 = vmatprep.mubr.msk.f32.mxu0 %vm1277_vm3, %v4098_v52  ;;  %vm4037_vm10 = vcmp.ge.f32.partialorder %v3923_v20, 0.0 }
 0x35e   : > { %vm4036_vm11 = vcmp.ge.f32.partialorder %v3918_v48, 0.0  ;;  %v4068_v53 = vmul.f32 %v3918_v48, %v7699_v50  ;;  %v6482_v32 = vpop.f32.mrb[108].mxu1  ;;  %6531 = vmatmul.mubr.msk.f32.gmra.mrb[72].mxu0 %vm1277_vm3, %v4099_v6 }
 0x35f   : > { %v3933_v27 = vadd.f32 %v6482_v32, %v8118_v56  ;;  %v3927_v41 = vpop.f32.mrb[109].mxu1  ;;  %v4101_v63 = vsel %vm4037_vm10, %v3923_v20, %v4069_v44 }
 0x360   : > { %v3928_v54 = vadd.f32 %v8118_v56, %v3927_v41  ;;  %v4100_v55 = vsel %vm4036_vm11, %v3918_v48, %v4068_v53 }
 0x361   : > { %v4071_v13 = vmul.f32 %v3933_v27, %v7699_v50  ;;  %6533 = vmatprep.mubr.msk.f32.mxu0 %vm1277_vm3, %v4100_v55  ;;  %vm4039_vm12 = vcmp.ge.f32.partialorder %v3933_v27, 0.0 }
 0x362   : > { %vm4038_vm13 = vcmp.ge.f32.partialorder %v3928_v54, 0.0  ;;  %v4070_v57 = vmul.f32 %v3928_v54, %v7699_v50  ;;  %v6485_v38 = vpop.f32.mrb[110].mxu1  ;;  %6534 = vmatmul.mubr.msk.f32.gmra.mrb[74].mxu0 %vm1277_vm3, %v4101_v63 }
 0x363   : > { %v3943_v14 = vadd.f32 %v6485_v38, %v8118_v56  ;;  %v3937_v59 = vpop.f32.mrb[111].mxu1  ;;  %v4103_v61 = vsel %vm4039_vm12, %v3933_v27, %v4071_v13 }
 0x364   : > { %v3938_v58 = vadd.f32 %v8118_v56, %v3937_v59  ;;  %v4102_v26 = vsel %vm4038_vm13, %v3928_v54, %v4070_v57 }
 0x365   : > { %v4073_v60 = vmul.f32 %v3943_v14, %v7699_v50  ;;  %6536 = vmatprep.mubr.msk.f32.mxu0 %vm1277_vm3, %v4102_v26  ;;  %vm4041_vm14 = vcmp.ge.f32.partialorder %v3943_v14, 0.0 }
 0x366   : > { %vm4040_vm15 = vcmp.ge.f32.partialorder %v3938_v58, 0.0  ;;  %v4072_v37 = vmul.f32 %v3938_v58, %v7699_v50  ;;  %v6488_v62 = vpop.f32.mrb[112].mxu1  ;;  %6537 = vmatmul.mubr.msk.f32.gmra.mrb[76].mxu0 %vm1277_vm3, %v4103_v61 }
 0x367   : > { %v3953_v40 = vadd.f32 %v6488_v62, %v8118_v56  ;;  %v3947_v16 = vpop.f32.mrb[113].mxu1  ;;  %v4105_v2 = vsel %vm4041_vm14, %v3943_v14, %v4073_v60 }
 0x368   : > { %v3948_v33 = vadd.f32 %v8118_v56, %v3947_v16  ;;  %v4104_v22 = vsel %vm4040_vm15, %v3938_v58, %v4072_v37 }
 0x369   : > { %v4075_v1 = vmul.f32 %v3953_v40, %v7699_v50  ;;  %6539 = vmatprep.mubr.msk.f32.mxu0 %vm1277_vm3, %v4104_v22  ;;  %vm4043_vm1 = vcmp.ge.f32.partialorder %v3953_v40, 0.0 }
 0x36a   : > { %vm4042_vm2 = vcmp.ge.f32.partialorder %v3948_v33, 0.0  ;;  %v4074_v17 = vmul.f32 %v3948_v33, %v7699_v50  ;;  %v6491_v15 = vpop.f32.mrb[114].mxu1  ;;  %6540 = vmatmul.mubr.msk.f32.gmra.mrb[78].mxu0 %vm1277_vm3, %v4105_v2 }
 0x36b   : > { %v3963_v29 = vadd.f32 %v6491_v15, %v8118_v56  ;;  %v3957_v3 = vpop.f32.mrb[115].mxu1  ;;  %v4107_v34 = vsel %vm4043_vm1, %v3953_v40, %v4075_v1  ;;  %v8221_v1 = vstv %s5369_s8 }
 0x36c   : > { %v3958_v46 = vadd.f32 %v8118_v56, %v3957_v3  ;;  %v4106_v39 = vsel %vm4042_vm2, %v3948_v33, %v4074_v17 }
 0x36d   : > { %v4077_v0 = vmul.f32 %v3963_v29, %v7699_v50  ;;  %6542 = vmatprep.mubr.msk.f32.mxu0 %vm1277_vm3, %v4106_v39  ;;  %vm4045_vm4 = vcmp.ge.f32.partialorder %v3963_v29, 0.0 }
 0x36e   : > { %vm4044_vm5 = vcmp.ge.f32.partialorder %v3958_v46, 0.0  ;;  %v4076_v4 = vmul.f32 %v3958_v46, %v7699_v50  ;;  %v6494_v43 = vpop.f32.mrb[116].mxu1  ;;  %6543 = vmatmul.mubr.msk.f32.gmra.mrb[80].mxu0 %vm1277_vm3, %v4107_v34 }
 0x36f   : > { %v3973_v21 = vadd.f32 %v6494_v43, %v8118_v56  ;;  %v3967_v8 = vpop.f32.mrb[117].mxu1  ;;  %v4109_v30 = vsel %vm4045_vm4, %v3963_v29, %v4077_v0 }
 0x370   : > { %v3968_v9 = vadd.f32 %v8118_v56, %v3967_v8  ;;  %v4108_v10 = vsel %vm4044_vm5, %v3958_v46, %v4076_v4 }
 0x371   : > { %v4079_v24 = vmul.f32 %v3973_v21, %v7699_v50  ;;  %6545 = vmatprep.mubr.msk.f32.mxu0 %vm1277_vm3, %v4108_v10  ;;  %vm4047_vm6 = vcmp.ge.f32.partialorder %v3973_v21, 0.0 }
 0x372   : > { %vm4046_vm7 = vcmp.ge.f32.partialorder %v3968_v9, 0.0  ;;  %v4078_v11 = vmul.f32 %v3968_v9, %v7699_v50  ;;  %v6497_v5 = vpop.f32.mrb[118].mxu1  ;;  %6546 = vmatmul.mubr.msk.f32.gmra.mrb[82].mxu0 %vm1277_vm3, %v4109_v30 }
 0x373   : > { %v3983_v7 = vadd.f32 %v6497_v5, %v8118_v56  ;;  %v3977_v12 = vpop.f32.mrb[119].mxu1  ;;  %v4111_v25 = vsel %vm4047_vm6, %v3973_v21, %v4079_v24 }
 0x374   : > { %v3978_v18 = vadd.f32 %v8118_v56, %v3977_v12  ;;  %v4110_v42 = vsel %vm4046_vm7, %v3968_v9, %v4078_v11 }
 0x375   : > { %v4081_v28 = vmul.f32 %v3983_v7, %v7699_v50  ;;  %6548 = vmatprep.mubr.msk.f32.mxu0 %vm1277_vm3, %v4110_v42  ;;  %vm4049_vm8 = vcmp.ge.f32.partialorder %v3983_v7, 0.0 }
 0x376   : > { %vm4048_vm9 = vcmp.ge.f32.partialorder %v3978_v18, 0.0  ;;  %v4080_v47 = vmul.f32 %v3978_v18, %v7699_v50  ;;  %v6500_v35 = vpop.f32.mrb[120].mxu1  ;;  %6549 = vmatmul.mubr.msk.f32.gmra.mrb[84].mxu0 %vm1277_vm3, %v4111_v25 }
 0x377   : > { %v3993_v23 = vadd.f32 %v6500_v35, %v8118_v56  ;;  %v3987_v45 = vpop.f32.mrb[121].mxu1  ;;  %v4113_v19 = vsel %vm4049_vm8, %v3983_v7, %v4081_v28 }
 0x378   : > { %v3988_v36 = vadd.f32 %v8118_v56, %v3987_v45  ;;  %v4112_v49 = vsel %vm4048_vm9, %v3978_v18, %v4080_v47 }
 0x379   : > { %v4083_v51 = vmul.f32 %v3993_v23, %v7699_v50  ;;  %6551 = vmatprep.mubr.msk.f32.mxu0 %vm1277_vm3, %v4112_v49  ;;  %vm4051_vm0 = vcmp.ge.f32.partialorder %v3993_v23, 0.0 }
 0x37a   : > { %vm4050_vm10 = vcmp.ge.f32.partialorder %v3988_v36, 0.0  ;;  %v4082_v20 = vmul.f32 %v3988_v36, %v7699_v50  ;;  %v6503_v31 = vpop.f32.mrb[122].mxu1  ;;  %6552 = vmatmul.mubr.msk.f32.gmra.mrb[86].mxu0 %vm1277_vm3, %v4113_v19 }
 0x37b   : > { %v4003_v48 = vadd.f32 %v6503_v31, %v8118_v56  ;;  %v3997_v52 = vpop.f32.mrb[123].mxu1  ;;  %v4115_v32 = vsel %vm4051_vm0, %v3993_v23, %v4083_v51 }
 0x37c   : > { %v3998_v44 = vadd.f32 %v8118_v56, %v3997_v52  ;;  %v4114_v6 = vsel %vm4050_vm10, %v3988_v36, %v4082_v20 }
 0x37d   : > { %v4085_v53 = vmul.f32 %v4003_v48, %v7699_v50  ;;  %6554 = vmatprep.mubr.msk.f32.mxu0 %vm1277_vm3, %v4114_v6  ;;  %vm4053_vm11 = vcmp.ge.f32.partialorder %v4003_v48, 0.0 }
 0x37e   : > { %vm4052_vm12 = vcmp.ge.f32.partialorder %v3998_v44, 0.0  ;;  %v4084_v27 = vmul.f32 %v3998_v44, %v7699_v50  ;;  %v6506_v41 = vpop.f32.mrb[124].mxu1  ;;  %6555 = vmatmul.mubr.msk.f32.gmra.mrb[88].mxu0 %vm1277_vm3, %v4115_v32 }
 0x37f   : > { %v4013_v54 = vadd.f32 %v6506_v41, %v8118_v56  ;;  %v4007_v55 = vpop.f32.mrb[125].mxu1  ;;  %v4117_v38 = vsel %vm4053_vm11, %v4003_v48, %v4085_v53 }
 0x380   : > { %v4008_v13 = vadd.f32 %v8118_v56, %v4007_v55  ;;  %v4116_v63 = vsel %vm4052_vm12, %v3998_v44, %v4084_v27 }
 0x381   : > { %v4087_v57 = vmul.f32 %v4013_v54, %v7699_v50  ;;  %6557 = vmatprep.mubr.msk.f32.mxu0 %vm1277_vm3, %v4116_v63  ;;  %vm4055_vm13 = vcmp.ge.f32.partialorder %v4013_v54, 0.0 }
 0x382   : > { %vm4054_vm14 = vcmp.ge.f32.partialorder %v4008_v13, 0.0  ;;  %v4086_v14 = vmul.f32 %v4008_v13, %v7699_v50  ;;  %v6509_v59 = vpop.f32.mrb[126].mxu1  ;;  %6558 = vmatmul.mubr.msk.f32.gmra.mrb[90].mxu0 %vm1277_vm3, %v4117_v38 }
 0x383   : > { %v4023_v58 = vadd.f32 %v6509_v59, %v8118_v56  ;;  %v4017_v26 = vpop.f32.mrb[127].mxu1  ;;  %v4119_v62 = vsel %vm4055_vm13, %v4013_v54, %v4087_v57 }
 0x384   : > { %v4018_v60 = vadd.f32 %v8118_v56, %v4017_v26  ;;  %v4118_v61 = vsel %vm4054_vm14, %v4008_v13, %v4086_v14  ;;  %v8219_v56 = vld [vmem:[%s8581_s19] ss:$0 sm:$0xff] }
 0x385   : > { %v4089_v37 = vmul.f32 %v4023_v58, %v7699_v50  ;;  %6560 = vmatprep.mubr.msk.f32.mxu0 %vm1277_vm3, %v4118_v61  ;;  %vm4057_vm15 = vcmp.ge.f32.partialorder %v4023_v58, 0.0 }
 0x386   : > { %vm4056_vm1 = vcmp.ge.f32.partialorder %v4018_v60, 0.0  ;;  %v4088_v40 = vmul.f32 %v4018_v60, %v7699_v50  ;;  %6561 = vmatmul.mubr.msk.f32.gmra.mrb[92].mxu0 %vm1277_vm3, %v4119_v62 }
 0x387   : > { %v4121_v33 = vsel %vm4057_vm15, %v4023_v58, %v4089_v37 }
 0x388   : > { %v4120_v16 = vsel %vm4056_vm1, %v4018_v60, %v4088_v40 }
 0x389   : > { %6563 = vmatprep.mubr.msk.f32.mxu0 %vm1277_vm3, %v4120_v16 }
 0x38a   : > { %6564 = vmatmul.mubr.msk.f32.gmra.mrb[94].mxu0 %vm1277_vm3, %v4121_v33 }
 0x421   : > { %v6520_v22 = vpop.f32.mrb[64].mxu0 }
 0x422   : > { %v4487_v2 = vadd.f32 %v6520_v22, %v8219_v56  ;;  %v4288_v50 = vpop.f32.mrb[65].mxu0 }
 0x423   : > { %v4486_v17 = vadd.f32 %v8219_v56, %v4288_v50 }
 0x424   : > { %v4552_v15 = vmul.f32 %v8221_v1, %v4487_v2  ;;  %vm4519_vm2 = vcmp.ge.f32.partialorder %v4487_v2, 0.0 }
 0x425   : > { %vm4518_vm4 = vcmp.ge.f32.partialorder %v4486_v17, 0.0  ;;  %v4551_v29 = vmul.f32 %v8221_v1, %v4486_v17  ;;  %v6523_v3 = vpop.f32.mrb[66].mxu0 }
 0x426   : > { %v4489_v46 = vadd.f32 %v6523_v3, %v8219_v56  ;;  %v4298_v39 = vpop.f32.mrb[67].mxu0  ;;  %v4584_v4 = vsel %vm4519_vm2, %v4487_v2, %v4552_v15 }
 0x427   : > { %v4488_v0 = vadd.f32 %v8219_v56, %v4298_v39  ;;  %v4583_v34 = vsel %vm4518_vm4, %v4486_v17, %v4551_v29 }
 0x428   : > { %v4554_v43 = vmul.f32 %v8221_v1, %v4489_v46  ;;  %6574 = vmatprep.mubr.msk.f32.mxu1 %vm1277_vm3, %v4583_v34  ;;  %vm4521_vm5 = vcmp.ge.f32.partialorder %v4489_v46, 0.0 }
 0x429   : > { %vm4520_vm6 = vcmp.ge.f32.partialorder %v4488_v0, 0.0  ;;  %v4553_v21 = vmul.f32 %v8221_v1, %v4488_v0  ;;  %v6526_v8 = vpop.f32.mrb[68].mxu0  ;;  %6575 = vmatmul.mubr.msk.f32.vlgmr.msra.gmra.mrb[128].mxu1 %vm1277_vm3, %v4584_v4 }
 0x42a   : > { %v4491_v9 = vadd.f32 %v6526_v8, %v8219_v56  ;;  %v4308_v10 = vpop.f32.mrb[69].mxu0  ;;  %v4586_v5 = vsel %vm4521_vm5, %v4489_v46, %v4554_v43 }
 0x42b   : > { %v4490_v24 = vadd.f32 %v8219_v56, %v4308_v10  ;;  %v4585_v30 = vsel %vm4520_vm6, %v4488_v0, %v4553_v21 }
 0x42c   : > { %v4556_v11 = vmul.f32 %v8221_v1, %v4491_v9  ;;  %6577 = vmatprep.mubr.msk.f32.mxu1 %vm1277_vm3, %v4585_v30  ;;  %vm4523_vm7 = vcmp.ge.f32.partialorder %v4491_v9, 0.0 }
 0x42d   : > { %vm4522_vm8 = vcmp.ge.f32.partialorder %v4490_v24, 0.0  ;;  %v4555_v7 = vmul.f32 %v8221_v1, %v4490_v24  ;;  %v6529_v12 = vpop.f32.mrb[70].mxu0  ;;  %6578 = vmatmul.mubr.msk.f32.gmra.mrb[130].mxu1 %vm1277_vm3, %v4586_v5 }
 0x42e   : > { %v4493_v18 = vadd.f32 %v6529_v12, %v8219_v56  ;;  %v4318_v42 = vpop.f32.mrb[71].mxu0  ;;  %v4588_v35 = vsel %vm4523_vm7, %v4491_v9, %v4556_v11 }
 0x42f   : > { %v4492_v28 = vadd.f32 %v8219_v56, %v4318_v42  ;;  %v4587_v25 = vsel %vm4522_vm8, %v4490_v24, %v4555_v7 }
 0x430   : > { %v4558_v47 = vmul.f32 %v8221_v1, %v4493_v18  ;;  %6580 = vmatprep.mubr.msk.f32.mxu1 %vm1277_vm3, %v4587_v25  ;;  %vm4525_vm9 = vcmp.ge.f32.partialorder %v4493_v18, 0.0 }
 0x431   : > { %vm4524_vm0 = vcmp.ge.f32.partialorder %v4492_v28, 0.0  ;;  %v4557_v23 = vmul.f32 %v8221_v1, %v4492_v28  ;;  %v6532_v45 = vpop.f32.mrb[72].mxu0  ;;  %6581 = vmatmul.mubr.msk.f32.gmra.mrb[132].mxu1 %vm1277_vm3, %v4588_v35 }
 0x432   : > { %v4495_v36 = vadd.f32 %v6532_v45, %v8219_v56  ;;  %v4328_v49 = vpop.f32.mrb[73].mxu0  ;;  %v4590_v31 = vsel %vm4525_vm9, %v4493_v18, %v4558_v47 }
 0x433   : > { %v4494_v51 = vadd.f32 %v8219_v56, %v4328_v49  ;;  %v4589_v19 = vsel %vm4524_vm0, %v4492_v28, %v4557_v23 }
 0x434   : > { %v4560_v20 = vmul.f32 %v8221_v1, %v4495_v36  ;;  %6583 = vmatprep.mubr.msk.f32.mxu1 %vm1277_vm3, %v4589_v19  ;;  %vm4527_vm10 = vcmp.ge.f32.partialorder %v4495_v36, 0.0 }
 0x435   : > { %vm4526_vm11 = vcmp.ge.f32.partialorder %v4494_v51, 0.0  ;;  %v4559_v48 = vmul.f32 %v8221_v1, %v4494_v51  ;;  %v6535_v52 = vpop.f32.mrb[74].mxu0  ;;  %6584 = vmatmul.mubr.msk.f32.gmra.mrb[134].mxu1 %vm1277_vm3, %v4590_v31 }
 0x436   : > { %v4497_v44 = vadd.f32 %v6535_v52, %v8219_v56  ;;  %v4338_v6 = vpop.f32.mrb[75].mxu0  ;;  %v4592_v41 = vsel %vm4527_vm10, %v4495_v36, %v4560_v20 }
 0x437   : > { %v4496_v53 = vadd.f32 %v8219_v56, %v4338_v6  ;;  %v4591_v32 = vsel %vm4526_vm11, %v4494_v51, %v4559_v48 }
 0x438   : > { %v4562_v27 = vmul.f32 %v8221_v1, %v4497_v44  ;;  %6586 = vmatprep.mubr.msk.f32.mxu1 %vm1277_vm3, %v4591_v32  ;;  %vm4529_vm12 = vcmp.ge.f32.partialorder %v4497_v44, 0.0 }
 0x439   : > { %vm4528_vm13 = vcmp.ge.f32.partialorder %v4496_v53, 0.0  ;;  %v4561_v54 = vmul.f32 %v8221_v1, %v4496_v53  ;;  %v6538_v55 = vpop.f32.mrb[76].mxu0  ;;  %6587 = vmatmul.mubr.msk.f32.gmra.mrb[136].mxu1 %vm1277_vm3, %v4592_v41 }
 0x43a   : > { %v4499_v13 = vadd.f32 %v6538_v55, %v8219_v56  ;;  %v4348_v63 = vpop.f32.mrb[77].mxu0  ;;  %v4594_v59 = vsel %vm4529_vm12, %v4497_v44, %v4562_v27 }
 0x43b   : > { %v4498_v57 = vadd.f32 %v8219_v56, %v4348_v63  ;;  %v4593_v38 = vsel %vm4528_vm13, %v4496_v53, %v4561_v54 }
 0x43c   : > { %v4564_v14 = vmul.f32 %v8221_v1, %v4499_v13  ;;  %6589 = vmatprep.mubr.msk.f32.mxu1 %vm1277_vm3, %v4593_v38  ;;  %vm4531_vm14 = vcmp.ge.f32.partialorder %v4499_v13, 0.0 }
 0x43d   : > { %vm4530_vm15 = vcmp.ge.f32.partialorder %v4498_v57, 0.0  ;;  %v4563_v58 = vmul.f32 %v8221_v1, %v4498_v57  ;;  %v6541_v26 = vpop.f32.mrb[78].mxu0  ;;  %6590 = vmatmul.mubr.msk.f32.gmra.mrb[138].mxu1 %vm1277_vm3, %v4594_v59 }
 0x43e   : > { %v4501_v60 = vadd.f32 %v6541_v26, %v8219_v56  ;;  %v4358_v61 = vpop.f32.mrb[79].mxu0  ;;  %v4596_v16 = vsel %vm4531_vm14, %v4499_v13, %v4564_v14 }
 0x43f   : > { %v4500_v37 = vadd.f32 %v8219_v56, %v4358_v61  ;;  %v4595_v62 = vsel %vm4530_vm15, %v4498_v57, %v4563_v58 }
 0x440   : > { %v4566_v40 = vmul.f32 %v8221_v1, %v4501_v60  ;;  %6592 = vmatprep.mubr.msk.f32.mxu1 %vm1277_vm3, %v4595_v62  ;;  %vm4533_vm1 = vcmp.ge.f32.partialorder %v4501_v60, 0.0 }
 0x441   : > { %vm4532_vm2 = vcmp.ge.f32.partialorder %v4500_v37, 0.0  ;;  %v4565_v33 = vmul.f32 %v8221_v1, %v4500_v37  ;;  %v6544_v22 = vpop.f32.mrb[80].mxu0  ;;  %6593 = vmatmul.mubr.msk.f32.gmra.mrb[140].mxu1 %vm1277_vm3, %v4596_v16 }
 0x442   : > { %v4503_v2 = vadd.f32 %v6544_v22, %v8219_v56  ;;  %v4368_v50 = vpop.f32.mrb[81].mxu0  ;;  %v4598_v3 = vsel %vm4533_vm1, %v4501_v60, %v4566_v40 }
 0x443   : > { %v4502_v17 = vadd.f32 %v8219_v56, %v4368_v50  ;;  %v4597_v15 = vsel %vm4532_vm2, %v4500_v37, %v4565_v33 }
 0x444   : > { %v4568_v29 = vmul.f32 %v8221_v1, %v4503_v2  ;;  %6595 = vmatprep.mubr.msk.f32.mxu1 %vm1277_vm3, %v4597_v15  ;;  %vm4535_vm4 = vcmp.ge.f32.partialorder %v4503_v2, 0.0 }
 0x445   : > { %vm4534_vm5 = vcmp.ge.f32.partialorder %v4502_v17, 0.0  ;;  %v4567_v46 = vmul.f32 %v8221_v1, %v4502_v17  ;;  %v6547_v39 = vpop.f32.mrb[82].mxu0  ;;  %6596 = vmatmul.mubr.msk.f32.gmra.mrb[142].mxu1 %vm1277_vm3, %v4598_v3 }
 0x446   : > { %v4505_v0 = vadd.f32 %v6547_v39, %v8219_v56  ;;  %v4378_v34 = vpop.f32.mrb[83].mxu0  ;;  %v4600_v8 = vsel %vm4535_vm4, %v4503_v2, %v4568_v29 }
 0x447   : > { %v4504_v4 = vadd.f32 %v8219_v56, %v4378_v34  ;;  %v4599_v43 = vsel %vm4534_vm5, %v4502_v17, %v4567_v46  ;;  %vm4947_vm5 = vcmask 64512  }
 0x448   : > { %v4570_v21 = vmul.f32 %v8221_v1, %v4505_v0  ;;  %6598 = vmatprep.mubr.msk.f32.mxu1 %vm1277_vm3, %v4599_v43  ;;  %vm4537_vm6 = vcmp.ge.f32.partialorder %v4505_v0, 0.0 }
 0x449   : > { %vm4536_vm7 = vcmp.ge.f32.partialorder %v4504_v4, 0.0  ;;  %v4569_v9 = vmul.f32 %v8221_v1, %v4504_v4  ;;  %v6550_v10 = vpop.f32.mrb[84].mxu0  ;;  %6599 = vmatmul.mubr.msk.f32.gmra.mrb[144].mxu1 %vm1277_vm3, %v4600_v8 }
 0x44a   : > { %v4507_v24 = vadd.f32 %v6550_v10, %v8219_v56  ;;  %v4388_v30 = vpop.f32.mrb[85].mxu0  ;;  %v4602_v12 = vsel %vm4537_vm6, %v4505_v0, %v4570_v21 }
 0x44b   : > { %v4506_v11 = vadd.f32 %v8219_v56, %v4388_v30  ;;  %v4601_v5 = vsel %vm4536_vm7, %v4504_v4, %v4569_v9 }
 0x44c   : > { %v4572_v7 = vmul.f32 %v8221_v1, %v4507_v24  ;;  %6601 = vmatprep.mubr.msk.f32.mxu1 %vm1277_vm3, %v4601_v5  ;;  %vm4539_vm8 = vcmp.ge.f32.partialorder %v4507_v24, 0.0 }
 0x44d   : > { %vm4538_vm9 = vcmp.ge.f32.partialorder %v4506_v11, 0.0  ;;  %v4571_v18 = vmul.f32 %v8221_v1, %v4506_v11  ;;  %v6553_v42 = vpop.f32.mrb[86].mxu0  ;;  %6602 = vmatmul.mubr.msk.f32.gmra.mrb[146].mxu1 %vm1277_vm3, %v4602_v12 }
 0x44e   : > { %v4509_v28 = vadd.f32 %v6553_v42, %v8219_v56  ;;  %v4398_v25 = vpop.f32.mrb[87].mxu0  ;;  %v4604_v45 = vsel %vm4539_vm8, %v4507_v24, %v4572_v7 }
 0x44f   : > { %v4508_v47 = vadd.f32 %v8219_v56, %v4398_v25  ;;  %v4603_v35 = vsel %vm4538_vm9, %v4506_v11, %v4571_v18 }
 0x450   : > { %v4574_v23 = vmul.f32 %v8221_v1, %v4509_v28  ;;  %6604 = vmatprep.mubr.msk.f32.mxu1 %vm1277_vm3, %v4603_v35  ;;  %vm4541_vm0 = vcmp.ge.f32.partialorder %v4509_v28, 0.0 }
 0x451   : > { %vm4540_vm10 = vcmp.ge.f32.partialorder %v4508_v47, 0.0  ;;  %v4573_v36 = vmul.f32 %v8221_v1, %v4508_v47  ;;  %v6556_v49 = vpop.f32.mrb[88].mxu0  ;;  %6605 = vmatmul.mubr.msk.f32.gmra.mrb[148].mxu1 %vm1277_vm3, %v4604_v45 }
 0x452   : > { %v4511_v51 = vadd.f32 %v6556_v49, %v8219_v56  ;;  %v4408_v19 = vpop.f32.mrb[89].mxu0  ;;  %v4606_v52 = vsel %vm4541_vm0, %v4509_v28, %v4574_v23 }
 0x453   : > { %v4510_v20 = vadd.f32 %v8219_v56, %v4408_v19  ;;  %v4605_v31 = vsel %vm4540_vm10, %v4508_v47, %v4573_v36 }
 0x454   : > { %v4576_v48 = vmul.f32 %v8221_v1, %v4511_v51  ;;  %6607 = vmatprep.mubr.msk.f32.mxu1 %vm1277_vm3, %v4605_v31  ;;  %vm4543_vm11 = vcmp.ge.f32.partialorder %v4511_v51, 0.0 }
 0x455   : > { %vm4542_vm12 = vcmp.ge.f32.partialorder %v4510_v20, 0.0  ;;  %v4575_v44 = vmul.f32 %v8221_v1, %v4510_v20  ;;  %v6559_v6 = vpop.f32.mrb[90].mxu0  ;;  %6608 = vmatmul.mubr.msk.f32.gmra.mrb[150].mxu1 %vm1277_vm3, %v4606_v52 }
 0x456   : > { %v4513_v53 = vadd.f32 %v6559_v6, %v8219_v56  ;;  %v4418_v32 = vpop.f32.mrb[91].mxu0  ;;  %v4608_v55 = vsel %vm4543_vm11, %v4511_v51, %v4576_v48 }
 0x457   : > { %v4512_v27 = vadd.f32 %v8219_v56, %v4418_v32  ;;  %v4607_v41 = vsel %vm4542_vm12, %v4510_v20, %v4575_v44 }
 0x458   : > { %v4578_v54 = vmul.f32 %v8221_v1, %v4513_v53  ;;  %6610 = vmatprep.mubr.msk.f32.mxu1 %vm1277_vm3, %v4607_v41  ;;  %vm4545_vm13 = vcmp.ge.f32.partialorder %v4513_v53, 0.0 }
 0x459   : > { %vm4544_vm14 = vcmp.ge.f32.partialorder %v4512_v27, 0.0  ;;  %v4577_v13 = vmul.f32 %v8221_v1, %v4512_v27  ;;  %v6562_v63 = vpop.f32.mrb[92].mxu0  ;;  %6611 = vmatmul.mubr.msk.f32.gmra.mrb[152].mxu1 %vm1277_vm3, %v4608_v55 }
 0x45a   : > { %v4515_v57 = vadd.f32 %v6562_v63, %v8219_v56  ;;  %v4428_v38 = vpop.f32.mrb[93].mxu0  ;;  %v4610_v26 = vsel %vm4545_vm13, %v4513_v53, %v4578_v54 }
 0x45b   : > { %v4514_v14 = vadd.f32 %v8219_v56, %v4428_v38  ;;  %v4609_v59 = vsel %vm4544_vm14, %v4512_v27, %v4577_v13 }
 0x45c   : > { %v4580_v58 = vmul.f32 %v8221_v1, %v4515_v57  ;;  %6613 = vmatprep.mubr.msk.f32.mxu1 %vm1277_vm3, %v4609_v59  ;;  %vm4547_vm15 = vcmp.ge.f32.partialorder %v4515_v57, 0.0 }
 0x45d   : > { %vm4546_vm1 = vcmp.ge.f32.partialorder %v4514_v14, 0.0  ;;  %v4579_v60 = vmul.f32 %v8221_v1, %v4514_v14  ;;  %v6565_v61 = vpop.f32.mrb[94].mxu0  ;;  %6614 = vmatmul.mubr.msk.f32.gmra.mrb[154].mxu1 %vm1277_vm3, %v4610_v26 }
 0x45e   : > { %v4517_v37 = vadd.f32 %v6565_v61, %v8219_v56  ;;  %v4438_v62 = vpop.f32.mrb[95].mxu0  ;;  %v4612_v22 = vsel %vm4547_vm15, %v4515_v57, %v4580_v58 }
 0x45f   : > { %v4516_v40 = vadd.f32 %v8219_v56, %v4438_v62  ;;  %v4611_v16 = vsel %vm4546_vm1, %v4514_v14, %v4579_v60  ;;  %v8323_v56 = vld [vmem:[%s8583_s21] ss:$0 sm:$0xff] }
 0x460   : > { %v4582_v33 = vmul.f32 %v8221_v1, %v4517_v37  ;;  %6616 = vmatprep.mubr.msk.f32.mxu1 %vm1277_vm3, %v4611_v16  ;;  %vm4549_vm2 = vcmp.ge.f32.partialorder %v4517_v37, 0.0 }
 0x461   : > { %vm4548_vm4 = vcmp.ge.f32.partialorder %v4516_v40, 0.0  ;;  %v4581_v2 = vmul.f32 %v8221_v1, %v4516_v40  ;;  %6617 = vmatmul.mubr.msk.f32.gmra.mrb[156].mxu1 %vm1277_vm3, %v4612_v22 }
 0x462   : > { %v4614_v17 = vsel %vm4549_vm2, %v4517_v37, %v4582_v33 }
 0x463   : > { %v4613_v50 = vsel %vm4548_vm4, %v4516_v40, %v4581_v2 }
 0x464   : > { %6619 = vmatprep.mubr.msk.f32.mxu1 %vm1277_vm3, %v4613_v50 }
 0x465   : > { %6620 = vmatmul.mubr.msk.f32.gmra.mrb[158].mxu1 %vm1277_vm3, %v4614_v17 }
 0x4fc   : > { %v6576_v15 = vpop.f32.mrb[128].mxu1 }
 0x4fd   : > { %v4794_v29 = vadd.f32 %v6576_v15, %v8323_v56  ;;  %v4788_v1 = vpop.f32.mrb[129].mxu1 }
 0x4fe   : > { %v4789_v3 = vadd.f32 %v8323_v56, %v4788_v1 }
 0x4ff   : > { %4949 = vst.msk [vmem:[%s8327_s0 + $0x8] sm:$0xff] %vm4947_vm5, %v4794_v29 }
 0x500   : > { %4948 = vst.msk [vmem:[%s8327_s0] sm:$0xff] %vm4947_vm5, %v4789_v3  ;;  %v6579_v46 = vpop.f32.mrb[130].mxu1 }
 0x501   : > { %v4804_v39 = vadd.f32 %v6579_v46, %v8323_v56  ;;  %v4798_v0 = vpop.f32.mrb[131].mxu1 }
 0x502   : > { %v4799_v34 = vadd.f32 %v8323_v56, %v4798_v0 }
 0x503   : > { %4951 = vst.msk [vmem:[%s8327_s0 + $0x18] sm:$0xff] %vm4947_vm5, %v4804_v39 }
 0x504   : > { %4950 = vst.msk [vmem:[%s8327_s0 + $0x10] sm:$0xff] %vm4947_vm5, %v4799_v34  ;;  %v6582_v4 = vpop.f32.mrb[132].mxu1 }
 0x505   : > { %v4814_v43 = vadd.f32 %v6582_v4, %v8323_v56  ;;  %v4808_v21 = vpop.f32.mrb[133].mxu1 }
 0x506   : > { %v4809_v8 = vadd.f32 %v8323_v56, %v4808_v21 }
 0x507   : > { %4953 = vst.msk [vmem:[%s8327_s0 + $0x28] sm:$0xff] %vm4947_vm5, %v4814_v43 }
 0x508   : > { %4952 = vst.msk [vmem:[%s8327_s0 + $0x20] sm:$0xff] %vm4947_vm5, %v4809_v8  ;;  %v6585_v9 = vpop.f32.mrb[134].mxu1 }
 0x509   : > { %v4824_v10 = vadd.f32 %v6585_v9, %v8323_v56  ;;  %v4818_v24 = vpop.f32.mrb[135].mxu1 }
 0x50a   : > { %v4819_v30 = vadd.f32 %v8323_v56, %v4818_v24 }
 0x50b   : > { %4955 = vst.msk [vmem:[%s8327_s0 + $0x38] sm:$0xff] %vm4947_vm5, %v4824_v10 }
 0x50c   : > { %4954 = vst.msk [vmem:[%s8327_s0 + $0x30] sm:$0xff] %vm4947_vm5, %v4819_v30  ;;  %v6588_v11 = vpop.f32.mrb[136].mxu1 }
 0x50d   : > { %v4834_v5 = vadd.f32 %v6588_v11, %v8323_v56  ;;  %v4828_v7 = vpop.f32.mrb[137].mxu1 }
 0x50e   : > { %v4829_v12 = vadd.f32 %v8323_v56, %v4828_v7 }
 0x50f   : > { %4957 = vst.msk [vmem:[%s8327_s0 + $0x48] sm:$0xff] %vm4947_vm5, %v4834_v5 }
 0x510   : > { %4956 = vst.msk [vmem:[%s8327_s0 + $0x40] sm:$0xff] %vm4947_vm5, %v4829_v12  ;;  %v6591_v18 = vpop.f32.mrb[138].mxu1 }
 0x511   : > { %v4844_v42 = vadd.f32 %v6591_v18, %v8323_v56  ;;  %v4838_v28 = vpop.f32.mrb[139].mxu1 }
 0x512   : > { %v4839_v25 = vadd.f32 %v8323_v56, %v4838_v28 }
 0x513   : > { %4959 = vst.msk [vmem:[%s8327_s0 + $0x58] sm:$0xff] %vm4947_vm5, %v4844_v42 }
 0x514   : > { %4958 = vst.msk [vmem:[%s8327_s0 + $0x50] sm:$0xff] %vm4947_vm5, %v4839_v25  ;;  %v6594_v47 = vpop.f32.mrb[140].mxu1 }
 0x515   : > { %v4854_v35 = vadd.f32 %v6594_v47, %v8323_v56  ;;  %v4848_v23 = vpop.f32.mrb[141].mxu1 }
 0x516   : > { %v4849_v45 = vadd.f32 %v8323_v56, %v4848_v23 }
 0x517   : > { %4961 = vst.msk [vmem:[%s8327_s0 + $0x68] sm:$0xff] %vm4947_vm5, %v4854_v35 }
 0x518   : > { %4960 = vst.msk [vmem:[%s8327_s0 + $0x60] sm:$0xff] %vm4947_vm5, %v4849_v45  ;;  %v6597_v36 = vpop.f32.mrb[142].mxu1 }
 0x519   : > { %v4864_v49 = vadd.f32 %v6597_v36, %v8323_v56  ;;  %v4858_v51 = vpop.f32.mrb[143].mxu1 }
 0x51a   : > { %v4859_v19 = vadd.f32 %v8323_v56, %v4858_v51 }
 0x51b   : > { %4963 = vst.msk [vmem:[%s8327_s0 + $0x78] sm:$0xff] %vm4947_vm5, %v4864_v49 }
 0x51c   : > { %4962 = vst.msk [vmem:[%s8327_s0 + $0x70] sm:$0xff] %vm4947_vm5, %v4859_v19  ;;  %v6600_v20 = vpop.f32.mrb[144].mxu1 }
 0x51d   : > { %v4874_v31 = vadd.f32 %v6600_v20, %v8323_v56  ;;  %v4868_v48 = vpop.f32.mrb[145].mxu1 }
 0x51e   : > { %v4869_v52 = vadd.f32 %v8323_v56, %v4868_v48 }
 0x51f   : > { %4965 = vst.msk [vmem:[%s8327_s0 + $0x88] sm:$0xff] %vm4947_vm5, %v4874_v31 }
 0x520   : > { %4964 = vst.msk [vmem:[%s8327_s0 + $0x80] sm:$0xff] %vm4947_vm5, %v4869_v52  ;;  %v6603_v44 = vpop.f32.mrb[146].mxu1 }
 0x521   : > { %v4884_v6 = vadd.f32 %v6603_v44, %v8323_v56  ;;  %v4878_v53 = vpop.f32.mrb[147].mxu1 }
 0x522   : > { %v4879_v32 = vadd.f32 %v8323_v56, %v4878_v53 }
 0x523   : > { %4967 = vst.msk [vmem:[%s8327_s0 + $0x98] sm:$0xff] %vm4947_vm5, %v4884_v6 }
 0x524   : > { %4966 = vst.msk [vmem:[%s8327_s0 + $0x90] sm:$0xff] %vm4947_vm5, %v4879_v32  ;;  %v6606_v27 = vpop.f32.mrb[148].mxu1 }
 0x525   : > { %v4894_v41 = vadd.f32 %v6606_v27, %v8323_v56  ;;  %v4888_v54 = vpop.f32.mrb[149].mxu1 }
 0x526   : > { %v4889_v55 = vadd.f32 %v8323_v56, %v4888_v54 }
 0x527   : > { %4969 = vst.msk [vmem:[%s8327_s0 + $0xa8] sm:$0xff] %vm4947_vm5, %v4894_v41 }
 0x528   : > { %4968 = vst.msk [vmem:[%s8327_s0 + $0xa0] sm:$0xff] %vm4947_vm5, %v4889_v55  ;;  %v6609_v13 = vpop.f32.mrb[150].mxu1 }
 0x529   : > { %v4904_v63 = vadd.f32 %v6609_v13, %v8323_v56  ;;  %v4898_v57 = vpop.f32.mrb[151].mxu1 }
 0x52a   : > { %v4899_v38 = vadd.f32 %v8323_v56, %v4898_v57 }
 0x52b   : > { %4971 = vst.msk [vmem:[%s8327_s0 + $0xb8] sm:$0xff] %vm4947_vm5, %v4904_v63 }
 0x52c   : > { %4970 = vst.msk [vmem:[%s8327_s0 + $0xb0] sm:$0xff] %vm4947_vm5, %v4899_v38  ;;  %v6612_v14 = vpop.f32.mrb[152].mxu1 }
 0x52d   : > { %v4914_v59 = vadd.f32 %v6612_v14, %v8323_v56  ;;  %v4908_v58 = vpop.f32.mrb[153].mxu1 }
 0x52e   : > { %v4909_v26 = vadd.f32 %v8323_v56, %v4908_v58 }
 0x52f   : > { %4973 = vst.msk [vmem:[%s8327_s0 + $0xc8] sm:$0xff] %vm4947_vm5, %v4914_v59 }
 0x530   : > { %4972 = vst.msk [vmem:[%s8327_s0 + $0xc0] sm:$0xff] %vm4947_vm5, %v4909_v26  ;;  %v6615_v60 = vpop.f32.mrb[154].mxu1 }
 0x531   : > { %v4924_v61 = vadd.f32 %v6615_v60, %v8323_v56  ;;  %v4918_v37 = vpop.f32.mrb[155].mxu1 }
 0x532   : > { %v4919_v62 = vadd.f32 %v8323_v56, %v4918_v37 }
 0x533   : > { %4975 = vst.msk [vmem:[%s8327_s0 + $0xd8] sm:$0xff] %vm4947_vm5, %v4924_v61 }
 0x534   : > { %4974 = vst.msk [vmem:[%s8327_s0 + $0xd0] sm:$0xff] %vm4947_vm5, %v4919_v62  ;;  %v6618_v40 = vpop.f32.mrb[156].mxu1 }
 0x535   : > { %v4934_v16 = vadd.f32 %v6618_v40, %v8323_v56  ;;  %v4928_v33 = vpop.f32.mrb[157].mxu1 }
 0x536   : > { %v4929_v22 = vadd.f32 %v8323_v56, %v4928_v33  ;;  %4986 = sbr.rel (!%p7101_p4) target bundleno = 1397 (0x575), region = 116 }
 0x537   : > { %4977 = vst.msk [vmem:[%s8327_s0 + $0xe8] sm:$0xff] %vm4947_vm5, %v4934_v16 }
 0x538   : > { %4976 = vst.msk [vmem:[%s8327_s0 + $0xe0] sm:$0xff] %vm4947_vm5, %v4929_v22  ;;  %v6621_v2 = vpop.f32.mrb[158].mxu1 }
 0x539   : > { %v4944_v50 = vadd.f32 %v6621_v2, %v8323_v56  ;;  %v4938_v17 = vpop.f32.mrb[159].mxu1 }
 0x53a   : > { %v4939_v15 = vadd.f32 %v8323_v56, %v4938_v17 }
 0x53b   : > { %4979 = vst.msk [vmem:[%s8327_s0 + $0xf8] sm:$0xff] %vm4947_vm5, %v4944_v50 }
 0x53c   : > { %4978 = vst.msk [vmem:[%s8327_s0 + $0xf0] sm:$0xff] %vm4947_vm5, %v4939_v15 }
 0x53d   : > { %s8622_s3 = smov (!%p4989_p6, %s4988_s3), 32 }
 0x53e   : > { %s5702_s1 = sshll.u32 %s8622_s3, 7 }
 0x53f   : > { %p5705_p7 = scmp.eq.s32.totalorder %s5702_s1, 0 }
 0x540   : > { %s8436_s29 = sshrl.u32 (!%p5705_p7), %s8622_s3, 5 }
 0x541   : > { %4997 = sbr.rel (%p5705_p7) target bundleno = 1397 (0x575), region = 120  ;;  %p5706_p4 = scmp.le.s32.totalorder (!%p5705_p7), %s8436_s29, 0 }
 0x548   : > { %5290 = sbr.rel (%p5706_p4) target bundleno = 1376 (0x560), region = 203  ;;  %s8613_s30 = smov (!%p5706_p4), %s8430_s27 }
 0x549   : > { %s8614_s5 = smov (!%p5706_p4), %s8327_s0  ;;  %s8445_s2 = smov (!%p5706_p4), 0  }
 0x54a   : > { %s8447_s25 = smov (!%p5706_p4), 0  }
 0x54f LB: >> { %v5121_v56 = vld [vmem:[%s6934_s5] sm:$0xff]  ;;  %v5123_v29 = vld [vmem:[%s6934_s5 + $0x8] sm:$0xff]  ;;  %v5125_v1 = vld [vmem:[%s6934_s5 + $0x10] sm:$0xff]  ;;  %s5185_s28 = sadd.s32 1, %s6938_s2  ;;  %s5115_s25 = sadd.s32 1, %s6942_s25   ;;  %s6942_s25 = sphi %s8447_s25, %s5115_s25   ;;  %s6938_s2 = sphi %s8445_s2, %s8617_s2   ;;  %s6934_s5 = sphi %s8614_s5, %s8616_s5   ;;  %s6930_s30 = sphi %s8613_s30, %s8615_s30  }
 0x550   : >> { %5122 = vst [vmem:[%s6930_s30] sm:$0xff] %v5121_v56  ;;  %5124 = vst [vmem:[%s6930_s30 + $0x8] sm:$0xff] %v5123_v29  ;;  %v5127_v3 = vld [vmem:[%s6934_s5 + $0x18] sm:$0xff]  ;;  %v5129_v46 = vld [vmem:[%s6934_s5 + $0x20] sm:$0xff]  ;;  %p5186_p8 = scmp.ge.s32.totalorder %s5185_s28, %s8436_s29  ;;  %p5114_p9 = scmp.ge.s32.totalorder %s5115_s25, %s8436_s29 }
 0x551   : >> { %5126 = vst [vmem:[%s6930_s30 + $0x10] sm:$0xff] %v5125_v1  ;;  %v5131_v39 = vld [vmem:[%s6934_s5 + $0x28] sm:$0xff]  ;;  %5128 = vst [vmem:[%s6930_s30 + $0x18] sm:$0xff] %v5127_v3  ;;  %v5133_v0 = vld [vmem:[%s6934_s5 + $0x30] sm:$0xff] }
 0x552   : >> { %5130 = vst [vmem:[%s6930_s30 + $0x20] sm:$0xff] %v5129_v46  ;;  %5132 = vst [vmem:[%s6930_s30 + $0x28] sm:$0xff] %v5131_v39  ;;  %v5135_v34 = vld [vmem:[%s6934_s5 + $0x38] sm:$0xff]  ;;  %v5137_v4 = vld [vmem:[%s6934_s5 + $0x40] sm:$0xff]  ;;  %s8624_s28 = smov (%p5186_p8, %s5185_s28), 0 }
 0x553   : >> { %5134 = vst [vmem:[%s6930_s30 + $0x30] sm:$0xff] %v5133_v0  ;;  %5136 = vst [vmem:[%s6930_s30 + $0x38] sm:$0xff] %v5135_v34  ;;  %v5139_v43 = vld [vmem:[%s6934_s5 + $0x48] sm:$0xff]  ;;  %v5141_v21 = vld [vmem:[%s6934_s5 + $0x50] sm:$0xff]  ;;  %s5707_s6 = sshll.u32 %s8624_s28, 8  ;;  %s8617_s2 = smov %s8624_s28 }
 0x554   : >> { %5138 = vst [vmem:[%s6930_s30 + $0x40] sm:$0xff] %v5137_v4  ;;  %v5143_v8 = vld [vmem:[%s6934_s5 + $0x58] sm:$0xff]  ;;  %5140 = vst [vmem:[%s6930_s30 + $0x48] sm:$0xff] %v5139_v43  ;;  %v5145_v9 = vld [vmem:[%s6934_s5 + $0x60] sm:$0xff]  ;;  %s8503_s23 = scalar_lea.vmem %s8327_s0, %s5707_s6 [#allocation4]   ;;  %s5191_s26 = scalar_lea.vmem %s8430_s27, %s5707_s6  }
 0x555   : >> { %5142 = vst [vmem:[%s6930_s30 + $0x50] sm:$0xff] %v5141_v21  ;;  %5144 = vst [vmem:[%s6930_s30 + $0x58] sm:$0xff] %v5143_v8  ;;  %v5147_v10 = vld [vmem:[%s6934_s5 + $0x68] sm:$0xff]  ;;  %v5149_v24 = vld [vmem:[%s6934_s5 + $0x70] sm:$0xff] }
 0x556   : >> { %5146 = vst [vmem:[%s6930_s30 + $0x60] sm:$0xff] %v5145_v9  ;;  %5148 = vst [vmem:[%s6930_s30 + $0x68] sm:$0xff] %v5147_v10  ;;  %v5151_v30 = vld [vmem:[%s6934_s5 + $0x78] sm:$0xff]  ;;  %v5153_v11 = vld [vmem:[%s6934_s5 + $0x80] sm:$0xff] }
 0x557   : >> { %5150 = vst [vmem:[%s6930_s30 + $0x70] sm:$0xff] %v5149_v24  ;;  %v5155_v5 = vld [vmem:[%s6934_s5 + $0x88] sm:$0xff]  ;;  %5152 = vst [vmem:[%s6930_s30 + $0x78] sm:$0xff] %v5151_v30  ;;  %v5157_v7 = vld [vmem:[%s6934_s5 + $0x90] sm:$0xff] }
 0x558   : >> { %5154 = vst [vmem:[%s6930_s30 + $0x80] sm:$0xff] %v5153_v11  ;;  %5156 = vst [vmem:[%s6930_s30 + $0x88] sm:$0xff] %v5155_v5  ;;  %v5159_v12 = vld [vmem:[%s6934_s5 + $0x98] sm:$0xff]  ;;  %v5161_v18 = vld [vmem:[%s6934_s5 + $0xa0] sm:$0xff] }
 0x559   : >> { %5158 = vst [vmem:[%s6930_s30 + $0x90] sm:$0xff] %v5157_v7  ;;  %5160 = vst [vmem:[%s6930_s30 + $0x98] sm:$0xff] %v5159_v12  ;;  %v5163_v42 = vld [vmem:[%s6934_s5 + $0xa8] sm:$0xff]  ;;  %v5165_v28 = vld [vmem:[%s6934_s5 + $0xb0] sm:$0xff]  ;;  %5117 = sbr.rel (!%p5114_p9) target bundleno = 1359 (0x54f), region = 209 }
 0x55a   : >> { %5162 = vst [vmem:[%s6930_s30 + $0xa0] sm:$0xff] %v5161_v18  ;;  %v5167_v25 = vld [vmem:[%s6934_s5 + $0xb8] sm:$0xff]  ;;  %5164 = vst [vmem:[%s6930_s30 + $0xa8] sm:$0xff] %v5163_v42  ;;  %v5169_v47 = vld [vmem:[%s6934_s5 + $0xc0] sm:$0xff] }
 0x55b   : >> { %5166 = vst [vmem:[%s6930_s30 + $0xb0] sm:$0xff] %v5165_v28  ;;  %5168 = vst [vmem:[%s6930_s30 + $0xb8] sm:$0xff] %v5167_v25  ;;  %v5171_v35 = vld [vmem:[%s6934_s5 + $0xc8] sm:$0xff]  ;;  %v5173_v23 = vld [vmem:[%s6934_s5 + $0xd0] sm:$0xff] }
 0x55c   : >> { %5170 = vst [vmem:[%s6930_s30 + $0xc0] sm:$0xff] %v5169_v47  ;;  %5172 = vst [vmem:[%s6930_s30 + $0xc8] sm:$0xff] %v5171_v35  ;;  %v5175_v45 = vld [vmem:[%s6934_s5 + $0xd8] sm:$0xff]  ;;  %v5177_v36 = vld [vmem:[%s6934_s5 + $0xe0] sm:$0xff] }
 0x55d   : >> { %5174 = vst [vmem:[%s6930_s30 + $0xd0] sm:$0xff] %v5173_v23  ;;  %v5179_v49 = vld [vmem:[%s6934_s5 + $0xe8] sm:$0xff]  ;;  %5176 = vst [vmem:[%s6930_s30 + $0xd8] sm:$0xff] %v5175_v45  ;;  %v5181_v51 = vld [vmem:[%s6934_s5 + $0xf0] sm:$0xff] }
 0x55e   : >> { %5178 = vst [vmem:[%s6930_s30 + $0xe0] sm:$0xff] %v5177_v36  ;;  %5180 = vst [vmem:[%s6930_s30 + $0xe8] sm:$0xff] %v5179_v49  ;;  %v5183_v19 = vld [vmem:[%s6934_s5 + $0xf8] sm:$0xff]  ;;  %s8616_s5 = smov %s8503_s23 }
 0x55f   : >> { %5182 = vst [vmem:[%s6930_s30 + $0xf0] sm:$0xff] %v5181_v51  ;;  %5184 = vst [vmem:[%s6930_s30 + $0xf8] sm:$0xff] %v5183_v19  ;;  %s8615_s30 = smov %s5191_s26 }
 0x560 PF: > { %s8544_s8 = sand.u32 31, %s8622_s3   ;;  %s5718_s1 = sshll.u32 %s8436_s29, 8 }
 0x561   : > { %s5196_s6 = scalar_lea.vmem %s8327_s0, %s5718_s1 [#allocation4]   ;;  %s5198_s7 = scalar_lea.vmem %s8430_s27, %s5718_s1  }
 0x562   : > { %p5712_p10 = scmp.le.s32.totalorder %s8544_s8, 0 }
 0x563   : > { %s6944_s26 = smov (!%p5712_p10), %s5198_s7   ;;  %s6948_s23 = smov (!%p5712_p10), %s5196_s6  }
 0x564   : > { %5304 = sbr.rel (%p5712_p10) target bundleno = 1397 (0x575), region = 214  ;;  %s6952_s9 = smov (!%p5712_p10), 0  }
 0x565   : > { %s6956_s28 = smov (!%p5712_p10), 0  }
 0x56b LB: >> { %v5208_v20 = vld [vmem:[%s6950_s23] sm:$0xff]  ;;  %s5210_s3 = sadd.s32 1, %s6954_s9  ;;  %s5202_s28 = sadd.s32 1, %s6958_s28   ;;  %s6958_s28 = sphi %s6956_s28, %s5202_s28   ;;  %s6954_s9 = sphi %s6952_s9, %s6953_s9   ;;  %s6950_s23 = sphi %s6948_s23, %s5215_s23   ;;  %s6946_s26 = sphi %s6944_s26, %s5216_s26  }
 0x56c   : >> { %5209 = vst [vmem:[%s6946_s26] sm:$0xff] %v5208_v20  ;;  %p5211_p11 = scmp.ge.s32.totalorder %s5210_s3, %s8544_s8  ;;  %p5201_p12 = scmp.ge.s32.totalorder %s5202_s28, %s8544_s8 }
 0x56e   : >> { %s8626_s3 = smov (%p5211_p11, %s5210_s3), 0  ;;  %5204 = sbr.rel (!%p5201_p12) target bundleno = 1387 (0x56b), region = 220 }
 0x56f   : >> { %s5713_s0 = sshll.u32 %s8626_s3, 3  ;;  %s6953_s9 = smov %s8626_s3  }
 0x570   : >> { %s5215_s23 = scalar_lea.vmem %s5196_s6, %s5713_s0 [#allocation4]   ;;  %s5216_s26 = scalar_lea.vmem %s5198_s7, %s5713_s0  }
 0x575 PF: > { %s8618_s3 = sld [smem:[#allocation6_spill]]  ;;  %s8619_s28 = sld [smem:[#allocation7_spill]] }
 0x576   : > { %p30_p13 = scmp.ge.s32.totalorder %s7091_s4, 4   ;;  %s8620_s29 = smov %s7091_s4 }
 0x578   :  { %32 = sbr.rel (!%p30_p13) target bundleno = 13 (0xd), region = 231 }
 0x57f   :  { %5232 = vsyncpa [#allocation3], 1 }
 0x580   :  { %5234 = vsyncpa [#allocation3 + $0x1], 1 }

// kernel: tpu_custom_call.1
= control target key start
LH: loop header
LB: loop body
LE: loop exit
PB: predicated region body
PF: predicated region fallthrough
CT: control target
= control target key end

     0   :  { %s8562_s0 = inlined_call_operand.vmem [shape: f32[5], index: 0, kind: input, shape index: {}]   ;;  %s8563_s1 = inlined_call_operand.vmem [shape: f32[500,16], index: 1, kind: input, shape index: {}]   ;;  %s8564_s2 = inlined_call_operand.vmem [shape: f32[500,16], index: 2, kind: input, shape index: {}]   ;;  %s8565_s3 = inlined_call_operand.vmem [shape: f32[500,16], index: 3, kind: input, shape index: {}]   ;;  %s8566_s4 = inlined_call_operand.vmem [shape: f32[16,32], index: 4, kind: input, shape index: {}]   ;;  %s8567_s5 = inlined_call_operand.vmem [shape: f32[1,32], index: 5, kind: input, shape index: {}]   ;;  %s8568_s6 = inlined_call_operand.vmem [shape: f32[32,32], index: 6, kind: input, shape index: {}]   ;;  %s8569_s7 = inlined_call_operand.vmem [shape: f32[1,32], index: 7, kind: input, shape index: {}]   ;;  %s8570_s8 = inlined_call_operand.vmem [shape: f32[16,32], index: 8, kind: input, shape index: {}]   ;;  %s8571_s9 = inlined_call_operand.vmem [shape: f32[1,32], index: 9, kind: input, shape index: {}]   ;;  %s8572_s10 = inlined_call_operand.vmem [shape: f32[32,32], index: 10, kind: input, shape index: {}]   ;;  %s8573_s11 = inlined_call_operand.vmem [shape: f32[1,32], index: 11, kind: input, shape index: {}]   ;;  %s8574_s12 = inlined_call_operand.vmem [shape: f32[16,32], index: 12, kind: input, shape index: {}]   ;;  %s8575_s13 = inlined_call_operand.vmem [shape: f32[1,32], index: 13, kind: input, shape index: {}]   ;;  %s8576_s14 = inlined_call_operand.vmem [shape: f32[32,32], index: 14, kind: input, shape index: {}]   ;;  %s8577_s15 = inlined_call_operand.vmem [shape: f32[1,32], index: 15, kind: input, shape index: {}]   ;;  %s8578_s16 = inlined_call_operand.vmem [shape: f32[32,32], index: 16, kind: input, shape index: {}]   ;;  %s8579_s17 = inlined_call_operand.vmem [shape: f32[32,32], index: 17, kind: input, shape index: {}]   ;;  %s8580_s18 = inlined_call_operand.vmem [shape: f32[32,32], index: 18, kind: input, shape index: {}]   ;;  %s8581_s19 = inlined_call_operand.vmem [shape: f32[1,32], index: 19, kind: input, shape index: {}]   ;;  %s8582_s20 = inlined_call_operand.vmem [shape: f32[32,8], index: 20, kind: input, shape index: {}]   ;;  %s8583_s21 = inlined_call_operand.vmem [shape: f32[1,8], index: 21, kind: input, shape index: {}]   ;;  %s8584_s22 = inlined_call_operand.vmem [shape: f32[500,8], index: 22, kind: output, shape index: {}]  }
   0x1   :  { %8589 = sst [smem:[#allocation8_spill]] %s8562_s0 }
   0x2   :  { %8590 = sst [smem:[#allocation9_spill]] %s8563_s1 }
   0x3   :  { %8591 = sst [smem:[#allocation10_spill]] %s8564_s2 }
   0x4   :  { %8592 = sst [smem:[#allocation11_spill]] %s8565_s3 }
   0x5   :  { %8593 = sst [smem:[#allocation12_spill]] %s8566_s4 }
   0x6   :  { %8594 = sst [smem:[#allocation13_spill]] %s8567_s5 }
   0x7   :  { %8595 = sst [smem:[#allocation14_spill]] %s8568_s6 }
   0x8   :  { %8596 = sst [smem:[#allocation15_spill]] %s8569_s7 }
   0x9   :  { %8597 = sst [smem:[#allocation16_spill]] %s8570_s8 }
   0xa   :  { %8598 = sst [smem:[#allocation17_spill]] %s8571_s9 }
   0xb   :  { %27 = vsyncpa [#allocation3], 0  ;;  %s7076_s3 = smov 0   ;;  %s7078_s28 = smov 0  }
   0xc   :  { %s7080_s29 = smov 0  }
   0xd LB: > { %8599 = sst [smem:[#allocation6_spill]] %s6922_s28  ;;  %s7089_s30 = sadd.s32 4294967295, %s6926_s29   ;;  %s6926_s29 = sphi %s7080_s29, %s8620_s29   ;;  %s6922_s28 = sphi %s7078_s28, %s8619_s28   ;;  %s6918_s3 = sphi %s7076_s3, %s8618_s3  }
   0xe   : > { %s7091_s4 = sadd.s32 1, %s6926_s29   ;;  %s517_s23 = sadd.s32 1, %s6922_s28 }
   0xf   : > { %s514_s0 = ssub.s32 %s6926_s29, %s7091_s4  ;;  %p527_p1 = scmp.ne.s32.totalorder %s6922_s28, %s6918_s3 }
  0x10   : > { %p515_p0 = scmp.eq.s32.totalorder %s514_s0, 0  ;;  %p528_p2 = scmp.eq.s32.totalorder %s7089_s30, 1 }
  0x11   : > { %p5356_p3 = scmp.ge.s32.totalorder %s6926_s29, 1  ;;  %p541_p5 = scmp.lt.s32.totalorder %s6926_s29, 3 }
  0x12   : > { %s7099_s1 = scalar_select %p515_p0, %s6922_s28, %s517_s23  }
  0x13   : > { %p7101_p4 = por %p528_p2, %p527_p1  ;;  %p6762_p6 = scmp.eq.s32.totalorder %s7089_s30, 0 }
  0x14   : > { %8600 = sst [smem:[#allocation7_spill]] %s7099_s1  ;;  %p7106_p7 = pnand %p5356_p3, %p541_p5 }
  0x15   : > { %s8603_s26 = sld [smem:[#allocation8_spill]] }
  0x16   : > { %p6758_p8 = pneg %p7106_p7 }
  0x18   : > { %p6759_p9 = pnand %p6762_p6, %p6758_p8 }
  0x1a   : > { %p6855_p11 = pneg %p6759_p9 }
  0x1b   : > { %s554_s2 = sshll.u32 %s8603_s26, 4  ;;  %s555_s2 = int_to_ptr.vmem [resolvable:$true] %s554_s2 }
  0x1c   : > { %s6853_s27 = scalar_lea.vmem %s555_s2, 16  ;;  %p6861_p0 = scmp.lt.s32.totalorder %s555_s2, %s555_s2 }
  0x1d   : > { %p6854_p10 = scmp.ne.s32.totalorder %s555_s2, %s6853_s27  ;;  %p6862_p1 = scmp.lt.s32.totalorder %s6853_s27, %s6853_s27 }
  0x1f   : > { %p6856_p12 = pnand %p6855_p11, %p6854_p10  ;;  %p6863_p2 = por %p6862_p1, %p6861_p0 }
  0x21   : > { %p6857_p13 = pneg %p6856_p12 }
  0x23   : > { %p6864_p3 = pnand %p6863_p2, %p6857_p13 }
  0x25   : > { %6867 = shalt.err (!%p6864_p3)
}
  0x26   : > { %s6960_s29 = smov [#allocation2]   ;;  %672 = sbr.rel (%p7106_p7) target bundleno = 1397 (0x575), region = 108 }
  0x27   : > { %6761 = dma.vmem_to_smem (!%p6759_p9), %s555_s2, 16, %s6960_s29, [#allocation3]  }
  0x2d   : > { %6913 = dma.done.wait (%p6762_p6), [#allocation3], 16  }
  0x2e   : > { %6915 = vsyncadd (%p6762_p6), [#allocation3], 4294967280 }
  0x2f   : > { %678 = sfence }
  0x30   : > { %s8604_s6 = sld [smem:[#allocation12_spill]]  ;;  %s7130_s2 = sshll.u32 %s7089_s30, 5  ;;  %vm846_vm0 = vcmask 130048   ;;  %v2161_v61 = vld [vmem:[%s8572_s10] sm:$0xff]  ;;  %v2162_v62 = vld [vmem:[%s8572_s10 + $0x8] sm:$0xff]  ;;  %vm1277_vm3 = vcmask 261120  }
  0x31   : > { %s8605_s8 = sld [smem:[#allocation16_spill]]  ;;  %p761_p5 = scmp.lt.s32.totalorder %s7130_s2, 62  ;;  %v7269_v63 = vpack.c.bf16 %v2162_v62, %v2161_v61 }
  0x32   : > { %s8606_s24 = sld [smem:[#allocation14_spill]]  ;;  %s8607_s29 = sld [smem:[#allocation9_spill]] }
  0x33   : > { %s762_s0 = scalar_select %p761_p5, %s7130_s2, 62 }
  0x34   : > { %s8609_s1 = sld [smem:[#allocation13_spill]]  ;;  %s8610_s9 = sld [smem:[#allocation17_spill]] }
  0x35   : > { %s7140_s23 = sshll.u32 %s762_s0, 3  ;;  %s8608_s0 = sld [smem:[#allocation10_spill]] }
  0x36   : > { %v838_v0 = vld [vmem:[%s8604_s6] sm:$0xff]  ;;  %v839_v1 = vld [vmem:[%s8604_s6 + $0x8] sm:$0xff]  ;;  %s5600_s27 = sld [smem:[#allocation2 + $0x2]]  ;;  %s8612_s7 = sld [smem:[#allocation15_spill]] }
  0x37   : > { %v1733_v2 = vld [vmem:[%s8605_s8] sm:$0xff]  ;;  %v6622_v3 = vpack.c.bf16 %v839_v1, %v838_v0  ;;  %v1734_v4 = vld [vmem:[%s8605_s8 + $0x8] sm:$0xff] }
  0x38   : > { %v6634_v5 = vpack.c.bf16 %v1734_v4, %v1733_v2  ;;  %v1267_v6 = vld [vmem:[%s8606_s24] sm:$0xff]  ;;  %v1268_v7 = vld [vmem:[%s8606_s24 + $0x8] sm:$0xff]  ;;  %s7152_s8 = scalar_lea.vmem %s8607_s29, %s7140_s23  ;;  %v1269_v54 = vld [vmem:[%s8606_s24 + $0x10] sm:$0xff]  ;;  %s753_s29 = sand.u32 1, %s6918_s3  }
  0x39   : > { %6623 = vmatprep.subr.bf16.mxu0 %v6622_v3  ;;  %v6626_v8 = vpack.c.bf16 %v1268_v7, %v1267_v6  ;;  %v805_v9 = vld [vmem:[%s7152_s8] sm:$0xff]  ;;  %v806_v10 = vld [vmem:[%s7152_s8 + $0x8] sm:$0xff]  ;;  %v807_v11 = vld [vmem:[%s7152_s8 + $0x10] sm:$0xff]  ;;  %s4988_s3 = ssub.s32 (%p7101_p4), 63, %s7130_s2 }
  0x3a   : > { %6625 = vmatpush3.bf16.msra.mxu0 %v6622_v3  ;;  %6078 = vmatprep.mubr.msk.f32.mxu0 %vm846_vm0, %v805_v9  ;;  %v808_v12 = vld [vmem:[%s7152_s8 + $0x18] sm:$0xff]  ;;  %v809_v13 = vld [vmem:[%s7152_s8 + $0x20] sm:$0xff]  ;;  %v810_v14 = vld [vmem:[%s7152_s8 + $0x28] sm:$0xff]  ;;  %p4989_p6 = scmp.lt.s32.totalorder (%p7101_p4), %s4988_s3, 32 }
  0x3b   : > { %6635 = vmatprep.subr.bf16.mxu0 %v6634_v5  ;;  %6627 = vmatprep.subr.bf16.mxu1 %v6626_v8  ;;  %v811_v15 = vld [vmem:[%s7152_s8 + $0x30] sm:$0xff]  ;;  %v812_v16 = vld [vmem:[%s7152_s8 + $0x38] sm:$0xff]  ;;  %v813_v17 = vld [vmem:[%s7152_s8 + $0x40] sm:$0xff]  ;;  %s7218_s25 = scalar_lea.vmem %s8608_s0, %s7140_s23  ;;  %s8611_s0 = sld [smem:[#allocation11_spill]] }
  0x3c   : > { %6629 = vmatpush3.bf16.msra.mxu1 %v6626_v8  ;;  %v814_v18 = vld [vmem:[%s7152_s8 + $0x48] sm:$0xff]  ;;  %v815_v19 = vld [vmem:[%s7152_s8 + $0x50] sm:$0xff]  ;;  %v816_v20 = vld [vmem:[%s7152_s8 + $0x58] sm:$0xff] }
  0x3d   : > { %6079 = vmatmul.mubr.msk.f32.vlgmr.msra.gmra.mrb[0].mxu0 %vm846_vm0, %v806_v10  ;;  %v817_v21 = vld [vmem:[%s7152_s8 + $0x60] sm:$0xff]  ;;  %v818_v22 = vld [vmem:[%s7152_s8 + $0x68] sm:$0xff]  ;;  %v819_v23 = vld [vmem:[%s7152_s8 + $0x70] sm:$0xff] }
  0x3e   : > { %6637 = vmatpush3.bf16.msra.mxu0 %v6634_v5  ;;  %6081 = vmatprep.mubr.msk.f32.mxu0 %vm846_vm0, %v807_v11  ;;  %v820_v24 = vld [vmem:[%s7152_s8 + $0x78] sm:$0xff]  ;;  %v821_v25 = vld [vmem:[%s7152_s8 + $0x80] sm:$0xff]  ;;  %v822_v26 = vld [vmem:[%s7152_s8 + $0x88] sm:$0xff] }
  0x3f   : > { %v823_v27 = vld [vmem:[%s7152_s8 + $0x90] sm:$0xff]  ;;  %v824_v28 = vld [vmem:[%s7152_s8 + $0x98] sm:$0xff]  ;;  %v825_v29 = vld [vmem:[%s7152_s8 + $0xa0] sm:$0xff] }
  0x40   : > { %v826_v30 = vld [vmem:[%s7152_s8 + $0xa8] sm:$0xff]  ;;  %v827_v31 = vld [vmem:[%s7152_s8 + $0xb0] sm:$0xff]  ;;  %v828_v32 = vld [vmem:[%s7152_s8 + $0xb8] sm:$0xff] }
  0x41   : > { %6082 = vmatmul.mubr.msk.f32.gmra.mrb[2].mxu0 %vm846_vm0, %v808_v12  ;;  %v829_v33 = vld [vmem:[%s7152_s8 + $0xc0] sm:$0xff]  ;;  %v830_v34 = vld [vmem:[%s7152_s8 + $0xc8] sm:$0xff]  ;;  %v831_v35 = vld [vmem:[%s7152_s8 + $0xd0] sm:$0xff] }
  0x42   : > { %6084 = vmatprep.mubr.msk.f32.mxu0 %vm846_vm0, %v809_v13  ;;  %v832_v36 = vld [vmem:[%s7152_s8 + $0xd8] sm:$0xff]  ;;  %v833_v37 = vld [vmem:[%s7152_s8 + $0xe0] sm:$0xff]  ;;  %v834_v38 = vld [vmem:[%s7152_s8 + $0xe8] sm:$0xff] }
  0x43   : > { %v835_v39 = vld [vmem:[%s7152_s8 + $0xf0] sm:$0xff]  ;;  %v836_v40 = vld [vmem:[%s7152_s8 + $0xf8] sm:$0xff]  ;;  %v1700_v41 = vld [vmem:[%s7218_s25] sm:$0xff]  ;;  %s1168_s8 = sld [smem:[#allocation2]] }
  0x44   : > { %v1701_v42 = vld [vmem:[%s7218_s25 + $0x8] sm:$0xff]  ;;  %v1702_v43 = vld [vmem:[%s7218_s25 + $0x10] sm:$0xff]  ;;  %v1703_v44 = vld [vmem:[%s7218_s25 + $0x18] sm:$0xff] }
  0x45   : > { %6085 = vmatmul.mubr.msk.f32.gmra.mrb[4].mxu0 %vm846_vm0, %v810_v14  ;;  %v1704_v45 = vld [vmem:[%s7218_s25 + $0x20] sm:$0xff]  ;;  %v1705_v46 = vld [vmem:[%s7218_s25 + $0x28] sm:$0xff]  ;;  %v1706_v47 = vld [vmem:[%s7218_s25 + $0x30] sm:$0xff] }
  0x46   : > { %6087 = vmatprep.mubr.msk.f32.mxu0 %vm846_vm0, %v811_v15  ;;  %v1707_v48 = vld [vmem:[%s7218_s25 + $0x38] sm:$0xff]  ;;  %v1708_v49 = vld [vmem:[%s7218_s25 + $0x40] sm:$0xff]  ;;  %v1709_v50 = vld [vmem:[%s7218_s25 + $0x48] sm:$0xff] }
  0x47   : > { %v1710_v51 = vld [vmem:[%s7218_s25 + $0x50] sm:$0xff]  ;;  %v1711_v52 = vld [vmem:[%s7218_s25 + $0x58] sm:$0xff]  ;;  %v1712_v53 = vld [vmem:[%s7218_s25 + $0x60] sm:$0xff] }
  0x48   : > { %v1270_v55 = vld [vmem:[%s8606_s24 + $0x18] sm:$0xff]  ;;  %v1713_v56 = vld [vmem:[%s7218_s25 + $0x68] sm:$0xff]  ;;  %v1714_v58 = vld [vmem:[%s7218_s25 + $0x70] sm:$0xff] }
  0x49   : > { %6088 = vmatmul.mubr.msk.f32.gmra.mrb[6].mxu0 %vm846_vm0, %v812_v16  ;;  %v6630_v57 = vpack.c.bf16 %v1270_v55, %v1269_v54  ;;  %v1715_v59 = vld [vmem:[%s7218_s25 + $0x78] sm:$0xff]  ;;  %v1716_v60 = vld [vmem:[%s7218_s25 + $0x80] sm:$0xff]  ;;  %v1717_v0 = vld [vmem:[%s7218_s25 + $0x88] sm:$0xff] }
  0x4a   : > { %6090 = vmatprep.mubr.msk.f32.mxu0 %vm846_vm0, %v813_v17  ;;  %v1718_v1 = vld [vmem:[%s7218_s25 + $0x90] sm:$0xff]  ;;  %v1719_v2 = vld [vmem:[%s7218_s25 + $0x98] sm:$0xff]  ;;  %v1720_v3 = vld [vmem:[%s7218_s25 + $0xa0] sm:$0xff]  ;;  %v7308_v17 = vstv %s1168_s8  ;;  %s7526_s8 = scalar_lea.vmem %s8611_s0, %s7140_s23  ;;  %s5717_s23 = sshll.u32 (%p7101_p4), %s7089_s30, 8 }
  0x4b   : > { %6631 = vmatprep.subr.bf16.mxu1 %v6630_v57  ;;  %v1721_v4 = vld [vmem:[%s7218_s25 + $0xa8] sm:$0xff]  ;;  %v1722_v5 = vld [vmem:[%s7218_s25 + $0xb0] sm:$0xff]  ;;  %v1723_v6 = vld [vmem:[%s7218_s25 + $0xb8] sm:$0xff] }
  0x4c   : > { %6633 = vmatpush3.bf16.msra.mxu1 %v6630_v57  ;;  %v1724_v7 = vld [vmem:[%s7218_s25 + $0xc0] sm:$0xff]  ;;  %v1725_v8 = vld [vmem:[%s7218_s25 + $0xc8] sm:$0xff]  ;;  %v1726_v9 = vld [vmem:[%s7218_s25 + $0xd0] sm:$0xff] }
  0x4d   : > { %6091 = vmatmul.mubr.msk.f32.gmra.mrb[8].mxu0 %vm846_vm0, %v814_v18  ;;  %6639 = vmatprep.subr.bf16.mxu1 %v7269_v63  ;;  %v1727_v10 = vld [vmem:[%s7218_s25 + $0xd8] sm:$0xff]  ;;  %v1728_v11 = vld [vmem:[%s7218_s25 + $0xe0] sm:$0xff]  ;;  %v1729_v12 = vld [vmem:[%s7218_s25 + $0xe8] sm:$0xff] }
  0x4e   : > { %6093 = vmatprep.mubr.msk.f32.mxu0 %vm846_vm0, %v815_v19  ;;  %v1730_v13 = vld [vmem:[%s7218_s25 + $0xf0] sm:$0xff]  ;;  %v1731_v14 = vld [vmem:[%s7218_s25 + $0xf8] sm:$0xff]  ;;  %v7306_v15 = vld [vmem:[%s8609_s1] ss:$0 sm:$0xff]  ;;  %s5469_s1 = sld [smem:[#allocation2 + $0x1]]  ;;  %s5361_s25 = sshll.u32 %s753_s29, 8 }
  0x4f   : > { %s8327_s0 = scalar_lea.vmem [#allocation4], %s5361_s25  }
  0x51   : > { %6094 = vmatmul.mubr.msk.f32.gmra.mrb[10].mxu0 %vm846_vm0, %v816_v20 }
  0x52   : > { %6096 = vmatprep.mubr.msk.f32.mxu0 %vm846_vm0, %v817_v21 }
  0x55   : > { %6097 = vmatmul.mubr.msk.f32.gmra.mrb[12].mxu0 %vm846_vm0, %v818_v22  ;;  %v2163_v22 = vld [vmem:[%s8572_s10 + $0x10] sm:$0xff] }
  0x56   : > { %6099 = vmatprep.mubr.msk.f32.mxu0 %vm846_vm0, %v819_v23  ;;  %v2164_v23 = vld [vmem:[%s8572_s10 + $0x18] sm:$0xff] }
  0x59   : > { %6100 = vmatmul.mubr.msk.f32.gmra.mrb[14].mxu0 %vm846_vm0, %v820_v24 }
  0x5a   : > { %6102 = vmatprep.mubr.msk.f32.mxu0 %vm846_vm0, %v821_v25 }
  0x5d   : > { %6103 = vmatmul.mubr.msk.f32.gmra.mrb[16].mxu0 %vm846_vm0, %v822_v26 }
  0x5e   : > { %6105 = vmatprep.mubr.msk.f32.mxu0 %vm846_vm0, %v823_v27 }
  0x61   : > { %6106 = vmatmul.mubr.msk.f32.gmra.mrb[18].mxu0 %vm846_vm0, %v824_v28 }
  0x62   : > { %6108 = vmatprep.mubr.msk.f32.mxu0 %vm846_vm0, %v825_v29 }
  0x65   : > { %6109 = vmatmul.mubr.msk.f32.gmra.mrb[20].mxu0 %vm846_vm0, %v826_v30  ;;  %v6642_v30 = vpack.c.bf16 %v2164_v23, %v2163_v22 }
  0x66   : > { %6111 = vmatprep.mubr.msk.f32.mxu0 %vm846_vm0, %v827_v31 }
  0x69   : > { %6112 = vmatmul.mubr.msk.f32.gmra.mrb[22].mxu0 %vm846_vm0, %v828_v32 }
  0x6a   : > { %6114 = vmatprep.mubr.msk.f32.mxu0 %vm846_vm0, %v829_v33  ;;  %v3267_v33 = vld [vmem:[%s8574_s12] sm:$0xff] }
  0x6d   : > { %6115 = vmatmul.mubr.msk.f32.gmra.mrb[24].mxu0 %vm846_vm0, %v830_v34  ;;  %v3268_v34 = vld [vmem:[%s8574_s12 + $0x8] sm:$0xff] }
  0x6e   : > { %6117 = vmatprep.mubr.msk.f32.mxu0 %vm846_vm0, %v831_v35 }
  0x71   : > { %6118 = vmatmul.mubr.msk.f32.gmra.mrb[26].mxu0 %vm846_vm0, %v832_v36 }
  0x72   : > { %6120 = vmatprep.mubr.msk.f32.mxu0 %vm846_vm0, %v833_v37 }
  0x75   : > { %6121 = vmatmul.mubr.msk.f32.gmra.mrb[28].mxu0 %vm846_vm0, %v834_v38 }
  0x76   : > { %6123 = vmatprep.mubr.msk.f32.mxu0 %vm846_vm0, %v835_v39 }
  0x79   : > { %6124 = vmatmul.mubr.msk.f32.gmra.mrb[30].mxu0 %vm846_vm0, %v836_v40 }
  0x7a   : > { %6186 = vmatprep.mubr.msk.f32.mxu0 %vm846_vm0, %v1700_v41  ;;  %v7335_v41 = vpack.c.bf16 %v3268_v34, %v3267_v33 }
  0x7d   : > { %6187 = vmatmul.mubr.msk.f32.vlgmr.msra.gmra.mrb[32].mxu0 %vm846_vm0, %v1701_v42 }
  0x7e   : > { %6189 = vmatprep.mubr.msk.f32.mxu0 %vm846_vm0, %v1702_v43 }
  0x81   : > { %6190 = vmatmul.mubr.msk.f32.gmra.mrb[34].mxu0 %vm846_vm0, %v1703_v44 }
  0x82   : > { %6192 = vmatprep.mubr.msk.f32.mxu0 %vm846_vm0, %v1704_v45 }
  0x85   : > { %6193 = vmatmul.mubr.msk.f32.gmra.mrb[36].mxu0 %vm846_vm0, %v1705_v46 }
  0x86   : > { %6195 = vmatprep.mubr.msk.f32.mxu0 %vm846_vm0, %v1706_v47 }
  0x89   : > { %6196 = vmatmul.mubr.msk.f32.gmra.mrb[38].mxu0 %vm846_vm0, %v1707_v48 }
  0x8a   : > { %6198 = vmatprep.mubr.msk.f32.mxu0 %vm846_vm0, %v1708_v49 }
  0x8d   : > { %6199 = vmatmul.mubr.msk.f32.gmra.mrb[40].mxu0 %vm846_vm0, %v1709_v50 }
  0x8e   : > { %6201 = vmatprep.mubr.msk.f32.mxu0 %vm846_vm0, %v1710_v51 }
  0x91   : > { %6202 = vmatmul.mubr.msk.f32.gmra.mrb[42].mxu0 %vm846_vm0, %v1711_v52 }
  0x92   : > { %6204 = vmatprep.mubr.msk.f32.mxu0 %vm846_vm0, %v1712_v53 }
  0x95   : > { %6205 = vmatmul.mubr.msk.f32.gmra.mrb[44].mxu0 %vm846_vm0, %v1713_v56 }
  0x96   : > { %6207 = vmatprep.mubr.msk.f32.mxu0 %vm846_vm0, %v1714_v58 }
  0x99   : > { %6208 = vmatmul.mubr.msk.f32.gmra.mrb[46].mxu0 %vm846_vm0, %v1715_v59 }
  0x9a   : > { %6210 = vmatprep.mubr.msk.f32.mxu0 %vm846_vm0, %v1716_v60 }
  0x9d   : > { %6211 = vmatmul.mubr.msk.f32.gmra.mrb[48].mxu0 %vm846_vm0, %v1717_v0 }
  0x9e   : > { %6213 = vmatprep.mubr.msk.f32.mxu0 %vm846_vm0, %v1718_v1 }
  0xa1   : > { %6214 = vmatmul.mubr.msk.f32.gmra.mrb[50].mxu0 %vm846_vm0, %v1719_v2 }
  0xa2   : > { %6216 = vmatprep.mubr.msk.f32.mxu0 %vm846_vm0, %v1720_v3 }
  0xa5   : > { %6217 = vmatmul.mubr.msk.f32.gmra.mrb[52].mxu0 %vm846_vm0, %v1721_v4 }
  0xa6   : > { %6219 = vmatprep.mubr.msk.f32.mxu0 %vm846_vm0, %v1722_v5 }
  0xa9   : > { %6220 = vmatmul.mubr.msk.f32.gmra.mrb[54].mxu0 %vm846_vm0, %v1723_v6 }
  0xaa   : > { %6222 = vmatprep.mubr.msk.f32.mxu0 %vm846_vm0, %v1724_v7 }
  0xad   : > { %6223 = vmatmul.mubr.msk.f32.gmra.mrb[56].mxu0 %vm846_vm0, %v1725_v8 }
  0xae   : > { %6225 = vmatprep.mubr.msk.f32.mxu0 %vm846_vm0, %v1726_v9 }
  0xb1   : > { %6226 = vmatmul.mubr.msk.f32.gmra.mrb[58].mxu0 %vm846_vm0, %v1727_v10 }
  0xb2   : > { %6228 = vmatprep.mubr.msk.f32.mxu0 %vm846_vm0, %v1728_v11 }
  0xb5   : > { %6229 = vmatmul.mubr.msk.f32.gmra.mrb[60].mxu0 %vm846_vm0, %v1729_v12 }
  0xb6   : > { %6231 = vmatprep.mubr.msk.f32.mxu0 %vm846_vm0, %v1730_v13 }
  0xb9   : > { %6232 = vmatmul.mubr.msk.f32.gmra.mrb[62].mxu0 %vm846_vm0, %v1731_v14 }
 0x110   : > { %v6080_v16 = vpop.f32.mrb[0].mxu0 }
 0x111   : > { %v1015_v18 = vadd.f32 %v6080_v16, %v7306_v15  ;;  %v1009_v19 = vpop.f32.mrb[1].mxu0 }
 0x112   : > { %v1010_v20 = vadd.f32 %v7306_v15, %v1009_v19 }
 0x113   : > { %v1203_v21 = vmul.f32 %v7308_v17, %v1015_v18  ;;  %vm1170_vm1 = vcmp.ge.f32.partialorder %v1015_v18, 0.0 }
 0x114   : > { %v6083_v24 = vpop.f32.mrb[2].mxu0  ;;  %vm1169_vm2 = vcmp.ge.f32.partialorder %v1010_v20, 0.0  ;;  %v1202_v25 = vmul.f32 %v7308_v17, %v1010_v20 }
 0x115   : > { %v1025_v26 = vadd.f32 %v6083_v24, %v7306_v15  ;;  %v1019_v27 = vpop.f32.mrb[3].mxu0  ;;  %v1235_v32 = vsel %vm1170_vm1, %v1015_v18, %v1203_v21 }
 0x116   : > { %v1020_v28 = vadd.f32 %v7306_v15, %v1019_v27  ;;  %v1234_v29 = vsel %vm1169_vm2, %v1010_v20, %v1202_v25 }
 0x117   : > { %v1205_v31 = vmul.f32 %v7308_v17, %v1025_v26  ;;  %6134 = vmatprep.mubr.msk.f32.mxu1 %vm1277_vm3, %v1234_v29  ;;  %vm1172_vm4 = vcmp.ge.f32.partialorder %v1025_v26, 0.0 }
 0x118   : > { %vm1171_vm5 = vcmp.ge.f32.partialorder %v1020_v28, 0.0  ;;  %v1204_v35 = vmul.f32 %v7308_v17, %v1020_v28  ;;  %v6086_v36 = vpop.f32.mrb[4].mxu0  ;;  %6135 = vmatmul.mubr.msk.f32.vlgmr.msra.gmra.mrb[0].mxu1 %vm1277_vm3, %v1235_v32 }
 0x119   : > { %v1035_v37 = vadd.f32 %v6086_v36, %v7306_v15  ;;  %6641 = vmatpush3.bf16.msra.mxu1 %v7269_v63  ;;  %v1029_v38 = vpop.f32.mrb[5].mxu0  ;;  %v1237_v43 = vsel %vm1172_vm4, %v1025_v26, %v1205_v31 }
 0x11a   : > { %v1030_v39 = vadd.f32 %v7306_v15, %v1029_v38  ;;  %v1236_v40 = vsel %vm1171_vm5, %v1020_v28, %v1204_v35  ;;  %6643 = vmatprep.subr.bf16.mxu1 %v6642_v30 }
 0x11b   : > { %v1207_v42 = vmul.f32 %v7308_v17, %v1035_v37  ;;  %6137 = vmatprep.mubr.msk.f32.mxu1 %vm1277_vm3, %v1236_v40  ;;  %vm1174_vm6 = vcmp.ge.f32.partialorder %v1035_v37, 0.0 }
 0x11c   : > { %vm1173_vm7 = vcmp.ge.f32.partialorder %v1030_v39, 0.0  ;;  %v1206_v44 = vmul.f32 %v7308_v17, %v1030_v39  ;;  %v6089_v45 = vpop.f32.mrb[6].mxu0  ;;  %6138 = vmatmul.mubr.msk.f32.gmra.mrb[2].mxu1 %vm1277_vm3, %v1237_v43 }
 0x11d   : > { %v1045_v46 = vadd.f32 %v6089_v45, %v7306_v15  ;;  %v1039_v47 = vpop.f32.mrb[7].mxu0  ;;  %6645 = vmatpush3.bf16.msra.mxu1 %v6642_v30  ;;  %v1239_v51 = vsel %vm1174_vm6, %v1035_v37, %v1207_v42 }
 0x11e   : > { %v1040_v48 = vadd.f32 %v7306_v15, %v1039_v47  ;;  %v1238_v49 = vsel %vm1173_vm7, %v1030_v39, %v1206_v44  ;;  %6663 = vmatprep.subr.bf16.mxu1 %v7335_v41 }
 0x11f   : > { %v1209_v50 = vmul.f32 %v7308_v17, %v1045_v46  ;;  %6140 = vmatprep.mubr.msk.f32.mxu1 %vm1277_vm3, %v1238_v49  ;;  %vm1176_vm8 = vcmp.ge.f32.partialorder %v1045_v46, 0.0 }
 0x120   : > { %vm1175_vm9 = vcmp.ge.f32.partialorder %v1040_v48, 0.0  ;;  %v1208_v52 = vmul.f32 %v7308_v17, %v1040_v48  ;;  %v6092_v53 = vpop.f32.mrb[8].mxu0  ;;  %6141 = vmatmul.mubr.msk.f32.gmra.mrb[4].mxu1 %vm1277_vm3, %v1239_v51 }
 0x121   : > { %v1055_v54 = vadd.f32 %v6092_v53, %v7306_v15  ;;  %v1049_v55 = vpop.f32.mrb[9].mxu0  ;;  %v1241_v59 = vsel %vm1176_vm8, %v1045_v46, %v1209_v50 }
 0x122   : > { %v1050_v56 = vadd.f32 %v7306_v15, %v1049_v55  ;;  %v1240_v57 = vsel %vm1175_vm9, %v1040_v48, %v1208_v52 }
 0x123   : > { %v1211_v58 = vmul.f32 %v7308_v17, %v1055_v54  ;;  %6143 = vmatprep.mubr.msk.f32.mxu1 %vm1277_vm3, %v1240_v57  ;;  %vm1178_vm10 = vcmp.ge.f32.partialorder %v1055_v54, 0.0 }
 0x124   : > { %vm1177_vm11 = vcmp.ge.f32.partialorder %v1050_v56, 0.0  ;;  %v1210_v60 = vmul.f32 %v7308_v17, %v1050_v56  ;;  %v6095_v61 = vpop.f32.mrb[10].mxu0  ;;  %6144 = vmatmul.mubr.msk.f32.gmra.mrb[6].mxu1 %vm1277_vm3, %v1241_v59 }
 0x125   : > { %v1065_v62 = vadd.f32 %v6095_v61, %v7306_v15  ;;  %v1059_v63 = vpop.f32.mrb[11].mxu0  ;;  %v1243_v3 = vsel %vm1178_vm10, %v1055_v54, %v1211_v58 }
 0x126   : > { %v1060_v0 = vadd.f32 %v7306_v15, %v1059_v63  ;;  %v1242_v1 = vsel %vm1177_vm11, %v1050_v56, %v1210_v60 }
 0x127   : > { %v1213_v2 = vmul.f32 %v7308_v17, %v1065_v62  ;;  %6146 = vmatprep.mubr.msk.f32.mxu1 %vm1277_vm3, %v1242_v1  ;;  %vm1180_vm12 = vcmp.ge.f32.partialorder %v1065_v62, 0.0 }
 0x128   : > { %vm1179_vm13 = vcmp.ge.f32.partialorder %v1060_v0, 0.0  ;;  %v1212_v4 = vmul.f32 %v7308_v17, %v1060_v0  ;;  %v6098_v5 = vpop.f32.mrb[12].mxu0  ;;  %6147 = vmatmul.mubr.msk.f32.gmra.mrb[8].mxu1 %vm1277_vm3, %v1243_v3 }
 0x129   : > { %v1075_v6 = vadd.f32 %v6098_v5, %v7306_v15  ;;  %v1069_v7 = vpop.f32.mrb[13].mxu0  ;;  %v1245_v11 = vsel %vm1180_vm12, %v1065_v62, %v1213_v2 }
 0x12a   : > { %v1070_v8 = vadd.f32 %v7306_v15, %v1069_v7  ;;  %v1244_v9 = vsel %vm1179_vm13, %v1060_v0, %v1212_v4 }
 0x12b   : > { %v1215_v10 = vmul.f32 %v7308_v17, %v1075_v6  ;;  %6149 = vmatprep.mubr.msk.f32.mxu1 %vm1277_vm3, %v1244_v9  ;;  %vm1182_vm14 = vcmp.ge.f32.partialorder %v1075_v6, 0.0 }
 0x12c   : > { %vm1181_vm15 = vcmp.ge.f32.partialorder %v1070_v8, 0.0  ;;  %v1214_v12 = vmul.f32 %v7308_v17, %v1070_v8  ;;  %v6101_v13 = vpop.f32.mrb[14].mxu0  ;;  %6150 = vmatmul.mubr.msk.f32.gmra.mrb[10].mxu1 %vm1277_vm3, %v1245_v11 }
 0x12d   : > { %v1085_v14 = vadd.f32 %v6101_v13, %v7306_v15  ;;  %v1079_v16 = vpop.f32.mrb[15].mxu0  ;;  %v1247_v21 = vsel %vm1182_vm14, %v1075_v6, %v1215_v10 }
 0x12e   : > { %v1080_v18 = vadd.f32 %v7306_v15, %v1079_v16  ;;  %v1246_v19 = vsel %vm1181_vm15, %v1070_v8, %v1214_v12 }
 0x12f   : > { %v1217_v20 = vmul.f32 %v7308_v17, %v1085_v14  ;;  %6152 = vmatprep.mubr.msk.f32.mxu1 %vm1277_vm3, %v1246_v19  ;;  %vm1184_vm1 = vcmp.ge.f32.partialorder %v1085_v14, 0.0 }
 0x130   : > { %vm1183_vm2 = vcmp.ge.f32.partialorder %v1080_v18, 0.0  ;;  %v1216_v22 = vmul.f32 %v7308_v17, %v1080_v18  ;;  %v6104_v23 = vpop.f32.mrb[16].mxu0  ;;  %6153 = vmatmul.mubr.msk.f32.gmra.mrb[12].mxu1 %vm1277_vm3, %v1247_v21 }
 0x131   : > { %v1095_v24 = vadd.f32 %v6104_v23, %v7306_v15  ;;  %v1089_v25 = vpop.f32.mrb[17].mxu0  ;;  %v1249_v29 = vsel %vm1184_vm1, %v1085_v14, %v1217_v20  ;;  %v7419_v23 = vld [vmem:[%s8610_s9] ss:$0 sm:$0xff] }
 0x132   : > { %v1090_v26 = vadd.f32 %v7306_v15, %v1089_v25  ;;  %v1248_v27 = vsel %vm1183_vm2, %v1080_v18, %v1216_v22 }
 0x133   : > { %v1219_v28 = vmul.f32 %v7308_v17, %v1095_v24  ;;  %6155 = vmatprep.mubr.msk.f32.mxu1 %vm1277_vm3, %v1248_v27  ;;  %vm1186_vm4 = vcmp.ge.f32.partialorder %v1095_v24, 0.0 }
 0x134   : > { %vm1185_vm5 = vcmp.ge.f32.partialorder %v1090_v26, 0.0  ;;  %v1218_v30 = vmul.f32 %v7308_v17, %v1090_v26  ;;  %v6107_v31 = vpop.f32.mrb[18].mxu0  ;;  %6156 = vmatmul.mubr.msk.f32.gmra.mrb[14].mxu1 %vm1277_vm3, %v1249_v29 }
 0x135   : > { %v1105_v32 = vadd.f32 %v6107_v31, %v7306_v15  ;;  %v1099_v33 = vpop.f32.mrb[19].mxu0  ;;  %v1251_v37 = vsel %vm1186_vm4, %v1095_v24, %v1219_v28  ;;  %v7425_v28 = vstv %s5469_s1 }
 0x136   : > { %v1100_v34 = vadd.f32 %v7306_v15, %v1099_v33  ;;  %v1250_v35 = vsel %vm1185_vm5, %v1090_v26, %v1218_v30 }
 0x137   : > { %v1221_v36 = vmul.f32 %v7308_v17, %v1105_v32  ;;  %6158 = vmatprep.mubr.msk.f32.mxu1 %vm1277_vm3, %v1250_v35  ;;  %vm1188_vm6 = vcmp.ge.f32.partialorder %v1105_v32, 0.0 }
 0x138   : > { %vm1187_vm7 = vcmp.ge.f32.partialorder %v1100_v34, 0.0  ;;  %v1220_v38 = vmul.f32 %v7308_v17, %v1100_v34  ;;  %v6110_v39 = vpop.f32.mrb[20].mxu0  ;;  %6159 = vmatmul.mubr.msk.f32.gmra.mrb[16].mxu1 %vm1277_vm3, %v1251_v37 }
 0x139   : > { %v1115_v40 = vadd.f32 %v6110_v39, %v7306_v15  ;;  %v1109_v42 = vpop.f32.mrb[21].mxu0  ;;  %v1253_v46 = vsel %vm1188_vm6, %v1105_v32, %v1221_v36 }
 0x13a   : > { %v1110_v43 = vadd.f32 %v7306_v15, %v1109_v42  ;;  %v1252_v44 = vsel %vm1187_vm7, %v1100_v34, %v1220_v38 }
 0x13b   : > { %v1223_v45 = vmul.f32 %v7308_v17, %v1115_v40  ;;  %6161 = vmatprep.mubr.msk.f32.mxu1 %vm1277_vm3, %v1252_v44  ;;  %vm1190_vm8 = vcmp.ge.f32.partialorder %v1115_v40, 0.0 }
 0x13c   : > { %vm1189_vm9 = vcmp.ge.f32.partialorder %v1110_v43, 0.0  ;;  %v1222_v47 = vmul.f32 %v7308_v17, %v1110_v43  ;;  %v6113_v48 = vpop.f32.mrb[22].mxu0  ;;  %6162 = vmatmul.mubr.msk.f32.gmra.mrb[18].mxu1 %vm1277_vm3, %v1253_v46 }
 0x13d   : > { %v1125_v49 = vadd.f32 %v6113_v48, %v7306_v15  ;;  %v1119_v50 = vpop.f32.mrb[23].mxu0  ;;  %v1255_v54 = vsel %vm1190_vm8, %v1115_v40, %v1223_v45 }
 0x13e   : > { %v1120_v51 = vadd.f32 %v7306_v15, %v1119_v50  ;;  %v1254_v52 = vsel %vm1189_vm9, %v1110_v43, %v1222_v47 }
 0x13f   : > { %v1225_v53 = vmul.f32 %v7308_v17, %v1125_v49  ;;  %6164 = vmatprep.mubr.msk.f32.mxu1 %vm1277_vm3, %v1254_v52  ;;  %vm1192_vm10 = vcmp.ge.f32.partialorder %v1125_v49, 0.0 }
 0x140   : > { %vm1191_vm11 = vcmp.ge.f32.partialorder %v1120_v51, 0.0  ;;  %v1224_v55 = vmul.f32 %v7308_v17, %v1120_v51  ;;  %v6116_v56 = vpop.f32.mrb[24].mxu0  ;;  %6165 = vmatmul.mubr.msk.f32.gmra.mrb[20].mxu1 %vm1277_vm3, %v1255_v54 }
 0x141   : > { %v1135_v57 = vadd.f32 %v6116_v56, %v7306_v15  ;;  %v1129_v58 = vpop.f32.mrb[25].mxu0  ;;  %v1257_v62 = vsel %vm1192_vm10, %v1125_v49, %v1225_v53 }
 0x142   : > { %v1130_v59 = vadd.f32 %v7306_v15, %v1129_v58  ;;  %v1256_v60 = vsel %vm1191_vm11, %v1120_v51, %v1224_v55 }
 0x143   : > { %v1227_v61 = vmul.f32 %v7308_v17, %v1135_v57  ;;  %6167 = vmatprep.mubr.msk.f32.mxu1 %vm1277_vm3, %v1256_v60  ;;  %vm1194_vm12 = vcmp.ge.f32.partialorder %v1135_v57, 0.0 }
 0x144   : > { %vm1193_vm13 = vcmp.ge.f32.partialorder %v1130_v59, 0.0  ;;  %v1226_v63 = vmul.f32 %v7308_v17, %v1130_v59  ;;  %v6119_v0 = vpop.f32.mrb[26].mxu0  ;;  %6168 = vmatmul.mubr.msk.f32.gmra.mrb[22].mxu1 %vm1277_vm3, %v1257_v62 }
 0x145   : > { %v1145_v1 = vadd.f32 %v6119_v0, %v7306_v15  ;;  %v1139_v2 = vpop.f32.mrb[27].mxu0  ;;  %v1259_v6 = vsel %vm1194_vm12, %v1135_v57, %v1227_v61 }
 0x146   : > { %v1140_v3 = vadd.f32 %v7306_v15, %v1139_v2  ;;  %v1258_v4 = vsel %vm1193_vm13, %v1130_v59, %v1226_v63 }
 0x147   : > { %v1229_v5 = vmul.f32 %v7308_v17, %v1145_v1  ;;  %6170 = vmatprep.mubr.msk.f32.mxu1 %vm1277_vm3, %v1258_v4  ;;  %vm1196_vm14 = vcmp.ge.f32.partialorder %v1145_v1, 0.0 }
 0x148   : > { %vm1195_vm15 = vcmp.ge.f32.partialorder %v1140_v3, 0.0  ;;  %v1228_v7 = vmul.f32 %v7308_v17, %v1140_v3  ;;  %v6122_v8 = vpop.f32.mrb[28].mxu0  ;;  %6171 = vmatmul.mubr.msk.f32.gmra.mrb[24].mxu1 %vm1277_vm3, %v1259_v6 }
 0x149   : > { %v1155_v9 = vadd.f32 %v6122_v8, %v7306_v15  ;;  %v1149_v10 = vpop.f32.mrb[29].mxu0  ;;  %v1261_v14 = vsel %vm1196_vm14, %v1145_v1, %v1229_v5 }
 0x14a   : > { %v1150_v11 = vadd.f32 %v7306_v15, %v1149_v10  ;;  %v1260_v12 = vsel %vm1195_vm15, %v1140_v3, %v1228_v7 }
 0x14b   : > { %v1231_v13 = vmul.f32 %v7308_v17, %v1155_v9  ;;  %6173 = vmatprep.mubr.msk.f32.mxu1 %vm1277_vm3, %v1260_v12  ;;  %vm1198_vm1 = vcmp.ge.f32.partialorder %v1155_v9, 0.0 }
 0x14c   : > { %vm1197_vm2 = vcmp.ge.f32.partialorder %v1150_v11, 0.0  ;;  %v1230_v16 = vmul.f32 %v7308_v17, %v1150_v11  ;;  %v6125_v18 = vpop.f32.mrb[30].mxu0  ;;  %6174 = vmatmul.mubr.msk.f32.gmra.mrb[26].mxu1 %vm1277_vm3, %v1261_v14 }
 0x14d   : > { %v1165_v19 = vadd.f32 %v6125_v18, %v7306_v15  ;;  %v1159_v20 = vpop.f32.mrb[31].mxu0  ;;  %v1263_v25 = vsel %vm1198_vm1, %v1155_v9, %v1231_v13 }
 0x14e   : > { %v1160_v21 = vadd.f32 %v7306_v15, %v1159_v20  ;;  %v1262_v22 = vsel %vm1197_vm2, %v1150_v11, %v1230_v16 }
 0x14f   : > { %v1233_v24 = vmul.f32 %v7308_v17, %v1165_v19  ;;  %6176 = vmatprep.mubr.msk.f32.mxu1 %vm1277_vm3, %v1262_v22  ;;  %vm1200_vm4 = vcmp.ge.f32.partialorder %v1165_v19, 0.0 }
 0x150   : > { %vm1199_vm5 = vcmp.ge.f32.partialorder %v1160_v21, 0.0  ;;  %v1232_v26 = vmul.f32 %v7308_v17, %v1160_v21  ;;  %6177 = vmatmul.mubr.msk.f32.gmra.mrb[28].mxu1 %vm1277_vm3, %v1263_v25  ;;  %v6188_v27 = vpop.f32.mrb[32].mxu0 }
 0x151   : > { %v1909_v15 = vadd.f32 %v6188_v27, %v7419_v23  ;;  %v1903_v29 = vpop.f32.mrb[33].mxu0  ;;  %v1265_v33 = vsel %vm1200_vm4, %v1165_v19, %v1233_v24 }
 0x152   : > { %v1904_v30 = vadd.f32 %v7419_v23, %v1903_v29  ;;  %v1264_v31 = vsel %vm1199_vm5, %v1160_v21, %v1232_v26 }
 0x153   : > { %v2097_v32 = vmul.f32 %v7425_v28, %v1909_v15  ;;  %6179 = vmatprep.mubr.msk.f32.mxu1 %vm1277_vm3, %v1264_v31  ;;  %vm2064_vm6 = vcmp.ge.f32.partialorder %v1909_v15, 0.0 }
 0x154   : > { %vm2063_vm7 = vcmp.ge.f32.partialorder %v1904_v30, 0.0  ;;  %v2096_v17 = vmul.f32 %v7425_v28, %v1904_v30  ;;  %6180 = vmatmul.mubr.msk.f32.gmra.mrb[30].mxu1 %vm1277_vm3, %v1265_v33  ;;  %v6191_v34 = vpop.f32.mrb[34].mxu0 }
 0x155   : > { %v1919_v35 = vadd.f32 %v6191_v34, %v7419_v23  ;;  %v1913_v36 = vpop.f32.mrb[35].mxu0  ;;  %v2129_v39 = vsel %vm2064_vm6, %v1909_v15, %v2097_v32 }
 0x156   : > { %v1914_v37 = vadd.f32 %v7419_v23, %v1913_v36  ;;  %v2128_v38 = vsel %vm2063_vm7, %v1904_v30, %v2096_v17 }
 0x157   : > { %v2099_v40 = vmul.f32 %v7425_v28, %v1919_v35  ;;  %6242 = vmatprep.mubr.msk.f32.mxu1 %vm1277_vm3, %v2128_v38  ;;  %vm2066_vm8 = vcmp.ge.f32.partialorder %v1919_v35, 0.0 }
 0x158   : > { %vm2065_vm9 = vcmp.ge.f32.partialorder %v1914_v37, 0.0  ;;  %v2098_v42 = vmul.f32 %v7425_v28, %v1914_v37  ;;  %v6194_v43 = vpop.f32.mrb[36].mxu0  ;;  %6243 = vmatmul.mubr.msk.f32.vlgmr.msra.gmra.mrb[32].mxu1 %vm1277_vm3, %v2129_v39 }
 0x159   : > { %v1929_v44 = vadd.f32 %v6194_v43, %v7419_v23  ;;  %6665 = vmatpush3.bf16.msra.mxu1 %v7335_v41  ;;  %v1923_v45 = vpop.f32.mrb[37].mxu0  ;;  %v2131_v49 = vsel %vm2066_vm8, %v1919_v35, %v2099_v40 }
 0x15a   : > { %v1924_v46 = vadd.f32 %v7419_v23, %v1923_v45  ;;  %v2130_v47 = vsel %vm2065_vm9, %v1914_v37, %v2098_v42 }
 0x15b   : > { %v2101_v48 = vmul.f32 %v7425_v28, %v1929_v44  ;;  %6245 = vmatprep.mubr.msk.f32.mxu1 %vm1277_vm3, %v2130_v47  ;;  %vm2068_vm10 = vcmp.ge.f32.partialorder %v1929_v44, 0.0 }
 0x15c   : > { %vm2067_vm11 = vcmp.ge.f32.partialorder %v1924_v46, 0.0  ;;  %v2100_v50 = vmul.f32 %v7425_v28, %v1924_v46  ;;  %v6197_v51 = vpop.f32.mrb[38].mxu0  ;;  %6246 = vmatmul.mubr.msk.f32.gmra.mrb[34].mxu1 %vm1277_vm3, %v2131_v49 }
 0x15d   : > { %v1939_v52 = vadd.f32 %v6197_v51, %v7419_v23  ;;  %v1933_v53 = vpop.f32.mrb[39].mxu0  ;;  %v2133_v56 = vsel %vm2068_vm10, %v1929_v44, %v2101_v48 }
 0x15e   : > { %v1934_v41 = vadd.f32 %v7419_v23, %v1933_v53  ;;  %v2132_v54 = vsel %vm2067_vm11, %v1924_v46, %v2100_v50 }
 0x15f   : > { %v2103_v55 = vmul.f32 %v7425_v28, %v1939_v52  ;;  %6248 = vmatprep.mubr.msk.f32.mxu1 %vm1277_vm3, %v2132_v54  ;;  %vm2070_vm12 = vcmp.ge.f32.partialorder %v1939_v52, 0.0 }
 0x160   : > { %vm2069_vm13 = vcmp.ge.f32.partialorder %v1934_v41, 0.0  ;;  %v2102_v57 = vmul.f32 %v7425_v28, %v1934_v41  ;;  %v6200_v58 = vpop.f32.mrb[40].mxu0  ;;  %6249 = vmatmul.mubr.msk.f32.gmra.mrb[36].mxu1 %vm1277_vm3, %v2133_v56 }
 0x161   : > { %v1949_v59 = vadd.f32 %v6200_v58, %v7419_v23  ;;  %v1943_v60 = vpop.f32.mrb[41].mxu0  ;;  %v2135_v0 = vsel %vm2070_vm12, %v1939_v52, %v2103_v55 }
 0x162   : > { %v1944_v61 = vadd.f32 %v7419_v23, %v1943_v60  ;;  %v2134_v62 = vsel %vm2069_vm13, %v1934_v41, %v2102_v57 }
 0x163   : > { %v2105_v63 = vmul.f32 %v7425_v28, %v1949_v59  ;;  %6251 = vmatprep.mubr.msk.f32.mxu1 %vm1277_vm3, %v2134_v62  ;;  %vm2072_vm14 = vcmp.ge.f32.partialorder %v1949_v59, 0.0 }
 0x164   : > { %vm2071_vm15 = vcmp.ge.f32.partialorder %v1944_v61, 0.0  ;;  %v2104_v1 = vmul.f32 %v7425_v28, %v1944_v61  ;;  %v6203_v2 = vpop.f32.mrb[42].mxu0  ;;  %6252 = vmatmul.mubr.msk.f32.gmra.mrb[38].mxu1 %vm1277_vm3, %v2135_v0 }
 0x165   : > { %v1959_v3 = vadd.f32 %v6203_v2, %v7419_v23  ;;  %v1953_v4 = vpop.f32.mrb[43].mxu0  ;;  %v2137_v8 = vsel %vm2072_vm14, %v1949_v59, %v2105_v63 }
 0x166   : > { %v1954_v5 = vadd.f32 %v7419_v23, %v1953_v4  ;;  %v2136_v6 = vsel %vm2071_vm15, %v1944_v61, %v2104_v1 }
 0x167   : > { %v2107_v7 = vmul.f32 %v7425_v28, %v1959_v3  ;;  %6254 = vmatprep.mubr.msk.f32.mxu1 %vm1277_vm3, %v2136_v6  ;;  %vm2074_vm1 = vcmp.ge.f32.partialorder %v1959_v3, 0.0 }
 0x168   : > { %vm2073_vm2 = vcmp.ge.f32.partialorder %v1954_v5, 0.0  ;;  %v2106_v9 = vmul.f32 %v7425_v28, %v1954_v5  ;;  %v6206_v10 = vpop.f32.mrb[44].mxu0  ;;  %6255 = vmatmul.mubr.msk.f32.gmra.mrb[40].mxu1 %vm1277_vm3, %v2137_v8 }
 0x169   : > { %v1969_v11 = vadd.f32 %v6206_v10, %v7419_v23  ;;  %v1963_v12 = vpop.f32.mrb[45].mxu0  ;;  %v2139_v18 = vsel %vm2074_vm1, %v1959_v3, %v2107_v7 }
 0x16a   : > { %v1964_v13 = vadd.f32 %v7419_v23, %v1963_v12  ;;  %v2138_v14 = vsel %vm2073_vm2, %v1954_v5, %v2106_v9 }
 0x16b   : > { %v2109_v16 = vmul.f32 %v7425_v28, %v1969_v11  ;;  %6257 = vmatprep.mubr.msk.f32.mxu1 %vm1277_vm3, %v2138_v14  ;;  %vm2076_vm4 = vcmp.ge.f32.partialorder %v1969_v11, 0.0 }
 0x16c   : > { %vm2075_vm5 = vcmp.ge.f32.partialorder %v1964_v13, 0.0  ;;  %v2108_v19 = vmul.f32 %v7425_v28, %v1964_v13  ;;  %v6209_v20 = vpop.f32.mrb[46].mxu0  ;;  %6258 = vmatmul.mubr.msk.f32.gmra.mrb[42].mxu1 %vm1277_vm3, %v2139_v18 }
 0x16d   : > { %v1979_v21 = vadd.f32 %v6209_v20, %v7419_v23  ;;  %v1973_v22 = vpop.f32.mrb[47].mxu0  ;;  %v2141_v27 = vsel %vm2076_vm4, %v1969_v11, %v2109_v16 }
 0x16e   : > { %v1974_v24 = vadd.f32 %v7419_v23, %v1973_v22  ;;  %v2140_v25 = vsel %vm2075_vm5, %v1964_v13, %v2108_v19 }
 0x16f   : > { %v2111_v26 = vmul.f32 %v7425_v28, %v1979_v21  ;;  %6260 = vmatprep.mubr.msk.f32.mxu1 %vm1277_vm3, %v2140_v25  ;;  %vm2078_vm6 = vcmp.ge.f32.partialorder %v1979_v21, 0.0 }
 0x170   : > { %vm2077_vm7 = vcmp.ge.f32.partialorder %v1974_v24, 0.0  ;;  %v2110_v15 = vmul.f32 %v7425_v28, %v1974_v24  ;;  %v6212_v29 = vpop.f32.mrb[48].mxu0  ;;  %6261 = vmatmul.mubr.msk.f32.gmra.mrb[44].mxu1 %vm1277_vm3, %v2141_v27 }
 0x171   : > { %v1989_v30 = vadd.f32 %v6212_v29, %v7419_v23  ;;  %v1983_v31 = vpop.f32.mrb[49].mxu0  ;;  %v2143_v34 = vsel %vm2078_vm6, %v1979_v21, %v2111_v26 }
 0x172   : > { %v1984_v32 = vadd.f32 %v7419_v23, %v1983_v31  ;;  %v2142_v33 = vsel %vm2077_vm7, %v1974_v24, %v2110_v15  ;;  %v3234_v31 = vld [vmem:[%s7526_s8] sm:$0xff] }
 0x173   : > { %v2113_v17 = vmul.f32 %v7425_v28, %v1989_v30  ;;  %6263 = vmatprep.mubr.msk.f32.mxu1 %vm1277_vm3, %v2142_v33  ;;  %vm2080_vm8 = vcmp.ge.f32.partialorder %v1989_v30, 0.0  ;;  %v3235_v33 = vld [vmem:[%s7526_s8 + $0x8] sm:$0xff] }
 0x174   : > { %vm2079_vm9 = vcmp.ge.f32.partialorder %v1984_v32, 0.0  ;;  %v2112_v35 = vmul.f32 %v7425_v28, %v1984_v32  ;;  %v6215_v36 = vpop.f32.mrb[50].mxu0  ;;  %6264 = vmatmul.mubr.msk.f32.gmra.mrb[46].mxu1 %vm1277_vm3, %v2143_v34  ;;  %v3238_v34 = vld [vmem:[%s7526_s8 + $0x20] sm:$0xff] }
 0x175   : > { %v1999_v37 = vadd.f32 %v6215_v36, %v7419_v23  ;;  %v1993_v38 = vpop.f32.mrb[51].mxu0  ;;  %v2145_v43 = vsel %vm2080_vm8, %v1989_v30, %v2113_v17  ;;  %v3236_v17 = vld [vmem:[%s7526_s8 + $0x10] sm:$0xff] }
 0x176   : > { %v1994_v39 = vadd.f32 %v7419_v23, %v1993_v38  ;;  %v2144_v40 = vsel %vm2079_vm9, %v1984_v32, %v2112_v35  ;;  %v3239_v35 = vld [vmem:[%s7526_s8 + $0x28] sm:$0xff]  ;;  %v3240_v36 = vld [vmem:[%s7526_s8 + $0x30] sm:$0xff]  ;;  %v3242_v38 = vld [vmem:[%s7526_s8 + $0x40] sm:$0xff] }
 0x177   : > { %v2115_v42 = vmul.f32 %v7425_v28, %v1999_v37  ;;  %6266 = vmatprep.mubr.msk.f32.mxu1 %vm1277_vm3, %v2144_v40  ;;  %vm2082_vm10 = vcmp.ge.f32.partialorder %v1999_v37, 0.0  ;;  %v3244_v40 = vld [vmem:[%s7526_s8 + $0x50] sm:$0xff] }
 0x178   : > { %vm2081_vm11 = vcmp.ge.f32.partialorder %v1994_v39, 0.0  ;;  %v2114_v44 = vmul.f32 %v7425_v28, %v1994_v39  ;;  %v6218_v45 = vpop.f32.mrb[52].mxu0  ;;  %6267 = vmatmul.mubr.msk.f32.gmra.mrb[48].mxu1 %vm1277_vm3, %v2145_v43  ;;  %v2589_v43 = vld [vmem:[%s8579_s17 + $0x8] sm:$0xff] }
 0x179   : > { %v2009_v46 = vadd.f32 %v6218_v45, %v7419_v23  ;;  %v2003_v47 = vpop.f32.mrb[53].mxu0  ;;  %v2147_v51 = vsel %vm2082_vm10, %v1999_v37, %v2115_v42  ;;  %v3241_v37 = vld [vmem:[%s7526_s8 + $0x38] sm:$0xff]  ;;  %v2588_v42 = vld [vmem:[%s8579_s17] sm:$0xff] }
 0x17a   : > { %v2004_v48 = vadd.f32 %v7419_v23, %v2003_v47  ;;  %v2146_v49 = vsel %vm2081_vm11, %v1994_v39, %v2114_v44  ;;  %v3243_v39 = vld [vmem:[%s7526_s8 + $0x48] sm:$0xff]  ;;  %v3245_v44 = vld [vmem:[%s7526_s8 + $0x58] sm:$0xff]  ;;  %v6646_v45 = vpack.c.bf16 %v2589_v43, %v2588_v42  ;;  %v2590_v47 = vld [vmem:[%s8579_s17 + $0x10] sm:$0xff] }
 0x17b   : > { %v2117_v50 = vmul.f32 %v7425_v28, %v2009_v46  ;;  %6269 = vmatprep.mubr.msk.f32.mxu1 %vm1277_vm3, %v2146_v49  ;;  %vm2084_vm12 = vcmp.ge.f32.partialorder %v2009_v46, 0.0  ;;  %v3247_v49 = vld [vmem:[%s7526_s8 + $0x68] sm:$0xff] }
 0x17c   : > { %vm2083_vm13 = vcmp.ge.f32.partialorder %v2004_v48, 0.0  ;;  %v2116_v52 = vmul.f32 %v7425_v28, %v2004_v48  ;;  %v6221_v53 = vpop.f32.mrb[54].mxu0  ;;  %6270 = vmatmul.mubr.msk.f32.gmra.mrb[50].mxu1 %vm1277_vm3, %v2147_v51  ;;  %6647 = vmatprep.subr.bf16.mxu0 %v6646_v45  ;;  %v3248_v51 = vld [vmem:[%s7526_s8 + $0x70] sm:$0xff] }
 0x17d   : > { %v2019_v41 = vadd.f32 %v6221_v53, %v7419_v23  ;;  %v2013_v54 = vpop.f32.mrb[55].mxu0  ;;  %v2149_v58 = vsel %vm2084_vm12, %v2009_v46, %v2117_v50  ;;  %v3246_v46 = vld [vmem:[%s7526_s8 + $0x60] sm:$0xff]  ;;  %6649 = vmatpush3.bf16.msra.mxu0 %v6646_v45 }
 0x17e   : > { %v2014_v55 = vadd.f32 %v7419_v23, %v2013_v54  ;;  %v2148_v56 = vsel %vm2083_vm13, %v2004_v48, %v2116_v52  ;;  %v2591_v48 = vld [vmem:[%s8579_s17 + $0x18] sm:$0xff]  ;;  %v3250_v53 = vld [vmem:[%s7526_s8 + $0x80] sm:$0xff]  ;;  %v3696_v54 = vld [vmem:[%s8576_s14 + $0x8] sm:$0xff] }
 0x17f   : > { %v2119_v57 = vmul.f32 %v7425_v28, %v2019_v41  ;;  %6272 = vmatprep.mubr.msk.f32.mxu1 %vm1277_vm3, %v2148_v56  ;;  %vm2086_vm14 = vcmp.ge.f32.partialorder %v2019_v41, 0.0  ;;  %v6650_v50 = vpack.c.bf16 %v2591_v48, %v2590_v47  ;;  %v3249_v52 = vld [vmem:[%s7526_s8 + $0x78] sm:$0xff]  ;;  %v3251_v56 = vld [vmem:[%s7526_s8 + $0x88] sm:$0xff] }
 0x180   : > { %vm2085_vm15 = vcmp.ge.f32.partialorder %v2014_v55, 0.0  ;;  %v2118_v59 = vmul.f32 %v7425_v28, %v2014_v55  ;;  %v6224_v60 = vpop.f32.mrb[56].mxu0  ;;  %6273 = vmatmul.mubr.msk.f32.gmra.mrb[52].mxu1 %vm1277_vm3, %v2149_v58  ;;  %v3253_v58 = vld [vmem:[%s7526_s8 + $0x98] sm:$0xff] }
 0x181   : > { %v2029_v61 = vadd.f32 %v6224_v60, %v7419_v23  ;;  %v2023_v62 = vpop.f32.mrb[57].mxu0  ;;  %v2151_v2 = vsel %vm2086_vm14, %v2019_v41, %v2119_v57  ;;  %6651 = vmatprep.subr.bf16.mxu0 %v6650_v50  ;;  %v3695_v41 = vld [vmem:[%s8576_s14] sm:$0xff]  ;;  %v3252_v57 = vld [vmem:[%s7526_s8 + $0x90] sm:$0xff]  ;;  %v3255_v60 = vld [vmem:[%s7526_s8 + $0xa8] sm:$0xff] }
 0x182   : > { %v2024_v63 = vadd.f32 %v7419_v23, %v2023_v62  ;;  %v2150_v0 = vsel %vm2085_vm15, %v2014_v55, %v2118_v59  ;;  %6653 = vmatpush3.bf16.msra.mxu0 %v6650_v50  ;;  %v6666_v55 = vpack.c.bf16 %v3696_v54, %v3695_v41  ;;  %v3254_v59 = vld [vmem:[%s7526_s8 + $0xa0] sm:$0xff]  ;;  %v3257_v62 = vld [vmem:[%s7526_s8 + $0xb8] sm:$0xff] }
 0x183   : > { %v2121_v1 = vmul.f32 %v7425_v28, %v2029_v61  ;;  %6275 = vmatprep.mubr.msk.f32.mxu1 %vm1277_vm3, %v2150_v0  ;;  %vm2088_vm1 = vcmp.ge.f32.partialorder %v2029_v61, 0.0  ;;  %v3259_v0 = vld [vmem:[%s7526_s8 + $0xc8] sm:$0xff]  ;;  %v1699_v41 = vld [vmem:[%s8578_s16 + $0x18] sm:$0xff] }
 0x184   : > { %vm2087_vm2 = vcmp.ge.f32.partialorder %v2024_v63, 0.0  ;;  %v2120_v3 = vmul.f32 %v7425_v28, %v2024_v63  ;;  %v6227_v4 = vpop.f32.mrb[58].mxu0  ;;  %6276 = vmatmul.mubr.msk.f32.gmra.mrb[54].mxu1 %vm1277_vm3, %v2151_v2  ;;  %6667 = vmatprep.subr.bf16.mxu1 %v6666_v55  ;;  %v3261_v2 = vld [vmem:[%s7526_s8 + $0xd8] sm:$0xff] }
 0x185   : > { %v2039_v5 = vadd.f32 %v6227_v4, %v7419_v23  ;;  %v2033_v6 = vpop.f32.mrb[59].mxu0  ;;  %v2153_v10 = vsel %vm2088_vm1, %v2029_v61, %v2121_v1  ;;  %v3256_v61 = vld [vmem:[%s7526_s8 + $0xb0] sm:$0xff]  ;;  %v3263_v4 = vld [vmem:[%s7526_s8 + $0xe8] sm:$0xff] }
 0x186   : > { %v2034_v7 = vadd.f32 %v7419_v23, %v2033_v6  ;;  %v2152_v8 = vsel %vm2087_vm2, %v2024_v63, %v2120_v3  ;;  %v3258_v63 = vld [vmem:[%s7526_s8 + $0xc0] sm:$0xff]  ;;  %v3260_v1 = vld [vmem:[%s7526_s8 + $0xd0] sm:$0xff]  ;;  %v3265_v6 = vld [vmem:[%s7526_s8 + $0xf8] sm:$0xff] }
 0x187   : > { %v2123_v9 = vmul.f32 %v7425_v28, %v2039_v5  ;;  %6278 = vmatprep.mubr.msk.f32.mxu1 %vm1277_vm3, %v2152_v8  ;;  %vm2090_vm4 = vcmp.ge.f32.partialorder %v2039_v5, 0.0  ;;  %v3262_v3 = vld [vmem:[%s7526_s8 + $0xe0] sm:$0xff]  ;;  %v3698_v8 = vld [vmem:[%s8576_s14 + $0x18] sm:$0xff] }
 0x188   : > { %vm2089_vm5 = vcmp.ge.f32.partialorder %v2034_v7, 0.0  ;;  %v2122_v11 = vmul.f32 %v7425_v28, %v2034_v7  ;;  %v6230_v12 = vpop.f32.mrb[60].mxu0  ;;  %6279 = vmatmul.mubr.msk.f32.gmra.mrb[56].mxu1 %vm1277_vm3, %v2153_v10  ;;  %v1696_v10 = vld [vmem:[%s8578_s16] sm:$0xff] }
 0x189   : > { %v2049_v13 = vadd.f32 %v6230_v12, %v7419_v23  ;;  %v2043_v14 = vpop.f32.mrb[61].mxu0  ;;  %v2155_v20 = vsel %vm2090_vm4, %v2039_v5, %v2123_v9  ;;  %v3264_v5 = vld [vmem:[%s7526_s8 + $0xf0] sm:$0xff] }
 0x18a   : > { %v2044_v16 = vadd.f32 %v7419_v23, %v2043_v14  ;;  %v2154_v18 = vsel %vm2089_vm5, %v2034_v7, %v2122_v11  ;;  %v3697_v7 = vld [vmem:[%s8576_s14 + $0x10] sm:$0xff]  ;;  %v1697_v11 = vld [vmem:[%s8578_s16 + $0x8] sm:$0xff] }
 0x18b   : > { %v2125_v19 = vmul.f32 %v7425_v28, %v2049_v13  ;;  %6281 = vmatprep.mubr.msk.f32.mxu1 %vm1277_vm3, %v2154_v18  ;;  %vm2092_vm6 = vcmp.ge.f32.partialorder %v2049_v13, 0.0  ;;  %v6670_v9 = vpack.c.bf16 %v3698_v8, %v3697_v7  ;;  %v7626_v12 = vpack.c.bf16 %v1697_v11, %v1696_v10 }
 0x18c   : > { %vm2091_vm7 = vcmp.ge.f32.partialorder %v2044_v16, 0.0  ;;  %v2124_v21 = vmul.f32 %v7425_v28, %v2044_v16  ;;  %v6233_v22 = vpop.f32.mrb[62].mxu0  ;;  %6282 = vmatmul.mubr.msk.f32.gmra.mrb[58].mxu1 %vm1277_vm3, %v2155_v20 }
 0x18d   : > { %v2059_v24 = vadd.f32 %v6233_v22, %v7419_v23  ;;  %v2053_v25 = vpop.f32.mrb[63].mxu0  ;;  %v2157_v29 = vsel %vm2092_vm6, %v2049_v13, %v2125_v19  ;;  %6655 = vmatprep.subr.bf16.mxu0 %v7626_v12 }
 0x18e   : > { %v2054_v26 = vadd.f32 %v7419_v23, %v2053_v25  ;;  %v2156_v27 = vsel %vm2091_vm7, %v2044_v16, %v2124_v21 }
 0x18f   : > { %v2127_v15 = vmul.f32 %v7425_v28, %v2059_v24  ;;  %6284 = vmatprep.mubr.msk.f32.mxu1 %vm1277_vm3, %v2156_v27  ;;  %vm2094_vm8 = vcmp.ge.f32.partialorder %v2059_v24, 0.0 }
 0x190   : > { %vm2093_vm9 = vcmp.ge.f32.partialorder %v2054_v26, 0.0  ;;  %v2126_v23 = vmul.f32 %v7425_v28, %v2054_v26  ;;  %6285 = vmatmul.mubr.msk.f32.gmra.mrb[60].mxu1 %vm1277_vm3, %v2157_v29  ;;  %v3237_v28 = vld [vmem:[%s7526_s8 + $0x18] sm:$0xff]  ;;  %s5368_s8 = sld [smem:[#allocation2 + $0x3]] }
 0x191   : > { %v2159_v32 = vsel %vm2094_vm8, %v2059_v24, %v2127_v15 }
 0x192   : > { %v2158_v30 = vsel %vm2093_vm9, %v2054_v26, %v2126_v23 }
 0x193   : > { %6287 = vmatprep.mubr.msk.f32.mxu1 %vm1277_vm3, %v2158_v30 }
 0x194   : > { %6288 = vmatmul.mubr.msk.f32.gmra.mrb[62].mxu1 %vm1277_vm3, %v2159_v32 }
 0x195   : > { %6406 = vmatprep.mubr.msk.f32.mxu1 %vm846_vm0, %v3234_v31 }
 0x196   : > { %v7699_v50 = vstv %s5368_s8  ;;  %s5369_s8 = sld [smem:[#allocation2 + $0x4]] }
 0x198   : > { %6407 = vmatmul.mubr.msk.f32.vlgmr.msra.gmra.mrb[64].mxu1 %vm846_vm0, %v3235_v33 }
 0x199   : > { %6409 = vmatprep.mubr.msk.f32.mxu1 %vm846_vm0, %v3236_v17  ;;  %6669 = vmatpush3.bf16.msra.mxu1 %v6666_v55 }
 0x19a   : > { %6671 = vmatprep.subr.bf16.mxu1 %v6670_v9 }
 0x19c   : > { %6410 = vmatmul.mubr.msk.f32.gmra.mrb[66].mxu1 %vm846_vm0, %v3237_v28 }
 0x19d   : > { %6412 = vmatprep.mubr.msk.f32.mxu1 %vm846_vm0, %v3238_v34  ;;  %6673 = vmatpush3.bf16.msra.mxu1 %v6670_v9 }
 0x1a0   : > { %6413 = vmatmul.mubr.msk.f32.gmra.mrb[68].mxu1 %vm846_vm0, %v3239_v35 }
 0x1a1   : > { %6415 = vmatprep.mubr.msk.f32.mxu1 %vm846_vm0, %v3240_v36 }
 0x1a4   : > { %6416 = vmatmul.mubr.msk.f32.gmra.mrb[70].mxu1 %vm846_vm0, %v3241_v37 }
 0x1a5   : > { %6418 = vmatprep.mubr.msk.f32.mxu1 %vm846_vm0, %v3242_v38 }
 0x1a8   : > { %6419 = vmatmul.mubr.msk.f32.gmra.mrb[72].mxu1 %vm846_vm0, %v3243_v39 }
 0x1a9   : > { %6421 = vmatprep.mubr.msk.f32.mxu1 %vm846_vm0, %v3244_v40 }
 0x1ac   : > { %6422 = vmatmul.mubr.msk.f32.gmra.mrb[74].mxu1 %vm846_vm0, %v3245_v44 }
 0x1ad   : > { %6424 = vmatprep.mubr.msk.f32.mxu1 %vm846_vm0, %v3246_v46  ;;  %v7696_v46 = vld [vmem:[%s8573_s11] ss:$0 sm:$0xff] }
 0x1b0   : > { %6425 = vmatmul.mubr.msk.f32.gmra.mrb[76].mxu1 %vm846_vm0, %v3247_v49 }
 0x1b1   : > { %6427 = vmatprep.mubr.msk.f32.mxu1 %vm846_vm0, %v3248_v51 }
 0x1b4   : > { %6428 = vmatmul.mubr.msk.f32.gmra.mrb[78].mxu1 %vm846_vm0, %v3249_v52 }
 0x1b5   : > { %6430 = vmatprep.mubr.msk.f32.mxu1 %vm846_vm0, %v3250_v53  ;;  %v1698_v53 = vld [vmem:[%s8578_s16 + $0x10] sm:$0xff] }
 0x1b8   : > { %6431 = vmatmul.mubr.msk.f32.gmra.mrb[80].mxu1 %vm846_vm0, %v3251_v56 }
 0x1b9   : > { %6433 = vmatprep.mubr.msk.f32.mxu1 %vm846_vm0, %v3252_v57 }
 0x1bc   : > { %6434 = vmatmul.mubr.msk.f32.gmra.mrb[82].mxu1 %vm846_vm0, %v3253_v58 }
 0x1bd   : > { %6436 = vmatprep.mubr.msk.f32.mxu1 %vm846_vm0, %v3254_v59 }
 0x1c0   : > { %6437 = vmatmul.mubr.msk.f32.gmra.mrb[84].mxu1 %vm846_vm0, %v3255_v60  ;;  %v6658_v60 = vpack.c.bf16 %v1699_v41, %v1698_v53 }
 0x1c1   : > { %6439 = vmatprep.mubr.msk.f32.mxu1 %vm846_vm0, %v3256_v61 }
 0x1c4   : > { %6440 = vmatmul.mubr.msk.f32.gmra.mrb[86].mxu1 %vm846_vm0, %v3257_v62 }
 0x1c5   : > { %6442 = vmatprep.mubr.msk.f32.mxu1 %vm846_vm0, %v3258_v63  ;;  %v4122_v63 = vld [vmem:[%s8580_s18] sm:$0xff] }
 0x1c8   : > { %6443 = vmatmul.mubr.msk.f32.gmra.mrb[88].mxu1 %vm846_vm0, %v3259_v0  ;;  %v4123_v0 = vld [vmem:[%s8580_s18 + $0x8] sm:$0xff] }
 0x1c9   : > { %6445 = vmatprep.mubr.msk.f32.mxu1 %vm846_vm0, %v3260_v1  ;;  %v7725_v7 = vpack.c.bf16 %v4123_v0, %v4122_v63 }
 0x1cc   : > { %6446 = vmatmul.mubr.msk.f32.gmra.mrb[90].mxu1 %vm846_vm0, %v3261_v2 }
 0x1cd   : > { %6448 = vmatprep.mubr.msk.f32.mxu1 %vm846_vm0, %v3262_v3 }
 0x1d0   : > { %6449 = vmatmul.mubr.msk.f32.gmra.mrb[92].mxu1 %vm846_vm0, %v3263_v4 }
 0x1d1   : > { %6451 = vmatprep.mubr.msk.f32.mxu1 %vm846_vm0, %v3264_v5 }
 0x1d4   : > { %6452 = vmatmul.mubr.msk.f32.gmra.mrb[94].mxu1 %vm846_vm0, %v3265_v6 }
 0x1eb   : > { %v7628_v13 = vpop.f32.mrb[0].mxu1 }
 0x1ec   : > { %v7631_v14 = vpop.f32.mrb[1].mxu1 }
 0x1ef   : > { %v7633_v16 = vpop.f32.mrb[2].mxu1 }
 0x1f0   : > { %v7635_v18 = vpop.f32.mrb[3].mxu1 }
 0x1f3   : > { %v7637_v19 = vpop.f32.mrb[4].mxu1 }
 0x1f4   : > { %v7639_v20 = vpop.f32.mrb[5].mxu1 }
 0x1f7   : > { %v7641_v21 = vpop.f32.mrb[6].mxu1 }
 0x1f8   : > { %v7643_v22 = vpop.f32.mrb[7].mxu1 }
 0x1fb   : > { %v7645_v24 = vpop.f32.mrb[8].mxu1 }
 0x1fc   : > { %v7647_v25 = vpop.f32.mrb[9].mxu1 }
 0x1ff   : > { %v7649_v26 = vpop.f32.mrb[10].mxu1 }
 0x200   : > { %v7651_v27 = vpop.f32.mrb[11].mxu1 }
 0x203   : > { %v7653_v15 = vpop.f32.mrb[12].mxu1 }
 0x204   : > { %v7655_v29 = vpop.f32.mrb[13].mxu1 }
 0x207   : > { %v7657_v23 = vpop.f32.mrb[14].mxu1 }
 0x208   : > { %v7659_v30 = vpop.f32.mrb[15].mxu1 }
 0x20b   : > { %v7661_v31 = vpop.f32.mrb[16].mxu1 }
 0x20c   : > { %v7663_v32 = vpop.f32.mrb[17].mxu1 }
 0x20f   : > { %v7665_v33 = vpop.f32.mrb[18].mxu1 }
 0x210   : > { %v7667_v17 = vpop.f32.mrb[19].mxu1 }
 0x213   : > { %v7669_v28 = vpop.f32.mrb[20].mxu1 }
 0x214   : > { %v7671_v34 = vpop.f32.mrb[21].mxu1 }
 0x217   : > { %v7673_v35 = vpop.f32.mrb[22].mxu1 }
 0x218   : > { %v7675_v36 = vpop.f32.mrb[23].mxu1 }
 0x21b   : > { %v7677_v37 = vpop.f32.mrb[24].mxu1 }
 0x21c   : > { %v7679_v38 = vpop.f32.mrb[25].mxu1 }
 0x21f   : > { %v7681_v39 = vpop.f32.mrb[26].mxu1 }
 0x220   : > { %v7683_v40 = vpop.f32.mrb[27].mxu1 }
 0x223   : > { %v7685_v42 = vpop.f32.mrb[28].mxu1 }
 0x224   : > { %v7687_v43 = vpop.f32.mrb[29].mxu1 }
 0x227   : > { %v7689_v44 = vpop.f32.mrb[30].mxu1 }
 0x228   : > { %v7691_v45 = vpop.f32.mrb[31].mxu1 }
 0x22b   : > { %v6244_v47 = vpop.f32.mrb[32].mxu1 }
 0x22c   : > { %v2339_v48 = vadd.f32 %v6244_v47, %v7696_v46  ;;  %v2333_v49 = vpop.f32.mrb[33].mxu1 }
 0x22d   : > { %v2334_v51 = vadd.f32 %v7696_v46, %v2333_v49 }
 0x22e   : > { %v2525_v52 = vmul.f32 %v2339_v48, %v7699_v50  ;;  %vm2493_vm0 = vcmp.ge.f32.partialorder %v2339_v48, 0.0 }
 0x22f   : > { %vm2492_vm10 = vcmp.ge.f32.partialorder %v2334_v51, 0.0  ;;  %v2524_v54 = vmul.f32 %v2334_v51, %v7699_v50  ;;  %v6247_v55 = vpop.f32.mrb[34].mxu1 }
 0x230   : > { %v2349_v56 = vadd.f32 %v6247_v55, %v7696_v46  ;;  %v2343_v57 = vpop.f32.mrb[35].mxu1  ;;  %v2557_v61 = vsel %vm2493_vm0, %v2339_v48, %v2525_v52 }
 0x231   : > { %v2344_v58 = vadd.f32 %v7696_v46, %v2343_v57  ;;  %v2556_v59 = vsel %vm2492_vm10, %v2334_v51, %v2524_v54 }
 0x232   : > { %v2527_v62 = vmul.f32 %v2349_v56, %v7699_v50  ;;  %6298 = vmatprep.mubr.msk.f32.mxu0 %vm1277_vm3, %v2556_v59  ;;  %vm2495_vm11 = vcmp.ge.f32.partialorder %v2349_v56, 0.0 }
 0x233   : > { %vm2494_vm12 = vcmp.ge.f32.partialorder %v2344_v58, 0.0  ;;  %v2526_v1 = vmul.f32 %v2344_v58, %v7699_v50  ;;  %v6250_v2 = vpop.f32.mrb[36].mxu1  ;;  %6299 = vmatmul.mubr.msk.f32.vlgmr.msra.gmra.mrb[64].mxu0 %vm1277_vm3, %v2557_v61 }
 0x234   : > { %v2359_v3 = vadd.f32 %v6250_v2, %v7696_v46  ;;  %v2353_v4 = vpop.f32.mrb[37].mxu1  ;;  %6657 = vmatpush3.bf16.msra.mxu0 %v7626_v12  ;;  %v2559_v9 = vsel %vm2495_vm11, %v2349_v56, %v2527_v62 }
 0x235   : > { %v2354_v5 = vadd.f32 %v7696_v46, %v2353_v4  ;;  %v2558_v6 = vsel %vm2494_vm12, %v2344_v58, %v2526_v1  ;;  %6659 = vmatprep.subr.bf16.mxu0 %v6658_v60 }
 0x236   : > { %v2529_v8 = vmul.f32 %v2359_v3, %v7699_v50  ;;  %6301 = vmatprep.mubr.msk.f32.mxu0 %vm1277_vm3, %v2558_v6  ;;  %vm2497_vm13 = vcmp.ge.f32.partialorder %v2359_v3, 0.0 }
 0x237   : > { %vm2496_vm14 = vcmp.ge.f32.partialorder %v2354_v5, 0.0  ;;  %v2528_v10 = vmul.f32 %v2354_v5, %v7699_v50  ;;  %v6253_v11 = vpop.f32.mrb[38].mxu1  ;;  %6302 = vmatmul.mubr.msk.f32.gmra.mrb[66].mxu0 %vm1277_vm3, %v2559_v9 }
 0x238   : > { %v2369_v12 = vadd.f32 %v6253_v11, %v7696_v46  ;;  %v2363_v47 = vpop.f32.mrb[39].mxu1  ;;  %6661 = vmatpush3.bf16.msra.mxu0 %v6658_v60  ;;  %v2561_v52 = vsel %vm2497_vm13, %v2359_v3, %v2529_v8 }
 0x239   : > { %v2364_v48 = vadd.f32 %v7696_v46, %v2363_v47  ;;  %v2560_v49 = vsel %vm2496_vm14, %v2354_v5, %v2528_v10  ;;  %6675 = vmatprep.subr.bf16.mxu0 %v7725_v7 }
 0x23a   : > { %v2531_v51 = vmul.f32 %v2369_v12, %v7699_v50  ;;  %6304 = vmatprep.mubr.msk.f32.mxu0 %vm1277_vm3, %v2560_v49  ;;  %vm2499_vm15 = vcmp.ge.f32.partialorder %v2369_v12, 0.0 }
 0x23b   : > { %vm2498_vm1 = vcmp.ge.f32.partialorder %v2364_v48, 0.0  ;;  %v2530_v53 = vmul.f32 %v2364_v48, %v7699_v50  ;;  %v6256_v41 = vpop.f32.mrb[40].mxu1  ;;  %6305 = vmatmul.mubr.msk.f32.gmra.mrb[68].mxu0 %vm1277_vm3, %v2561_v52 }
 0x23c   : > { %v2379_v54 = vadd.f32 %v6256_v41, %v7696_v46  ;;  %v2373_v55 = vpop.f32.mrb[41].mxu1  ;;  %v2563_v59 = vsel %vm2499_vm15, %v2369_v12, %v2531_v51 }
 0x23d   : > { %v2374_v56 = vadd.f32 %v7696_v46, %v2373_v55  ;;  %v2562_v57 = vsel %vm2498_vm1, %v2364_v48, %v2530_v53 }
 0x23e   : > { %v2533_v58 = vmul.f32 %v2379_v54, %v7699_v50  ;;  %6307 = vmatprep.mubr.msk.f32.mxu0 %vm1277_vm3, %v2562_v57  ;;  %vm2501_vm2 = vcmp.ge.f32.partialorder %v2379_v54, 0.0 }
 0x23f   : > { %vm2500_vm4 = vcmp.ge.f32.partialorder %v2374_v56, 0.0  ;;  %v2532_v60 = vmul.f32 %v2374_v56, %v7699_v50  ;;  %v6259_v61 = vpop.f32.mrb[42].mxu1  ;;  %6308 = vmatmul.mubr.msk.f32.gmra.mrb[70].mxu0 %vm1277_vm3, %v2563_v59 }
 0x240   : > { %v2389_v62 = vadd.f32 %v6259_v61, %v7696_v46  ;;  %v2383_v63 = vpop.f32.mrb[43].mxu1  ;;  %v2565_v3 = vsel %vm2501_vm2, %v2379_v54, %v2533_v58 }
 0x241   : > { %v2384_v0 = vadd.f32 %v7696_v46, %v2383_v63  ;;  %v2564_v1 = vsel %vm2500_vm4, %v2374_v56, %v2532_v60 }
 0x242   : > { %v2535_v2 = vmul.f32 %v2389_v62, %v7699_v50  ;;  %6310 = vmatprep.mubr.msk.f32.mxu0 %vm1277_vm3, %v2564_v1  ;;  %vm2503_vm5 = vcmp.ge.f32.partialorder %v2389_v62, 0.0 }
 0x243   : > { %vm2502_vm6 = vcmp.ge.f32.partialorder %v2384_v0, 0.0  ;;  %v2534_v4 = vmul.f32 %v2384_v0, %v7699_v50  ;;  %v6262_v5 = vpop.f32.mrb[44].mxu1  ;;  %6311 = vmatmul.mubr.msk.f32.gmra.mrb[72].mxu0 %vm1277_vm3, %v2565_v3 }
 0x244   : > { %v2399_v6 = vadd.f32 %v6262_v5, %v7696_v46  ;;  %v2393_v8 = vpop.f32.mrb[45].mxu1  ;;  %v2567_v12 = vsel %vm2503_vm5, %v2389_v62, %v2535_v2 }
 0x245   : > { %v2394_v9 = vadd.f32 %v7696_v46, %v2393_v8  ;;  %v2566_v10 = vsel %vm2502_vm6, %v2384_v0, %v2534_v4 }
 0x246   : > { %v2537_v11 = vmul.f32 %v2399_v6, %v7699_v50  ;;  %6313 = vmatprep.mubr.msk.f32.mxu0 %vm1277_vm3, %v2566_v10  ;;  %vm2505_vm7 = vcmp.ge.f32.partialorder %v2399_v6, 0.0 }
 0x247   : > { %vm2504_vm8 = vcmp.ge.f32.partialorder %v2394_v9, 0.0  ;;  %v2536_v47 = vmul.f32 %v2394_v9, %v7699_v50  ;;  %v6265_v48 = vpop.f32.mrb[46].mxu1  ;;  %6314 = vmatmul.mubr.msk.f32.gmra.mrb[74].mxu0 %vm1277_vm3, %v2567_v12 }
 0x248   : > { %v2409_v49 = vadd.f32 %v6265_v48, %v7696_v46  ;;  %v2403_v51 = vpop.f32.mrb[47].mxu1  ;;  %v2569_v54 = vsel %vm2505_vm7, %v2399_v6, %v2537_v11 }
 0x249   : > { %v2404_v52 = vadd.f32 %v7696_v46, %v2403_v51  ;;  %v2568_v53 = vsel %vm2504_vm8, %v2394_v9, %v2536_v47 }
 0x24a   : > { %v2539_v41 = vmul.f32 %v2409_v49, %v7699_v50  ;;  %6316 = vmatprep.mubr.msk.f32.mxu0 %vm1277_vm3, %v2568_v53  ;;  %vm2507_vm9 = vcmp.ge.f32.partialorder %v2409_v49, 0.0 }
 0x24b   : > { %vm2506_vm0 = vcmp.ge.f32.partialorder %v2404_v52, 0.0  ;;  %v2538_v55 = vmul.f32 %v2404_v52, %v7699_v50  ;;  %v6268_v56 = vpop.f32.mrb[48].mxu1  ;;  %6317 = vmatmul.mubr.msk.f32.gmra.mrb[76].mxu0 %vm1277_vm3, %v2569_v54 }
 0x24c   : > { %v2419_v57 = vadd.f32 %v6268_v56, %v7696_v46  ;;  %v2413_v58 = vpop.f32.mrb[49].mxu1  ;;  %v2571_v62 = vsel %vm2507_vm9, %v2409_v49, %v2539_v41 }
 0x24d   : > { %v2414_v59 = vadd.f32 %v7696_v46, %v2413_v58  ;;  %v2570_v60 = vsel %vm2506_vm0, %v2404_v52, %v2538_v55 }
 0x24e   : > { %v2541_v61 = vmul.f32 %v2419_v57, %v7699_v50  ;;  %6319 = vmatprep.mubr.msk.f32.mxu0 %vm1277_vm3, %v2570_v60  ;;  %vm2509_vm10 = vcmp.ge.f32.partialorder %v2419_v57, 0.0 }
 0x24f   : > { %vm2508_vm11 = vcmp.ge.f32.partialorder %v2414_v59, 0.0  ;;  %v2540_v63 = vmul.f32 %v2414_v59, %v7699_v50  ;;  %v6271_v0 = vpop.f32.mrb[50].mxu1  ;;  %6320 = vmatmul.mubr.msk.f32.gmra.mrb[78].mxu0 %vm1277_vm3, %v2571_v62 }
 0x250   : > { %v2429_v1 = vadd.f32 %v6271_v0, %v7696_v46  ;;  %v2423_v2 = vpop.f32.mrb[51].mxu1  ;;  %v2573_v6 = vsel %vm2509_vm10, %v2419_v57, %v2541_v61 }
 0x251   : > { %v2424_v3 = vadd.f32 %v7696_v46, %v2423_v2  ;;  %v2572_v4 = vsel %vm2508_vm11, %v2414_v59, %v2540_v63 }
 0x252   : > { %v2543_v5 = vmul.f32 %v2429_v1, %v7699_v50  ;;  %6322 = vmatprep.mubr.msk.f32.mxu0 %vm1277_vm3, %v2572_v4  ;;  %vm2511_vm12 = vcmp.ge.f32.partialorder %v2429_v1, 0.0 }
 0x253   : > { %vm2510_vm13 = vcmp.ge.f32.partialorder %v2424_v3, 0.0  ;;  %v2542_v8 = vmul.f32 %v2424_v3, %v7699_v50  ;;  %v6274_v9 = vpop.f32.mrb[52].mxu1  ;;  %6323 = vmatmul.mubr.msk.f32.gmra.mrb[80].mxu0 %vm1277_vm3, %v2573_v6  ;;  %v7796_v6 = vld [vmem:[%s8612_s7] ss:$0 sm:$0xff] }
 0x254   : > { %v2439_v10 = vadd.f32 %v6274_v9, %v7696_v46  ;;  %v2433_v11 = vpop.f32.mrb[53].mxu1  ;;  %v2575_v49 = vsel %vm2511_vm12, %v2429_v1, %v2543_v5 }
 0x255   : > { %v2434_v12 = vadd.f32 %v7696_v46, %v2433_v11  ;;  %v2574_v47 = vsel %vm2510_vm13, %v2424_v3, %v2542_v8 }
 0x256   : > { %v2545_v48 = vmul.f32 %v2439_v10, %v7699_v50  ;;  %6325 = vmatprep.mubr.msk.f32.mxu0 %vm1277_vm3, %v2574_v47  ;;  %vm2513_vm14 = vcmp.ge.f32.partialorder %v2439_v10, 0.0 }
 0x257   : > { %vm2512_vm15 = vcmp.ge.f32.partialorder %v2434_v12, 0.0  ;;  %v2544_v51 = vmul.f32 %v2434_v12, %v7699_v50  ;;  %v6277_v52 = vpop.f32.mrb[54].mxu1  ;;  %6326 = vmatmul.mubr.msk.f32.gmra.mrb[82].mxu0 %vm1277_vm3, %v2575_v49 }
 0x258   : > { %v2449_v53 = vadd.f32 %v6277_v52, %v7696_v46  ;;  %v2443_v41 = vpop.f32.mrb[55].mxu1  ;;  %v2577_v57 = vsel %vm2513_vm14, %v2439_v10, %v2545_v48  ;;  %v1446_v48 = vadd.f32 %v7628_v13, %v7796_v6  ;;  %v1441_v52 = vadd.f32 %v7796_v6, %v7631_v14 }
 0x259   : > { %v2444_v54 = vadd.f32 %v7696_v46, %v2443_v41  ;;  %v2576_v55 = vsel %vm2512_vm15, %v2434_v12, %v2544_v51 }
 0x25a   : > { %v2547_v56 = vmul.f32 %v2449_v53, %v7699_v50  ;;  %6328 = vmatprep.mubr.msk.f32.mxu0 %vm1277_vm3, %v2576_v55  ;;  %vm2515_vm1 = vcmp.ge.f32.partialorder %v2449_v53, 0.0  ;;  %vm1600_vm0 = vcmp.ge.f32.partialorder %v1446_v48, 0.0  ;;  %vm1599_vm10 = vcmp.ge.f32.partialorder %v1441_v52, 0.0 }
 0x25b   : > { %vm2514_vm2 = vcmp.ge.f32.partialorder %v2444_v54, 0.0  ;;  %v2546_v58 = vmul.f32 %v2444_v54, %v7699_v50  ;;  %v6280_v59 = vpop.f32.mrb[56].mxu1  ;;  %6329 = vmatmul.mubr.msk.f32.gmra.mrb[84].mxu0 %vm1277_vm3, %v2577_v57 }
 0x25c   : > { %v2459_v60 = vadd.f32 %v6280_v59, %v7696_v46  ;;  %v2453_v61 = vpop.f32.mrb[57].mxu1  ;;  %v2579_v1 = vsel %vm2515_vm1, %v2449_v53, %v2547_v56  ;;  %v1456_v56 = vadd.f32 %v7633_v16, %v7796_v6  ;;  %v7816_v59 = vstv %s5600_s27  ;;  %s8430_s27 = scalar_lea.vmem (%p7101_p4), %s8584_s22, %s5717_s23  }
 0x25d   : > { %v2454_v62 = vadd.f32 %v7696_v46, %v2453_v61  ;;  %v2578_v63 = vsel %vm2514_vm2, %v2444_v54, %v2546_v58  ;;  %v1632_v61 = vmul.f32 %v7699_v50, %v1441_v52 }
 0x25e   : > { %v2549_v0 = vmul.f32 %v2459_v60, %v7699_v50  ;;  %6331 = vmatprep.mubr.msk.f32.mxu0 %vm1277_vm3, %v2578_v63  ;;  %vm2517_vm4 = vcmp.ge.f32.partialorder %v2459_v60, 0.0  ;;  %v7824_v63 = vld [vmem:[%s8575_s13] ss:$0 sm:$0xff]  ;;  %vm1602_vm13 = vcmp.ge.f32.partialorder %v1456_v56, 0.0 }
 0x25f   : > { %vm2516_vm5 = vcmp.ge.f32.partialorder %v2454_v62, 0.0  ;;  %v2548_v2 = vmul.f32 %v2454_v62, %v7699_v50  ;;  %v6283_v3 = vpop.f32.mrb[58].mxu1  ;;  %6332 = vmatmul.mubr.msk.f32.gmra.mrb[86].mxu0 %vm1277_vm3, %v2579_v1 }
 0x260   : > { %v2469_v4 = vadd.f32 %v6283_v3, %v7696_v46  ;;  %v2463_v5 = vpop.f32.mrb[59].mxu1  ;;  %v2581_v11 = vsel %vm2517_vm4, %v2459_v60, %v2549_v0  ;;  %v1633_v60 = vmul.f32 %v7699_v50, %v1446_v48  ;;  %v1451_v0 = vadd.f32 %v7796_v6, %v7635_v18 }
 0x261   : > { %v2464_v8 = vadd.f32 %v7696_v46, %v2463_v5  ;;  %v2580_v9 = vsel %vm2516_vm5, %v2454_v62, %v2548_v2  ;;  %v1635_v3 = vmul.f32 %v7699_v50, %v1456_v56  ;;  %v1466_v5 = vadd.f32 %v7637_v19, %v7796_v6 }
 0x262   : > { %v2551_v10 = vmul.f32 %v2469_v4, %v7699_v50  ;;  %6334 = vmatprep.mubr.msk.f32.mxu0 %vm1277_vm3, %v2580_v9  ;;  %vm2519_vm6 = vcmp.ge.f32.partialorder %v2469_v4, 0.0  ;;  %v1461_v18 = vadd.f32 %v7796_v6, %v7639_v20  ;;  %vm1601_vm14 = vcmp.ge.f32.partialorder %v1451_v0, 0.0  ;;  %v4124_v20 = vld [vmem:[%s8580_s18 + $0x10] sm:$0xff] }
 0x263   : > { %vm2518_vm7 = vcmp.ge.f32.partialorder %v2464_v8, 0.0  ;;  %v2550_v12 = vmul.f32 %v2464_v8, %v7699_v50  ;;  %v6286_v47 = vpop.f32.mrb[60].mxu1  ;;  %6335 = vmatmul.mubr.msk.f32.gmra.mrb[88].mxu0 %vm1277_vm3, %v2581_v11  ;;  %vm1604_vm2 = vcmp.ge.f32.partialorder %v1466_v5, 0.0 }
 0x264   : > { %v2479_v49 = vadd.f32 %v6286_v47, %v7696_v46  ;;  %v2473_v51 = vpop.f32.mrb[61].mxu1  ;;  %v2583_v55 = vsel %vm2519_vm6, %v2469_v4, %v2551_v10  ;;  %v1665_v10 = vsel %vm1600_vm0, %v1446_v48, %v1633_v60  ;;  %v1664_v47 = vsel %vm1599_vm10, %v1441_v52, %v1632_v61  ;;  %v4125_v48 = vld [vmem:[%s8580_s18 + $0x18] sm:$0xff] }
 0x265   : > { %v2474_v53 = vadd.f32 %v7696_v46, %v2473_v51  ;;  %v2582_v41 = vsel %vm2518_vm7, %v2464_v8, %v2550_v12  ;;  %v6678_v61 = vpack.c.bf16 %v4125_v48, %v4124_v20  ;;  %vm1603_vm4 = vcmp.ge.f32.partialorder %v1461_v18, 0.0 }
 0x266   : > { %v2553_v54 = vmul.f32 %v2479_v49, %v7699_v50  ;;  %6337 = vmatprep.mubr.msk.f32.mxu0 %vm1277_vm3, %v2582_v41  ;;  %vm2521_vm8 = vcmp.ge.f32.partialorder %v2479_v49, 0.0  ;;  %v1667_v41 = vsel %vm1602_vm13, %v1456_v56, %v1635_v3  ;;  %v1486_v3 = vadd.f32 %v7645_v24, %v7796_v6 }
 0x267   : > { %vm2520_vm9 = vcmp.ge.f32.partialorder %v2474_v53, 0.0  ;;  %v2552_v13 = vmul.f32 %v2474_v53, %v7699_v50  ;;  %v6289_v57 = vpop.f32.mrb[62].mxu1  ;;  %6338 = vmatmul.mubr.msk.f32.gmra.mrb[90].mxu0 %vm1277_vm3, %v2583_v55  ;;  %v1636_v55 = vmul.f32 %v7699_v50, %v1461_v18  ;;  %v1481_v24 = vadd.f32 %v7796_v6, %v7647_v25 }
 0x268   : > { %v2489_v14 = vadd.f32 %v6289_v57, %v7696_v46  ;;  %v2483_v58 = vpop.f32.mrb[63].mxu1  ;;  %v2585_v2 = vsel %vm2521_vm8, %v2479_v49, %v2553_v54  ;;  %v1634_v49 = vmul.f32 %v7699_v50, %v1451_v0  ;;  %v1637_v54 = vmul.f32 %v7699_v50, %v1466_v5 }
 0x269   : > { %v2484_v62 = vadd.f32 %v7696_v46, %v2483_v58  ;;  %v2584_v16 = vsel %vm2520_vm9, %v2474_v53, %v2552_v13  ;;  %v1641_v25 = vmul.f32 %v7699_v50, %v1486_v3  ;;  %vm1608_vm10 = vcmp.ge.f32.partialorder %v1486_v3, 0.0 }
 0x26a   : > { %v2555_v1 = vmul.f32 %v2489_v14, %v7699_v50  ;;  %6340 = vmatprep.mubr.msk.f32.mxu0 %vm1277_vm3, %v2584_v16  ;;  %vm2523_vm11 = vcmp.ge.f32.partialorder %v2489_v14, 0.0  ;;  %v1666_v16 = vsel %vm1601_vm14, %v1451_v0, %v1634_v49 }
 0x26b   : > { %vm2522_vm12 = vcmp.ge.f32.partialorder %v2484_v62, 0.0  ;;  %v2554_v46 = vmul.f32 %v2484_v62, %v7699_v50  ;;  %6341 = vmatmul.mubr.msk.f32.gmra.mrb[92].mxu0 %vm1277_vm3, %v2585_v2  ;;  %v6408_v4 = vpop.f32.mrb[64].mxu1 }
 0x26c   : > { %v3443_v8 = vadd.f32 %v6408_v4, %v7824_v63  ;;  %v3437_v9 = vpop.f32.mrb[65].mxu1  ;;  %v2587_v19 = vsel %vm2523_vm11, %v2489_v14, %v2555_v1  ;;  %v1471_v14 = vadd.f32 %v7796_v6, %v7643_v22  ;;  %v1476_v1 = vadd.f32 %v7641_v21, %v7796_v6 }
 0x26d   : > { %v3438_v11 = vadd.f32 %v7824_v63, %v3437_v9  ;;  %v2586_v12 = vsel %vm2522_vm12, %v2484_v62, %v2554_v46  ;;  %v1669_v4 = vsel %vm1604_vm2, %v1466_v5, %v1637_v54  ;;  %vm1607_vm11 = vcmp.ge.f32.partialorder %v1481_v24, 0.0 }
 0x26e   : > { %v3631_v51 = vmul.f32 %v7816_v59, %v3443_v8  ;;  %6343 = vmatprep.mubr.msk.f32.mxu0 %vm1277_vm3, %v2586_v12  ;;  %vm3598_vm15 = vcmp.ge.f32.partialorder %v3443_v8, 0.0  ;;  %v1638_v21 = vmul.f32 %v7699_v50, %v1471_v14  ;;  %vm1605_vm7 = vcmp.ge.f32.partialorder %v1471_v14, 0.0 }
 0x26f   : > { %vm3597_vm1 = vcmp.ge.f32.partialorder %v3438_v11, 0.0  ;;  %v3630_v52 = vmul.f32 %v7816_v59, %v3438_v11  ;;  %6344 = vmatmul.mubr.msk.f32.gmra.mrb[94].mxu0 %vm1277_vm3, %v2587_v19  ;;  %v6411_v53 = vpop.f32.mrb[66].mxu1  ;;  %vm1606_vm0 = vcmp.ge.f32.partialorder %v1476_v1, 0.0 }
 0x270   : > { %v3453_v13 = vadd.f32 %v6411_v53, %v7824_v63  ;;  %6354 = vmatprep.mubr.msk.f32.mxu0 %vm1277_vm3, %v1664_v47  ;;  %v3447_v57 = vpop.f32.mrb[67].mxu1  ;;  %v3663_v56 = vsel %vm3598_vm15, %v3443_v8, %v3631_v51  ;;  %v1491_v47 = vadd.f32 %v7796_v6, %v7651_v27  ;;  %v1670_v48 = vsel %vm1605_vm7, %v1471_v14, %v1638_v21 }
 0x271   : > { %v3448_v58 = vadd.f32 %v7824_v63, %v3447_v57  ;;  %v3662_v60 = vsel %vm3597_vm1, %v3438_v11, %v3630_v52  ;;  %v1640_v52 = vmul.f32 %v7699_v50, %v1481_v24 }
 0x272   : > { %v3633_v62 = vmul.f32 %v7816_v59, %v3453_v13  ;;  %6462 = vmatprep.mubr.msk.f32.mxu1 %vm1277_vm3, %v3662_v60  ;;  %vm3600_vm5 = vcmp.ge.f32.partialorder %v3453_v13, 0.0  ;;  %vm1609_vm14 = vcmp.ge.f32.partialorder %v1491_v47, 0.0  ;;  %v1506_v60 = vadd.f32 %v7653_v15, %v7796_v6 }
 0x273   : > { %vm3599_vm6 = vcmp.ge.f32.partialorder %v3448_v58, 0.0  ;;  %v3632_v22 = vmul.f32 %v7816_v59, %v3448_v58  ;;  %6355 = vmatmul.mubr.msk.f32.vlgmr.msra.gmra.mrb[64].mxu0 %vm1277_vm3, %v1665_v10  ;;  %v6414_v2 = vpop.f32.mrb[68].mxu1  ;;  %6463 = vmatmul.mubr.msk.f32.vlgmr.msra.gmra.mrb[96].mxu1 %vm1277_vm3, %v3663_v56  ;;  %v1668_v10 = vsel %vm1603_vm4, %v1461_v18, %v1636_v55 }
 0x274   : > { %v3463_v46 = vadd.f32 %v6414_v2, %v7824_v63  ;;  %6357 = vmatprep.mubr.msk.f32.mxu0 %vm1277_vm3, %v1666_v16  ;;  %v3457_v0 = vpop.f32.mrb[69].mxu1  ;;  %6677 = vmatpush3.bf16.msra.mxu0 %v7725_v7  ;;  %v3665_v5 = vsel %vm3600_vm5, %v3453_v13, %v3633_v62  ;;  %v1639_v7 = vmul.f32 %v7699_v50, %v1476_v1  ;;  %vm1612_vm4 = vcmp.ge.f32.partialorder %v1506_v60, 0.0 }
 0x275   : > { %v3458_v8 = vadd.f32 %v7824_v63, %v3457_v0  ;;  %v3664_v9 = vsel %vm3599_vm6, %v3448_v58, %v3632_v22  ;;  %6679 = vmatprep.subr.bf16.mxu0 %v6678_v61  ;;  %v1642_v13 = vmul.f32 %v7699_v50, %v1491_v47  ;;  %v1501_v62 = vadd.f32 %v7796_v6, %v7655_v29 }
 0x276   : > { %v3635_v11 = vmul.f32 %v7816_v59, %v3463_v46  ;;  %6465 = vmatprep.mubr.msk.f32.mxu1 %vm1277_vm3, %v3664_v9  ;;  %vm3602_vm8 = vcmp.ge.f32.partialorder %v3463_v46, 0.0  ;;  %v1671_v58 = vsel %vm1606_vm0, %v1476_v1, %v1639_v7  ;;  %v1672_v1 = vsel %vm1607_vm11, %v1481_v24, %v1640_v52 }
 0x277   : > { %vm3601_vm9 = vcmp.ge.f32.partialorder %v3458_v8, 0.0  ;;  %v3634_v12 = vmul.f32 %v7816_v59, %v3458_v8  ;;  %6358 = vmatmul.mubr.msk.f32.gmra.mrb[66].mxu0 %vm1277_vm3, %v1667_v41  ;;  %v6417_v18 = vpop.f32.mrb[70].mxu1  ;;  %6466 = vmatmul.mubr.msk.f32.gmra.mrb[98].mxu1 %vm1277_vm3, %v3665_v5  ;;  %v1496_v41 = vadd.f32 %v7649_v26, %v7796_v6  ;;  %v1673_v26 = vsel %vm1608_vm10, %v1486_v3, %v1641_v25 }
 0x278   : > { %v3473_v49 = vadd.f32 %v6417_v18, %v7824_v63  ;;  %6360 = vmatprep.mubr.msk.f32.mxu0 %vm1277_vm3, %v1668_v10  ;;  %v3467_v51 = vpop.f32.mrb[71].mxu1  ;;  %6681 = vmatpush3.bf16.msra.mxu0 %v6678_v61  ;;  %v3667_v27 = vsel %vm3602_vm8, %v3463_v46, %v3635_v11  ;;  %v1511_v3 = vadd.f32 %v7796_v6, %v7659_v30  ;;  %vm1611_vm5 = vcmp.ge.f32.partialorder %v1501_v62, 0.0 }
 0x279   : > { %v3468_v19 = vadd.f32 %v7824_v63, %v3467_v51  ;;  %v3666_v20 = vsel %vm3601_vm9, %v3458_v8, %v3634_v12  ;;  %vm1610_vm15 = vcmp.ge.f32.partialorder %v1496_v41, 0.0  ;;  %v1643_v29 = vmul.f32 %v7699_v50, %v1496_v41 }
 0x27a   : > { %v3637_v53 = vmul.f32 %v7816_v59, %v3473_v49  ;;  %6468 = vmatprep.mubr.msk.f32.mxu1 %vm1277_vm3, %v3666_v20  ;;  %vm3604_vm12 = vcmp.ge.f32.partialorder %v3473_v49, 0.0  ;;  %v1645_v21 = vmul.f32 %v7699_v50, %v1506_v60  ;;  %v1644_v10 = vmul.f32 %v7699_v50, %v1501_v62 }
 0x27b   : > { %vm3603_vm13 = vcmp.ge.f32.partialorder %v3468_v19, 0.0  ;;  %v3636_v54 = vmul.f32 %v7816_v59, %v3468_v19  ;;  %6361 = vmatmul.mubr.msk.f32.gmra.mrb[68].mxu0 %vm1277_vm3, %v1669_v4  ;;  %v6420_v55 = vpop.f32.mrb[72].mxu1  ;;  %6469 = vmatmul.mubr.msk.f32.gmra.mrb[100].mxu1 %vm1277_vm3, %v3667_v27  ;;  %v1674_v4 = vsel %vm1609_vm14, %v1491_v47, %v1642_v13  ;;  %v1516_v11 = vadd.f32 %v7657_v23, %v7796_v6 }
 0x27c   : > { %v3483_v57 = vadd.f32 %v6420_v55, %v7824_v63  ;;  %6363 = vmatprep.mubr.msk.f32.mxu0 %vm1277_vm3, %v1670_v48  ;;  %v3477_v14 = vpop.f32.mrb[73].mxu1  ;;  %v3669_v22 = vsel %vm3604_vm12, %v3473_v49, %v3637_v53  ;;  %v1646_v12 = vmul.f32 %v7699_v50, %v1511_v3  ;;  %v1526_v18 = vadd.f32 %v7661_v31, %v7796_v6 }
 0x27d   : > { %v3478_v61 = vadd.f32 %v7824_v63, %v3477_v14  ;;  %v3668_v56 = vsel %vm3603_vm13, %v3468_v19, %v3636_v54  ;;  %v1675_v23 = vsel %vm1610_vm15, %v1496_v41, %v1643_v29  ;;  %vm1613_vm8 = vcmp.ge.f32.partialorder %v1511_v3, 0.0 }
 0x27e   : > { %v3639_v16 = vmul.f32 %v7816_v59, %v3483_v57  ;;  %6471 = vmatprep.mubr.msk.f32.mxu1 %vm1277_vm3, %v3668_v56  ;;  %vm3606_vm1 = vcmp.ge.f32.partialorder %v3483_v57, 0.0  ;;  %v1521_v49 = vadd.f32 %v7796_v6, %v7663_v32  ;;  %v1676_v48 = vsel %vm1611_vm5, %v1501_v62, %v1644_v10 }
 0x27f   : > { %vm3605_vm2 = vcmp.ge.f32.partialorder %v3478_v61, 0.0  ;;  %v3638_v2 = vmul.f32 %v7816_v59, %v3478_v61  ;;  %6364 = vmatmul.mubr.msk.f32.gmra.mrb[70].mxu0 %vm1277_vm3, %v1671_v58  ;;  %v6423_v15 = vpop.f32.mrb[74].mxu1  ;;  %6472 = vmatmul.mubr.msk.f32.gmra.mrb[102].mxu1 %vm1277_vm3, %v3669_v22  ;;  %v1677_v52 = vsel %vm1612_vm4, %v1506_v60, %v1645_v21  ;;  %vm1614_vm9 = vcmp.ge.f32.partialorder %v1516_v11, 0.0 }
 0x280   : > { %v3493_v46 = vadd.f32 %v6423_v15, %v7824_v63  ;;  %6366 = vmatprep.mubr.msk.f32.mxu0 %vm1277_vm3, %v1672_v1  ;;  %v3487_v0 = vpop.f32.mrb[75].mxu1  ;;  %v3671_v30 = vsel %vm3606_vm1, %v3483_v57, %v3639_v16  ;;  %v1647_v27 = vmul.f32 %v7699_v50, %v1516_v11  ;;  %vm1616_vm11 = vcmp.ge.f32.partialorder %v1526_v18, 0.0 }
 0x281   : > { %v3488_v8 = vadd.f32 %v7824_v63, %v3487_v0  ;;  %v3670_v9 = vsel %vm3605_vm2, %v3478_v61, %v3638_v2  ;;  %v1678_v55 = vsel %vm1613_vm8, %v1511_v3, %v1646_v12  ;;  %v1649_v13 = vmul.f32 %v7699_v50, %v1526_v18 }
 0x282   : > { %v3641_v24 = vmul.f32 %v7816_v59, %v3493_v46  ;;  %6474 = vmatprep.mubr.msk.f32.mxu1 %vm1277_vm3, %v3670_v9  ;;  %vm3608_vm6 = vcmp.ge.f32.partialorder %v3493_v46, 0.0  ;;  %v1648_v57 = vmul.f32 %v7699_v50, %v1521_v49  ;;  %vm1615_vm12 = vcmp.ge.f32.partialorder %v1521_v49, 0.0 }
 0x283   : > { %vm3607_vm7 = vcmp.ge.f32.partialorder %v3488_v8, 0.0  ;;  %v3640_v5 = vmul.f32 %v7816_v59, %v3488_v8  ;;  %6367 = vmatmul.mubr.msk.f32.gmra.mrb[72].mxu0 %vm1277_vm3, %v1673_v26  ;;  %v6426_v7 = vpop.f32.mrb[76].mxu1  ;;  %6475 = vmatmul.mubr.msk.f32.gmra.mrb[104].mxu1 %vm1277_vm3, %v3671_v30  ;;  %v1536_v26 = vadd.f32 %v7665_v33, %v7796_v6  ;;  %v1531_v56 = vadd.f32 %v7796_v6, %v7667_v17 }
 0x284   : > { %v3503_v25 = vadd.f32 %v6426_v7, %v7824_v63  ;;  %6369 = vmatprep.mubr.msk.f32.mxu0 %vm1277_vm3, %v1674_v4  ;;  %v3497_v47 = vpop.f32.mrb[77].mxu1  ;;  %v3673_v31 = vsel %vm3608_vm6, %v3493_v46, %v3641_v24  ;;  %v1541_v33 = vadd.f32 %v7796_v6, %v7671_v34  ;;  %v1679_v2 = vsel %vm1614_vm9, %v1516_v11, %v1647_v27 }
 0x285   : > { %v3498_v51 = vadd.f32 %v7824_v63, %v3497_v47  ;;  %v3672_v19 = vsel %vm3607_vm7, %v3488_v8, %v3640_v5  ;;  %v1680_v29 = vsel %vm1615_vm12, %v1521_v49, %v1648_v57  ;;  %v1681_v3 = vsel %vm1616_vm11, %v1526_v18, %v1649_v13 }
 0x286   : > { %v3643_v20 = vmul.f32 %v7816_v59, %v3503_v25  ;;  %6477 = vmatprep.mubr.msk.f32.mxu1 %vm1277_vm3, %v3672_v19  ;;  %vm3610_vm0 = vcmp.ge.f32.partialorder %v3503_v25, 0.0  ;;  %vm1618_vm15 = vcmp.ge.f32.partialorder %v1536_v26, 0.0  ;;  %v1651_v46 = vmul.f32 %v7699_v50, %v1536_v26 }
 0x287   : > { %vm3609_vm10 = vcmp.ge.f32.partialorder %v3498_v51, 0.0  ;;  %v3642_v53 = vmul.f32 %v7816_v59, %v3498_v51  ;;  %6370 = vmatmul.mubr.msk.f32.gmra.mrb[74].mxu0 %vm1277_vm3, %v1675_v23  ;;  %v6429_v32 = vpop.f32.mrb[78].mxu1  ;;  %6478 = vmatmul.mubr.msk.f32.gmra.mrb[106].mxu1 %vm1277_vm3, %v3673_v31  ;;  %v1650_v4 = vmul.f32 %v7699_v50, %v1531_v56  ;;  %vm1617_vm4 = vcmp.ge.f32.partialorder %v1531_v56, 0.0 }
 0x288   : > { %v3513_v41 = vadd.f32 %v6429_v32, %v7824_v63  ;;  %6372 = vmatprep.mubr.msk.f32.mxu0 %vm1277_vm3, %v1676_v48  ;;  %v3507_v54 = vpop.f32.mrb[79].mxu1  ;;  %v3675_v61 = vsel %vm3610_vm0, %v3503_v25, %v3643_v20  ;;  %v1546_v9 = vadd.f32 %v7669_v28, %v7796_v6  ;;  %v1652_v10 = vmul.f32 %v7699_v50, %v1541_v33 }
 0x289   : > { %v3508_v14 = vadd.f32 %v7824_v63, %v3507_v54  ;;  %v3674_v58 = vsel %vm3609_vm10, %v3498_v51, %v3642_v53  ;;  %vm1619_vm5 = vcmp.ge.f32.partialorder %v1541_v33, 0.0  ;;  %v1556_v11 = vadd.f32 %v7673_v35, %v7796_v6 }
 0x28a   : > { %v3645_v60 = vmul.f32 %v7816_v59, %v3513_v41  ;;  %6480 = vmatprep.mubr.msk.f32.mxu1 %vm1277_vm3, %v3674_v58  ;;  %vm3612_vm13 = vcmp.ge.f32.partialorder %v3513_v41, 0.0  ;;  %v1551_v12 = vadd.f32 %v7796_v6, %v7675_v36  ;;  %v1683_v25 = vsel %vm1618_vm15, %v1536_v26, %v1651_v46 }
 0x28b   : > { %vm3611_vm14 = vcmp.ge.f32.partialorder %v3508_v14, 0.0  ;;  %v3644_v62 = vmul.f32 %v7816_v59, %v3508_v14  ;;  %6373 = vmatmul.mubr.msk.f32.gmra.mrb[76].mxu0 %vm1277_vm3, %v1677_v52  ;;  %v6432_v16 = vpop.f32.mrb[80].mxu1  ;;  %6481 = vmatmul.mubr.msk.f32.gmra.mrb[108].mxu1 %vm1277_vm3, %v3675_v61  ;;  %v1682_v23 = vsel %vm1617_vm4, %v1531_v56, %v1650_v4  ;;  %vm1620_vm8 = vcmp.ge.f32.partialorder %v1546_v9, 0.0 }
 0x28c   : > { %v3523_v22 = vadd.f32 %v6432_v16, %v7824_v63  ;;  %6375 = vmatprep.mubr.msk.f32.mxu0 %vm1277_vm3, %v1678_v55  ;;  %v3517_v1 = vpop.f32.mrb[81].mxu1  ;;  %v3677_v34 = vsel %vm3612_vm13, %v3513_v41, %v3645_v60  ;;  %v1653_v36 = vmul.f32 %v7699_v50, %v1546_v9  ;;  %v1684_v19 = vsel %vm1619_vm5, %v1541_v33, %v1652_v10 }
 0x28d   : > { %v3518_v17 = vadd.f32 %v7824_v63, %v3517_v1  ;;  %v3676_v15 = vsel %vm3611_vm14, %v3508_v14, %v3644_v62  ;;  %vm1622_vm9 = vcmp.ge.f32.partialorder %v1556_v11, 0.0  ;;  %v1655_v20 = vmul.f32 %v7699_v50, %v1556_v11 }
 0x28e   : > { %v3647_v0 = vmul.f32 %v7816_v59, %v3523_v22  ;;  %6483 = vmatprep.mubr.msk.f32.mxu1 %vm1277_vm3, %v3676_v15  ;;  %vm3614_vm1 = vcmp.ge.f32.partialorder %v3523_v22, 0.0  ;;  %vm1621_vm0 = vcmp.ge.f32.partialorder %v1551_v12, 0.0  ;;  %v1654_v52 = vmul.f32 %v7699_v50, %v1551_v12 }
 0x28f   : > { %vm3613_vm2 = vcmp.ge.f32.partialorder %v3518_v17, 0.0  ;;  %v3646_v21 = vmul.f32 %v7816_v59, %v3518_v17  ;;  %6376 = vmatmul.mubr.msk.f32.gmra.mrb[78].mxu0 %vm1277_vm3, %v1679_v2  ;;  %v6435_v8 = vpop.f32.mrb[82].mxu1  ;;  %6484 = vmatmul.mubr.msk.f32.gmra.mrb[110].mxu1 %vm1277_vm3, %v3677_v34  ;;  %v1561_v27 = vadd.f32 %v7796_v6, %v7679_v38  ;;  %v1566_v55 = vadd.f32 %v7677_v37, %v7796_v6 }
 0x290   : > { %v3533_v24 = vadd.f32 %v6435_v8, %v7824_v63  ;;  %6378 = vmatprep.mubr.msk.f32.mxu0 %vm1277_vm3, %v1680_v29  ;;  %v3527_v30 = vpop.f32.mrb[83].mxu1  ;;  %v3679_v28 = vsel %vm3614_vm1, %v3523_v22, %v3647_v0  ;;  %v1571_v38 = vadd.f32 %v7796_v6, %v7683_v40  ;;  %v1685_v26 = vsel %vm1620_vm8, %v1546_v9, %v1653_v36 }
 0x291   : > { %v3528_v5 = vadd.f32 %v7824_v63, %v3527_v30  ;;  %v3678_v7 = vsel %vm3613_vm2, %v3518_v17, %v3646_v21  ;;  %v1686_v37 = vsel %vm1621_vm0, %v1551_v12, %v1654_v52  ;;  %v1687_v56 = vsel %vm1622_vm9, %v1556_v11, %v1655_v20 }
 0x292   : > { %v3649_v18 = vmul.f32 %v7816_v59, %v3533_v24  ;;  %6486 = vmatprep.mubr.msk.f32.mxu1 %vm1277_vm3, %v3678_v7  ;;  %vm3616_vm6 = vcmp.ge.f32.partialorder %v3533_v24, 0.0  ;;  %v1656_v62 = vmul.f32 %v7699_v50, %v1561_v27  ;;  %v1657_v33 = vmul.f32 %v7699_v50, %v1566_v55 }
 0x293   : > { %vm3615_vm7 = vcmp.ge.f32.partialorder %v3528_v5, 0.0  ;;  %v3648_v47 = vmul.f32 %v7816_v59, %v3528_v5  ;;  %6379 = vmatmul.mubr.msk.f32.gmra.mrb[80].mxu0 %vm1277_vm3, %v1681_v3  ;;  %v6438_v35 = vpop.f32.mrb[84].mxu1  ;;  %6487 = vmatmul.mubr.msk.f32.gmra.mrb[112].mxu1 %vm1277_vm3, %v3679_v28  ;;  %vm1623_vm14 = vcmp.ge.f32.partialorder %v1561_v27, 0.0  ;;  %v1576_v22 = vadd.f32 %v7681_v39, %v7796_v6 }
 0x294   : > { %v3543_v49 = vadd.f32 %v6438_v35, %v7824_v63  ;;  %6381 = vmatprep.mubr.msk.f32.mxu0 %vm1277_vm3, %v1682_v23  ;;  %v3537_v51 = vpop.f32.mrb[85].mxu1  ;;  %v3681_v32 = vsel %vm3616_vm6, %v3533_v24, %v3649_v18  ;;  %vm1624_vm15 = vcmp.ge.f32.partialorder %v1566_v55, 0.0  ;;  %v1658_v17 = vmul.f32 %v7699_v50, %v1571_v38 }
 0x295   : > { %v3538_v31 = vadd.f32 %v7824_v63, %v3537_v51  ;;  %v3680_v48 = vsel %vm3615_vm7, %v3528_v5, %v3648_v47  ;;  %vm1625_vm1 = vcmp.ge.f32.partialorder %v1571_v38, 0.0  ;;  %v1581_v3 = vadd.f32 %v7796_v6, %v7687_v43 }
 0x296   : > { %v3651_v53 = vmul.f32 %v7816_v59, %v3543_v49  ;;  %6489 = vmatprep.mubr.msk.f32.mxu1 %vm1277_vm3, %v3680_v48  ;;  %vm3618_vm10 = vcmp.ge.f32.partialorder %v3543_v49, 0.0  ;;  %v1688_v4 = vsel %vm1623_vm14, %v1561_v27, %v1656_v62  ;;  %vm1626_vm5 = vcmp.ge.f32.partialorder %v1576_v22, 0.0 }
 0x297   : > { %vm3617_vm11 = vcmp.ge.f32.partialorder %v3538_v31, 0.0  ;;  %v3650_v41 = vmul.f32 %v7816_v59, %v3538_v31  ;;  %6382 = vmatmul.mubr.msk.f32.gmra.mrb[82].mxu0 %vm1277_vm3, %v1683_v25  ;;  %v6441_v54 = vpop.f32.mrb[86].mxu1  ;;  %6490 = vmatmul.mubr.msk.f32.gmra.mrb[114].mxu1 %vm1277_vm3, %v3681_v32  ;;  %v1659_v43 = vmul.f32 %v7699_v50, %v1576_v22  ;;  %v1689_v9 = vsel %vm1624_vm15, %v1566_v55, %v1657_v33 }
 0x298   : > { %v3553_v13 = vadd.f32 %v6441_v54, %v7824_v63  ;;  %6384 = vmatprep.mubr.msk.f32.mxu0 %vm1277_vm3, %v1684_v19  ;;  %v3547_v57 = vpop.f32.mrb[87].mxu1  ;;  %v3683_v61 = vsel %vm3618_vm10, %v3543_v49, %v3651_v53  ;;  %v1586_v10 = vadd.f32 %v7685_v42, %v7796_v6  ;;  %v1690_v11 = vsel %vm1625_vm1, %v1571_v38, %v1658_v17 }
 0x299   : > { %v3548_v14 = vadd.f32 %v7824_v63, %v3547_v57  ;;  %v3682_v58 = vsel %vm3617_vm11, %v3538_v31, %v3650_v41  ;;  %vm1627_vm6 = vcmp.ge.f32.partialorder %v1581_v3, 0.0  ;;  %v1660_v5 = vmul.f32 %v7699_v50, %v1581_v3 }
 0x29a   : > { %v3653_v60 = vmul.f32 %v7816_v59, %v3553_v13  ;;  %6492 = vmatprep.mubr.msk.f32.mxu1 %vm1277_vm3, %v3682_v58  ;;  %vm3620_vm12 = vcmp.ge.f32.partialorder %v3553_v13, 0.0  ;;  %v1591_v18 = vadd.f32 %v7796_v6, %v7691_v45  ;;  %v1691_v35 = vsel %vm1626_vm5, %v1576_v22, %v1659_v43  ;;  %v4617_v58 = vld [vmem:[%s8582_s20 + $0x8] sm:$0xff] }
 0x29b   : > { %vm3619_vm13 = vcmp.ge.f32.partialorder %v3548_v14, 0.0  ;;  %v3652_v40 = vmul.f32 %v7816_v59, %v3548_v14  ;;  %6385 = vmatmul.mubr.msk.f32.gmra.mrb[84].mxu0 %vm1277_vm3, %v1685_v26  ;;  %v6444_v16 = vpop.f32.mrb[88].mxu1  ;;  %6493 = vmatmul.mubr.msk.f32.gmra.mrb[116].mxu1 %vm1277_vm3, %v3683_v61  ;;  %vm1628_vm9 = vcmp.ge.f32.partialorder %v1586_v10, 0.0  ;;  %v1661_v23 = vmul.f32 %v7699_v50, %v1586_v10  ;;  %v4618_v26 = vld [vmem:[%s8582_s20 + $0x10] sm:$0xff]  ;;  %v4619_v61 = vld [vmem:[%s8582_s20 + $0x18] sm:$0xff] }
 0x29c   : > { %v3563_v1 = vadd.f32 %v6444_v16, %v7824_v63  ;;  %6387 = vmatprep.mubr.msk.f32.mxu0 %vm1277_vm3, %v1686_v37  ;;  %v3557_v2 = vpop.f32.mrb[89].mxu1  ;;  %v3685_v39 = vsel %vm3620_vm12, %v3553_v13, %v3653_v60  ;;  %v1596_v49 = vadd.f32 %v7689_v44, %v7796_v6  ;;  %v1692_v20 = vsel %vm1627_vm6, %v1581_v3, %v1660_v5 }
 0x29d   : > { %v3558_v15 = vadd.f32 %v7824_v63, %v3557_v2  ;;  %v3684_v29 = vsel %vm3619_vm13, %v3548_v14, %v3652_v40  ;;  %v1662_v31 = vmul.f32 %v7699_v50, %v1591_v18  ;;  %vm1629_vm11 = vcmp.ge.f32.partialorder %v1591_v18, 0.0 }
 0x29e   : > { %v3655_v46 = vmul.f32 %v7816_v59, %v3563_v1  ;;  %6495 = vmatprep.mubr.msk.f32.mxu1 %vm1277_vm3, %v3684_v29  ;;  %vm3622_vm2 = vcmp.ge.f32.partialorder %v3563_v1, 0.0  ;;  %v1693_v27 = vsel %vm1628_vm9, %v1586_v10, %v1661_v23  ;;  %vm1630_vm12 = vcmp.ge.f32.partialorder %v1596_v49, 0.0 }
 0x29f   : > { %vm3621_vm4 = vcmp.ge.f32.partialorder %v3558_v15, 0.0  ;;  %v3654_v0 = vmul.f32 %v7816_v59, %v3558_v15  ;;  %6388 = vmatmul.mubr.msk.f32.gmra.mrb[86].mxu0 %vm1277_vm3, %v1687_v56  ;;  %v6447_v34 = vpop.f32.mrb[90].mxu1  ;;  %6496 = vmatmul.mubr.msk.f32.gmra.mrb[118].mxu1 %vm1277_vm3, %v3685_v39  ;;  %v1663_v41 = vmul.f32 %v7699_v50, %v1596_v49  ;;  %v6686_v37 = vpack.c.bf16 %v4619_v61, %v4618_v26  ;;  %v8118_v56 = vld [vmem:[%s8577_s15] ss:$0 sm:$0xff] }
 0x2a0   : > { %v3573_v21 = vadd.f32 %v6447_v34, %v7824_v63  ;;  %6390 = vmatprep.mubr.msk.f32.mxu0 %vm1277_vm3, %v1688_v4  ;;  %v3567_v8 = vpop.f32.mrb[91].mxu1  ;;  %v3687_v12 = vsel %vm3622_vm2, %v3563_v1, %v3655_v46 }
 0x2a1   : > { %v3568_v24 = vadd.f32 %v7824_v63, %v3567_v8  ;;  %v3686_v30 = vsel %vm3621_vm4, %v3558_v15, %v3654_v0  ;;  %v1695_v38 = vsel %vm1630_vm12, %v1596_v49, %v1663_v41 }
 0x2a2   : > { %v3657_v7 = vmul.f32 %v7816_v59, %v3573_v21  ;;  %6498 = vmatprep.mubr.msk.f32.mxu1 %vm1277_vm3, %v3686_v30  ;;  %vm3624_vm7 = vcmp.ge.f32.partialorder %v3573_v21, 0.0 }
 0x2a3   : > { %vm3623_vm8 = vcmp.ge.f32.partialorder %v3568_v24, 0.0  ;;  %v3656_v42 = vmul.f32 %v7816_v59, %v3568_v24  ;;  %6391 = vmatmul.mubr.msk.f32.gmra.mrb[88].mxu0 %vm1277_vm3, %v1689_v9  ;;  %v6450_v28 = vpop.f32.mrb[92].mxu1  ;;  %6499 = vmatmul.mubr.msk.f32.gmra.mrb[120].mxu1 %vm1277_vm3, %v3687_v12 }
 0x2a4   : > { %v3583_v25 = vadd.f32 %v6450_v28, %v7824_v63  ;;  %6393 = vmatprep.mubr.msk.f32.mxu0 %vm1277_vm3, %v1690_v11  ;;  %v3577_v47 = vpop.f32.mrb[93].mxu1  ;;  %v3689_v19 = vsel %vm3624_vm7, %v3573_v21, %v3657_v7 }
 0x2a5   : > { %v3578_v45 = vadd.f32 %v7824_v63, %v3577_v47  ;;  %v3688_v36 = vsel %vm3623_vm8, %v3568_v24, %v3656_v42 }
 0x2a6   : > { %v3659_v51 = vmul.f32 %v7816_v59, %v3583_v25  ;;  %6501 = vmatprep.mubr.msk.f32.mxu1 %vm1277_vm3, %v3688_v36  ;;  %vm3626_vm0 = vcmp.ge.f32.partialorder %v3583_v25, 0.0 }
 0x2a7   : > { %vm3625_vm10 = vcmp.ge.f32.partialorder %v3578_v45, 0.0  ;;  %v3658_v48 = vmul.f32 %v7816_v59, %v3578_v45  ;;  %6394 = vmatmul.mubr.msk.f32.gmra.mrb[90].mxu0 %vm1277_vm3, %v1691_v35  ;;  %v6453_v52 = vpop.f32.mrb[94].mxu1  ;;  %6502 = vmatmul.mubr.msk.f32.gmra.mrb[122].mxu1 %vm1277_vm3, %v3689_v19 }
 0x2a8   : > { %v3593_v44 = vadd.f32 %v6453_v52, %v7824_v63  ;;  %6396 = vmatprep.mubr.msk.f32.mxu0 %vm1277_vm3, %v1692_v20  ;;  %v3587_v6 = vpop.f32.mrb[95].mxu1  ;;  %v3691_v55 = vsel %vm3626_vm0, %v3583_v25, %v3659_v51 }
 0x2a9   : > { %v3588_v53 = vadd.f32 %v7824_v63, %v3587_v6  ;;  %v3690_v32 = vsel %vm3625_vm10, %v3578_v45, %v3658_v48  ;;  %v1694_v63 = vsel %vm1629_vm11, %v1591_v18, %v1662_v31 }
 0x2aa   : > { %v3661_v54 = vmul.f32 %v7816_v59, %v3593_v44  ;;  %6504 = vmatprep.mubr.msk.f32.mxu1 %vm1277_vm3, %v3690_v32  ;;  %vm3628_vm13 = vcmp.ge.f32.partialorder %v3593_v44, 0.0 }
 0x2ab   : > { %vm3627_vm14 = vcmp.ge.f32.partialorder %v3588_v53, 0.0  ;;  %v3660_v13 = vmul.f32 %v7816_v59, %v3588_v53  ;;  %6397 = vmatmul.mubr.msk.f32.gmra.mrb[92].mxu0 %vm1277_vm3, %v1693_v27  ;;  %6505 = vmatmul.mubr.msk.f32.gmra.mrb[124].mxu1 %vm1277_vm3, %v3691_v55  ;;  %v4616_v59 = vld [vmem:[%s8582_s20] sm:$0xff] }
 0x2ac   : > { %6399 = vmatprep.mubr.msk.f32.mxu0 %vm1277_vm3, %v1694_v63  ;;  %v3693_v14 = vsel %vm3628_vm13, %v3593_v44, %v3661_v54  ;;  %v6682_v60 = vpack.c.bf16 %v4617_v58, %v4616_v59 }
 0x2ad   : > { %v3692_v57 = vsel %vm3627_vm14, %v3588_v53, %v3660_v13 }
 0x2ae   : > { %6507 = vmatprep.mubr.msk.f32.mxu1 %vm1277_vm3, %v3692_v57  ;;  %6683 = vmatprep.subr.bf16.mxu1 %v6682_v60 }
 0x2af   : > { %6400 = vmatmul.mubr.msk.f32.gmra.mrb[94].mxu0 %vm1277_vm3, %v1695_v38  ;;  %6508 = vmatmul.mubr.msk.f32.gmra.mrb[126].mxu1 %vm1277_vm3, %v3693_v14 }
 0x2b0   : > { %6685 = vmatpush3.bf16.msra.mxu1 %v6682_v60 }
 0x2b1   : > { %6687 = vmatprep.subr.bf16.mxu1 %v6686_v37 }
 0x2b4   : > { %6689 = vmatpush3.bf16.msra.mxu1 %v6686_v37 }
 0x346   : > { %v6464_v62 = vpop.f32.mrb[96].mxu1 }
 0x347   : > { %v3873_v40 = vadd.f32 %v6464_v62, %v8118_v56  ;;  %v3867_v16 = vpop.f32.mrb[97].mxu1 }
 0x348   : > { %v3868_v33 = vadd.f32 %v8118_v56, %v3867_v16 }
 0x349   : > { %v4059_v22 = vmul.f32 %v3873_v40, %v7699_v50  ;;  %vm4027_vm15 = vcmp.ge.f32.partialorder %v3873_v40, 0.0 }
 0x34a   : > { %vm4026_vm1 = vcmp.ge.f32.partialorder %v3868_v33, 0.0  ;;  %v4058_v1 = vmul.f32 %v3868_v33, %v7699_v50  ;;  %v6467_v2 = vpop.f32.mrb[98].mxu1 }
 0x34b   : > { %v3883_v17 = vadd.f32 %v6467_v2, %v8118_v56  ;;  %v3877_v15 = vpop.f32.mrb[99].mxu1  ;;  %v4091_v46 = vsel %vm4027_vm15, %v3873_v40, %v4059_v22 }
 0x34c   : > { %v3878_v29 = vadd.f32 %v8118_v56, %v3877_v15  ;;  %v4090_v3 = vsel %vm4026_vm1, %v3868_v33, %v4058_v1 }
 0x34d   : > { %v4061_v39 = vmul.f32 %v3883_v17, %v7699_v50  ;;  %6518 = vmatprep.mubr.msk.f32.mxu0 %vm1277_vm3, %v4090_v3  ;;  %vm4029_vm2 = vcmp.ge.f32.partialorder %v3883_v17, 0.0 }
 0x34e   : > { %vm4028_vm4 = vcmp.ge.f32.partialorder %v3878_v29, 0.0  ;;  %v4060_v0 = vmul.f32 %v3878_v29, %v7699_v50  ;;  %v6470_v34 = vpop.f32.mrb[100].mxu1  ;;  %6519 = vmatmul.mubr.msk.f32.vlgmr.msra.gmra.mrb[64].mxu0 %vm1277_vm3, %v4091_v46 }
 0x34f   : > { %v3893_v4 = vadd.f32 %v6470_v34, %v8118_v56  ;;  %v3887_v43 = vpop.f32.mrb[101].mxu1  ;;  %v4093_v10 = vsel %vm4029_vm2, %v3883_v17, %v4061_v39 }
 0x350   : > { %v3888_v21 = vadd.f32 %v8118_v56, %v3887_v43  ;;  %v4092_v8 = vsel %vm4028_vm4, %v3878_v29, %v4060_v0 }
 0x351   : > { %v4063_v9 = vmul.f32 %v3893_v4, %v7699_v50  ;;  %6521 = vmatprep.mubr.msk.f32.mxu0 %vm1277_vm3, %v4092_v8  ;;  %vm4031_vm5 = vcmp.ge.f32.partialorder %v3893_v4, 0.0 }
 0x352   : > { %vm4030_vm6 = vcmp.ge.f32.partialorder %v3888_v21, 0.0  ;;  %v4062_v24 = vmul.f32 %v3888_v21, %v7699_v50  ;;  %v6473_v30 = vpop.f32.mrb[102].mxu1  ;;  %6522 = vmatmul.mubr.msk.f32.gmra.mrb[66].mxu0 %vm1277_vm3, %v4093_v10 }
 0x353   : > { %v3903_v11 = vadd.f32 %v6473_v30, %v8118_v56  ;;  %v3897_v5 = vpop.f32.mrb[103].mxu1  ;;  %v4095_v42 = vsel %vm4031_vm5, %v3893_v4, %v4063_v9 }
 0x354   : > { %v3898_v7 = vadd.f32 %v8118_v56, %v3897_v5  ;;  %v4094_v12 = vsel %vm4030_vm6, %v3888_v21, %v4062_v24 }
 0x355   : > { %v4065_v18 = vmul.f32 %v3903_v11, %v7699_v50  ;;  %6524 = vmatprep.mubr.msk.f32.mxu0 %vm1277_vm3, %v4094_v12  ;;  %vm4033_vm7 = vcmp.ge.f32.partialorder %v3903_v11, 0.0 }
 0x356   : > { %vm4032_vm8 = vcmp.ge.f32.partialorder %v3898_v7, 0.0  ;;  %v4064_v28 = vmul.f32 %v3898_v7, %v7699_v50  ;;  %v6476_v25 = vpop.f32.mrb[104].mxu1  ;;  %6525 = vmatmul.mubr.msk.f32.gmra.mrb[68].mxu0 %vm1277_vm3, %v4095_v42 }
 0x357   : > { %v3913_v47 = vadd.f32 %v6476_v25, %v8118_v56  ;;  %v3907_v35 = vpop.f32.mrb[105].mxu1  ;;  %v4097_v49 = vsel %vm4033_vm7, %v3903_v11, %v4065_v18 }
 0x358   : > { %v3908_v23 = vadd.f32 %v8118_v56, %v3907_v35  ;;  %v4096_v45 = vsel %vm4032_vm8, %v3898_v7, %v4064_v28 }
 0x359   : > { %v4067_v36 = vmul.f32 %v3913_v47, %v7699_v50  ;;  %6527 = vmatprep.mubr.msk.f32.mxu0 %vm1277_vm3, %v4096_v45  ;;  %vm4035_vm9 = vcmp.ge.f32.partialorder %v3913_v47, 0.0 }
 0x35a   : > { %vm4034_vm0 = vcmp.ge.f32.partialorder %v3908_v23, 0.0  ;;  %v4066_v51 = vmul.f32 %v3908_v23, %v7699_v50  ;;  %v6479_v19 = vpop.f32.mrb[106].mxu1  ;;  %6528 = vmatmul.mubr.msk.f32.gmra.mrb[70].mxu0 %vm1277_vm3, %v4097_v49 }
 0x35b   : > { %v3923_v20 = vadd.f32 %v6479_v19, %v8118_v56  ;;  %v3917_v31 = vpop.f32.mrb[107].mxu1  ;;  %v4099_v6 = vsel %vm4035_vm9, %v3913_v47, %v4067_v36 }
 0x35c   : > { %v3918_v48 = vadd.f32 %v8118_v56, %v3917_v31  ;;  %v4098_v52 = vsel %vm4034_vm0, %v3908_v23, %v4066_v51 }
 0x35d   : > { %v4069_v44 = vmul.f32 %v3923_v20, %v7699_v50  ;;  %6530 = vmatprep.mubr.msk.f32.mxu0 %vm1277_vm3, %v4098_v52  ;;  %vm4037_vm10 = vcmp.ge.f32.partialorder %v3923_v20, 0.0 }
 0x35e   : > { %vm4036_vm11 = vcmp.ge.f32.partialorder %v3918_v48, 0.0  ;;  %v4068_v53 = vmul.f32 %v3918_v48, %v7699_v50  ;;  %v6482_v32 = vpop.f32.mrb[108].mxu1  ;;  %6531 = vmatmul.mubr.msk.f32.gmra.mrb[72].mxu0 %vm1277_vm3, %v4099_v6 }
 0x35f   : > { %v3933_v27 = vadd.f32 %v6482_v32, %v8118_v56  ;;  %v3927_v41 = vpop.f32.mrb[109].mxu1  ;;  %v4101_v63 = vsel %vm4037_vm10, %v3923_v20, %v4069_v44 }
 0x360   : > { %v3928_v54 = vadd.f32 %v8118_v56, %v3927_v41  ;;  %v4100_v55 = vsel %vm4036_vm11, %v3918_v48, %v4068_v53 }
 0x361   : > { %v4071_v13 = vmul.f32 %v3933_v27, %v7699_v50  ;;  %6533 = vmatprep.mubr.msk.f32.mxu0 %vm1277_vm3, %v4100_v55  ;;  %vm4039_vm12 = vcmp.ge.f32.partialorder %v3933_v27, 0.0 }
 0x362   : > { %vm4038_vm13 = vcmp.ge.f32.partialorder %v3928_v54, 0.0  ;;  %v4070_v57 = vmul.f32 %v3928_v54, %v7699_v50  ;;  %v6485_v38 = vpop.f32.mrb[110].mxu1  ;;  %6534 = vmatmul.mubr.msk.f32.gmra.mrb[74].mxu0 %vm1277_vm3, %v4101_v63 }
 0x363   : > { %v3943_v14 = vadd.f32 %v6485_v38, %v8118_v56  ;;  %v3937_v59 = vpop.f32.mrb[111].mxu1  ;;  %v4103_v61 = vsel %vm4039_vm12, %v3933_v27, %v4071_v13 }
 0x364   : > { %v3938_v58 = vadd.f32 %v8118_v56, %v3937_v59  ;;  %v4102_v26 = vsel %vm4038_vm13, %v3928_v54, %v4070_v57 }
 0x365   : > { %v4073_v60 = vmul.f32 %v3943_v14, %v7699_v50  ;;  %6536 = vmatprep.mubr.msk.f32.mxu0 %vm1277_vm3, %v4102_v26  ;;  %vm4041_vm14 = vcmp.ge.f32.partialorder %v3943_v14, 0.0 }
 0x366   : > { %vm4040_vm15 = vcmp.ge.f32.partialorder %v3938_v58, 0.0  ;;  %v4072_v37 = vmul.f32 %v3938_v58, %v7699_v50  ;;  %v6488_v62 = vpop.f32.mrb[112].mxu1  ;;  %6537 = vmatmul.mubr.msk.f32.gmra.mrb[76].mxu0 %vm1277_vm3, %v4103_v61 }
 0x367   : > { %v3953_v40 = vadd.f32 %v6488_v62, %v8118_v56  ;;  %v3947_v16 = vpop.f32.mrb[113].mxu1  ;;  %v4105_v2 = vsel %vm4041_vm14, %v3943_v14, %v4073_v60 }
 0x368   : > { %v3948_v33 = vadd.f32 %v8118_v56, %v3947_v16  ;;  %v4104_v22 = vsel %vm4040_vm15, %v3938_v58, %v4072_v37 }
 0x369   : > { %v4075_v1 = vmul.f32 %v3953_v40, %v7699_v50  ;;  %6539 = vmatprep.mubr.msk.f32.mxu0 %vm1277_vm3, %v4104_v22  ;;  %vm4043_vm1 = vcmp.ge.f32.partialorder %v3953_v40, 0.0 }
 0x36a   : > { %vm4042_vm2 = vcmp.ge.f32.partialorder %v3948_v33, 0.0  ;;  %v4074_v17 = vmul.f32 %v3948_v33, %v7699_v50  ;;  %v6491_v15 = vpop.f32.mrb[114].mxu1  ;;  %6540 = vmatmul.mubr.msk.f32.gmra.mrb[78].mxu0 %vm1277_vm3, %v4105_v2 }
 0x36b   : > { %v3963_v29 = vadd.f32 %v6491_v15, %v8118_v56  ;;  %v3957_v3 = vpop.f32.mrb[115].mxu1  ;;  %v4107_v34 = vsel %vm4043_vm1, %v3953_v40, %v4075_v1  ;;  %v8221_v1 = vstv %s5369_s8 }
 0x36c   : > { %v3958_v46 = vadd.f32 %v8118_v56, %v3957_v3  ;;  %v4106_v39 = vsel %vm4042_vm2, %v3948_v33, %v4074_v17 }
 0x36d   : > { %v4077_v0 = vmul.f32 %v3963_v29, %v7699_v50  ;;  %6542 = vmatprep.mubr.msk.f32.mxu0 %vm1277_vm3, %v4106_v39  ;;  %vm4045_vm4 = vcmp.ge.f32.partialorder %v3963_v29, 0.0 }
 0x36e   : > { %vm4044_vm5 = vcmp.ge.f32.partialorder %v3958_v46, 0.0  ;;  %v4076_v4 = vmul.f32 %v3958_v46, %v7699_v50  ;;  %v6494_v43 = vpop.f32.mrb[116].mxu1  ;;  %6543 = vmatmul.mubr.msk.f32.gmra.mrb[80].mxu0 %vm1277_vm3, %v4107_v34 }
 0x36f   : > { %v3973_v21 = vadd.f32 %v6494_v43, %v8118_v56  ;;  %v3967_v8 = vpop.f32.mrb[117].mxu1  ;;  %v4109_v30 = vsel %vm4045_vm4, %v3963_v29, %v4077_v0 }
 0x370   : > { %v3968_v9 = vadd.f32 %v8118_v56, %v3967_v8  ;;  %v4108_v10 = vsel %vm4044_vm5, %v3958_v46, %v4076_v4 }
 0x371   : > { %v4079_v24 = vmul.f32 %v3973_v21, %v7699_v50  ;;  %6545 = vmatprep.mubr.msk.f32.mxu0 %vm1277_vm3, %v4108_v10  ;;  %vm4047_vm6 = vcmp.ge.f32.partialorder %v3973_v21, 0.0 }
 0x372   : > { %vm4046_vm7 = vcmp.ge.f32.partialorder %v3968_v9, 0.0  ;;  %v4078_v11 = vmul.f32 %v3968_v9, %v7699_v50  ;;  %v6497_v5 = vpop.f32.mrb[118].mxu1  ;;  %6546 = vmatmul.mubr.msk.f32.gmra.mrb[82].mxu0 %vm1277_vm3, %v4109_v30 }
 0x373   : > { %v3983_v7 = vadd.f32 %v6497_v5, %v8118_v56  ;;  %v3977_v12 = vpop.f32.mrb[119].mxu1  ;;  %v4111_v25 = vsel %vm4047_vm6, %v3973_v21, %v4079_v24 }
 0x374   : > { %v3978_v18 = vadd.f32 %v8118_v56, %v3977_v12  ;;  %v4110_v42 = vsel %vm4046_vm7, %v3968_v9, %v4078_v11 }
 0x375   : > { %v4081_v28 = vmul.f32 %v3983_v7, %v7699_v50  ;;  %6548 = vmatprep.mubr.msk.f32.mxu0 %vm1277_vm3, %v4110_v42  ;;  %vm4049_vm8 = vcmp.ge.f32.partialorder %v3983_v7, 0.0 }
 0x376   : > { %vm4048_vm9 = vcmp.ge.f32.partialorder %v3978_v18, 0.0  ;;  %v4080_v47 = vmul.f32 %v3978_v18, %v7699_v50  ;;  %v6500_v35 = vpop.f32.mrb[120].mxu1  ;;  %6549 = vmatmul.mubr.msk.f32.gmra.mrb[84].mxu0 %vm1277_vm3, %v4111_v25 }
 0x377   : > { %v3993_v23 = vadd.f32 %v6500_v35, %v8118_v56  ;;  %v3987_v45 = vpop.f32.mrb[121].mxu1  ;;  %v4113_v19 = vsel %vm4049_vm8, %v3983_v7, %v4081_v28 }
 0x378   : > { %v3988_v36 = vadd.f32 %v8118_v56, %v3987_v45  ;;  %v4112_v49 = vsel %vm4048_vm9, %v3978_v18, %v4080_v47 }
 0x379   : > { %v4083_v51 = vmul.f32 %v3993_v23, %v7699_v50  ;;  %6551 = vmatprep.mubr.msk.f32.mxu0 %vm1277_vm3, %v4112_v49  ;;  %vm4051_vm0 = vcmp.ge.f32.partialorder %v3993_v23, 0.0 }
 0x37a   : > { %vm4050_vm10 = vcmp.ge.f32.partialorder %v3988_v36, 0.0  ;;  %v4082_v20 = vmul.f32 %v3988_v36, %v7699_v50  ;;  %v6503_v31 = vpop.f32.mrb[122].mxu1  ;;  %6552 = vmatmul.mubr.msk.f32.gmra.mrb[86].mxu0 %vm1277_vm3, %v4113_v19 }
 0x37b   : > { %v4003_v48 = vadd.f32 %v6503_v31, %v8118_v56  ;;  %v3997_v52 = vpop.f32.mrb[123].mxu1  ;;  %v4115_v32 = vsel %vm4051_vm0, %v3993_v23, %v4083_v51 }
 0x37c   : > { %v3998_v44 = vadd.f32 %v8118_v56, %v3997_v52  ;;  %v4114_v6 = vsel %vm4050_vm10, %v3988_v36, %v4082_v20 }
 0x37d   : > { %v4085_v53 = vmul.f32 %v4003_v48, %v7699_v50  ;;  %6554 = vmatprep.mubr.msk.f32.mxu0 %vm1277_vm3, %v4114_v6  ;;  %vm4053_vm11 = vcmp.ge.f32.partialorder %v4003_v48, 0.0 }
 0x37e   : > { %vm4052_vm12 = vcmp.ge.f32.partialorder %v3998_v44, 0.0  ;;  %v4084_v27 = vmul.f32 %v3998_v44, %v7699_v50  ;;  %v6506_v41 = vpop.f32.mrb[124].mxu1  ;;  %6555 = vmatmul.mubr.msk.f32.gmra.mrb[88].mxu0 %vm1277_vm3, %v4115_v32 }
 0x37f   : > { %v4013_v54 = vadd.f32 %v6506_v41, %v8118_v56  ;;  %v4007_v55 = vpop.f32.mrb[125].mxu1  ;;  %v4117_v38 = vsel %vm4053_vm11, %v4003_v48, %v4085_v53 }
 0x380   : > { %v4008_v13 = vadd.f32 %v8118_v56, %v4007_v55  ;;  %v4116_v63 = vsel %vm4052_vm12, %v3998_v44, %v4084_v27 }
 0x381   : > { %v4087_v57 = vmul.f32 %v4013_v54, %v7699_v50  ;;  %6557 = vmatprep.mubr.msk.f32.mxu0 %vm1277_vm3, %v4116_v63  ;;  %vm4055_vm13 = vcmp.ge.f32.partialorder %v4013_v54, 0.0 }
 0x382   : > { %vm4054_vm14 = vcmp.ge.f32.partialorder %v4008_v13, 0.0  ;;  %v4086_v14 = vmul.f32 %v4008_v13, %v7699_v50  ;;  %v6509_v59 = vpop.f32.mrb[126].mxu1  ;;  %6558 = vmatmul.mubr.msk.f32.gmra.mrb[90].mxu0 %vm1277_vm3, %v4117_v38 }
 0x383   : > { %v4023_v58 = vadd.f32 %v6509_v59, %v8118_v56  ;;  %v4017_v26 = vpop.f32.mrb[127].mxu1  ;;  %v4119_v62 = vsel %vm4055_vm13, %v4013_v54, %v4087_v57 }
 0x384   : > { %v4018_v60 = vadd.f32 %v8118_v56, %v4017_v26  ;;  %v4118_v61 = vsel %vm4054_vm14, %v4008_v13, %v4086_v14  ;;  %v8219_v56 = vld [vmem:[%s8581_s19] ss:$0 sm:$0xff] }
 0x385   : > { %v4089_v37 = vmul.f32 %v4023_v58, %v7699_v50  ;;  %6560 = vmatprep.mubr.msk.f32.mxu0 %vm1277_vm3, %v4118_v61  ;;  %vm4057_vm15 = vcmp.ge.f32.partialorder %v4023_v58, 0.0 }
 0x386   : > { %vm4056_vm1 = vcmp.ge.f32.partialorder %v4018_v60, 0.0  ;;  %v4088_v40 = vmul.f32 %v4018_v60, %v7699_v50  ;;  %6561 = vmatmul.mubr.msk.f32.gmra.mrb[92].mxu0 %vm1277_vm3, %v4119_v62 }
 0x387   : > { %v4121_v33 = vsel %vm4057_vm15, %v4023_v58, %v4089_v37 }
 0x388   : > { %v4120_v16 = vsel %vm4056_vm1, %v4018_v60, %v4088_v40 }
 0x389   : > { %6563 = vmatprep.mubr.msk.f32.mxu0 %vm1277_vm3, %v4120_v16 }
 0x38a   : > { %6564 = vmatmul.mubr.msk.f32.gmra.mrb[94].mxu0 %vm1277_vm3, %v4121_v33 }
 0x421   : > { %v6520_v22 = vpop.f32.mrb[64].mxu0 }
 0x422   : > { %v4487_v2 = vadd.f32 %v6520_v22, %v8219_v56  ;;  %v4288_v50 = vpop.f32.mrb[65].mxu0 }
 0x423   : > { %v4486_v17 = vadd.f32 %v8219_v56, %v4288_v50 }
 0x424   : > { %v4552_v15 = vmul.f32 %v8221_v1, %v4487_v2  ;;  %vm4519_vm2 = vcmp.ge.f32.partialorder %v4487_v2, 0.0 }
 0x425   : > { %vm4518_vm4 = vcmp.ge.f32.partialorder %v4486_v17, 0.0  ;;  %v4551_v29 = vmul.f32 %v8221_v1, %v4486_v17  ;;  %v6523_v3 = vpop.f32.mrb[66].mxu0 }
 0x426   : > { %v4489_v46 = vadd.f32 %v6523_v3, %v8219_v56  ;;  %v4298_v39 = vpop.f32.mrb[67].mxu0  ;;  %v4584_v4 = vsel %vm4519_vm2, %v4487_v2, %v4552_v15 }
 0x427   : > { %v4488_v0 = vadd.f32 %v8219_v56, %v4298_v39  ;;  %v4583_v34 = vsel %vm4518_vm4, %v4486_v17, %v4551_v29 }
 0x428   : > { %v4554_v43 = vmul.f32 %v8221_v1, %v4489_v46  ;;  %6574 = vmatprep.mubr.msk.f32.mxu1 %vm1277_vm3, %v4583_v34  ;;  %vm4521_vm5 = vcmp.ge.f32.partialorder %v4489_v46, 0.0 }
 0x429   : > { %vm4520_vm6 = vcmp.ge.f32.partialorder %v4488_v0, 0.0  ;;  %v4553_v21 = vmul.f32 %v8221_v1, %v4488_v0  ;;  %v6526_v8 = vpop.f32.mrb[68].mxu0  ;;  %6575 = vmatmul.mubr.msk.f32.vlgmr.msra.gmra.mrb[128].mxu1 %vm1277_vm3, %v4584_v4 }
 0x42a   : > { %v4491_v9 = vadd.f32 %v6526_v8, %v8219_v56  ;;  %v4308_v10 = vpop.f32.mrb[69].mxu0  ;;  %v4586_v5 = vsel %vm4521_vm5, %v4489_v46, %v4554_v43 }
 0x42b   : > { %v4490_v24 = vadd.f32 %v8219_v56, %v4308_v10  ;;  %v4585_v30 = vsel %vm4520_vm6, %v4488_v0, %v4553_v21 }
 0x42c   : > { %v4556_v11 = vmul.f32 %v8221_v1, %v4491_v9  ;;  %6577 = vmatprep.mubr.msk.f32.mxu1 %vm1277_vm3, %v4585_v30  ;;  %vm4523_vm7 = vcmp.ge.f32.partialorder %v4491_v9, 0.0 }
 0x42d   : > { %vm4522_vm8 = vcmp.ge.f32.partialorder %v4490_v24, 0.0  ;;  %v4555_v7 = vmul.f32 %v8221_v1, %v4490_v24  ;;  %v6529_v12 = vpop.f32.mrb[70].mxu0  ;;  %6578 = vmatmul.mubr.msk.f32.gmra.mrb[130].mxu1 %vm1277_vm3, %v4586_v5 }
 0x42e   : > { %v4493_v18 = vadd.f32 %v6529_v12, %v8219_v56  ;;  %v4318_v42 = vpop.f32.mrb[71].mxu0  ;;  %v4588_v35 = vsel %vm4523_vm7, %v4491_v9, %v4556_v11 }
 0x42f   : > { %v4492_v28 = vadd.f32 %v8219_v56, %v4318_v42  ;;  %v4587_v25 = vsel %vm4522_vm8, %v4490_v24, %v4555_v7 }
 0x430   : > { %v4558_v47 = vmul.f32 %v8221_v1, %v4493_v18  ;;  %6580 = vmatprep.mubr.msk.f32.mxu1 %vm1277_vm3, %v4587_v25  ;;  %vm4525_vm9 = vcmp.ge.f32.partialorder %v4493_v18, 0.0 }
 0x431   : > { %vm4524_vm0 = vcmp.ge.f32.partialorder %v4492_v28, 0.0  ;;  %v4557_v23 = vmul.f32 %v8221_v1, %v4492_v28  ;;  %v6532_v45 = vpop.f32.mrb[72].mxu0  ;;  %6581 = vmatmul.mubr.msk.f32.gmra.mrb[132].mxu1 %vm1277_vm3, %v4588_v35 }
 0x432   : > { %v4495_v36 = vadd.f32 %v6532_v45, %v8219_v56  ;;  %v4328_v49 = vpop.f32.mrb[73].mxu0  ;;  %v4590_v31 = vsel %vm4525_vm9, %v4493_v18, %v4558_v47 }
 0x433   : > { %v4494_v51 = vadd.f32 %v8219_v56, %v4328_v49  ;;  %v4589_v19 = vsel %vm4524_vm0, %v4492_v28, %v4557_v23 }
 0x434   : > { %v4560_v20 = vmul.f32 %v8221_v1, %v4495_v36  ;;  %6583 = vmatprep.mubr.msk.f32.mxu1 %vm1277_vm3, %v4589_v19  ;;  %vm4527_vm10 = vcmp.ge.f32.partialorder %v4495_v36, 0.0 }
 0x435   : > { %vm4526_vm11 = vcmp.ge.f32.partialorder %v4494_v51, 0.0  ;;  %v4559_v48 = vmul.f32 %v8221_v1, %v4494_v51  ;;  %v6535_v52 = vpop.f32.mrb[74].mxu0  ;;  %6584 = vmatmul.mubr.msk.f32.gmra.mrb[134].mxu1 %vm1277_vm3, %v4590_v31 }
 0x436   : > { %v4497_v44 = vadd.f32 %v6535_v52, %v8219_v56  ;;  %v4338_v6 = vpop.f32.mrb[75].mxu0  ;;  %v4592_v41 = vsel %vm4527_vm10, %v4495_v36, %v4560_v20 }
 0x437   : > { %v4496_v53 = vadd.f32 %v8219_v56, %v4338_v6  ;;  %v4591_v32 = vsel %vm4526_vm11, %v4494_v51, %v4559_v48 }
 0x438   : > { %v4562_v27 = vmul.f32 %v8221_v1, %v4497_v44  ;;  %6586 = vmatprep.mubr.msk.f32.mxu1 %vm1277_vm3, %v4591_v32  ;;  %vm4529_vm12 = vcmp.ge.f32.partialorder %v4497_v44, 0.0 }
 0x439   : > { %vm4528_vm13 = vcmp.ge.f32.partialorder %v4496_v53, 0.0  ;;  %v4561_v54 = vmul.f32 %v8221_v1, %v4496_v53  ;;  %v6538_v55 = vpop.f32.mrb[76].mxu0  ;;  %6587 = vmatmul.mubr.msk.f32.gmra.mrb[136].mxu1 %vm1277_vm3, %v4592_v41 }
 0x43a   : > { %v4499_v13 = vadd.f32 %v6538_v55, %v8219_v56  ;;  %v4348_v63 = vpop.f32.mrb[77].mxu0  ;;  %v4594_v59 = vsel %vm4529_vm12, %v4497_v44, %v4562_v27 }
 0x43b   : > { %v4498_v57 = vadd.f32 %v8219_v56, %v4348_v63  ;;  %v4593_v38 = vsel %vm4528_vm13, %v4496_v53, %v4561_v54 }
 0x43c   : > { %v4564_v14 = vmul.f32 %v8221_v1, %v4499_v13  ;;  %6589 = vmatprep.mubr.msk.f32.mxu1 %vm1277_vm3, %v4593_v38  ;;  %vm4531_vm14 = vcmp.ge.f32.partialorder %v4499_v13, 0.0 }
 0x43d   : > { %vm4530_vm15 = vcmp.ge.f32.partialorder %v4498_v57, 0.0  ;;  %v4563_v58 = vmul.f32 %v8221_v1, %v4498_v57  ;;  %v6541_v26 = vpop.f32.mrb[78].mxu0  ;;  %6590 = vmatmul.mubr.msk.f32.gmra.mrb[138].mxu1 %vm1277_vm3, %v4594_v59 }
 0x43e   : > { %v4501_v60 = vadd.f32 %v6541_v26, %v8219_v56  ;;  %v4358_v61 = vpop.f32.mrb[79].mxu0  ;;  %v4596_v16 = vsel %vm4531_vm14, %v4499_v13, %v4564_v14 }
 0x43f   : > { %v4500_v37 = vadd.f32 %v8219_v56, %v4358_v61  ;;  %v4595_v62 = vsel %vm4530_vm15, %v4498_v57, %v4563_v58 }
 0x440   : > { %v4566_v40 = vmul.f32 %v8221_v1, %v4501_v60  ;;  %6592 = vmatprep.mubr.msk.f32.mxu1 %vm1277_vm3, %v4595_v62  ;;  %vm4533_vm1 = vcmp.ge.f32.partialorder %v4501_v60, 0.0 }
 0x441   : > { %vm4532_vm2 = vcmp.ge.f32.partialorder %v4500_v37, 0.0  ;;  %v4565_v33 = vmul.f32 %v8221_v1, %v4500_v37  ;;  %v6544_v22 = vpop.f32.mrb[80].mxu0  ;;  %6593 = vmatmul.mubr.msk.f32.gmra.mrb[140].mxu1 %vm1277_vm3, %v4596_v16 }
 0x442   : > { %v4503_v2 = vadd.f32 %v6544_v22, %v8219_v56  ;;  %v4368_v50 = vpop.f32.mrb[81].mxu0  ;;  %v4598_v3 = vsel %vm4533_vm1, %v4501_v60, %v4566_v40 }
 0x443   : > { %v4502_v17 = vadd.f32 %v8219_v56, %v4368_v50  ;;  %v4597_v15 = vsel %vm4532_vm2, %v4500_v37, %v4565_v33 }
 0x444   : > { %v4568_v29 = vmul.f32 %v8221_v1, %v4503_v2  ;;  %6595 = vmatprep.mubr.msk.f32.mxu1 %vm1277_vm3, %v4597_v15  ;;  %vm4535_vm4 = vcmp.ge.f32.partialorder %v4503_v2, 0.0 }
 0x445   : > { %vm4534_vm5 = vcmp.ge.f32.partialorder %v4502_v17, 0.0  ;;  %v4567_v46 = vmul.f32 %v8221_v1, %v4502_v17  ;;  %v6547_v39 = vpop.f32.mrb[82].mxu0  ;;  %6596 = vmatmul.mubr.msk.f32.gmra.mrb[142].mxu1 %vm1277_vm3, %v4598_v3 }
 0x446   : > { %v4505_v0 = vadd.f32 %v6547_v39, %v8219_v56  ;;  %v4378_v34 = vpop.f32.mrb[83].mxu0  ;;  %v4600_v8 = vsel %vm4535_vm4, %v4503_v2, %v4568_v29 }
 0x447   : > { %v4504_v4 = vadd.f32 %v8219_v56, %v4378_v34  ;;  %v4599_v43 = vsel %vm4534_vm5, %v4502_v17, %v4567_v46  ;;  %vm4947_vm5 = vcmask 64512  }
 0x448   : > { %v4570_v21 = vmul.f32 %v8221_v1, %v4505_v0  ;;  %6598 = vmatprep.mubr.msk.f32.mxu1 %vm1277_vm3, %v4599_v43  ;;  %vm4537_vm6 = vcmp.ge.f32.partialorder %v4505_v0, 0.0 }
 0x449   : > { %vm4536_vm7 = vcmp.ge.f32.partialorder %v4504_v4, 0.0  ;;  %v4569_v9 = vmul.f32 %v8221_v1, %v4504_v4  ;;  %v6550_v10 = vpop.f32.mrb[84].mxu0  ;;  %6599 = vmatmul.mubr.msk.f32.gmra.mrb[144].mxu1 %vm1277_vm3, %v4600_v8 }
 0x44a   : > { %v4507_v24 = vadd.f32 %v6550_v10, %v8219_v56  ;;  %v4388_v30 = vpop.f32.mrb[85].mxu0  ;;  %v4602_v12 = vsel %vm4537_vm6, %v4505_v0, %v4570_v21 }
 0x44b   : > { %v4506_v11 = vadd.f32 %v8219_v56, %v4388_v30  ;;  %v4601_v5 = vsel %vm4536_vm7, %v4504_v4, %v4569_v9 }
 0x44c   : > { %v4572_v7 = vmul.f32 %v8221_v1, %v4507_v24  ;;  %6601 = vmatprep.mubr.msk.f32.mxu1 %vm1277_vm3, %v4601_v5  ;;  %vm4539_vm8 = vcmp.ge.f32.partialorder %v4507_v24, 0.0 }
 0x44d   : > { %vm4538_vm9 = vcmp.ge.f32.partialorder %v4506_v11, 0.0  ;;  %v4571_v18 = vmul.f32 %v8221_v1, %v4506_v11  ;;  %v6553_v42 = vpop.f32.mrb[86].mxu0  ;;  %6602 = vmatmul.mubr.msk.f32.gmra.mrb[146].mxu1 %vm1277_vm3, %v4602_v12 }
 0x44e   : > { %v4509_v28 = vadd.f32 %v6553_v42, %v8219_v56  ;;  %v4398_v25 = vpop.f32.mrb[87].mxu0  ;;  %v4604_v45 = vsel %vm4539_vm8, %v4507_v24, %v4572_v7 }
 0x44f   : > { %v4508_v47 = vadd.f32 %v8219_v56, %v4398_v25  ;;  %v4603_v35 = vsel %vm4538_vm9, %v4506_v11, %v4571_v18 }
 0x450   : > { %v4574_v23 = vmul.f32 %v8221_v1, %v4509_v28  ;;  %6604 = vmatprep.mubr.msk.f32.mxu1 %vm1277_vm3, %v4603_v35  ;;  %vm4541_vm0 = vcmp.ge.f32.partialorder %v4509_v28, 0.0 }
 0x451   : > { %vm4540_vm10 = vcmp.ge.f32.partialorder %v4508_v47, 0.0  ;;  %v4573_v36 = vmul.f32 %v8221_v1, %v4508_v47  ;;  %v6556_v49 = vpop.f32.mrb[88].mxu0  ;;  %6605 = vmatmul.mubr.msk.f32.gmra.mrb[148].mxu1 %vm1277_vm3, %v4604_v45 }
 0x452   : > { %v4511_v51 = vadd.f32 %v6556_v49, %v8219_v56  ;;  %v4408_v19 = vpop.f32.mrb[89].mxu0  ;;  %v4606_v52 = vsel %vm4541_vm0, %v4509_v28, %v4574_v23 }
 0x453   : > { %v4510_v20 = vadd.f32 %v8219_v56, %v4408_v19  ;;  %v4605_v31 = vsel %vm4540_vm10, %v4508_v47, %v4573_v36 }
 0x454   : > { %v4576_v48 = vmul.f32 %v8221_v1, %v4511_v51  ;;  %6607 = vmatprep.mubr.msk.f32.mxu1 %vm1277_vm3, %v4605_v31  ;;  %vm4543_vm11 = vcmp.ge.f32.partialorder %v4511_v51, 0.0 }
 0x455   : > { %vm4542_vm12 = vcmp.ge.f32.partialorder %v4510_v20, 0.0  ;;  %v4575_v44 = vmul.f32 %v8221_v1, %v4510_v20  ;;  %v6559_v6 = vpop.f32.mrb[90].mxu0  ;;  %6608 = vmatmul.mubr.msk.f32.gmra.mrb[150].mxu1 %vm1277_vm3, %v4606_v52 }
 0x456   : > { %v4513_v53 = vadd.f32 %v6559_v6, %v8219_v56  ;;  %v4418_v32 = vpop.f32.mrb[91].mxu0  ;;  %v4608_v55 = vsel %vm4543_vm11, %v4511_v51, %v4576_v48 }
 0x457   : > { %v4512_v27 = vadd.f32 %v8219_v56, %v4418_v32  ;;  %v4607_v41 = vsel %vm4542_vm12, %v4510_v20, %v4575_v44 }
 0x458   : > { %v4578_v54 = vmul.f32 %v8221_v1, %v4513_v53  ;;  %6610 = vmatprep.mubr.msk.f32.mxu1 %vm1277_vm3, %v4607_v41  ;;  %vm4545_vm13 = vcmp.ge.f32.partialorder %v4513_v53, 0.0 }
 0x459   : > { %vm4544_vm14 = vcmp.ge.f32.partialorder %v4512_v27, 0.0  ;;  %v4577_v13 = vmul.f32 %v8221_v1, %v4512_v27  ;;  %v6562_v63 = vpop.f32.mrb[92].mxu0  ;;  %6611 = vmatmul.mubr.msk.f32.gmra.mrb[152].mxu1 %vm1277_vm3, %v4608_v55 }
 0x45a   : > { %v4515_v57 = vadd.f32 %v6562_v63, %v8219_v56  ;;  %v4428_v38 = vpop.f32.mrb[93].mxu0  ;;  %v4610_v26 = vsel %vm4545_vm13, %v4513_v53, %v4578_v54 }
 0x45b   : > { %v4514_v14 = vadd.f32 %v8219_v56, %v4428_v38  ;;  %v4609_v59 = vsel %vm4544_vm14, %v4512_v27, %v4577_v13 }
 0x45c   : > { %v4580_v58 = vmul.f32 %v8221_v1, %v4515_v57  ;;  %6613 = vmatprep.mubr.msk.f32.mxu1 %vm1277_vm3, %v4609_v59  ;;  %vm4547_vm15 = vcmp.ge.f32.partialorder %v4515_v57, 0.0 }
 0x45d   : > { %vm4546_vm1 = vcmp.ge.f32.partialorder %v4514_v14, 0.0  ;;  %v4579_v60 = vmul.f32 %v8221_v1, %v4514_v14  ;;  %v6565_v61 = vpop.f32.mrb[94].mxu0  ;;  %6614 = vmatmul.mubr.msk.f32.gmra.mrb[154].mxu1 %vm1277_vm3, %v4610_v26 }
 0x45e   : > { %v4517_v37 = vadd.f32 %v6565_v61, %v8219_v56  ;;  %v4438_v62 = vpop.f32.mrb[95].mxu0  ;;  %v4612_v22 = vsel %vm4547_vm15, %v4515_v57, %v4580_v58 }
 0x45f   : > { %v4516_v40 = vadd.f32 %v8219_v56, %v4438_v62  ;;  %v4611_v16 = vsel %vm4546_vm1, %v4514_v14, %v4579_v60  ;;  %v8323_v56 = vld [vmem:[%s8583_s21] ss:$0 sm:$0xff] }
 0x460   : > { %v4582_v33 = vmul.f32 %v8221_v1, %v4517_v37  ;;  %6616 = vmatprep.mubr.msk.f32.mxu1 %vm1277_vm3, %v4611_v16  ;;  %vm4549_vm2 = vcmp.ge.f32.partialorder %v4517_v37, 0.0 }
 0x461   : > { %vm4548_vm4 = vcmp.ge.f32.partialorder %v4516_v40, 0.0  ;;  %v4581_v2 = vmul.f32 %v8221_v1, %v4516_v40  ;;  %6617 = vmatmul.mubr.msk.f32.gmra.mrb[156].mxu1 %vm1277_vm3, %v4612_v22 }
 0x462   : > { %v4614_v17 = vsel %vm4549_vm2, %v4517_v37, %v4582_v33 }
 0x463   : > { %v4613_v50 = vsel %vm4548_vm4, %v4516_v40, %v4581_v2 }
 0x464   : > { %6619 = vmatprep.mubr.msk.f32.mxu1 %vm1277_vm3, %v4613_v50 }
 0x465   : > { %6620 = vmatmul.mubr.msk.f32.gmra.mrb[158].mxu1 %vm1277_vm3, %v4614_v17 }
 0x4fc   : > { %v6576_v15 = vpop.f32.mrb[128].mxu1 }
 0x4fd   : > { %v4794_v29 = vadd.f32 %v6576_v15, %v8323_v56  ;;  %v4788_v1 = vpop.f32.mrb[129].mxu1 }
 0x4fe   : > { %v4789_v3 = vadd.f32 %v8323_v56, %v4788_v1 }
 0x4ff   : > { %4949 = vst.msk [vmem:[%s8327_s0 + $0x8] sm:$0xff] %vm4947_vm5, %v4794_v29 }
 0x500   : > { %4948 = vst.msk [vmem:[%s8327_s0] sm:$0xff] %vm4947_vm5, %v4789_v3  ;;  %v6579_v46 = vpop.f32.mrb[130].mxu1 }
 0x501   : > { %v4804_v39 = vadd.f32 %v6579_v46, %v8323_v56  ;;  %v4798_v0 = vpop.f32.mrb[131].mxu1 }
 0x502   : > { %v4799_v34 = vadd.f32 %v8323_v56, %v4798_v0 }
 0x503   : > { %4951 = vst.msk [vmem:[%s8327_s0 + $0x18] sm:$0xff] %vm4947_vm5, %v4804_v39 }
 0x504   : > { %4950 = vst.msk [vmem:[%s8327_s0 + $0x10] sm:$0xff] %vm4947_vm5, %v4799_v34  ;;  %v6582_v4 = vpop.f32.mrb[132].mxu1 }
 0x505   : > { %v4814_v43 = vadd.f32 %v6582_v4, %v8323_v56  ;;  %v4808_v21 = vpop.f32.mrb[133].mxu1 }
 0x506   : > { %v4809_v8 = vadd.f32 %v8323_v56, %v4808_v21 }
 0x507   : > { %4953 = vst.msk [vmem:[%s8327_s0 + $0x28] sm:$0xff] %vm4947_vm5, %v4814_v43 }
 0x508   : > { %4952 = vst.msk [vmem:[%s8327_s0 + $0x20] sm:$0xff] %vm4947_vm5, %v4809_v8  ;;  %v6585_v9 = vpop.f32.mrb[134].mxu1 }
 0x509   : > { %v4824_v10 = vadd.f32 %v6585_v9, %v8323_v56  ;;  %v4818_v24 = vpop.f32.mrb[135].mxu1 }
 0x50a   : > { %v4819_v30 = vadd.f32 %v8323_v56, %v4818_v24 }
 0x50b   : > { %4955 = vst.msk [vmem:[%s8327_s0 + $0x38] sm:$0xff] %vm4947_vm5, %v4824_v10 }
 0x50c   : > { %4954 = vst.msk [vmem:[%s8327_s0 + $0x30] sm:$0xff] %vm4947_vm5, %v4819_v30  ;;  %v6588_v11 = vpop.f32.mrb[136].mxu1 }
 0x50d   : > { %v4834_v5 = vadd.f32 %v6588_v11, %v8323_v56  ;;  %v4828_v7 = vpop.f32.mrb[137].mxu1 }
 0x50e   : > { %v4829_v12 = vadd.f32 %v8323_v56, %v4828_v7 }
 0x50f   : > { %4957 = vst.msk [vmem:[%s8327_s0 + $0x48] sm:$0xff] %vm4947_vm5, %v4834_v5 }
 0x510   : > { %4956 = vst.msk [vmem:[%s8327_s0 + $0x40] sm:$0xff] %vm4947_vm5, %v4829_v12  ;;  %v6591_v18 = vpop.f32.mrb[138].mxu1 }
 0x511   : > { %v4844_v42 = vadd.f32 %v6591_v18, %v8323_v56  ;;  %v4838_v28 = vpop.f32.mrb[139].mxu1 }
 0x512   : > { %v4839_v25 = vadd.f32 %v8323_v56, %v4838_v28 }
 0x513   : > { %4959 = vst.msk [vmem:[%s8327_s0 + $0x58] sm:$0xff] %vm4947_vm5, %v4844_v42 }
 0x514   : > { %4958 = vst.msk [vmem:[%s8327_s0 + $0x50] sm:$0xff] %vm4947_vm5, %v4839_v25  ;;  %v6594_v47 = vpop.f32.mrb[140].mxu1 }
 0x515   : > { %v4854_v35 = vadd.f32 %v6594_v47, %v8323_v56  ;;  %v4848_v23 = vpop.f32.mrb[141].mxu1 }
 0x516   : > { %v4849_v45 = vadd.f32 %v8323_v56, %v4848_v23 }
 0x517   : > { %4961 = vst.msk [vmem:[%s8327_s0 + $0x68] sm:$0xff] %vm4947_vm5, %v4854_v35 }
 0x518   : > { %4960 = vst.msk [vmem:[%s8327_s0 + $0x60] sm:$0xff] %vm4947_vm5, %v4849_v45  ;;  %v6597_v36 = vpop.f32.mrb[142].mxu1 }
 0x519   : > { %v4864_v49 = vadd.f32 %v6597_v36, %v8323_v56  ;;  %v4858_v51 = vpop.f32.mrb[143].mxu1 }
 0x51a   : > { %v4859_v19 = vadd.f32 %v8323_v56, %v4858_v51 }
 0x51b   : > { %4963 = vst.msk [vmem:[%s8327_s0 + $0x78] sm:$0xff] %vm4947_vm5, %v4864_v49 }
 0x51c   : > { %4962 = vst.msk [vmem:[%s8327_s0 + $0x70] sm:$0xff] %vm4947_vm5, %v4859_v19  ;;  %v6600_v20 = vpop.f32.mrb[144].mxu1 }
 0x51d   : > { %v4874_v31 = vadd.f32 %v6600_v20, %v8323_v56  ;;  %v4868_v48 = vpop.f32.mrb[145].mxu1 }
 0x51e   : > { %v4869_v52 = vadd.f32 %v8323_v56, %v4868_v48 }
 0x51f   : > { %4965 = vst.msk [vmem:[%s8327_s0 + $0x88] sm:$0xff] %vm4947_vm5, %v4874_v31 }
 0x520   : > { %4964 = vst.msk [vmem:[%s8327_s0 + $0x80] sm:$0xff] %vm4947_vm5, %v4869_v52  ;;  %v6603_v44 = vpop.f32.mrb[146].mxu1 }
 0x521   : > { %v4884_v6 = vadd.f32 %v6603_v44, %v8323_v56  ;;  %v4878_v53 = vpop.f32.mrb[147].mxu1 }
 0x522   : > { %v4879_v32 = vadd.f32 %v8323_v56, %v4878_v53 }
 0x523   : > { %4967 = vst.msk [vmem:[%s8327_s0 + $0x98] sm:$0xff] %vm4947_vm5, %v4884_v6 }
 0x524   : > { %4966 = vst.msk [vmem:[%s8327_s0 + $0x90] sm:$0xff] %vm4947_vm5, %v4879_v32  ;;  %v6606_v27 = vpop.f32.mrb[148].mxu1 }
 0x525   : > { %v4894_v41 = vadd.f32 %v6606_v27, %v8323_v56  ;;  %v4888_v54 = vpop.f32.mrb[149].mxu1 }
 0x526   : > { %v4889_v55 = vadd.f32 %v8323_v56, %v4888_v54 }
 0x527   : > { %4969 = vst.msk [vmem:[%s8327_s0 + $0xa8] sm:$0xff] %vm4947_vm5, %v4894_v41 }
 0x528   : > { %4968 = vst.msk [vmem:[%s8327_s0 + $0xa0] sm:$0xff] %vm4947_vm5, %v4889_v55  ;;  %v6609_v13 = vpop.f32.mrb[150].mxu1 }
 0x529   : > { %v4904_v63 = vadd.f32 %v6609_v13, %v8323_v56  ;;  %v4898_v57 = vpop.f32.mrb[151].mxu1 }
 0x52a   : > { %v4899_v38 = vadd.f32 %v8323_v56, %v4898_v57 }
 0x52b   : > { %4971 = vst.msk [vmem:[%s8327_s0 + $0xb8] sm:$0xff] %vm4947_vm5, %v4904_v63 }
 0x52c   : > { %4970 = vst.msk [vmem:[%s8327_s0 + $0xb0] sm:$0xff] %vm4947_vm5, %v4899_v38  ;;  %v6612_v14 = vpop.f32.mrb[152].mxu1 }
 0x52d   : > { %v4914_v59 = vadd.f32 %v6612_v14, %v8323_v56  ;;  %v4908_v58 = vpop.f32.mrb[153].mxu1 }
 0x52e   : > { %v4909_v26 = vadd.f32 %v8323_v56, %v4908_v58 }
 0x52f   : > { %4973 = vst.msk [vmem:[%s8327_s0 + $0xc8] sm:$0xff] %vm4947_vm5, %v4914_v59 }
 0x530   : > { %4972 = vst.msk [vmem:[%s8327_s0 + $0xc0] sm:$0xff] %vm4947_vm5, %v4909_v26  ;;  %v6615_v60 = vpop.f32.mrb[154].mxu1 }
 0x531   : > { %v4924_v61 = vadd.f32 %v6615_v60, %v8323_v56  ;;  %v4918_v37 = vpop.f32.mrb[155].mxu1 }
 0x532   : > { %v4919_v62 = vadd.f32 %v8323_v56, %v4918_v37 }
 0x533   : > { %4975 = vst.msk [vmem:[%s8327_s0 + $0xd8] sm:$0xff] %vm4947_vm5, %v4924_v61 }
 0x534   : > { %4974 = vst.msk [vmem:[%s8327_s0 + $0xd0] sm:$0xff] %vm4947_vm5, %v4919_v62  ;;  %v6618_v40 = vpop.f32.mrb[156].mxu1 }
 0x535   : > { %v4934_v16 = vadd.f32 %v6618_v40, %v8323_v56  ;;  %v4928_v33 = vpop.f32.mrb[157].mxu1 }
 0x536   : > { %v4929_v22 = vadd.f32 %v8323_v56, %v4928_v33  ;;  %4986 = sbr.rel (!%p7101_p4) target bundleno = 1397 (0x575), region = 116 }
 0x537   : > { %4977 = vst.msk [vmem:[%s8327_s0 + $0xe8] sm:$0xff] %vm4947_vm5, %v4934_v16 }
 0x538   : > { %4976 = vst.msk [vmem:[%s8327_s0 + $0xe0] sm:$0xff] %vm4947_vm5, %v4929_v22  ;;  %v6621_v2 = vpop.f32.mrb[158].mxu1 }
 0x539   : > { %v4944_v50 = vadd.f32 %v6621_v2, %v8323_v56  ;;  %v4938_v17 = vpop.f32.mrb[159].mxu1 }
 0x53a   : > { %v4939_v15 = vadd.f32 %v8323_v56, %v4938_v17 }
 0x53b   : > { %4979 = vst.msk [vmem:[%s8327_s0 + $0xf8] sm:$0xff] %vm4947_vm5, %v4944_v50 }
 0x53c   : > { %4978 = vst.msk [vmem:[%s8327_s0 + $0xf0] sm:$0xff] %vm4947_vm5, %v4939_v15 }
 0x53d   : > { %s8622_s3 = smov (!%p4989_p6, %s4988_s3), 32 }
 0x53e   : > { %s5702_s1 = sshll.u32 %s8622_s3, 7 }
 0x53f   : > { %p5705_p7 = scmp.eq.s32.totalorder %s5702_s1, 0 }
 0x540   : > { %s8436_s29 = sshrl.u32 (!%p5705_p7), %s8622_s3, 5 }
 0x541   : > { %4997 = sbr.rel (%p5705_p7) target bundleno = 1397 (0x575), region = 120  ;;  %p5706_p4 = scmp.le.s32.totalorder (!%p5705_p7), %s8436_s29, 0 }
 0x548   : > { %5290 = sbr.rel (%p5706_p4) target bundleno = 1376 (0x560), region = 203  ;;  %s8613_s30 = smov (!%p5706_p4), %s8430_s27 }
 0x549   : > { %s8614_s5 = smov (!%p5706_p4), %s8327_s0  ;;  %s8445_s2 = smov (!%p5706_p4), 0  }
 0x54a   : > { %s8447_s25 = smov (!%p5706_p4), 0  }
 0x54f LB: >> { %v5121_v56 = vld [vmem:[%s6934_s5] sm:$0xff]  ;;  %v5123_v29 = vld [vmem:[%s6934_s5 + $0x8] sm:$0xff]  ;;  %v5125_v1 = vld [vmem:[%s6934_s5 + $0x10] sm:$0xff]  ;;  %s5185_s28 = sadd.s32 1, %s6938_s2  ;;  %s5115_s25 = sadd.s32 1, %s6942_s25   ;;  %s6942_s25 = sphi %s8447_s25, %s5115_s25   ;;  %s6938_s2 = sphi %s8445_s2, %s8617_s2   ;;  %s6934_s5 = sphi %s8614_s5, %s8616_s5   ;;  %s6930_s30 = sphi %s8613_s30, %s8615_s30  }
 0x550   : >> { %5122 = vst [vmem:[%s6930_s30] sm:$0xff] %v5121_v56  ;;  %5124 = vst [vmem:[%s6930_s30 + $0x8] sm:$0xff] %v5123_v29  ;;  %v5127_v3 = vld [vmem:[%s6934_s5 + $0x18] sm:$0xff]  ;;  %v5129_v46 = vld [vmem:[%s6934_s5 + $0x20] sm:$0xff]  ;;  %p5186_p8 = scmp.ge.s32.totalorder %s5185_s28, %s8436_s29  ;;  %p5114_p9 = scmp.ge.s32.totalorder %s5115_s25, %s8436_s29 }
 0x551   : >> { %5126 = vst [vmem:[%s6930_s30 + $0x10] sm:$0xff] %v5125_v1  ;;  %v5131_v39 = vld [vmem:[%s6934_s5 + $0x28] sm:$0xff]  ;;  %5128 = vst [vmem:[%s6930_s30 + $0x18] sm:$0xff] %v5127_v3  ;;  %v5133_v0 = vld [vmem:[%s6934_s5 + $0x30] sm:$0xff] }
 0x552   : >> { %5130 = vst [vmem:[%s6930_s30 + $0x20] sm:$0xff] %v5129_v46  ;;  %5132 = vst [vmem:[%s6930_s30 + $0x28] sm:$0xff] %v5131_v39  ;;  %v5135_v34 = vld [vmem:[%s6934_s5 + $0x38] sm:$0xff]  ;;  %v5137_v4 = vld [vmem:[%s6934_s5 + $0x40] sm:$0xff]  ;;  %s8624_s28 = smov (%p5186_p8, %s5185_s28), 0 }
 0x553   : >> { %5134 = vst [vmem:[%s6930_s30 + $0x30] sm:$0xff] %v5133_v0  ;;  %5136 = vst [vmem:[%s6930_s30 + $0x38] sm:$0xff] %v5135_v34  ;;  %v5139_v43 = vld [vmem:[%s6934_s5 + $0x48] sm:$0xff]  ;;  %v5141_v21 = vld [vmem:[%s6934_s5 + $0x50] sm:$0xff]  ;;  %s5707_s6 = sshll.u32 %s8624_s28, 8  ;;  %s8617_s2 = smov %s8624_s28 }
 0x554   : >> { %5138 = vst [vmem:[%s6930_s30 + $0x40] sm:$0xff] %v5137_v4  ;;  %v5143_v8 = vld [vmem:[%s6934_s5 + $0x58] sm:$0xff]  ;;  %5140 = vst [vmem:[%s6930_s30 + $0x48] sm:$0xff] %v5139_v43  ;;  %v5145_v9 = vld [vmem:[%s6934_s5 + $0x60] sm:$0xff]  ;;  %s8503_s23 = scalar_lea.vmem %s8327_s0, %s5707_s6 [#allocation4]   ;;  %s5191_s26 = scalar_lea.vmem %s8430_s27, %s5707_s6  }
 0x555   : >> { %5142 = vst [vmem:[%s6930_s30 + $0x50] sm:$0xff] %v5141_v21  ;;  %5144 = vst [vmem:[%s6930_s30 + $0x58] sm:$0xff] %v5143_v8  ;;  %v5147_v10 = vld [vmem:[%s6934_s5 + $0x68] sm:$0xff]  ;;  %v5149_v24 = vld [vmem:[%s6934_s5 + $0x70] sm:$0xff] }
 0x556   : >> { %5146 = vst [vmem:[%s6930_s30 + $0x60] sm:$0xff] %v5145_v9  ;;  %5148 = vst [vmem:[%s6930_s30 + $0x68] sm:$0xff] %v5147_v10  ;;  %v5151_v30 = vld [vmem:[%s6934_s5 + $0x78] sm:$0xff]  ;;  %v5153_v11 = vld [vmem:[%s6934_s5 + $0x80] sm:$0xff] }
 0x557   : >> { %5150 = vst [vmem:[%s6930_s30 + $0x70] sm:$0xff] %v5149_v24  ;;  %v5155_v5 = vld [vmem:[%s6934_s5 + $0x88] sm:$0xff]  ;;  %5152 = vst [vmem:[%s6930_s30 + $0x78] sm:$0xff] %v5151_v30  ;;  %v5157_v7 = vld [vmem:[%s6934_s5 + $0x90] sm:$0xff] }
 0x558   : >> { %5154 = vst [vmem:[%s6930_s30 + $0x80] sm:$0xff] %v5153_v11  ;;  %5156 = vst [vmem:[%s6930_s30 + $0x88] sm:$0xff] %v5155_v5  ;;  %v5159_v12 = vld [vmem:[%s6934_s5 + $0x98] sm:$0xff]  ;;  %v5161_v18 = vld [vmem:[%s6934_s5 + $0xa0] sm:$0xff] }
 0x559   : >> { %5158 = vst [vmem:[%s6930_s30 + $0x90] sm:$0xff] %v5157_v7  ;;  %5160 = vst [vmem:[%s6930_s30 + $0x98] sm:$0xff] %v5159_v12  ;;  %v5163_v42 = vld [vmem:[%s6934_s5 + $0xa8] sm:$0xff]  ;;  %v5165_v28 = vld [vmem:[%s6934_s5 + $0xb0] sm:$0xff]  ;;  %5117 = sbr.rel (!%p5114_p9) target bundleno = 1359 (0x54f), region = 209 }
 0x55a   : >> { %5162 = vst [vmem:[%s6930_s30 + $0xa0] sm:$0xff] %v5161_v18  ;;  %v5167_v25 = vld [vmem:[%s6934_s5 + $0xb8] sm:$0xff]  ;;  %5164 = vst [vmem:[%s6930_s30 + $0xa8] sm:$0xff] %v5163_v42  ;;  %v5169_v47 = vld [vmem:[%s6934_s5 + $0xc0] sm:$0xff] }
 0x55b   : >> { %5166 = vst [vmem:[%s6930_s30 + $0xb0] sm:$0xff] %v5165_v28  ;;  %5168 = vst [vmem:[%s6930_s30 + $0xb8] sm:$0xff] %v5167_v25  ;;  %v5171_v35 = vld [vmem:[%s6934_s5 + $0xc8] sm:$0xff]  ;;  %v5173_v23 = vld [vmem:[%s6934_s5 + $0xd0] sm:$0xff] }
 0x55c   : >> { %5170 = vst [vmem:[%s6930_s30 + $0xc0] sm:$0xff] %v5169_v47  ;;  %5172 = vst [vmem:[%s6930_s30 + $0xc8] sm:$0xff] %v5171_v35  ;;  %v5175_v45 = vld [vmem:[%s6934_s5 + $0xd8] sm:$0xff]  ;;  %v5177_v36 = vld [vmem:[%s6934_s5 + $0xe0] sm:$0xff] }
 0x55d   : >> { %5174 = vst [vmem:[%s6930_s30 + $0xd0] sm:$0xff] %v5173_v23  ;;  %v5179_v49 = vld [vmem:[%s6934_s5 + $0xe8] sm:$0xff]  ;;  %5176 = vst [vmem:[%s6930_s30 + $0xd8] sm:$0xff] %v5175_v45  ;;  %v5181_v51 = vld [vmem:[%s6934_s5 + $0xf0] sm:$0xff] }
 0x55e   : >> { %5178 = vst [vmem:[%s6930_s30 + $0xe0] sm:$0xff] %v5177_v36  ;;  %5180 = vst [vmem:[%s6930_s30 + $0xe8] sm:$0xff] %v5179_v49  ;;  %v5183_v19 = vld [vmem:[%s6934_s5 + $0xf8] sm:$0xff]  ;;  %s8616_s5 = smov %s8503_s23 }
 0x55f   : >> { %5182 = vst [vmem:[%s6930_s30 + $0xf0] sm:$0xff] %v5181_v51  ;;  %5184 = vst [vmem:[%s6930_s30 + $0xf8] sm:$0xff] %v5183_v19  ;;  %s8615_s30 = smov %s5191_s26 }
 0x560 PF: > { %s8544_s8 = sand.u32 31, %s8622_s3   ;;  %s5718_s1 = sshll.u32 %s8436_s29, 8 }
 0x561   : > { %s5196_s6 = scalar_lea.vmem %s8327_s0, %s5718_s1 [#allocation4]   ;;  %s5198_s7 = scalar_lea.vmem %s8430_s27, %s5718_s1  }
 0x562   : > { %p5712_p10 = scmp.le.s32.totalorder %s8544_s8, 0 }
 0x563   : > { %s6944_s26 = smov (!%p5712_p10), %s5198_s7   ;;  %s6948_s23 = smov (!%p5712_p10), %s5196_s6  }
 0x564   : > { %5304 = sbr.rel (%p5712_p10) target bundleno = 1397 (0x575), region = 214  ;;  %s6952_s9 = smov (!%p5712_p10), 0  }
 0x565   : > { %s6956_s28 = smov (!%p5712_p10), 0  }
 0x56b LB: >> { %v5208_v20 = vld [vmem:[%s6950_s23] sm:$0xff]  ;;  %s5210_s3 = sadd.s32 1, %s6954_s9  ;;  %s5202_s28 = sadd.s32 1, %s6958_s28   ;;  %s6958_s28 = sphi %s6956_s28, %s5202_s28   ;;  %s6954_s9 = sphi %s6952_s9, %s6953_s9   ;;  %s6950_s23 = sphi %s6948_s23, %s5215_s23   ;;  %s6946_s26 = sphi %s6944_s26, %s5216_s26  }
 0x56c   : >> { %5209 = vst [vmem:[%s6946_s26] sm:$0xff] %v5208_v20  ;;  %p5211_p11 = scmp.ge.s32.totalorder %s5210_s3, %s8544_s8  ;;  %p5201_p12 = scmp.ge.s32.totalorder %s5202_s28, %s8544_s8 }
 0x56e   : >> { %s8626_s3 = smov (%p5211_p11, %s5210_s3), 0  ;;  %5204 = sbr.rel (!%p5201_p12) target bundleno = 1387 (0x56b), region = 220 }
 0x56f   : >> { %s5713_s0 = sshll.u32 %s8626_s3, 3  ;;  %s6953_s9 = smov %s8626_s3  }
 0x570   : >> { %s5215_s23 = scalar_lea.vmem %s5196_s6, %s5713_s0 [#allocation4]   ;;  %s5216_s26 = scalar_lea.vmem %s5198_s7, %s5713_s0  }
 0x575 PF: > { %s8618_s3 = sld [smem:[#allocation6_spill]]  ;;  %s8619_s28 = sld [smem:[#allocation7_spill]] }
 0x576   : > { %p30_p13 = scmp.ge.s32.totalorder %s7091_s4, 4   ;;  %s8620_s29 = smov %s7091_s4 }
 0x578   :  { %32 = sbr.rel (!%p30_p13) target bundleno = 13 (0xd), region = 231 }
 0x57f   :  { %5232 = vsyncpa [#allocation3], 1 }
 0x580   :  { %5234 = vsyncpa [#allocation3 + $0x1], 1 }

</bundles_post_ra>
